<compile_context>
chip_gen: v6e
topology: v6e:2x2x1
jax: 0.10.0
libtpu: 0.0.40
codegen_flags: <defaults>
</compile_context>

<pallas_src>
import functools

import jax
import jax.numpy as jnp
import numpy as np
from jax.experimental import pallas as pl
from jax.experimental.pallas import tpu as pltpu

# Architecture constants of the torch module.
_K1, _S1 = 7, 4
_K2, _S2 = 5, 2
_K3, _S3 = 3, 1
_FOLD = _S1 * _S2  # 8: conv2's sampling period measured in raw input pixels.


# ------------------------------ Pallas kernel -------------------------------

def _dqn_kernel(xt_ref, w1_ref, b1_ref, w2_ref, b2_ref, w3_ref, b3_ref,
                wfc1_hbm, bfc1_ref, wfc2_ref, bfc2_ref,
                out_ref,
                y1_ref, im2_ref, y2_ref, im3_ref, y3_ref, xfc_ref,
                wfc1_vmem, wfc1_sem,
                *, n_b, hb_sz, wb_sz, h2_sz, w2_sz, h3_sz, w3_sz):
    """Entire DQN forward.  Matmuls: bf16 operands, f32 accumulation (MXU);
    bias + ReLU in f32 (VPU); activations live in VMEM scratch."""
    f32 = jnp.float32
    bf16 = jnp.bfloat16

    # Kick off the fc1-weight DMA first; it completes while conv1-conv3 run.
    wfc1_cp = pltpu.make_async_copy(wfc1_hbm, wfc1_vmem, wfc1_sem)
    wfc1_cp.start()

    # ---- conv1: 4 taps, each a (128,256)x(256,128) MXU matmul ----
    acc1 = jnp.zeros((xt_ref.shape[1], w1_ref.shape[2]), f32)
    for t in range(xt_ref.shape[0]):
        acc1 += jnp.dot(xt_ref[t], w1_ref[t], preferred_element_type=f32)
    # Single bias broadcast + ReLU, one dense (128,128) store.
    y1_ref[...] = jnp.maximum(acc1 + b1_ref[...], 0.0).astype(bf16)

    # ---- conv2: (72, 9*128) im2col built with contiguous row copies, 1 dot --
    c1 = y1_ref.shape[1]                       # 128 folded channels
    a2 = int(round((w2_ref.shape[0] // c1) ** 0.5))   # 3 taps per axis
    for n in range(n_b):
        for ho in range(h2_sz):
            dst = (n * h2_sz + ho) * w2_sz
            for ah in range(a2):
                src = n * hb_sz * wb_sz + (ho + ah) * wb_sz
                for aw in range(a2):
                    im2_ref[pl.ds(dst, w2_sz), pl.ds((ah * a2 + aw) * c1, c1)] = \
                        y1_ref[pl.ds(src + aw, w2_sz), :]
    acc2 = jnp.dot(im2_ref[...], w2_ref[...], preferred_element_type=f32)
    y2_ref[...] = jnp.maximum(acc2 + b2_ref[...], 0.0).astype(bf16)

    # ---- conv3: (32, 9*64) im2col, 1 dot ----
    c2 = y2_ref.shape[1]                       # 64
    k3 = int(round((w3_ref.shape[0] // c2) ** 0.5))   # 3
    for n in range(n_b):
        for ho in range(h3_sz):
            dst = (n * h3_sz + ho) * w3_sz
            for kh in range(k3):
                src = n * h2_sz * w2_sz + (ho + kh) * w2_sz
                for kw in range(k3):
                    im3_ref[pl.ds(dst, w3_sz), pl.ds((kh * k3 + kw) * c2, c2)] = \
                        y2_ref[pl.ds(src + kw, w3_sz), :]
    acc3 = jnp.dot(im3_ref[...], w3_ref[...], preferred_element_type=f32)
    y3_ref[...] = jnp.maximum(acc3 + b3_ref[...], 0.0).astype(bf16)

    # ---- flatten conv3 output to (N, h3*w3*64) in (h, w, c) lane order ----
    c3 = y3_ref.shape[1]
    for n in range(n_b):
        for p in range(h3_sz * w3_sz):
            xfc_ref[pl.ds(n, 1), pl.ds(p * c3, c3)] = \
                y3_ref[pl.ds(n * h3_sz * w3_sz + p, 1), :]

    # ---- fc1 + fc2: whole batch at once, lane-dense (N, 128) output store ---
    wfc1_cp.wait()                              # wfc1 DMA hidden behind convs
    hid = jnp.dot(xfc_ref[...], wfc1_vmem[...], preferred_element_type=f32)
    hid = jnp.maximum(hid + bfc1_ref[...], 0.0).astype(bf16)
    out = jnp.dot(hid, wfc2_ref[...], preferred_element_type=f32)
    out_ref[...] = (out + bfc2_ref[...]).astype(out_ref.dtype)


# ------------------------------ forward wrapper ------------------------------

def dqn_forward(prep, x, *, n_actions):
    """Full DQN forward.  Out-of-kernel work: one small space-to-depth fold +
    tap staging of the raw input (XLA) and the final [:, :n_actions] slice."""
    N, C0, H, W = x.shape
    F = _FOLD
    assert H % F == 0 and W % F == 0, "demo wrapper assumes H, W divisible by 8"
    HB, WB = H // F, W // F
    h1 = (H - _K1) // _S1 + 1
    w1sp = (W - _K1) // _S1 + 1
    h2 = (h1 - _K2) // _S2 + 1
    w2sp = (w1sp - _K2) // _S2 + 1
    h3 = (h2 - _K3) // _S3 + 1
    w3sp = (w2sp - _K3) // _S3 + 1
    # The fold covers conv1's output grid plus exactly one padding phase
    # row/col (those phases only ever meet zero folded-weight entries).
    assert 2 * HB == h1 + 1 and 2 * WB == w1sp + 1

    # Space-to-depth fold (N,C,H,W)->(N,H/8,W/8,64*C), pad one folded row/col,
    # then stage the tap-major conv1 LHS: (A1*A1, N*HB*WB, 256), bf16.
    xf = x.transpose(0, 2, 3, 1).reshape(N, HB, F, WB, F, C0)
    xf = xf.transpose(0, 1, 3, 2, 4, 5).reshape(N, HB, WB, F * F * C0)
    xf = jnp.pad(xf, ((0, 0), (0, 1), (0, 1), (0, 0))).astype(jnp.bfloat16)
    a1 = int(round(prep["w1f"].shape[0] ** 0.5))          # 2 taps per axis
    xt = jnp.stack([xf[:, ah:ah + HB, aw:aw + WB, :].reshape(N * HB * WB,
                                                             F * F * C0)
                    for ah in range(a1) for aw in range(a1)])

    c1f = prep["w1f"].shape[2]      # 128 folded conv1 output channels
    k2_im = prep["w2f"].shape[0]    # 1152
    c2 = prep["w2f"].shape[1]       # 64
    k3_im = prep["w3f"].shape[0]    # 576
    c3 = prep["w3f"].shape[1]       # 64
    nf = prep["wfc1"].shape[0]      # 1024
    nh = prep["wfc1"].shape[1]      # 512
    npad = prep["wfc2"].shape[1]    # 128

    kernel = functools.partial(
        _dqn_kernel, n_b=N, hb_sz=HB, wb_sz=WB,
        h2_sz=h2, w2_sz=w2sp, h3_sz=h3, w3_sz=w3sp)

    vmem = functools.partial(pl.BlockSpec, memory_space=pltpu.MemorySpace.VMEM)
    out_pad = pl.pallas_call(
        kernel,
        out_shape=jax.ShapeDtypeStruct((N, npad), jnp.float32),
        in_specs=[vmem(), vmem(), vmem(), vmem(), vmem(), vmem(), vmem(),
                  pl.BlockSpec(memory_space=pl.ANY),   # wfc1 stays in HBM
                  vmem(), vmem(), vmem()],
        out_specs=vmem(),
        scratch_shapes=[
            pltpu.VMEM((N * HB * WB, c1f), jnp.bfloat16),       # y1 (128,128)
            pltpu.VMEM((N * h2 * w2sp, k2_im), jnp.bfloat16),   # conv2 im2col
            pltpu.VMEM((N * h2 * w2sp, c2), jnp.bfloat16),      # y2 (72,64)
            pltpu.VMEM((N * h3 * w3sp, k3_im), jnp.bfloat16),   # conv3 im2col
            pltpu.VMEM((N * h3 * w3sp, c3), jnp.bfloat16),      # y3 (32,64)
            pltpu.VMEM((N, nf), jnp.bfloat16),                  # fc1 input
            pltpu.VMEM((nf, nh), jnp.bfloat16),                 # wfc1 DMA dst
            pltpu.SemaphoreType.DMA,                            # wfc1 DMA sem
        ],
    )(xt, prep["w1f"], prep["b1f"], prep["w2f"], prep["b2"],
      prep["w3f"], prep["b3"], prep["wfc1"], prep["bfc1"],
      prep["wfc2"], prep["bfc2"])
    return out_pad[:, :n_actions]


# ------------------- one-time weight repacking (init time) -------------------

def prepare_params(params, n_actions):
    """Repack torch-layout params into the kernel's folded, im2col-flattened,
    lane-dense, bf16 layout.  Runs once at init -- outside the hot path."""
    w1 = np.asarray(params["conv1_w"], np.float32)   # (32, C0, 7, 7) OIHW
    b1 = np.asarray(params["conv1_b"], np.float32)
    w2 = np.asarray(params["conv2_w"], np.float32)   # (64, 32, 5, 5)
    b2 = np.asarray(params["conv2_b"], np.float32)
    w3 = np.asarray(params["conv3_w"], np.float32)   # (64, 64, 3, 3)
    b3 = np.asarray(params["conv3_b"], np.float32)
    fc1_w = np.asarray(params["fc1_w"], np.float32)  # (n_feat, 512) = torch.T
    fc1_b = np.asarray(params["fc1_b"], np.float32)
    fc2_w = np.asarray(params["fc2_w"], np.float32)  # (512, n_actions)
    fc2_b = np.asarray(params["fc2_b"], np.float32)

    C1o, C0, K1, _ = w1.shape
    C2o, C1i, K2, _ = w2.shape
    C3o, C3i, K3, _ = w3.shape
    S1, S2 = _S1, _S2
    F = _FOLD

    # conv1 -> A1 x A1 stride-1 taps on the F-folded input; output channels are
    # laid out as (h-phase, w-phase, co), i.e. already in conv2's 2x2 fold.
    A1 = -(-(S1 * (S2 - 1) + K1) // F)               # = 2
    w1f = np.zeros((A1, A1, F * F * C0, S2 * S2 * C1o), np.float32)
    for ah in range(A1):
        for aw in range(A1):
            for rh in range(F):
                for rw in range(F):
                    for hop in range(S2):
                        for wop in range(S2):
                            kh = F * ah + rh - S1 * hop
                            kw = F * aw + rw - S1 * wop
                            if 0 <= kh < K1 and 0 <= kw < K1:
                                ri = (rh * F + rw) * C0
                                ci = (hop * S2 + wop) * C1o
                                w1f[ah, aw, ri:ri + C0, ci:ci + C1o] = \
                                    w1[:, :, kh, kw].T
    w1f = w1f.reshape(A1 * A1, F * F * C0, S2 * S2 * C1o)   # (4, 256, 128)
    b1f = np.tile(b1, S2 * S2)                               # (128,)

    # conv2 -> 3x3 stride-1 taps over the 2x2-folded conv1 output, flattened to
    # an im2col weight (9*128, 64) matching the kernel's column order.
    A2 = -(-K2 // S2)                                # = 3
    w2f = np.zeros((A2, A2, S2 * S2 * C1i, C2o), np.float32)
    for ah in range(A2):
        for aw in range(A2):
            for rh in range(S2):
                for rw in range(S2):
                    kh, kw = S2 * ah + rh, S2 * aw + rw
                    if kh < K2 and kw < K2:
                        ri = (rh * S2 + rw) * C1i
                        w2f[ah, aw, ri:ri + C1i, :] = w2[:, :, kh, kw].T
    w2f = w2f.reshape(A2 * A2 * S2 * S2 * C1i, C2o)          # (1152, 64)

    # conv3: im2col weight (9*64, 64), row order (kh, kw, ci).
    w3f = np.transpose(w3, (2, 3, 1, 0)).reshape(K3 * K3 * C3i, C3o)

    # fc1: permute rows from torch's (c, h, w) flatten order to the kernel's
    # (h, w, c) order, flattened to (n_feat, 512).
    n_feat, n_hidden = fc1_w.shape
    h3 = int(round((n_feat // C3o) ** 0.5))
    fc1t = fc1_w.reshape(C3o, h3, h3, n_hidden).transpose(1, 2, 0, 3)
    fc1t = fc1t.reshape(n_feat, n_hidden)

    # fc2: pad the action dim to a lane-dense 128 so the final store is
    # unmasked; the wrapper slices the real actions back out.
    npad = max(128, -(-n_actions // 128) * 128)
    fc2_wp = np.zeros((n_hidden, npad), np.float32)
    fc2_wp[:, :n_actions] = fc2_w
    fc2_bp = np.zeros((npad,), np.float32)
    fc2_bp[:n_actions] = fc2_b

    bf16 = jnp.bfloat16
    return {
        "w1f": jnp.asarray(w1f, bf16),
        "b1f": jnp.asarray(b1f.reshape(1, -1), jnp.float32),
        "w2f": jnp.asarray(w2f, bf16),
        "b2": jnp.asarray(b2.reshape(1, -1), jnp.float32),
        "w3f": jnp.asarray(w3f, bf16),
        "b3": jnp.asarray(b3.reshape(1, -1), jnp.float32),
        "wfc1": jnp.asarray(fc1t, bf16),
        "bfc1": jnp.asarray(fc1_b.reshape(1, -1), jnp.float32),
        "wfc2": jnp.asarray(fc2_wp, bf16),
        "bfc2": jnp.asarray(fc2_bp.reshape(1, -1), jnp.float32),
    }


# ---------------------------- reference (pure JAX) ---------------------------

def dqn_reference(params, x):
    hp = jax.lax.Precision.HIGHEST

    def conv(x, w, b, s):
        y = jax.lax.conv_general_dilated(
            x, w, window_strides=(s, s), padding="VALID",
            dimension_numbers=("NCHW", "OIHW", "NCHW"), precision=hp)
        return y + b[None, :, None, None]

    x = jax.nn.relu(conv(x, params["conv1_w"], params["conv1_b"], 4))
    x = jax.nn.relu(conv(x, params["conv2_w"], params["conv2_b"], 2))
    x = jax.nn.relu(conv(x, params["conv3_w"], params["conv3_b"], 1))
    x = x.reshape(x.shape[0], -1)
    x = jax.nn.relu(jnp.dot(x, params["fc1_w"], precision=hp) + params["fc1_b"])
    return jnp.dot(x, params["fc2_w"], precision=hp) + params["fc2_b"]


# --------------------------------- main --------------------------------------

def init_params(key, in_ch, n_actions, n_features):
    ks = jax.random.split(key, 10)
    s = 0.05
    return {
        "conv1_w": s * jax.random.normal(ks[0], (32, in_ch, 7, 7), jnp.float32),
        "conv1_b": s * jax.random.normal(ks[1], (32,), jnp.float32),
        "conv2_w": s * jax.random.normal(ks[2], (64, 32, 5, 5), jnp.float32),
        "conv2_b": s * jax.random.normal(ks[3], (64,), jnp.float32),
        "conv3_w": s * jax.random.normal(ks[4], (64, 64, 3, 3), jnp.float32),
        "conv3_b": s * jax.random.normal(ks[5], (64,), jnp.float32),
        # FC weights stored as (in, out) == torch weight.T
        "fc1_w": s * jax.random.normal(ks[6], (n_features, 512), jnp.float32),
        "fc1_b": s * jax.random.normal(ks[7], (512,), jnp.float32),
        "fc2_w": s * jax.random.normal(ks[8], (512, n_actions), jnp.float32),
        "fc2_b": s * jax.random.normal(ks[9], (n_actions,), jnp.float32),
    }


if __name__ == "__main__":
    # Small-shape DQN: input_shape = (4, 64, 64), batch = 2, n_actions = 6.
    # (64 is the smallest 8-divisible spatial size for which all three convs
    # are valid; 16 would make conv2's window larger than its input.)
    batch, in_ch, H, W = 2, 4, 64, 64
    n_actions = 6

    h1 = (H - 7) // 4 + 1          # 15
    h2 = (h1 - 5) // 2 + 1         # 6
    h3 = (h2 - 3) // 1 + 1         # 4
    n_features = 64 * h3 * h3      # 1024 (== module's _get_conv_out)

    key = jax.random.PRNGKey(0)
    k_x, k_p = jax.random.split(key)
    x = jax.random.normal(k_x, (batch, in_ch, H, W), jnp.float32)
    params = init_params(k_p, in_ch, n_actions, n_features)

    prep = prepare_params(params, n_actions)         # one-time weight repack
    fwd = jax.jit(functools.partial(dqn_forward, n_actions=n_actions))

    out = jax.block_until_ready(fwd(prep, x))
    assert out.shape == (batch, n_actions), out.shape

    ref = jax.block_until_ready(dqn_reference(params, x))
    # bf16 MXU operands with f32 accumulation => loosened tolerance.
    assert jnp.allclose(out, ref, rtol=5e-2, atol=5e-2), (
        float(jnp.max(jnp.abs(out - ref))))

    print("KERNEL_OK")
</pallas_src>

<mosaic_0001>
module attributes {stable_mosaic.version = 11 : i64} {
  func.func @_dqn_kernel(%arg0: memref<4x128x256xbf16, #tpu.memory_space<vmem>>, %arg1: memref<4x256x128xbf16, #tpu.memory_space<vmem>>, %arg2: memref<1x128xf32, #tpu.memory_space<vmem>>, %arg3: memref<1152x64xbf16, #tpu.memory_space<vmem>>, %arg4: memref<1x64xf32, #tpu.memory_space<vmem>>, %arg5: memref<576x64xbf16, #tpu.memory_space<vmem>>, %arg6: memref<1x64xf32, #tpu.memory_space<vmem>>, %arg7: memref<1024x512xbf16, #tpu.memory_space<any>>, %arg8: memref<1x512xf32, #tpu.memory_space<vmem>>, %arg9: memref<512x128xbf16, #tpu.memory_space<vmem>>, %arg10: memref<1x128xf32, #tpu.memory_space<vmem>>, %arg11: memref<2x128xf32, #tpu.memory_space<vmem>>, %arg12: memref<128x128xbf16, #tpu.memory_space<vmem>>, %arg13: memref<72x1152xbf16, #tpu.memory_space<vmem>>, %arg14: memref<72x64xbf16, #tpu.memory_space<vmem>>, %arg15: memref<32x576xbf16, #tpu.memory_space<vmem>>, %arg16: memref<32x64xbf16, #tpu.memory_space<vmem>>, %arg17: memref<2x1024xbf16, #tpu.memory_space<vmem>>, %arg18: memref<1024x512xbf16, #tpu.memory_space<vmem>>, %arg19: memref<!tpu.dma_semaphore, #tpu.memory_space<semaphore_mem>>) attributes {dimension_semantics = [], scalar_prefetch = 0 : i64, scratch_operands = 8 : i64, tpu.core_type = #tpu.core_type<tc>} {
    tpu.enqueue_dma source(%arg7 : memref<1024x512xbf16, #tpu.memory_space<any>>) target(%arg18 : memref<1024x512xbf16, #tpu.memory_space<vmem>>) target_semaphore(%arg19 : memref<!tpu.dma_semaphore, #tpu.memory_space<semaphore_mem>>)
    %cst = arith.constant 0.000000e+00 : f32
    %0 = vector.broadcast %cst : f32 to vector<128x128xf32>
    %c0 = arith.constant 0 : index
    %c0_0 = arith.constant 0 : index
    %c0_1 = arith.constant 0 : index
    %1 = vector.load %arg0[%c0, %c0_0, %c0_1] : memref<4x128x256xbf16, #tpu.memory_space<vmem>>, vector<1x128x256xbf16>
    %2 = vector.shape_cast %1 : vector<1x128x256xbf16> to vector<128x256xbf16>
    %c0_2 = arith.constant 0 : index
    %c0_3 = arith.constant 0 : index
    %c0_4 = arith.constant 0 : index
    %3 = vector.load %arg1[%c0_2, %c0_3, %c0_4] : memref<4x256x128xbf16, #tpu.memory_space<vmem>>, vector<1x256x128xbf16>
    %4 = vector.shape_cast %3 : vector<1x256x128xbf16> to vector<256x128xbf16>
    %cst_5 = arith.constant dense<0.000000e+00> : vector<128x128xf32>
    %5 = tpu.matmul %2, %4, %cst_5 {dimension_numbers = #tpu.dot_dimension_numbers<[1], [0], [0], [1], [0, 0, 1, 1], [], []>} : vector<128x256xbf16>, vector<256x128xbf16>, vector<128x128xf32> -> vector<128x128xf32>
    %6 = arith.addf %0, %5 : vector<128x128xf32>
    %c1 = arith.constant 1 : index
    %c0_6 = arith.constant 0 : index
    %c0_7 = arith.constant 0 : index
    %7 = vector.load %arg0[%c1, %c0_6, %c0_7] : memref<4x128x256xbf16, #tpu.memory_space<vmem>>, vector<1x128x256xbf16>
    %8 = vector.shape_cast %7 : vector<1x128x256xbf16> to vector<128x256xbf16>
    %c1_8 = arith.constant 1 : index
    %c0_9 = arith.constant 0 : index
    %c0_10 = arith.constant 0 : index
    %9 = vector.load %arg1[%c1_8, %c0_9, %c0_10] : memref<4x256x128xbf16, #tpu.memory_space<vmem>>, vector<1x256x128xbf16>
    %10 = vector.shape_cast %9 : vector<1x256x128xbf16> to vector<256x128xbf16>
    %cst_11 = arith.constant dense<0.000000e+00> : vector<128x128xf32>
    %11 = tpu.matmul %8, %10, %cst_11 {dimension_numbers = #tpu.dot_dimension_numbers<[1], [0], [0], [1], [0, 0, 1, 1], [], []>} : vector<128x256xbf16>, vector<256x128xbf16>, vector<128x128xf32> -> vector<128x128xf32>
    %12 = arith.addf %6, %11 : vector<128x128xf32>
    %c2 = arith.constant 2 : index
    %c0_12 = arith.constant 0 : index
    %c0_13 = arith.constant 0 : index
    %13 = vector.load %arg0[%c2, %c0_12, %c0_13] : memref<4x128x256xbf16, #tpu.memory_space<vmem>>, vector<1x128x256xbf16>
    %14 = vector.shape_cast %13 : vector<1x128x256xbf16> to vector<128x256xbf16>
    %c2_14 = arith.constant 2 : index
    %c0_15 = arith.constant 0 : index
    %c0_16 = arith.constant 0 : index
    %15 = vector.load %arg1[%c2_14, %c0_15, %c0_16] : memref<4x256x128xbf16, #tpu.memory_space<vmem>>, vector<1x256x128xbf16>
    %16 = vector.shape_cast %15 : vector<1x256x128xbf16> to vector<256x128xbf16>
    %cst_17 = arith.constant dense<0.000000e+00> : vector<128x128xf32>
    %17 = tpu.matmul %14, %16, %cst_17 {dimension_numbers = #tpu.dot_dimension_numbers<[1], [0], [0], [1], [0, 0, 1, 1], [], []>} : vector<128x256xbf16>, vector<256x128xbf16>, vector<128x128xf32> -> vector<128x128xf32>
    %18 = arith.addf %12, %17 : vector<128x128xf32>
    %c3 = arith.constant 3 : index
    %c0_18 = arith.constant 0 : index
    %c0_19 = arith.constant 0 : index
    %19 = vector.load %arg0[%c3, %c0_18, %c0_19] : memref<4x128x256xbf16, #tpu.memory_space<vmem>>, vector<1x128x256xbf16>
    %20 = vector.shape_cast %19 : vector<1x128x256xbf16> to vector<128x256xbf16>
    %c3_20 = arith.constant 3 : index
    %c0_21 = arith.constant 0 : index
    %c0_22 = arith.constant 0 : index
    %21 = vector.load %arg1[%c3_20, %c0_21, %c0_22] : memref<4x256x128xbf16, #tpu.memory_space<vmem>>, vector<1x256x128xbf16>
    %22 = vector.shape_cast %21 : vector<1x256x128xbf16> to vector<256x128xbf16>
    %cst_23 = arith.constant dense<0.000000e+00> : vector<128x128xf32>
    %23 = tpu.matmul %20, %22, %cst_23 {dimension_numbers = #tpu.dot_dimension_numbers<[1], [0], [0], [1], [0, 0, 1, 1], [], []>} : vector<128x256xbf16>, vector<256x128xbf16>, vector<128x128xf32> -> vector<128x128xf32>
    %24 = arith.addf %18, %23 : vector<128x128xf32>
    %c0_24 = arith.constant 0 : index
    %c0_25 = arith.constant 0 : index
    %25 = vector.load %arg2[%c0_24, %c0_25] : memref<1x128xf32, #tpu.memory_space<vmem>>, vector<1x128xf32>
    %26 = vector.broadcast %25 : vector<1x128xf32> to vector<128x128xf32>
    %27 = arith.addf %24, %26 : vector<128x128xf32>
    %cst_26 = arith.constant 0.000000e+00 : f32
    %28 = vector.broadcast %cst_26 : f32 to vector<128x128xf32>
    %29 = arith.maximumf %27, %28 : vector<128x128xf32>
    %30 = arith.truncf %29 : vector<128x128xf32> to vector<128x128xbf16>
    %c0_27 = arith.constant 0 : index
    %c0_28 = arith.constant 0 : index
    %31 = vector.load %arg12[%c0_27, %c0_28] : memref<128x128xbf16, #tpu.memory_space<vmem>>, vector<128x128xbf16>
    tpu.vector_store %arg12[%c0_27, %c0_28], %30 {strides = array<i32>} : memref<128x128xbf16, #tpu.memory_space<vmem>>, vector<128x128xbf16>,
    %c0_29 = arith.constant 0 : index
    %c0_30 = arith.constant 0 : index
    %32 = vector.load %arg12[%c0_29, %c0_30] : memref<128x128xbf16, #tpu.memory_space<vmem>>, vector<6x128xbf16>
    %c0_31 = arith.constant 0 : index
    %c0_32 = arith.constant 0 : index
    %33 = vector.load %arg13[%c0_31, %c0_32] : memref<72x1152xbf16, #tpu.memory_space<vmem>>, vector<6x128xbf16>
    tpu.vector_store %arg13[%c0_31, %c0_32], %32 {strides = array<i32>} : memref<72x1152xbf16, #tpu.memory_space<vmem>>, vector<6x128xbf16>,
    %c1_33 = arith.constant 1 : index
    %c0_34 = arith.constant 0 : index
    %34 = vector.load %arg12[%c1_33, %c0_34] : memref<128x128xbf16, #tpu.memory_space<vmem>>, vector<6x128xbf16>
    %c0_35 = arith.constant 0 : index
    %c128 = arith.constant 128 : index
    %35 = vector.load %arg13[%c0_35, %c128] : memref<72x1152xbf16, #tpu.memory_space<vmem>>, vector<6x128xbf16>
    tpu.vector_store %arg13[%c0_35, %c128], %34 {strides = array<i32>} : memref<72x1152xbf16, #tpu.memory_space<vmem>>, vector<6x128xbf16>,
    %c2_36 = arith.constant 2 : index
    %c0_37 = arith.constant 0 : index
    %36 = vector.load %arg12[%c2_36, %c0_37] : memref<128x128xbf16, #tpu.memory_space<vmem>>, vector<6x128xbf16>
    %c0_38 = arith.constant 0 : index
    %c256 = arith.constant 256 : index
    %37 = vector.load %arg13[%c0_38, %c256] : memref<72x1152xbf16, #tpu.memory_space<vmem>>, vector<6x128xbf16>
    tpu.vector_store %arg13[%c0_38, %c256], %36 {strides = array<i32>} : memref<72x1152xbf16, #tpu.memory_space<vmem>>, vector<6x128xbf16>,
    %c8 = arith.constant 8 : index
    %c0_39 = arith.constant 0 : index
    %38 = vector.load %arg12[%c8, %c0_39] : memref<128x128xbf16, #tpu.memory_space<vmem>>, vector<6x128xbf16>
    %c0_40 = arith.constant 0 : index
    %c384 = arith.constant 384 : index
    %39 = vector.load %arg13[%c0_40, %c384] : memref<72x1152xbf16, #tpu.memory_space<vmem>>, vector<6x128xbf16>
    tpu.vector_store %arg13[%c0_40, %c384], %38 {strides = array<i32>} : memref<72x1152xbf16, #tpu.memory_space<vmem>>, vector<6x128xbf16>,
    %c9 = arith.constant 9 : index
    %c0_41 = arith.constant 0 : index
    %40 = vector.load %arg12[%c9, %c0_41] : memref<128x128xbf16, #tpu.memory_space<vmem>>, vector<6x128xbf16>
    %c0_42 = arith.constant 0 : index
    %c512 = arith.constant 512 : index
    %41 = vector.load %arg13[%c0_42, %c512] : memref<72x1152xbf16, #tpu.memory_space<vmem>>, vector<6x128xbf16>
    tpu.vector_store %arg13[%c0_42, %c512], %40 {strides = array<i32>} : memref<72x1152xbf16, #tpu.memory_space<vmem>>, vector<6x128xbf16>,
    %c10 = arith.constant 10 : index
    %c0_43 = arith.constant 0 : index
    %42 = vector.load %arg12[%c10, %c0_43] : memref<128x128xbf16, #tpu.memory_space<vmem>>, vector<6x128xbf16>
    %c0_44 = arith.constant 0 : index
    %c640 = arith.constant 640 : index
    %43 = vector.load %arg13[%c0_44, %c640] : memref<72x1152xbf16, #tpu.memory_space<vmem>>, vector<6x128xbf16>
    tpu.vector_store %arg13[%c0_44, %c640], %42 {strides = array<i32>} : memref<72x1152xbf16, #tpu.memory_space<vmem>>, vector<6x128xbf16>,
    %c16 = arith.constant 16 : index
    %c0_45 = arith.constant 0 : index
    %44 = vector.load %arg12[%c16, %c0_45] : memref<128x128xbf16, #tpu.memory_space<vmem>>, vector<6x128xbf16>
    %c0_46 = arith.constant 0 : index
    %c768 = arith.constant 768 : index
    %45 = vector.load %arg13[%c0_46, %c768] : memref<72x1152xbf16, #tpu.memory_space<vmem>>, vector<6x128xbf16>
    tpu.vector_store %arg13[%c0_46, %c768], %44 {strides = array<i32>} : memref<72x1152xbf16, #tpu.memory_space<vmem>>, vector<6x128xbf16>,
    %c17 = arith.constant 17 : index
    %c0_47 = arith.constant 0 : index
    %46 = vector.load %arg12[%c17, %c0_47] : memref<128x128xbf16, #tpu.memory_space<vmem>>, vector<6x128xbf16>
    %c0_48 = arith.constant 0 : index
    %c896 = arith.constant 896 : index
    %47 = vector.load %arg13[%c0_48, %c896] : memref<72x1152xbf16, #tpu.memory_space<vmem>>, vector<6x128xbf16>
    tpu.vector_store %arg13[%c0_48, %c896], %46 {strides = array<i32>} : memref<72x1152xbf16, #tpu.memory_space<vmem>>, vector<6x128xbf16>,
    %c18 = arith.constant 18 : index
    %c0_49 = arith.constant 0 : index
    %48 = vector.load %arg12[%c18, %c0_49] : memref<128x128xbf16, #tpu.memory_space<vmem>>, vector<6x128xbf16>
    %c0_50 = arith.constant 0 : index
    %c1024 = arith.constant 1024 : index
    %49 = vector.load %arg13[%c0_50, %c1024] : memref<72x1152xbf16, #tpu.memory_space<vmem>>, vector<6x128xbf16>
    tpu.vector_store %arg13[%c0_50, %c1024], %48 {strides = array<i32>} : memref<72x1152xbf16, #tpu.memory_space<vmem>>, vector<6x128xbf16>,
    %c8_51 = arith.constant 8 : index
    %c0_52 = arith.constant 0 : index
    %50 = vector.load %arg12[%c8_51, %c0_52] : memref<128x128xbf16, #tpu.memory_space<vmem>>, vector<6x128xbf16>
    %c6 = arith.constant 6 : index
    %c0_53 = arith.constant 0 : index
    %51 = vector.load %arg13[%c6, %c0_53] : memref<72x1152xbf16, #tpu.memory_space<vmem>>, vector<6x128xbf16>
    tpu.vector_store %arg13[%c6, %c0_53], %50 {strides = array<i32>} : memref<72x1152xbf16, #tpu.memory_space<vmem>>, vector<6x128xbf16>,
    %c9_54 = arith.constant 9 : index
    %c0_55 = arith.constant 0 : index
    %52 = vector.load %arg12[%c9_54, %c0_55] : memref<128x128xbf16, #tpu.memory_space<vmem>>, vector<6x128xbf16>
    %c6_56 = arith.constant 6 : index
    %c128_57 = arith.constant 128 : index
    %53 = vector.load %arg13[%c6_56, %c128_57] : memref<72x1152xbf16, #tpu.memory_space<vmem>>, vector<6x128xbf16>
    tpu.vector_store %arg13[%c6_56, %c128_57], %52 {strides = array<i32>} : memref<72x1152xbf16, #tpu.memory_space<vmem>>, vector<6x128xbf16>,
    %c10_58 = arith.constant 10 : index
    %c0_59 = arith.constant 0 : index
    %54 = vector.load %arg12[%c10_58, %c0_59] : memref<128x128xbf16, #tpu.memory_space<vmem>>, vector<6x128xbf16>
    %c6_60 = arith.constant 6 : index
    %c256_61 = arith.constant 256 : index
    %55 = vector.load %arg13[%c6_60, %c256_61] : memref<72x1152xbf16, #tpu.memory_space<vmem>>, vector<6x128xbf16>
    tpu.vector_store %arg13[%c6_60, %c256_61], %54 {strides = array<i32>} : memref<72x1152xbf16, #tpu.memory_space<vmem>>, vector<6x128xbf16>,
    %c16_62 = arith.constant 16 : index
    %c0_63 = arith.constant 0 : index
    %56 = vector.load %arg12[%c16_62, %c0_63] : memref<128x128xbf16, #tpu.memory_space<vmem>>, vector<6x128xbf16>
    %c6_64 = arith.constant 6 : index
    %c384_65 = arith.constant 384 : index
    %57 = vector.load %arg13[%c6_64, %c384_65] : memref<72x1152xbf16, #tpu.memory_space<vmem>>, vector<6x128xbf16>
    tpu.vector_store %arg13[%c6_64, %c384_65], %56 {strides = array<i32>} : memref<72x1152xbf16, #tpu.memory_space<vmem>>, vector<6x128xbf16>,
    %c17_66 = arith.constant 17 : index
    %c0_67 = arith.constant 0 : index
    %58 = vector.load %arg12[%c17_66, %c0_67] : memref<128x128xbf16, #tpu.memory_space<vmem>>, vector<6x128xbf16>
    %c6_68 = arith.constant 6 : index
    %c512_69 = arith.constant 512 : index
    %59 = vector.load %arg13[%c6_68, %c512_69] : memref<72x1152xbf16, #tpu.memory_space<vmem>>, vector<6x128xbf16>
    tpu.vector_store %arg13[%c6_68, %c512_69], %58 {strides = array<i32>} : memref<72x1152xbf16, #tpu.memory_space<vmem>>, vector<6x128xbf16>,
    %c18_70 = arith.constant 18 : index
    %c0_71 = arith.constant 0 : index
    %60 = vector.load %arg12[%c18_70, %c0_71] : memref<128x128xbf16, #tpu.memory_space<vmem>>, vector<6x128xbf16>
    %c6_72 = arith.constant 6 : index
    %c640_73 = arith.constant 640 : index
    %61 = vector.load %arg13[%c6_72, %c640_73] : memref<72x1152xbf16, #tpu.memory_space<vmem>>, vector<6x128xbf16>
    tpu.vector_store %arg13[%c6_72, %c640_73], %60 {strides = array<i32>} : memref<72x1152xbf16, #tpu.memory_space<vmem>>, vector<6x128xbf16>,
    %c24 = arith.constant 24 : index
    %c0_74 = arith.constant 0 : index
    %62 = vector.load %arg12[%c24, %c0_74] : memref<128x128xbf16, #tpu.memory_space<vmem>>, vector<6x128xbf16>
    %c6_75 = arith.constant 6 : index
    %c768_76 = arith.constant 768 : index
    %63 = vector.load %arg13[%c6_75, %c768_76] : memref<72x1152xbf16, #tpu.memory_space<vmem>>, vector<6x128xbf16>
    tpu.vector_store %arg13[%c6_75, %c768_76], %62 {strides = array<i32>} : memref<72x1152xbf16, #tpu.memory_space<vmem>>, vector<6x128xbf16>,
    %c25 = arith.constant 25 : index
    %c0_77 = arith.constant 0 : index
    %64 = vector.load %arg12[%c25, %c0_77] : memref<128x128xbf16, #tpu.memory_space<vmem>>, vector<6x128xbf16>
    %c6_78 = arith.constant 6 : index
    %c896_79 = arith.constant 896 : index
    %65 = vector.load %arg13[%c6_78, %c896_79] : memref<72x1152xbf16, #tpu.memory_space<vmem>>, vector<6x128xbf16>
    tpu.vector_store %arg13[%c6_78, %c896_79], %64 {strides = array<i32>} : memref<72x1152xbf16, #tpu.memory_space<vmem>>, vector<6x128xbf16>,
    %c26 = arith.constant 26 : index
    %c0_80 = arith.constant 0 : index
    %66 = vector.load %arg12[%c26, %c0_80] : memref<128x128xbf16, #tpu.memory_space<vmem>>, vector<6x128xbf16>
    %c6_81 = arith.constant 6 : index
    %c1024_82 = arith.constant 1024 : index
    %67 = vector.load %arg13[%c6_81, %c1024_82] : memref<72x1152xbf16, #tpu.memory_space<vmem>>, vector<6x128xbf16>
    tpu.vector_store %arg13[%c6_81, %c1024_82], %66 {strides = array<i32>} : memref<72x1152xbf16, #tpu.memory_space<vmem>>, vector<6x128xbf16>,
    %c16_83 = arith.constant 16 : index
    %c0_84 = arith.constant 0 : index
    %68 = vector.load %arg12[%c16_83, %c0_84] : memref<128x128xbf16, #tpu.memory_space<vmem>>, vector<6x128xbf16>
    %c12 = arith.constant 12 : index
    %c0_85 = arith.constant 0 : index
    %69 = vector.load %arg13[%c12, %c0_85] : memref<72x1152xbf16, #tpu.memory_space<vmem>>, vector<6x128xbf16>
    tpu.vector_store %arg13[%c12, %c0_85], %68 {strides = array<i32>} : memref<72x1152xbf16, #tpu.memory_space<vmem>>, vector<6x128xbf16>,
    %c17_86 = arith.constant 17 : index
    %c0_87 = arith.constant 0 : index
    %70 = vector.load %arg12[%c17_86, %c0_87] : memref<128x128xbf16, #tpu.memory_space<vmem>>, vector<6x128xbf16>
    %c12_88 = arith.constant 12 : index
    %c128_89 = arith.constant 128 : index
    %71 = vector.load %arg13[%c12_88, %c128_89] : memref<72x1152xbf16, #tpu.memory_space<vmem>>, vector<6x128xbf16>
    tpu.vector_store %arg13[%c12_88, %c128_89], %70 {strides = array<i32>} : memref<72x1152xbf16, #tpu.memory_space<vmem>>, vector<6x128xbf16>,
    %c18_90 = arith.constant 18 : index
    %c0_91 = arith.constant 0 : index
    %72 = vector.load %arg12[%c18_90, %c0_91] : memref<128x128xbf16, #tpu.memory_space<vmem>>, vector<6x128xbf16>
    %c12_92 = arith.constant 12 : index
    %c256_93 = arith.constant 256 : index
    %73 = vector.load %arg13[%c12_92, %c256_93] : memref<72x1152xbf16, #tpu.memory_space<vmem>>, vector<6x128xbf16>
    tpu.vector_store %arg13[%c12_92, %c256_93], %72 {strides = array<i32>} : memref<72x1152xbf16, #tpu.memory_space<vmem>>, vector<6x128xbf16>,
    %c24_94 = arith.constant 24 : index
    %c0_95 = arith.constant 0 : index
    %74 = vector.load %arg12[%c24_94, %c0_95] : memref<128x128xbf16, #tpu.memory_space<vmem>>, vector<6x128xbf16>
    %c12_96 = arith.constant 12 : index
    %c384_97 = arith.constant 384 : index
    %75 = vector.load %arg13[%c12_96, %c384_97] : memref<72x1152xbf16, #tpu.memory_space<vmem>>, vector<6x128xbf16>
    tpu.vector_store %arg13[%c12_96, %c384_97], %74 {strides = array<i32>} : memref<72x1152xbf16, #tpu.memory_space<vmem>>, vector<6x128xbf16>,
    %c25_98 = arith.constant 25 : index
    %c0_99 = arith.constant 0 : index
    %76 = vector.load %arg12[%c25_98, %c0_99] : memref<128x128xbf16, #tpu.memory_space<vmem>>, vector<6x128xbf16>
    %c12_100 = arith.constant 12 : index
    %c512_101 = arith.constant 512 : index
    %77 = vector.load %arg13[%c12_100, %c512_101] : memref<72x1152xbf16, #tpu.memory_space<vmem>>, vector<6x128xbf16>
    tpu.vector_store %arg13[%c12_100, %c512_101], %76 {strides = array<i32>} : memref<72x1152xbf16, #tpu.memory_space<vmem>>, vector<6x128xbf16>,
    %c26_102 = arith.constant 26 : index
    %c0_103 = arith.constant 0 : index
    %78 = vector.load %arg12[%c26_102, %c0_103] : memref<128x128xbf16, #tpu.memory_space<vmem>>, vector<6x128xbf16>
    %c12_104 = arith.constant 12 : index
    %c640_105 = arith.constant 640 : index
    %79 = vector.load %arg13[%c12_104, %c640_105] : memref<72x1152xbf16, #tpu.memory_space<vmem>>, vector<6x128xbf16>
    tpu.vector_store %arg13[%c12_104, %c640_105], %78 {strides = array<i32>} : memref<72x1152xbf16, #tpu.memory_space<vmem>>, vector<6x128xbf16>,
    %c32 = arith.constant 32 : index
    %c0_106 = arith.constant 0 : index
    %80 = vector.load %arg12[%c32, %c0_106] : memref<128x128xbf16, #tpu.memory_space<vmem>>, vector<6x128xbf16>
    %c12_107 = arith.constant 12 : index
    %c768_108 = arith.constant 768 : index
    %81 = vector.load %arg13[%c12_107, %c768_108] : memref<72x1152xbf16, #tpu.memory_space<vmem>>, vector<6x128xbf16>
    tpu.vector_store %arg13[%c12_107, %c768_108], %80 {strides = array<i32>} : memref<72x1152xbf16, #tpu.memory_space<vmem>>, vector<6x128xbf16>,
    %c33 = arith.constant 33 : index
    %c0_109 = arith.constant 0 : index
    %82 = vector.load %arg12[%c33, %c0_109] : memref<128x128xbf16, #tpu.memory_space<vmem>>, vector<6x128xbf16>
    %c12_110 = arith.constant 12 : index
    %c896_111 = arith.constant 896 : index
    %83 = vector.load %arg13[%c12_110, %c896_111] : memref<72x1152xbf16, #tpu.memory_space<vmem>>, vector<6x128xbf16>
    tpu.vector_store %arg13[%c12_110, %c896_111], %82 {strides = array<i32>} : memref<72x1152xbf16, #tpu.memory_space<vmem>>, vector<6x128xbf16>,
    %c34 = arith.constant 34 : index
    %c0_112 = arith.constant 0 : index
    %84 = vector.load %arg12[%c34, %c0_112] : memref<128x128xbf16, #tpu.memory_space<vmem>>, vector<6x128xbf16>
    %c12_113 = arith.constant 12 : index
    %c1024_114 = arith.constant 1024 : index
    %85 = vector.load %arg13[%c12_113, %c1024_114] : memref<72x1152xbf16, #tpu.memory_space<vmem>>, vector<6x128xbf16>
    tpu.vector_store %arg13[%c12_113, %c1024_114], %84 {strides = array<i32>} : memref<72x1152xbf16, #tpu.memory_space<vmem>>, vector<6x128xbf16>,
    %c24_115 = arith.constant 24 : index
    %c0_116 = arith.constant 0 : index
    %86 = vector.load %arg12[%c24_115, %c0_116] : memref<128x128xbf16, #tpu.memory_space<vmem>>, vector<6x128xbf16>
    %c18_117 = arith.constant 18 : index
    %c0_118 = arith.constant 0 : index
    %87 = vector.load %arg13[%c18_117, %c0_118] : memref<72x1152xbf16, #tpu.memory_space<vmem>>, vector<6x128xbf16>
    tpu.vector_store %arg13[%c18_117, %c0_118], %86 {strides = array<i32>} : memref<72x1152xbf16, #tpu.memory_space<vmem>>, vector<6x128xbf16>,
    %c25_119 = arith.constant 25 : index
    %c0_120 = arith.constant 0 : index
    %88 = vector.load %arg12[%c25_119, %c0_120] : memref<128x128xbf16, #tpu.memory_space<vmem>>, vector<6x128xbf16>
    %c18_121 = arith.constant 18 : index
    %c128_122 = arith.constant 128 : index
    %89 = vector.load %arg13[%c18_121, %c128_122] : memref<72x1152xbf16, #tpu.memory_space<vmem>>, vector<6x128xbf16>
    tpu.vector_store %arg13[%c18_121, %c128_122], %88 {strides = array<i32>} : memref<72x1152xbf16, #tpu.memory_space<vmem>>, vector<6x128xbf16>,
    %c26_123 = arith.constant 26 : index
    %c0_124 = arith.constant 0 : index
    %90 = vector.load %arg12[%c26_123, %c0_124] : memref<128x128xbf16, #tpu.memory_space<vmem>>, vector<6x128xbf16>
    %c18_125 = arith.constant 18 : index
    %c256_126 = arith.constant 256 : index
    %91 = vector.load %arg13[%c18_125, %c256_126] : memref<72x1152xbf16, #tpu.memory_space<vmem>>, vector<6x128xbf16>
    tpu.vector_store %arg13[%c18_125, %c256_126], %90 {strides = array<i32>} : memref<72x1152xbf16, #tpu.memory_space<vmem>>, vector<6x128xbf16>,
    %c32_127 = arith.constant 32 : index
    %c0_128 = arith.constant 0 : index
    %92 = vector.load %arg12[%c32_127, %c0_128] : memref<128x128xbf16, #tpu.memory_space<vmem>>, vector<6x128xbf16>
    %c18_129 = arith.constant 18 : index
    %c384_130 = arith.constant 384 : index
    %93 = vector.load %arg13[%c18_129, %c384_130] : memref<72x1152xbf16, #tpu.memory_space<vmem>>, vector<6x128xbf16>
    tpu.vector_store %arg13[%c18_129, %c384_130], %92 {strides = array<i32>} : memref<72x1152xbf16, #tpu.memory_space<vmem>>, vector<6x128xbf16>,
    %c33_131 = arith.constant 33 : index
    %c0_132 = arith.constant 0 : index
    %94 = vector.load %arg12[%c33_131, %c0_132] : memref<128x128xbf16, #tpu.memory_space<vmem>>, vector<6x128xbf16>
    %c18_133 = arith.constant 18 : index
    %c512_134 = arith.constant 512 : index
    %95 = vector.load %arg13[%c18_133, %c512_134] : memref<72x1152xbf16, #tpu.memory_space<vmem>>, vector<6x128xbf16>
    tpu.vector_store %arg13[%c18_133, %c512_134], %94 {strides = array<i32>} : memref<72x1152xbf16, #tpu.memory_space<vmem>>, vector<6x128xbf16>,
    %c34_135 = arith.constant 34 : index
    %c0_136 = arith.constant 0 : index
    %96 = vector.load %arg12[%c34_135, %c0_136] : memref<128x128xbf16, #tpu.memory_space<vmem>>, vector<6x128xbf16>
    %c18_137 = arith.constant 18 : index
    %c640_138 = arith.constant 640 : index
    %97 = vector.load %arg13[%c18_137, %c640_138] : memref<72x1152xbf16, #tpu.memory_space<vmem>>, vector<6x128xbf16>
    tpu.vector_store %arg13[%c18_137, %c640_138], %96 {strides = array<i32>} : memref<72x1152xbf16, #tpu.memory_space<vmem>>, vector<6x128xbf16>,
    %c40 = arith.constant 40 : index
    %c0_139 = arith.constant 0 : index
    %98 = vector.load %arg12[%c40, %c0_139] : memref<128x128xbf16, #tpu.memory_space<vmem>>, vector<6x128xbf16>
    %c18_140 = arith.constant 18 : index
    %c768_141 = arith.constant 768 : index
    %99 = vector.load %arg13[%c18_140, %c768_141] : memref<72x1152xbf16, #tpu.memory_space<vmem>>, vector<6x128xbf16>
    tpu.vector_store %arg13[%c18_140, %c768_141], %98 {strides = array<i32>} : memref<72x1152xbf16, #tpu.memory_space<vmem>>, vector<6x128xbf16>,
    %c41 = arith.constant 41 : index
    %c0_142 = arith.constant 0 : index
    %100 = vector.load %arg12[%c41, %c0_142] : memref<128x128xbf16, #tpu.memory_space<vmem>>, vector<6x128xbf16>
    %c18_143 = arith.constant 18 : index
    %c896_144 = arith.constant 896 : index
    %101 = vector.load %arg13[%c18_143, %c896_144] : memref<72x1152xbf16, #tpu.memory_space<vmem>>, vector<6x128xbf16>
    tpu.vector_store %arg13[%c18_143, %c896_144], %100 {strides = array<i32>} : memref<72x1152xbf16, #tpu.memory_space<vmem>>, vector<6x128xbf16>,
    %c42 = arith.constant 42 : index
    %c0_145 = arith.constant 0 : index
    %102 = vector.load %arg12[%c42, %c0_145] : memref<128x128xbf16, #tpu.memory_space<vmem>>, vector<6x128xbf16>
    %c18_146 = arith.constant 18 : index
    %c1024_147 = arith.constant 1024 : index
    %103 = vector.load %arg13[%c18_146, %c1024_147] : memref<72x1152xbf16, #tpu.memory_space<vmem>>, vector<6x128xbf16>
    tpu.vector_store %arg13[%c18_146, %c1024_147], %102 {strides = array<i32>} : memref<72x1152xbf16, #tpu.memory_space<vmem>>, vector<6x128xbf16>,
    %c32_148 = arith.constant 32 : index
    %c0_149 = arith.constant 0 : index
    %104 = vector.load %arg12[%c32_148, %c0_149] : memref<128x128xbf16, #tpu.memory_space<vmem>>, vector<6x128xbf16>
    %c24_150 = arith.constant 24 : index
    %c0_151 = arith.constant 0 : index
    %105 = vector.load %arg13[%c24_150, %c0_151] : memref<72x1152xbf16, #tpu.memory_space<vmem>>, vector<6x128xbf16>
    tpu.vector_store %arg13[%c24_150, %c0_151], %104 {strides = array<i32>} : memref<72x1152xbf16, #tpu.memory_space<vmem>>, vector<6x128xbf16>,
    %c33_152 = arith.constant 33 : index
    %c0_153 = arith.constant 0 : index
    %106 = vector.load %arg12[%c33_152, %c0_153] : memref<128x128xbf16, #tpu.memory_space<vmem>>, vector<6x128xbf16>
    %c24_154 = arith.constant 24 : index
    %c128_155 = arith.constant 128 : index
    %107 = vector.load %arg13[%c24_154, %c128_155] : memref<72x1152xbf16, #tpu.memory_space<vmem>>, vector<6x128xbf16>
    tpu.vector_store %arg13[%c24_154, %c128_155], %106 {strides = array<i32>} : memref<72x1152xbf16, #tpu.memory_space<vmem>>, vector<6x128xbf16>,
    %c34_156 = arith.constant 34 : index
    %c0_157 = arith.constant 0 : index
    %108 = vector.load %arg12[%c34_156, %c0_157] : memref<128x128xbf16, #tpu.memory_space<vmem>>, vector<6x128xbf16>
    %c24_158 = arith.constant 24 : index
    %c256_159 = arith.constant 256 : index
    %109 = vector.load %arg13[%c24_158, %c256_159] : memref<72x1152xbf16, #tpu.memory_space<vmem>>, vector<6x128xbf16>
    tpu.vector_store %arg13[%c24_158, %c256_159], %108 {strides = array<i32>} : memref<72x1152xbf16, #tpu.memory_space<vmem>>, vector<6x128xbf16>,
    %c40_160 = arith.constant 40 : index
    %c0_161 = arith.constant 0 : index
    %110 = vector.load %arg12[%c40_160, %c0_161] : memref<128x128xbf16, #tpu.memory_space<vmem>>, vector<6x128xbf16>
    %c24_162 = arith.constant 24 : index
    %c384_163 = arith.constant 384 : index
    %111 = vector.load %arg13[%c24_162, %c384_163] : memref<72x1152xbf16, #tpu.memory_space<vmem>>, vector<6x128xbf16>
    tpu.vector_store %arg13[%c24_162, %c384_163], %110 {strides = array<i32>} : memref<72x1152xbf16, #tpu.memory_space<vmem>>, vector<6x128xbf16>,
    %c41_164 = arith.constant 41 : index
    %c0_165 = arith.constant 0 : index
    %112 = vector.load %arg12[%c41_164, %c0_165] : memref<128x128xbf16, #tpu.memory_space<vmem>>, vector<6x128xbf16>
    %c24_166 = arith.constant 24 : index
    %c512_167 = arith.constant 512 : index
    %113 = vector.load %arg13[%c24_166, %c512_167] : memref<72x1152xbf16, #tpu.memory_space<vmem>>, vector<6x128xbf16>
    tpu.vector_store %arg13[%c24_166, %c512_167], %112 {strides = array<i32>} : memref<72x1152xbf16, #tpu.memory_space<vmem>>, vector<6x128xbf16>,
    %c42_168 = arith.constant 42 : index
    %c0_169 = arith.constant 0 : index
    %114 = vector.load %arg12[%c42_168, %c0_169] : memref<128x128xbf16, #tpu.memory_space<vmem>>, vector<6x128xbf16>
    %c24_170 = arith.constant 24 : index
    %c640_171 = arith.constant 640 : index
    %115 = vector.load %arg13[%c24_170, %c640_171] : memref<72x1152xbf16, #tpu.memory_space<vmem>>, vector<6x128xbf16>
    tpu.vector_store %arg13[%c24_170, %c640_171], %114 {strides = array<i32>} : memref<72x1152xbf16, #tpu.memory_space<vmem>>, vector<6x128xbf16>,
    %c48 = arith.constant 48 : index
    %c0_172 = arith.constant 0 : index
    %116 = vector.load %arg12[%c48, %c0_172] : memref<128x128xbf16, #tpu.memory_space<vmem>>, vector<6x128xbf16>
    %c24_173 = arith.constant 24 : index
    %c768_174 = arith.constant 768 : index
    %117 = vector.load %arg13[%c24_173, %c768_174] : memref<72x1152xbf16, #tpu.memory_space<vmem>>, vector<6x128xbf16>
    tpu.vector_store %arg13[%c24_173, %c768_174], %116 {strides = array<i32>} : memref<72x1152xbf16, #tpu.memory_space<vmem>>, vector<6x128xbf16>,
    %c49 = arith.constant 49 : index
    %c0_175 = arith.constant 0 : index
    %118 = vector.load %arg12[%c49, %c0_175] : memref<128x128xbf16, #tpu.memory_space<vmem>>, vector<6x128xbf16>
    %c24_176 = arith.constant 24 : index
    %c896_177 = arith.constant 896 : index
    %119 = vector.load %arg13[%c24_176, %c896_177] : memref<72x1152xbf16, #tpu.memory_space<vmem>>, vector<6x128xbf16>
    tpu.vector_store %arg13[%c24_176, %c896_177], %118 {strides = array<i32>} : memref<72x1152xbf16, #tpu.memory_space<vmem>>, vector<6x128xbf16>,
    %c50 = arith.constant 50 : index
    %c0_178 = arith.constant 0 : index
    %120 = vector.load %arg12[%c50, %c0_178] : memref<128x128xbf16, #tpu.memory_space<vmem>>, vector<6x128xbf16>
    %c24_179 = arith.constant 24 : index
    %c1024_180 = arith.constant 1024 : index
    %121 = vector.load %arg13[%c24_179, %c1024_180] : memref<72x1152xbf16, #tpu.memory_space<vmem>>, vector<6x128xbf16>
    tpu.vector_store %arg13[%c24_179, %c1024_180], %120 {strides = array<i32>} : memref<72x1152xbf16, #tpu.memory_space<vmem>>, vector<6x128xbf16>,
    %c40_181 = arith.constant 40 : index
    %c0_182 = arith.constant 0 : index
    %122 = vector.load %arg12[%c40_181, %c0_182] : memref<128x128xbf16, #tpu.memory_space<vmem>>, vector<6x128xbf16>
    %c30 = arith.constant 30 : index
    %c0_183 = arith.constant 0 : index
    %123 = vector.load %arg13[%c30, %c0_183] : memref<72x1152xbf16, #tpu.memory_space<vmem>>, vector<6x128xbf16>
    tpu.vector_store %arg13[%c30, %c0_183], %122 {strides = array<i32>} : memref<72x1152xbf16, #tpu.memory_space<vmem>>, vector<6x128xbf16>,
    %c41_184 = arith.constant 41 : index
    %c0_185 = arith.constant 0 : index
    %124 = vector.load %arg12[%c41_184, %c0_185] : memref<128x128xbf16, #tpu.memory_space<vmem>>, vector<6x128xbf16>
    %c30_186 = arith.constant 30 : index
    %c128_187 = arith.constant 128 : index
    %125 = vector.load %arg13[%c30_186, %c128_187] : memref<72x1152xbf16, #tpu.memory_space<vmem>>, vector<6x128xbf16>
    tpu.vector_store %arg13[%c30_186, %c128_187], %124 {strides = array<i32>} : memref<72x1152xbf16, #tpu.memory_space<vmem>>, vector<6x128xbf16>,
    %c42_188 = arith.constant 42 : index
    %c0_189 = arith.constant 0 : index
    %126 = vector.load %arg12[%c42_188, %c0_189] : memref<128x128xbf16, #tpu.memory_space<vmem>>, vector<6x128xbf16>
    %c30_190 = arith.constant 30 : index
    %c256_191 = arith.constant 256 : index
    %127 = vector.load %arg13[%c30_190, %c256_191] : memref<72x1152xbf16, #tpu.memory_space<vmem>>, vector<6x128xbf16>
    tpu.vector_store %arg13[%c30_190, %c256_191], %126 {strides = array<i32>} : memref<72x1152xbf16, #tpu.memory_space<vmem>>, vector<6x128xbf16>,
    %c48_192 = arith.constant 48 : index
    %c0_193 = arith.constant 0 : index
    %128 = vector.load %arg12[%c48_192, %c0_193] : memref<128x128xbf16, #tpu.memory_space<vmem>>, vector<6x128xbf16>
    %c30_194 = arith.constant 30 : index
    %c384_195 = arith.constant 384 : index
    %129 = vector.load %arg13[%c30_194, %c384_195] : memref<72x1152xbf16, #tpu.memory_space<vmem>>, vector<6x128xbf16>
    tpu.vector_store %arg13[%c30_194, %c384_195], %128 {strides = array<i32>} : memref<72x1152xbf16, #tpu.memory_space<vmem>>, vector<6x128xbf16>,
    %c49_196 = arith.constant 49 : index
    %c0_197 = arith.constant 0 : index
    %130 = vector.load %arg12[%c49_196, %c0_197] : memref<128x128xbf16, #tpu.memory_space<vmem>>, vector<6x128xbf16>
    %c30_198 = arith.constant 30 : index
    %c512_199 = arith.constant 512 : index
    %131 = vector.load %arg13[%c30_198, %c512_199] : memref<72x1152xbf16, #tpu.memory_space<vmem>>, vector<6x128xbf16>
    tpu.vector_store %arg13[%c30_198, %c512_199], %130 {strides = array<i32>} : memref<72x1152xbf16, #tpu.memory_space<vmem>>, vector<6x128xbf16>,
    %c50_200 = arith.constant 50 : index
    %c0_201 = arith.constant 0 : index
    %132 = vector.load %arg12[%c50_200, %c0_201] : memref<128x128xbf16, #tpu.memory_space<vmem>>, vector<6x128xbf16>
    %c30_202 = arith.constant 30 : index
    %c640_203 = arith.constant 640 : index
    %133 = vector.load %arg13[%c30_202, %c640_203] : memref<72x1152xbf16, #tpu.memory_space<vmem>>, vector<6x128xbf16>
    tpu.vector_store %arg13[%c30_202, %c640_203], %132 {strides = array<i32>} : memref<72x1152xbf16, #tpu.memory_space<vmem>>, vector<6x128xbf16>,
    %c56 = arith.constant 56 : index
    %c0_204 = arith.constant 0 : index
    %134 = vector.load %arg12[%c56, %c0_204] : memref<128x128xbf16, #tpu.memory_space<vmem>>, vector<6x128xbf16>
    %c30_205 = arith.constant 30 : index
    %c768_206 = arith.constant 768 : index
    %135 = vector.load %arg13[%c30_205, %c768_206] : memref<72x1152xbf16, #tpu.memory_space<vmem>>, vector<6x128xbf16>
    tpu.vector_store %arg13[%c30_205, %c768_206], %134 {strides = array<i32>} : memref<72x1152xbf16, #tpu.memory_space<vmem>>, vector<6x128xbf16>,
    %c57 = arith.constant 57 : index
    %c0_207 = arith.constant 0 : index
    %136 = vector.load %arg12[%c57, %c0_207] : memref<128x128xbf16, #tpu.memory_space<vmem>>, vector<6x128xbf16>
    %c30_208 = arith.constant 30 : index
    %c896_209 = arith.constant 896 : index
    %137 = vector.load %arg13[%c30_208, %c896_209] : memref<72x1152xbf16, #tpu.memory_space<vmem>>, vector<6x128xbf16>
    tpu.vector_store %arg13[%c30_208, %c896_209], %136 {strides = array<i32>} : memref<72x1152xbf16, #tpu.memory_space<vmem>>, vector<6x128xbf16>,
    %c58 = arith.constant 58 : index
    %c0_210 = arith.constant 0 : index
    %138 = vector.load %arg12[%c58, %c0_210] : memref<128x128xbf16, #tpu.memory_space<vmem>>, vector<6x128xbf16>
    %c30_211 = arith.constant 30 : index
    %c1024_212 = arith.constant 1024 : index
    %139 = vector.load %arg13[%c30_211, %c1024_212] : memref<72x1152xbf16, #tpu.memory_space<vmem>>, vector<6x128xbf16>
    tpu.vector_store %arg13[%c30_211, %c1024_212], %138 {strides = array<i32>} : memref<72x1152xbf16, #tpu.memory_space<vmem>>, vector<6x128xbf16>,
    %c64 = arith.constant 64 : index
    %c0_213 = arith.constant 0 : index
    %140 = vector.load %arg12[%c64, %c0_213] : memref<128x128xbf16, #tpu.memory_space<vmem>>, vector<6x128xbf16>
    %c36 = arith.constant 36 : index
    %c0_214 = arith.constant 0 : index
    %141 = vector.load %arg13[%c36, %c0_214] : memref<72x1152xbf16, #tpu.memory_space<vmem>>, vector<6x128xbf16>
    tpu.vector_store %arg13[%c36, %c0_214], %140 {strides = array<i32>} : memref<72x1152xbf16, #tpu.memory_space<vmem>>, vector<6x128xbf16>,
    %c65 = arith.constant 65 : index
    %c0_215 = arith.constant 0 : index
    %142 = vector.load %arg12[%c65, %c0_215] : memref<128x128xbf16, #tpu.memory_space<vmem>>, vector<6x128xbf16>
    %c36_216 = arith.constant 36 : index
    %c128_217 = arith.constant 128 : index
    %143 = vector.load %arg13[%c36_216, %c128_217] : memref<72x1152xbf16, #tpu.memory_space<vmem>>, vector<6x128xbf16>
    tpu.vector_store %arg13[%c36_216, %c128_217], %142 {strides = array<i32>} : memref<72x1152xbf16, #tpu.memory_space<vmem>>, vector<6x128xbf16>,
    %c66 = arith.constant 66 : index
    %c0_218 = arith.constant 0 : index
    %144 = vector.load %arg12[%c66, %c0_218] : memref<128x128xbf16, #tpu.memory_space<vmem>>, vector<6x128xbf16>
    %c36_219 = arith.constant 36 : index
    %c256_220 = arith.constant 256 : index
    %145 = vector.load %arg13[%c36_219, %c256_220] : memref<72x1152xbf16, #tpu.memory_space<vmem>>, vector<6x128xbf16>
    tpu.vector_store %arg13[%c36_219, %c256_220], %144 {strides = array<i32>} : memref<72x1152xbf16, #tpu.memory_space<vmem>>, vector<6x128xbf16>,
    %c72 = arith.constant 72 : index
    %c0_221 = arith.constant 0 : index
    %146 = vector.load %arg12[%c72, %c0_221] : memref<128x128xbf16, #tpu.memory_space<vmem>>, vector<6x128xbf16>
    %c36_222 = arith.constant 36 : index
    %c384_223 = arith.constant 384 : index
    %147 = vector.load %arg13[%c36_222, %c384_223] : memref<72x1152xbf16, #tpu.memory_space<vmem>>, vector<6x128xbf16>
    tpu.vector_store %arg13[%c36_222, %c384_223], %146 {strides = array<i32>} : memref<72x1152xbf16, #tpu.memory_space<vmem>>, vector<6x128xbf16>,
    %c73 = arith.constant 73 : index
    %c0_224 = arith.constant 0 : index
    %148 = vector.load %arg12[%c73, %c0_224] : memref<128x128xbf16, #tpu.memory_space<vmem>>, vector<6x128xbf16>
    %c36_225 = arith.constant 36 : index
    %c512_226 = arith.constant 512 : index
    %149 = vector.load %arg13[%c36_225, %c512_226] : memref<72x1152xbf16, #tpu.memory_space<vmem>>, vector<6x128xbf16>
    tpu.vector_store %arg13[%c36_225, %c512_226], %148 {strides = array<i32>} : memref<72x1152xbf16, #tpu.memory_space<vmem>>, vector<6x128xbf16>,
    %c74 = arith.constant 74 : index
    %c0_227 = arith.constant 0 : index
    %150 = vector.load %arg12[%c74, %c0_227] : memref<128x128xbf16, #tpu.memory_space<vmem>>, vector<6x128xbf16>
    %c36_228 = arith.constant 36 : index
    %c640_229 = arith.constant 640 : index
    %151 = vector.load %arg13[%c36_228, %c640_229] : memref<72x1152xbf16, #tpu.memory_space<vmem>>, vector<6x128xbf16>
    tpu.vector_store %arg13[%c36_228, %c640_229], %150 {strides = array<i32>} : memref<72x1152xbf16, #tpu.memory_space<vmem>>, vector<6x128xbf16>,
    %c80 = arith.constant 80 : index
    %c0_230 = arith.constant 0 : index
    %152 = vector.load %arg12[%c80, %c0_230] : memref<128x128xbf16, #tpu.memory_space<vmem>>, vector<6x128xbf16>
    %c36_231 = arith.constant 36 : index
    %c768_232 = arith.constant 768 : index
    %153 = vector.load %arg13[%c36_231, %c768_232] : memref<72x1152xbf16, #tpu.memory_space<vmem>>, vector<6x128xbf16>
    tpu.vector_store %arg13[%c36_231, %c768_232], %152 {strides = array<i32>} : memref<72x1152xbf16, #tpu.memory_space<vmem>>, vector<6x128xbf16>,
    %c81 = arith.constant 81 : index
    %c0_233 = arith.constant 0 : index
    %154 = vector.load %arg12[%c81, %c0_233] : memref<128x128xbf16, #tpu.memory_space<vmem>>, vector<6x128xbf16>
    %c36_234 = arith.constant 36 : index
    %c896_235 = arith.constant 896 : index
    %155 = vector.load %arg13[%c36_234, %c896_235] : memref<72x1152xbf16, #tpu.memory_space<vmem>>, vector<6x128xbf16>
    tpu.vector_store %arg13[%c36_234, %c896_235], %154 {strides = array<i32>} : memref<72x1152xbf16, #tpu.memory_space<vmem>>, vector<6x128xbf16>,
    %c82 = arith.constant 82 : index
    %c0_236 = arith.constant 0 : index
    %156 = vector.load %arg12[%c82, %c0_236] : memref<128x128xbf16, #tpu.memory_space<vmem>>, vector<6x128xbf16>
    %c36_237 = arith.constant 36 : index
    %c1024_238 = arith.constant 1024 : index
    %157 = vector.load %arg13[%c36_237, %c1024_238] : memref<72x1152xbf16, #tpu.memory_space<vmem>>, vector<6x128xbf16>
    tpu.vector_store %arg13[%c36_237, %c1024_238], %156 {strides = array<i32>} : memref<72x1152xbf16, #tpu.memory_space<vmem>>, vector<6x128xbf16>,
    %c72_239 = arith.constant 72 : index
    %c0_240 = arith.constant 0 : index
    %158 = vector.load %arg12[%c72_239, %c0_240] : memref<128x128xbf16, #tpu.memory_space<vmem>>, vector<6x128xbf16>
    %c42_241 = arith.constant 42 : index
    %c0_242 = arith.constant 0 : index
    %159 = vector.load %arg13[%c42_241, %c0_242] : memref<72x1152xbf16, #tpu.memory_space<vmem>>, vector<6x128xbf16>
    tpu.vector_store %arg13[%c42_241, %c0_242], %158 {strides = array<i32>} : memref<72x1152xbf16, #tpu.memory_space<vmem>>, vector<6x128xbf16>,
    %c73_243 = arith.constant 73 : index
    %c0_244 = arith.constant 0 : index
    %160 = vector.load %arg12[%c73_243, %c0_244] : memref<128x128xbf16, #tpu.memory_space<vmem>>, vector<6x128xbf16>
    %c42_245 = arith.constant 42 : index
    %c128_246 = arith.constant 128 : index
    %161 = vector.load %arg13[%c42_245, %c128_246] : memref<72x1152xbf16, #tpu.memory_space<vmem>>, vector<6x128xbf16>
    tpu.vector_store %arg13[%c42_245, %c128_246], %160 {strides = array<i32>} : memref<72x1152xbf16, #tpu.memory_space<vmem>>, vector<6x128xbf16>,
    %c74_247 = arith.constant 74 : index
    %c0_248 = arith.constant 0 : index
    %162 = vector.load %arg12[%c74_247, %c0_248] : memref<128x128xbf16, #tpu.memory_space<vmem>>, vector<6x128xbf16>
    %c42_249 = arith.constant 42 : index
    %c256_250 = arith.constant 256 : index
    %163 = vector.load %arg13[%c42_249, %c256_250] : memref<72x1152xbf16, #tpu.memory_space<vmem>>, vector<6x128xbf16>
    tpu.vector_store %arg13[%c42_249, %c256_250], %162 {strides = array<i32>} : memref<72x1152xbf16, #tpu.memory_space<vmem>>, vector<6x128xbf16>,
    %c80_251 = arith.constant 80 : index
    %c0_252 = arith.constant 0 : index
    %164 = vector.load %arg12[%c80_251, %c0_252] : memref<128x128xbf16, #tpu.memory_space<vmem>>, vector<6x128xbf16>
    %c42_253 = arith.constant 42 : index
    %c384_254 = arith.constant 384 : index
    %165 = vector.load %arg13[%c42_253, %c384_254] : memref<72x1152xbf16, #tpu.memory_space<vmem>>, vector<6x128xbf16>
    tpu.vector_store %arg13[%c42_253, %c384_254], %164 {strides = array<i32>} : memref<72x1152xbf16, #tpu.memory_space<vmem>>, vector<6x128xbf16>,
    %c81_255 = arith.constant 81 : index
    %c0_256 = arith.constant 0 : index
    %166 = vector.load %arg12[%c81_255, %c0_256] : memref<128x128xbf16, #tpu.memory_space<vmem>>, vector<6x128xbf16>
    %c42_257 = arith.constant 42 : index
    %c512_258 = arith.constant 512 : index
    %167 = vector.load %arg13[%c42_257, %c512_258] : memref<72x1152xbf16, #tpu.memory_space<vmem>>, vector<6x128xbf16>
    tpu.vector_store %arg13[%c42_257, %c512_258], %166 {strides = array<i32>} : memref<72x1152xbf16, #tpu.memory_space<vmem>>, vector<6x128xbf16>,
    %c82_259 = arith.constant 82 : index
    %c0_260 = arith.constant 0 : index
    %168 = vector.load %arg12[%c82_259, %c0_260] : memref<128x128xbf16, #tpu.memory_space<vmem>>, vector<6x128xbf16>
    %c42_261 = arith.constant 42 : index
    %c640_262 = arith.constant 640 : index
    %169 = vector.load %arg13[%c42_261, %c640_262] : memref<72x1152xbf16, #tpu.memory_space<vmem>>, vector<6x128xbf16>
    tpu.vector_store %arg13[%c42_261, %c640_262], %168 {strides = array<i32>} : memref<72x1152xbf16, #tpu.memory_space<vmem>>, vector<6x128xbf16>,
    %c88 = arith.constant 88 : index
    %c0_263 = arith.constant 0 : index
    %170 = vector.load %arg12[%c88, %c0_263] : memref<128x128xbf16, #tpu.memory_space<vmem>>, vector<6x128xbf16>
    %c42_264 = arith.constant 42 : index
    %c768_265 = arith.constant 768 : index
    %171 = vector.load %arg13[%c42_264, %c768_265] : memref<72x1152xbf16, #tpu.memory_space<vmem>>, vector<6x128xbf16>
    tpu.vector_store %arg13[%c42_264, %c768_265], %170 {strides = array<i32>} : memref<72x1152xbf16, #tpu.memory_space<vmem>>, vector<6x128xbf16>,
    %c89 = arith.constant 89 : index
    %c0_266 = arith.constant 0 : index
    %172 = vector.load %arg12[%c89, %c0_266] : memref<128x128xbf16, #tpu.memory_space<vmem>>, vector<6x128xbf16>
    %c42_267 = arith.constant 42 : index
    %c896_268 = arith.constant 896 : index
    %173 = vector.load %arg13[%c42_267, %c896_268] : memref<72x1152xbf16, #tpu.memory_space<vmem>>, vector<6x128xbf16>
    tpu.vector_store %arg13[%c42_267, %c896_268], %172 {strides = array<i32>} : memref<72x1152xbf16, #tpu.memory_space<vmem>>, vector<6x128xbf16>,
    %c90 = arith.constant 90 : index
    %c0_269 = arith.constant 0 : index
    %174 = vector.load %arg12[%c90, %c0_269] : memref<128x128xbf16, #tpu.memory_space<vmem>>, vector<6x128xbf16>
    %c42_270 = arith.constant 42 : index
    %c1024_271 = arith.constant 1024 : index
    %175 = vector.load %arg13[%c42_270, %c1024_271] : memref<72x1152xbf16, #tpu.memory_space<vmem>>, vector<6x128xbf16>
    tpu.vector_store %arg13[%c42_270, %c1024_271], %174 {strides = array<i32>} : memref<72x1152xbf16, #tpu.memory_space<vmem>>, vector<6x128xbf16>,
    %c80_272 = arith.constant 80 : index
    %c0_273 = arith.constant 0 : index
    %176 = vector.load %arg12[%c80_272, %c0_273] : memref<128x128xbf16, #tpu.memory_space<vmem>>, vector<6x128xbf16>
    %c48_274 = arith.constant 48 : index
    %c0_275 = arith.constant 0 : index
    %177 = vector.load %arg13[%c48_274, %c0_275] : memref<72x1152xbf16, #tpu.memory_space<vmem>>, vector<6x128xbf16>
    tpu.vector_store %arg13[%c48_274, %c0_275], %176 {strides = array<i32>} : memref<72x1152xbf16, #tpu.memory_space<vmem>>, vector<6x128xbf16>,
    %c81_276 = arith.constant 81 : index
    %c0_277 = arith.constant 0 : index
    %178 = vector.load %arg12[%c81_276, %c0_277] : memref<128x128xbf16, #tpu.memory_space<vmem>>, vector<6x128xbf16>
    %c48_278 = arith.constant 48 : index
    %c128_279 = arith.constant 128 : index
    %179 = vector.load %arg13[%c48_278, %c128_279] : memref<72x1152xbf16, #tpu.memory_space<vmem>>, vector<6x128xbf16>
    tpu.vector_store %arg13[%c48_278, %c128_279], %178 {strides = array<i32>} : memref<72x1152xbf16, #tpu.memory_space<vmem>>, vector<6x128xbf16>,
    %c82_280 = arith.constant 82 : index
    %c0_281 = arith.constant 0 : index
    %180 = vector.load %arg12[%c82_280, %c0_281] : memref<128x128xbf16, #tpu.memory_space<vmem>>, vector<6x128xbf16>
    %c48_282 = arith.constant 48 : index
    %c256_283 = arith.constant 256 : index
    %181 = vector.load %arg13[%c48_282, %c256_283] : memref<72x1152xbf16, #tpu.memory_space<vmem>>, vector<6x128xbf16>
    tpu.vector_store %arg13[%c48_282, %c256_283], %180 {strides = array<i32>} : memref<72x1152xbf16, #tpu.memory_space<vmem>>, vector<6x128xbf16>,
    %c88_284 = arith.constant 88 : index
    %c0_285 = arith.constant 0 : index
    %182 = vector.load %arg12[%c88_284, %c0_285] : memref<128x128xbf16, #tpu.memory_space<vmem>>, vector<6x128xbf16>
    %c48_286 = arith.constant 48 : index
    %c384_287 = arith.constant 384 : index
    %183 = vector.load %arg13[%c48_286, %c384_287] : memref<72x1152xbf16, #tpu.memory_space<vmem>>, vector<6x128xbf16>
    tpu.vector_store %arg13[%c48_286, %c384_287], %182 {strides = array<i32>} : memref<72x1152xbf16, #tpu.memory_space<vmem>>, vector<6x128xbf16>,
    %c89_288 = arith.constant 89 : index
    %c0_289 = arith.constant 0 : index
    %184 = vector.load %arg12[%c89_288, %c0_289] : memref<128x128xbf16, #tpu.memory_space<vmem>>, vector<6x128xbf16>
    %c48_290 = arith.constant 48 : index
    %c512_291 = arith.constant 512 : index
    %185 = vector.load %arg13[%c48_290, %c512_291] : memref<72x1152xbf16, #tpu.memory_space<vmem>>, vector<6x128xbf16>
    tpu.vector_store %arg13[%c48_290, %c512_291], %184 {strides = array<i32>} : memref<72x1152xbf16, #tpu.memory_space<vmem>>, vector<6x128xbf16>,
    %c90_292 = arith.constant 90 : index
    %c0_293 = arith.constant 0 : index
    %186 = vector.load %arg12[%c90_292, %c0_293] : memref<128x128xbf16, #tpu.memory_space<vmem>>, vector<6x128xbf16>
    %c48_294 = arith.constant 48 : index
    %c640_295 = arith.constant 640 : index
    %187 = vector.load %arg13[%c48_294, %c640_295] : memref<72x1152xbf16, #tpu.memory_space<vmem>>, vector<6x128xbf16>
    tpu.vector_store %arg13[%c48_294, %c640_295], %186 {strides = array<i32>} : memref<72x1152xbf16, #tpu.memory_space<vmem>>, vector<6x128xbf16>,
    %c96 = arith.constant 96 : index
    %c0_296 = arith.constant 0 : index
    %188 = vector.load %arg12[%c96, %c0_296] : memref<128x128xbf16, #tpu.memory_space<vmem>>, vector<6x128xbf16>
    %c48_297 = arith.constant 48 : index
    %c768_298 = arith.constant 768 : index
    %189 = vector.load %arg13[%c48_297, %c768_298] : memref<72x1152xbf16, #tpu.memory_space<vmem>>, vector<6x128xbf16>
    tpu.vector_store %arg13[%c48_297, %c768_298], %188 {strides = array<i32>} : memref<72x1152xbf16, #tpu.memory_space<vmem>>, vector<6x128xbf16>,
    %c97 = arith.constant 97 : index
    %c0_299 = arith.constant 0 : index
    %190 = vector.load %arg12[%c97, %c0_299] : memref<128x128xbf16, #tpu.memory_space<vmem>>, vector<6x128xbf16>
    %c48_300 = arith.constant 48 : index
    %c896_301 = arith.constant 896 : index
    %191 = vector.load %arg13[%c48_300, %c896_301] : memref<72x1152xbf16, #tpu.memory_space<vmem>>, vector<6x128xbf16>
    tpu.vector_store %arg13[%c48_300, %c896_301], %190 {strides = array<i32>} : memref<72x1152xbf16, #tpu.memory_space<vmem>>, vector<6x128xbf16>,
    %c98 = arith.constant 98 : index
    %c0_302 = arith.constant 0 : index
    %192 = vector.load %arg12[%c98, %c0_302] : memref<128x128xbf16, #tpu.memory_space<vmem>>, vector<6x128xbf16>
    %c48_303 = arith.constant 48 : index
    %c1024_304 = arith.constant 1024 : index
    %193 = vector.load %arg13[%c48_303, %c1024_304] : memref<72x1152xbf16, #tpu.memory_space<vmem>>, vector<6x128xbf16>
    tpu.vector_store %arg13[%c48_303, %c1024_304], %192 {strides = array<i32>} : memref<72x1152xbf16, #tpu.memory_space<vmem>>, vector<6x128xbf16>,
    %c88_305 = arith.constant 88 : index
    %c0_306 = arith.constant 0 : index
    %194 = vector.load %arg12[%c88_305, %c0_306] : memref<128x128xbf16, #tpu.memory_space<vmem>>, vector<6x128xbf16>
    %c54 = arith.constant 54 : index
    %c0_307 = arith.constant 0 : index
    %195 = vector.load %arg13[%c54, %c0_307] : memref<72x1152xbf16, #tpu.memory_space<vmem>>, vector<6x128xbf16>
    tpu.vector_store %arg13[%c54, %c0_307], %194 {strides = array<i32>} : memref<72x1152xbf16, #tpu.memory_space<vmem>>, vector<6x128xbf16>,
    %c89_308 = arith.constant 89 : index
    %c0_309 = arith.constant 0 : index
    %196 = vector.load %arg12[%c89_308, %c0_309] : memref<128x128xbf16, #tpu.memory_space<vmem>>, vector<6x128xbf16>
    %c54_310 = arith.constant 54 : index
    %c128_311 = arith.constant 128 : index
    %197 = vector.load %arg13[%c54_310, %c128_311] : memref<72x1152xbf16, #tpu.memory_space<vmem>>, vector<6x128xbf16>
    tpu.vector_store %arg13[%c54_310, %c128_311], %196 {strides = array<i32>} : memref<72x1152xbf16, #tpu.memory_space<vmem>>, vector<6x128xbf16>,
    %c90_312 = arith.constant 90 : index
    %c0_313 = arith.constant 0 : index
    %198 = vector.load %arg12[%c90_312, %c0_313] : memref<128x128xbf16, #tpu.memory_space<vmem>>, vector<6x128xbf16>
    %c54_314 = arith.constant 54 : index
    %c256_315 = arith.constant 256 : index
    %199 = vector.load %arg13[%c54_314, %c256_315] : memref<72x1152xbf16, #tpu.memory_space<vmem>>, vector<6x128xbf16>
    tpu.vector_store %arg13[%c54_314, %c256_315], %198 {strides = array<i32>} : memref<72x1152xbf16, #tpu.memory_space<vmem>>, vector<6x128xbf16>,
    %c96_316 = arith.constant 96 : index
    %c0_317 = arith.constant 0 : index
    %200 = vector.load %arg12[%c96_316, %c0_317] : memref<128x128xbf16, #tpu.memory_space<vmem>>, vector<6x128xbf16>
    %c54_318 = arith.constant 54 : index
    %c384_319 = arith.constant 384 : index
    %201 = vector.load %arg13[%c54_318, %c384_319] : memref<72x1152xbf16, #tpu.memory_space<vmem>>, vector<6x128xbf16>
    tpu.vector_store %arg13[%c54_318, %c384_319], %200 {strides = array<i32>} : memref<72x1152xbf16, #tpu.memory_space<vmem>>, vector<6x128xbf16>,
    %c97_320 = arith.constant 97 : index
    %c0_321 = arith.constant 0 : index
    %202 = vector.load %arg12[%c97_320, %c0_321] : memref<128x128xbf16, #tpu.memory_space<vmem>>, vector<6x128xbf16>
    %c54_322 = arith.constant 54 : index
    %c512_323 = arith.constant 512 : index
    %203 = vector.load %arg13[%c54_322, %c512_323] : memref<72x1152xbf16, #tpu.memory_space<vmem>>, vector<6x128xbf16>
    tpu.vector_store %arg13[%c54_322, %c512_323], %202 {strides = array<i32>} : memref<72x1152xbf16, #tpu.memory_space<vmem>>, vector<6x128xbf16>,
    %c98_324 = arith.constant 98 : index
    %c0_325 = arith.constant 0 : index
    %204 = vector.load %arg12[%c98_324, %c0_325] : memref<128x128xbf16, #tpu.memory_space<vmem>>, vector<6x128xbf16>
    %c54_326 = arith.constant 54 : index
    %c640_327 = arith.constant 640 : index
    %205 = vector.load %arg13[%c54_326, %c640_327] : memref<72x1152xbf16, #tpu.memory_space<vmem>>, vector<6x128xbf16>
    tpu.vector_store %arg13[%c54_326, %c640_327], %204 {strides = array<i32>} : memref<72x1152xbf16, #tpu.memory_space<vmem>>, vector<6x128xbf16>,
    %c104 = arith.constant 104 : index
    %c0_328 = arith.constant 0 : index
    %206 = vector.load %arg12[%c104, %c0_328] : memref<128x128xbf16, #tpu.memory_space<vmem>>, vector<6x128xbf16>
    %c54_329 = arith.constant 54 : index
    %c768_330 = arith.constant 768 : index
    %207 = vector.load %arg13[%c54_329, %c768_330] : memref<72x1152xbf16, #tpu.memory_space<vmem>>, vector<6x128xbf16>
    tpu.vector_store %arg13[%c54_329, %c768_330], %206 {strides = array<i32>} : memref<72x1152xbf16, #tpu.memory_space<vmem>>, vector<6x128xbf16>,
    %c105 = arith.constant 105 : index
    %c0_331 = arith.constant 0 : index
    %208 = vector.load %arg12[%c105, %c0_331] : memref<128x128xbf16, #tpu.memory_space<vmem>>, vector<6x128xbf16>
    %c54_332 = arith.constant 54 : index
    %c896_333 = arith.constant 896 : index
    %209 = vector.load %arg13[%c54_332, %c896_333] : memref<72x1152xbf16, #tpu.memory_space<vmem>>, vector<6x128xbf16>
    tpu.vector_store %arg13[%c54_332, %c896_333], %208 {strides = array<i32>} : memref<72x1152xbf16, #tpu.memory_space<vmem>>, vector<6x128xbf16>,
    %c106 = arith.constant 106 : index
    %c0_334 = arith.constant 0 : index
    %210 = vector.load %arg12[%c106, %c0_334] : memref<128x128xbf16, #tpu.memory_space<vmem>>, vector<6x128xbf16>
    %c54_335 = arith.constant 54 : index
    %c1024_336 = arith.constant 1024 : index
    %211 = vector.load %arg13[%c54_335, %c1024_336] : memref<72x1152xbf16, #tpu.memory_space<vmem>>, vector<6x128xbf16>
    tpu.vector_store %arg13[%c54_335, %c1024_336], %210 {strides = array<i32>} : memref<72x1152xbf16, #tpu.memory_space<vmem>>, vector<6x128xbf16>,
    %c96_337 = arith.constant 96 : index
    %c0_338 = arith.constant 0 : index
    %212 = vector.load %arg12[%c96_337, %c0_338] : memref<128x128xbf16, #tpu.memory_space<vmem>>, vector<6x128xbf16>
    %c60 = arith.constant 60 : index
    %c0_339 = arith.constant 0 : index
    %213 = vector.load %arg13[%c60, %c0_339] : memref<72x1152xbf16, #tpu.memory_space<vmem>>, vector<6x128xbf16>
    tpu.vector_store %arg13[%c60, %c0_339], %212 {strides = array<i32>} : memref<72x1152xbf16, #tpu.memory_space<vmem>>, vector<6x128xbf16>,
    %c97_340 = arith.constant 97 : index
    %c0_341 = arith.constant 0 : index
    %214 = vector.load %arg12[%c97_340, %c0_341] : memref<128x128xbf16, #tpu.memory_space<vmem>>, vector<6x128xbf16>
    %c60_342 = arith.constant 60 : index
    %c128_343 = arith.constant 128 : index
    %215 = vector.load %arg13[%c60_342, %c128_343] : memref<72x1152xbf16, #tpu.memory_space<vmem>>, vector<6x128xbf16>
    tpu.vector_store %arg13[%c60_342, %c128_343], %214 {strides = array<i32>} : memref<72x1152xbf16, #tpu.memory_space<vmem>>, vector<6x128xbf16>,
    %c98_344 = arith.constant 98 : index
    %c0_345 = arith.constant 0 : index
    %216 = vector.load %arg12[%c98_344, %c0_345] : memref<128x128xbf16, #tpu.memory_space<vmem>>, vector<6x128xbf16>
    %c60_346 = arith.constant 60 : index
    %c256_347 = arith.constant 256 : index
    %217 = vector.load %arg13[%c60_346, %c256_347] : memref<72x1152xbf16, #tpu.memory_space<vmem>>, vector<6x128xbf16>
    tpu.vector_store %arg13[%c60_346, %c256_347], %216 {strides = array<i32>} : memref<72x1152xbf16, #tpu.memory_space<vmem>>, vector<6x128xbf16>,
    %c104_348 = arith.constant 104 : index
    %c0_349 = arith.constant 0 : index
    %218 = vector.load %arg12[%c104_348, %c0_349] : memref<128x128xbf16, #tpu.memory_space<vmem>>, vector<6x128xbf16>
    %c60_350 = arith.constant 60 : index
    %c384_351 = arith.constant 384 : index
    %219 = vector.load %arg13[%c60_350, %c384_351] : memref<72x1152xbf16, #tpu.memory_space<vmem>>, vector<6x128xbf16>
    tpu.vector_store %arg13[%c60_350, %c384_351], %218 {strides = array<i32>} : memref<72x1152xbf16, #tpu.memory_space<vmem>>, vector<6x128xbf16>,
    %c105_352 = arith.constant 105 : index
    %c0_353 = arith.constant 0 : index
    %220 = vector.load %arg12[%c105_352, %c0_353] : memref<128x128xbf16, #tpu.memory_space<vmem>>, vector<6x128xbf16>
    %c60_354 = arith.constant 60 : index
    %c512_355 = arith.constant 512 : index
    %221 = vector.load %arg13[%c60_354, %c512_355] : memref<72x1152xbf16, #tpu.memory_space<vmem>>, vector<6x128xbf16>
    tpu.vector_store %arg13[%c60_354, %c512_355], %220 {strides = array<i32>} : memref<72x1152xbf16, #tpu.memory_space<vmem>>, vector<6x128xbf16>,
    %c106_356 = arith.constant 106 : index
    %c0_357 = arith.constant 0 : index
    %222 = vector.load %arg12[%c106_356, %c0_357] : memref<128x128xbf16, #tpu.memory_space<vmem>>, vector<6x128xbf16>
    %c60_358 = arith.constant 60 : index
    %c640_359 = arith.constant 640 : index
    %223 = vector.load %arg13[%c60_358, %c640_359] : memref<72x1152xbf16, #tpu.memory_space<vmem>>, vector<6x128xbf16>
    tpu.vector_store %arg13[%c60_358, %c640_359], %222 {strides = array<i32>} : memref<72x1152xbf16, #tpu.memory_space<vmem>>, vector<6x128xbf16>,
    %c112 = arith.constant 112 : index
    %c0_360 = arith.constant 0 : index
    %224 = vector.load %arg12[%c112, %c0_360] : memref<128x128xbf16, #tpu.memory_space<vmem>>, vector<6x128xbf16>
    %c60_361 = arith.constant 60 : index
    %c768_362 = arith.constant 768 : index
    %225 = vector.load %arg13[%c60_361, %c768_362] : memref<72x1152xbf16, #tpu.memory_space<vmem>>, vector<6x128xbf16>
    tpu.vector_store %arg13[%c60_361, %c768_362], %224 {strides = array<i32>} : memref<72x1152xbf16, #tpu.memory_space<vmem>>, vector<6x128xbf16>,
    %c113 = arith.constant 113 : index
    %c0_363 = arith.constant 0 : index
    %226 = vector.load %arg12[%c113, %c0_363] : memref<128x128xbf16, #tpu.memory_space<vmem>>, vector<6x128xbf16>
    %c60_364 = arith.constant 60 : index
    %c896_365 = arith.constant 896 : index
    %227 = vector.load %arg13[%c60_364, %c896_365] : memref<72x1152xbf16, #tpu.memory_space<vmem>>, vector<6x128xbf16>
    tpu.vector_store %arg13[%c60_364, %c896_365], %226 {strides = array<i32>} : memref<72x1152xbf16, #tpu.memory_space<vmem>>, vector<6x128xbf16>,
    %c114 = arith.constant 114 : index
    %c0_366 = arith.constant 0 : index
    %228 = vector.load %arg12[%c114, %c0_366] : memref<128x128xbf16, #tpu.memory_space<vmem>>, vector<6x128xbf16>
    %c60_367 = arith.constant 60 : index
    %c1024_368 = arith.constant 1024 : index
    %229 = vector.load %arg13[%c60_367, %c1024_368] : memref<72x1152xbf16, #tpu.memory_space<vmem>>, vector<6x128xbf16>
    tpu.vector_store %arg13[%c60_367, %c1024_368], %228 {strides = array<i32>} : memref<72x1152xbf16, #tpu.memory_space<vmem>>, vector<6x128xbf16>,
    %c104_369 = arith.constant 104 : index
    %c0_370 = arith.constant 0 : index
    %230 = vector.load %arg12[%c104_369, %c0_370] : memref<128x128xbf16, #tpu.memory_space<vmem>>, vector<6x128xbf16>
    %c66_371 = arith.constant 66 : index
    %c0_372 = arith.constant 0 : index
    %231 = vector.load %arg13[%c66_371, %c0_372] : memref<72x1152xbf16, #tpu.memory_space<vmem>>, vector<6x128xbf16>
    tpu.vector_store %arg13[%c66_371, %c0_372], %230 {strides = array<i32>} : memref<72x1152xbf16, #tpu.memory_space<vmem>>, vector<6x128xbf16>,
    %c105_373 = arith.constant 105 : index
    %c0_374 = arith.constant 0 : index
    %232 = vector.load %arg12[%c105_373, %c0_374] : memref<128x128xbf16, #tpu.memory_space<vmem>>, vector<6x128xbf16>
    %c66_375 = arith.constant 66 : index
    %c128_376 = arith.constant 128 : index
    %233 = vector.load %arg13[%c66_375, %c128_376] : memref<72x1152xbf16, #tpu.memory_space<vmem>>, vector<6x128xbf16>
    tpu.vector_store %arg13[%c66_375, %c128_376], %232 {strides = array<i32>} : memref<72x1152xbf16, #tpu.memory_space<vmem>>, vector<6x128xbf16>,
    %c106_377 = arith.constant 106 : index
    %c0_378 = arith.constant 0 : index
    %234 = vector.load %arg12[%c106_377, %c0_378] : memref<128x128xbf16, #tpu.memory_space<vmem>>, vector<6x128xbf16>
    %c66_379 = arith.constant 66 : index
    %c256_380 = arith.constant 256 : index
    %235 = vector.load %arg13[%c66_379, %c256_380] : memref<72x1152xbf16, #tpu.memory_space<vmem>>, vector<6x128xbf16>
    tpu.vector_store %arg13[%c66_379, %c256_380], %234 {strides = array<i32>} : memref<72x1152xbf16, #tpu.memory_space<vmem>>, vector<6x128xbf16>,
    %c112_381 = arith.constant 112 : index
    %c0_382 = arith.constant 0 : index
    %236 = vector.load %arg12[%c112_381, %c0_382] : memref<128x128xbf16, #tpu.memory_space<vmem>>, vector<6x128xbf16>
    %c66_383 = arith.constant 66 : index
    %c384_384 = arith.constant 384 : index
    %237 = vector.load %arg13[%c66_383, %c384_384] : memref<72x1152xbf16, #tpu.memory_space<vmem>>, vector<6x128xbf16>
    tpu.vector_store %arg13[%c66_383, %c384_384], %236 {strides = array<i32>} : memref<72x1152xbf16, #tpu.memory_space<vmem>>, vector<6x128xbf16>,
    %c113_385 = arith.constant 113 : index
    %c0_386 = arith.constant 0 : index
    %238 = vector.load %arg12[%c113_385, %c0_386] : memref<128x128xbf16, #tpu.memory_space<vmem>>, vector<6x128xbf16>
    %c66_387 = arith.constant 66 : index
    %c512_388 = arith.constant 512 : index
    %239 = vector.load %arg13[%c66_387, %c512_388] : memref<72x1152xbf16, #tpu.memory_space<vmem>>, vector<6x128xbf16>
    tpu.vector_store %arg13[%c66_387, %c512_388], %238 {strides = array<i32>} : memref<72x1152xbf16, #tpu.memory_space<vmem>>, vector<6x128xbf16>,
    %c114_389 = arith.constant 114 : index
    %c0_390 = arith.constant 0 : index
    %240 = vector.load %arg12[%c114_389, %c0_390] : memref<128x128xbf16, #tpu.memory_space<vmem>>, vector<6x128xbf16>
    %c66_391 = arith.constant 66 : index
    %c640_392 = arith.constant 640 : index
    %241 = vector.load %arg13[%c66_391, %c640_392] : memref<72x1152xbf16, #tpu.memory_space<vmem>>, vector<6x128xbf16>
    tpu.vector_store %arg13[%c66_391, %c640_392], %240 {strides = array<i32>} : memref<72x1152xbf16, #tpu.memory_space<vmem>>, vector<6x128xbf16>,
    %c120 = arith.constant 120 : index
    %c0_393 = arith.constant 0 : index
    %242 = vector.load %arg12[%c120, %c0_393] : memref<128x128xbf16, #tpu.memory_space<vmem>>, vector<6x128xbf16>
    %c66_394 = arith.constant 66 : index
    %c768_395 = arith.constant 768 : index
    %243 = vector.load %arg13[%c66_394, %c768_395] : memref<72x1152xbf16, #tpu.memory_space<vmem>>, vector<6x128xbf16>
    tpu.vector_store %arg13[%c66_394, %c768_395], %242 {strides = array<i32>} : memref<72x1152xbf16, #tpu.memory_space<vmem>>, vector<6x128xbf16>,
    %c121 = arith.constant 121 : index
    %c0_396 = arith.constant 0 : index
    %244 = vector.load %arg12[%c121, %c0_396] : memref<128x128xbf16, #tpu.memory_space<vmem>>, vector<6x128xbf16>
    %c66_397 = arith.constant 66 : index
    %c896_398 = arith.constant 896 : index
    %245 = vector.load %arg13[%c66_397, %c896_398] : memref<72x1152xbf16, #tpu.memory_space<vmem>>, vector<6x128xbf16>
    tpu.vector_store %arg13[%c66_397, %c896_398], %244 {strides = array<i32>} : memref<72x1152xbf16, #tpu.memory_space<vmem>>, vector<6x128xbf16>,
    %c122 = arith.constant 122 : index
    %c0_399 = arith.constant 0 : index
    %246 = vector.load %arg12[%c122, %c0_399] : memref<128x128xbf16, #tpu.memory_space<vmem>>, vector<6x128xbf16>
    %c66_400 = arith.constant 66 : index
    %c1024_401 = arith.constant 1024 : index
    %247 = vector.load %arg13[%c66_400, %c1024_401] : memref<72x1152xbf16, #tpu.memory_space<vmem>>, vector<6x128xbf16>
    tpu.vector_store %arg13[%c66_400, %c1024_401], %246 {strides = array<i32>} : memref<72x1152xbf16, #tpu.memory_space<vmem>>, vector<6x128xbf16>,
    %c0_402 = arith.constant 0 : index
    %c0_403 = arith.constant 0 : index
    %248 = vector.load %arg13[%c0_402, %c0_403] : memref<72x1152xbf16, #tpu.memory_space<vmem>>, vector<72x1152xbf16>
    %c0_404 = arith.constant 0 : index
    %c0_405 = arith.constant 0 : index
    %249 = vector.load %arg3[%c0_404, %c0_405] : memref<1152x64xbf16, #tpu.memory_space<vmem>>, vector<1152x64xbf16>
    %cst_406 = arith.constant dense<0.000000e+00> : vector<72x64xf32>
    %250 = tpu.matmul %248, %249, %cst_406 {dimension_numbers = #tpu.dot_dimension_numbers<[1], [0], [0], [1], [0, 0, 1, 1], [], []>} : vector<72x1152xbf16>, vector<1152x64xbf16>, vector<72x64xf32> -> vector<72x64xf32>
    %c0_407 = arith.constant 0 : index
    %c0_408 = arith.constant 0 : index
    %251 = vector.load %arg4[%c0_407, %c0_408] : memref<1x64xf32, #tpu.memory_space<vmem>>, vector<1x64xf32>
    %252 = vector.broadcast %251 : vector<1x64xf32> to vector<72x64xf32>
    %253 = arith.addf %250, %252 : vector<72x64xf32>
    %cst_409 = arith.constant 0.000000e+00 : f32
    %254 = vector.broadcast %cst_409 : f32 to vector<72x64xf32>
    %255 = arith.maximumf %253, %254 : vector<72x64xf32>
    %256 = arith.truncf %255 : vector<72x64xf32> to vector<72x64xbf16>
    %c0_410 = arith.constant 0 : index
    %c0_411 = arith.constant 0 : index
    %257 = vector.load %arg14[%c0_410, %c0_411] : memref<72x64xbf16, #tpu.memory_space<vmem>>, vector<72x64xbf16>
    tpu.vector_store %arg14[%c0_410, %c0_411], %256 {strides = array<i32>} : memref<72x64xbf16, #tpu.memory_space<vmem>>, vector<72x64xbf16>,
    %c0_412 = arith.constant 0 : index
    %c0_413 = arith.constant 0 : index
    %258 = vector.load %arg14[%c0_412, %c0_413] : memref<72x64xbf16, #tpu.memory_space<vmem>>, vector<4x64xbf16>
    %c0_414 = arith.constant 0 : index
    %c0_415 = arith.constant 0 : index
    %259 = vector.load %arg15[%c0_414, %c0_415] : memref<32x576xbf16, #tpu.memory_space<vmem>>, vector<4x64xbf16>
    tpu.vector_store %arg15[%c0_414, %c0_415], %258 {strides = array<i32>} : memref<32x576xbf16, #tpu.memory_space<vmem>>, vector<4x64xbf16>,
    %c1_416 = arith.constant 1 : index
    %c0_417 = arith.constant 0 : index
    %260 = vector.load %arg14[%c1_416, %c0_417] : memref<72x64xbf16, #tpu.memory_space<vmem>>, vector<4x64xbf16>
    %c0_418 = arith.constant 0 : index
    %c64_419 = arith.constant 64 : index
    %261 = vector.load %arg15[%c0_418, %c64_419] : memref<32x576xbf16, #tpu.memory_space<vmem>>, vector<4x64xbf16>
    tpu.vector_store %arg15[%c0_418, %c64_419], %260 {strides = array<i32>} : memref<32x576xbf16, #tpu.memory_space<vmem>>, vector<4x64xbf16>,
    %c2_420 = arith.constant 2 : index
    %c0_421 = arith.constant 0 : index
    %262 = vector.load %arg14[%c2_420, %c0_421] : memref<72x64xbf16, #tpu.memory_space<vmem>>, vector<4x64xbf16>
    %c0_422 = arith.constant 0 : index
    %c128_423 = arith.constant 128 : index
    %263 = vector.load %arg15[%c0_422, %c128_423] : memref<32x576xbf16, #tpu.memory_space<vmem>>, vector<4x64xbf16>
    tpu.vector_store %arg15[%c0_422, %c128_423], %262 {strides = array<i32>} : memref<32x576xbf16, #tpu.memory_space<vmem>>, vector<4x64xbf16>,
    %c6_424 = arith.constant 6 : index
    %c0_425 = arith.constant 0 : index
    %264 = vector.load %arg14[%c6_424, %c0_425] : memref<72x64xbf16, #tpu.memory_space<vmem>>, vector<4x64xbf16>
    %c0_426 = arith.constant 0 : index
    %c192 = arith.constant 192 : index
    %265 = vector.load %arg15[%c0_426, %c192] : memref<32x576xbf16, #tpu.memory_space<vmem>>, vector<4x64xbf16>
    tpu.vector_store %arg15[%c0_426, %c192], %264 {strides = array<i32>} : memref<32x576xbf16, #tpu.memory_space<vmem>>, vector<4x64xbf16>,
    %c7 = arith.constant 7 : index
    %c0_427 = arith.constant 0 : index
    %266 = vector.load %arg14[%c7, %c0_427] : memref<72x64xbf16, #tpu.memory_space<vmem>>, vector<4x64xbf16>
    %c0_428 = arith.constant 0 : index
    %c256_429 = arith.constant 256 : index
    %267 = vector.load %arg15[%c0_428, %c256_429] : memref<32x576xbf16, #tpu.memory_space<vmem>>, vector<4x64xbf16>
    tpu.vector_store %arg15[%c0_428, %c256_429], %266 {strides = array<i32>} : memref<32x576xbf16, #tpu.memory_space<vmem>>, vector<4x64xbf16>,
    %c8_430 = arith.constant 8 : index
    %c0_431 = arith.constant 0 : index
    %268 = vector.load %arg14[%c8_430, %c0_431] : memref<72x64xbf16, #tpu.memory_space<vmem>>, vector<4x64xbf16>
    %c0_432 = arith.constant 0 : index
    %c320 = arith.constant 320 : index
    %269 = vector.load %arg15[%c0_432, %c320] : memref<32x576xbf16, #tpu.memory_space<vmem>>, vector<4x64xbf16>
    tpu.vector_store %arg15[%c0_432, %c320], %268 {strides = array<i32>} : memref<32x576xbf16, #tpu.memory_space<vmem>>, vector<4x64xbf16>,
    %c12_433 = arith.constant 12 : index
    %c0_434 = arith.constant 0 : index
    %270 = vector.load %arg14[%c12_433, %c0_434] : memref<72x64xbf16, #tpu.memory_space<vmem>>, vector<4x64xbf16>
    %c0_435 = arith.constant 0 : index
    %c384_436 = arith.constant 384 : index
    %271 = vector.load %arg15[%c0_435, %c384_436] : memref<32x576xbf16, #tpu.memory_space<vmem>>, vector<4x64xbf16>
    tpu.vector_store %arg15[%c0_435, %c384_436], %270 {strides = array<i32>} : memref<32x576xbf16, #tpu.memory_space<vmem>>, vector<4x64xbf16>,
    %c13 = arith.constant 13 : index
    %c0_437 = arith.constant 0 : index
    %272 = vector.load %arg14[%c13, %c0_437] : memref<72x64xbf16, #tpu.memory_space<vmem>>, vector<4x64xbf16>
    %c0_438 = arith.constant 0 : index
    %c448 = arith.constant 448 : index
    %273 = vector.load %arg15[%c0_438, %c448] : memref<32x576xbf16, #tpu.memory_space<vmem>>, vector<4x64xbf16>
    tpu.vector_store %arg15[%c0_438, %c448], %272 {strides = array<i32>} : memref<32x576xbf16, #tpu.memory_space<vmem>>, vector<4x64xbf16>,
    %c14 = arith.constant 14 : index
    %c0_439 = arith.constant 0 : index
    %274 = vector.load %arg14[%c14, %c0_439] : memref<72x64xbf16, #tpu.memory_space<vmem>>, vector<4x64xbf16>
    %c0_440 = arith.constant 0 : index
    %c512_441 = arith.constant 512 : index
    %275 = vector.load %arg15[%c0_440, %c512_441] : memref<32x576xbf16, #tpu.memory_space<vmem>>, vector<4x64xbf16>
    tpu.vector_store %arg15[%c0_440, %c512_441], %274 {strides = array<i32>} : memref<32x576xbf16, #tpu.memory_space<vmem>>, vector<4x64xbf16>,
    %c6_442 = arith.constant 6 : index
    %c0_443 = arith.constant 0 : index
    %276 = vector.load %arg14[%c6_442, %c0_443] : memref<72x64xbf16, #tpu.memory_space<vmem>>, vector<4x64xbf16>
    %c4 = arith.constant 4 : index
    %c0_444 = arith.constant 0 : index
    %277 = vector.load %arg15[%c4, %c0_444] : memref<32x576xbf16, #tpu.memory_space<vmem>>, vector<4x64xbf16>
    tpu.vector_store %arg15[%c4, %c0_444], %276 {strides = array<i32>} : memref<32x576xbf16, #tpu.memory_space<vmem>>, vector<4x64xbf16>,
    %c7_445 = arith.constant 7 : index
    %c0_446 = arith.constant 0 : index
    %278 = vector.load %arg14[%c7_445, %c0_446] : memref<72x64xbf16, #tpu.memory_space<vmem>>, vector<4x64xbf16>
    %c4_447 = arith.constant 4 : index
    %c64_448 = arith.constant 64 : index
    %279 = vector.load %arg15[%c4_447, %c64_448] : memref<32x576xbf16, #tpu.memory_space<vmem>>, vector<4x64xbf16>
    tpu.vector_store %arg15[%c4_447, %c64_448], %278 {strides = array<i32>} : memref<32x576xbf16, #tpu.memory_space<vmem>>, vector<4x64xbf16>,
    %c8_449 = arith.constant 8 : index
    %c0_450 = arith.constant 0 : index
    %280 = vector.load %arg14[%c8_449, %c0_450] : memref<72x64xbf16, #tpu.memory_space<vmem>>, vector<4x64xbf16>
    %c4_451 = arith.constant 4 : index
    %c128_452 = arith.constant 128 : index
    %281 = vector.load %arg15[%c4_451, %c128_452] : memref<32x576xbf16, #tpu.memory_space<vmem>>, vector<4x64xbf16>
    tpu.vector_store %arg15[%c4_451, %c128_452], %280 {strides = array<i32>} : memref<32x576xbf16, #tpu.memory_space<vmem>>, vector<4x64xbf16>,
    %c12_453 = arith.constant 12 : index
    %c0_454 = arith.constant 0 : index
    %282 = vector.load %arg14[%c12_453, %c0_454] : memref<72x64xbf16, #tpu.memory_space<vmem>>, vector<4x64xbf16>
    %c4_455 = arith.constant 4 : index
    %c192_456 = arith.constant 192 : index
    %283 = vector.load %arg15[%c4_455, %c192_456] : memref<32x576xbf16, #tpu.memory_space<vmem>>, vector<4x64xbf16>
    tpu.vector_store %arg15[%c4_455, %c192_456], %282 {strides = array<i32>} : memref<32x576xbf16, #tpu.memory_space<vmem>>, vector<4x64xbf16>,
    %c13_457 = arith.constant 13 : index
    %c0_458 = arith.constant 0 : index
    %284 = vector.load %arg14[%c13_457, %c0_458] : memref<72x64xbf16, #tpu.memory_space<vmem>>, vector<4x64xbf16>
    %c4_459 = arith.constant 4 : index
    %c256_460 = arith.constant 256 : index
    %285 = vector.load %arg15[%c4_459, %c256_460] : memref<32x576xbf16, #tpu.memory_space<vmem>>, vector<4x64xbf16>
    tpu.vector_store %arg15[%c4_459, %c256_460], %284 {strides = array<i32>} : memref<32x576xbf16, #tpu.memory_space<vmem>>, vector<4x64xbf16>,
    %c14_461 = arith.constant 14 : index
    %c0_462 = arith.constant 0 : index
    %286 = vector.load %arg14[%c14_461, %c0_462] : memref<72x64xbf16, #tpu.memory_space<vmem>>, vector<4x64xbf16>
    %c4_463 = arith.constant 4 : index
    %c320_464 = arith.constant 320 : index
    %287 = vector.load %arg15[%c4_463, %c320_464] : memref<32x576xbf16, #tpu.memory_space<vmem>>, vector<4x64xbf16>
    tpu.vector_store %arg15[%c4_463, %c320_464], %286 {strides = array<i32>} : memref<32x576xbf16, #tpu.memory_space<vmem>>, vector<4x64xbf16>,
    %c18_465 = arith.constant 18 : index
    %c0_466 = arith.constant 0 : index
    %288 = vector.load %arg14[%c18_465, %c0_466] : memref<72x64xbf16, #tpu.memory_space<vmem>>, vector<4x64xbf16>
    %c4_467 = arith.constant 4 : index
    %c384_468 = arith.constant 384 : index
    %289 = vector.load %arg15[%c4_467, %c384_468] : memref<32x576xbf16, #tpu.memory_space<vmem>>, vector<4x64xbf16>
    tpu.vector_store %arg15[%c4_467, %c384_468], %288 {strides = array<i32>} : memref<32x576xbf16, #tpu.memory_space<vmem>>, vector<4x64xbf16>,
    %c19 = arith.constant 19 : index
    %c0_469 = arith.constant 0 : index
    %290 = vector.load %arg14[%c19, %c0_469] : memref<72x64xbf16, #tpu.memory_space<vmem>>, vector<4x64xbf16>
    %c4_470 = arith.constant 4 : index
    %c448_471 = arith.constant 448 : index
    %291 = vector.load %arg15[%c4_470, %c448_471] : memref<32x576xbf16, #tpu.memory_space<vmem>>, vector<4x64xbf16>
    tpu.vector_store %arg15[%c4_470, %c448_471], %290 {strides = array<i32>} : memref<32x576xbf16, #tpu.memory_space<vmem>>, vector<4x64xbf16>,
    %c20 = arith.constant 20 : index
    %c0_472 = arith.constant 0 : index
    %292 = vector.load %arg14[%c20, %c0_472] : memref<72x64xbf16, #tpu.memory_space<vmem>>, vector<4x64xbf16>
    %c4_473 = arith.constant 4 : index
    %c512_474 = arith.constant 512 : index
    %293 = vector.load %arg15[%c4_473, %c512_474] : memref<32x576xbf16, #tpu.memory_space<vmem>>, vector<4x64xbf16>
    tpu.vector_store %arg15[%c4_473, %c512_474], %292 {strides = array<i32>} : memref<32x576xbf16, #tpu.memory_space<vmem>>, vector<4x64xbf16>,
    %c12_475 = arith.constant 12 : index
    %c0_476 = arith.constant 0 : index
    %294 = vector.load %arg14[%c12_475, %c0_476] : memref<72x64xbf16, #tpu.memory_space<vmem>>, vector<4x64xbf16>
    %c8_477 = arith.constant 8 : index
    %c0_478 = arith.constant 0 : index
    %295 = vector.load %arg15[%c8_477, %c0_478] : memref<32x576xbf16, #tpu.memory_space<vmem>>, vector<4x64xbf16>
    tpu.vector_store %arg15[%c8_477, %c0_478], %294 {strides = array<i32>} : memref<32x576xbf16, #tpu.memory_space<vmem>>, vector<4x64xbf16>,
    %c13_479 = arith.constant 13 : index
    %c0_480 = arith.constant 0 : index
    %296 = vector.load %arg14[%c13_479, %c0_480] : memref<72x64xbf16, #tpu.memory_space<vmem>>, vector<4x64xbf16>
    %c8_481 = arith.constant 8 : index
    %c64_482 = arith.constant 64 : index
    %297 = vector.load %arg15[%c8_481, %c64_482] : memref<32x576xbf16, #tpu.memory_space<vmem>>, vector<4x64xbf16>
    tpu.vector_store %arg15[%c8_481, %c64_482], %296 {strides = array<i32>} : memref<32x576xbf16, #tpu.memory_space<vmem>>, vector<4x64xbf16>,
    %c14_483 = arith.constant 14 : index
    %c0_484 = arith.constant 0 : index
    %298 = vector.load %arg14[%c14_483, %c0_484] : memref<72x64xbf16, #tpu.memory_space<vmem>>, vector<4x64xbf16>
    %c8_485 = arith.constant 8 : index
    %c128_486 = arith.constant 128 : index
    %299 = vector.load %arg15[%c8_485, %c128_486] : memref<32x576xbf16, #tpu.memory_space<vmem>>, vector<4x64xbf16>
    tpu.vector_store %arg15[%c8_485, %c128_486], %298 {strides = array<i32>} : memref<32x576xbf16, #tpu.memory_space<vmem>>, vector<4x64xbf16>,
    %c18_487 = arith.constant 18 : index
    %c0_488 = arith.constant 0 : index
    %300 = vector.load %arg14[%c18_487, %c0_488] : memref<72x64xbf16, #tpu.memory_space<vmem>>, vector<4x64xbf16>
    %c8_489 = arith.constant 8 : index
    %c192_490 = arith.constant 192 : index
    %301 = vector.load %arg15[%c8_489, %c192_490] : memref<32x576xbf16, #tpu.memory_space<vmem>>, vector<4x64xbf16>
    tpu.vector_store %arg15[%c8_489, %c192_490], %300 {strides = array<i32>} : memref<32x576xbf16, #tpu.memory_space<vmem>>, vector<4x64xbf16>,
    %c19_491 = arith.constant 19 : index
    %c0_492 = arith.constant 0 : index
    %302 = vector.load %arg14[%c19_491, %c0_492] : memref<72x64xbf16, #tpu.memory_space<vmem>>, vector<4x64xbf16>
    %c8_493 = arith.constant 8 : index
    %c256_494 = arith.constant 256 : index
    %303 = vector.load %arg15[%c8_493, %c256_494] : memref<32x576xbf16, #tpu.memory_space<vmem>>, vector<4x64xbf16>
    tpu.vector_store %arg15[%c8_493, %c256_494], %302 {strides = array<i32>} : memref<32x576xbf16, #tpu.memory_space<vmem>>, vector<4x64xbf16>,
    %c20_495 = arith.constant 20 : index
    %c0_496 = arith.constant 0 : index
    %304 = vector.load %arg14[%c20_495, %c0_496] : memref<72x64xbf16, #tpu.memory_space<vmem>>, vector<4x64xbf16>
    %c8_497 = arith.constant 8 : index
    %c320_498 = arith.constant 320 : index
    %305 = vector.load %arg15[%c8_497, %c320_498] : memref<32x576xbf16, #tpu.memory_space<vmem>>, vector<4x64xbf16>
    tpu.vector_store %arg15[%c8_497, %c320_498], %304 {strides = array<i32>} : memref<32x576xbf16, #tpu.memory_space<vmem>>, vector<4x64xbf16>,
    %c24_499 = arith.constant 24 : index
    %c0_500 = arith.constant 0 : index
    %306 = vector.load %arg14[%c24_499, %c0_500] : memref<72x64xbf16, #tpu.memory_space<vmem>>, vector<4x64xbf16>
    %c8_501 = arith.constant 8 : index
    %c384_502 = arith.constant 384 : index
    %307 = vector.load %arg15[%c8_501, %c384_502] : memref<32x576xbf16, #tpu.memory_space<vmem>>, vector<4x64xbf16>
    tpu.vector_store %arg15[%c8_501, %c384_502], %306 {strides = array<i32>} : memref<32x576xbf16, #tpu.memory_space<vmem>>, vector<4x64xbf16>,
    %c25_503 = arith.constant 25 : index
    %c0_504 = arith.constant 0 : index
    %308 = vector.load %arg14[%c25_503, %c0_504] : memref<72x64xbf16, #tpu.memory_space<vmem>>, vector<4x64xbf16>
    %c8_505 = arith.constant 8 : index
    %c448_506 = arith.constant 448 : index
    %309 = vector.load %arg15[%c8_505, %c448_506] : memref<32x576xbf16, #tpu.memory_space<vmem>>, vector<4x64xbf16>
    tpu.vector_store %arg15[%c8_505, %c448_506], %308 {strides = array<i32>} : memref<32x576xbf16, #tpu.memory_space<vmem>>, vector<4x64xbf16>,
    %c26_507 = arith.constant 26 : index
    %c0_508 = arith.constant 0 : index
    %310 = vector.load %arg14[%c26_507, %c0_508] : memref<72x64xbf16, #tpu.memory_space<vmem>>, vector<4x64xbf16>
    %c8_509 = arith.constant 8 : index
    %c512_510 = arith.constant 512 : index
    %311 = vector.load %arg15[%c8_509, %c512_510] : memref<32x576xbf16, #tpu.memory_space<vmem>>, vector<4x64xbf16>
    tpu.vector_store %arg15[%c8_509, %c512_510], %310 {strides = array<i32>} : memref<32x576xbf16, #tpu.memory_space<vmem>>, vector<4x64xbf16>,
    %c18_511 = arith.constant 18 : index
    %c0_512 = arith.constant 0 : index
    %312 = vector.load %arg14[%c18_511, %c0_512] : memref<72x64xbf16, #tpu.memory_space<vmem>>, vector<4x64xbf16>
    %c12_513 = arith.constant 12 : index
    %c0_514 = arith.constant 0 : index
    %313 = vector.load %arg15[%c12_513, %c0_514] : memref<32x576xbf16, #tpu.memory_space<vmem>>, vector<4x64xbf16>
    tpu.vector_store %arg15[%c12_513, %c0_514], %312 {strides = array<i32>} : memref<32x576xbf16, #tpu.memory_space<vmem>>, vector<4x64xbf16>,
    %c19_515 = arith.constant 19 : index
    %c0_516 = arith.constant 0 : index
    %314 = vector.load %arg14[%c19_515, %c0_516] : memref<72x64xbf16, #tpu.memory_space<vmem>>, vector<4x64xbf16>
    %c12_517 = arith.constant 12 : index
    %c64_518 = arith.constant 64 : index
    %315 = vector.load %arg15[%c12_517, %c64_518] : memref<32x576xbf16, #tpu.memory_space<vmem>>, vector<4x64xbf16>
    tpu.vector_store %arg15[%c12_517, %c64_518], %314 {strides = array<i32>} : memref<32x576xbf16, #tpu.memory_space<vmem>>, vector<4x64xbf16>,
    %c20_519 = arith.constant 20 : index
    %c0_520 = arith.constant 0 : index
    %316 = vector.load %arg14[%c20_519, %c0_520] : memref<72x64xbf16, #tpu.memory_space<vmem>>, vector<4x64xbf16>
    %c12_521 = arith.constant 12 : index
    %c128_522 = arith.constant 128 : index
    %317 = vector.load %arg15[%c12_521, %c128_522] : memref<32x576xbf16, #tpu.memory_space<vmem>>, vector<4x64xbf16>
    tpu.vector_store %arg15[%c12_521, %c128_522], %316 {strides = array<i32>} : memref<32x576xbf16, #tpu.memory_space<vmem>>, vector<4x64xbf16>,
    %c24_523 = arith.constant 24 : index
    %c0_524 = arith.constant 0 : index
    %318 = vector.load %arg14[%c24_523, %c0_524] : memref<72x64xbf16, #tpu.memory_space<vmem>>, vector<4x64xbf16>
    %c12_525 = arith.constant 12 : index
    %c192_526 = arith.constant 192 : index
    %319 = vector.load %arg15[%c12_525, %c192_526] : memref<32x576xbf16, #tpu.memory_space<vmem>>, vector<4x64xbf16>
    tpu.vector_store %arg15[%c12_525, %c192_526], %318 {strides = array<i32>} : memref<32x576xbf16, #tpu.memory_space<vmem>>, vector<4x64xbf16>,
    %c25_527 = arith.constant 25 : index
    %c0_528 = arith.constant 0 : index
    %320 = vector.load %arg14[%c25_527, %c0_528] : memref<72x64xbf16, #tpu.memory_space<vmem>>, vector<4x64xbf16>
    %c12_529 = arith.constant 12 : index
    %c256_530 = arith.constant 256 : index
    %321 = vector.load %arg15[%c12_529, %c256_530] : memref<32x576xbf16, #tpu.memory_space<vmem>>, vector<4x64xbf16>
    tpu.vector_store %arg15[%c12_529, %c256_530], %320 {strides = array<i32>} : memref<32x576xbf16, #tpu.memory_space<vmem>>, vector<4x64xbf16>,
    %c26_531 = arith.constant 26 : index
    %c0_532 = arith.constant 0 : index
    %322 = vector.load %arg14[%c26_531, %c0_532] : memref<72x64xbf16, #tpu.memory_space<vmem>>, vector<4x64xbf16>
    %c12_533 = arith.constant 12 : index
    %c320_534 = arith.constant 320 : index
    %323 = vector.load %arg15[%c12_533, %c320_534] : memref<32x576xbf16, #tpu.memory_space<vmem>>, vector<4x64xbf16>
    tpu.vector_store %arg15[%c12_533, %c320_534], %322 {strides = array<i32>} : memref<32x576xbf16, #tpu.memory_space<vmem>>, vector<4x64xbf16>,
    %c30_535 = arith.constant 30 : index
    %c0_536 = arith.constant 0 : index
    %324 = vector.load %arg14[%c30_535, %c0_536] : memref<72x64xbf16, #tpu.memory_space<vmem>>, vector<4x64xbf16>
    %c12_537 = arith.constant 12 : index
    %c384_538 = arith.constant 384 : index
    %325 = vector.load %arg15[%c12_537, %c384_538] : memref<32x576xbf16, #tpu.memory_space<vmem>>, vector<4x64xbf16>
    tpu.vector_store %arg15[%c12_537, %c384_538], %324 {strides = array<i32>} : memref<32x576xbf16, #tpu.memory_space<vmem>>, vector<4x64xbf16>,
    %c31 = arith.constant 31 : index
    %c0_539 = arith.constant 0 : index
    %326 = vector.load %arg14[%c31, %c0_539] : memref<72x64xbf16, #tpu.memory_space<vmem>>, vector<4x64xbf16>
    %c12_540 = arith.constant 12 : index
    %c448_541 = arith.constant 448 : index
    %327 = vector.load %arg15[%c12_540, %c448_541] : memref<32x576xbf16, #tpu.memory_space<vmem>>, vector<4x64xbf16>
    tpu.vector_store %arg15[%c12_540, %c448_541], %326 {strides = array<i32>} : memref<32x576xbf16, #tpu.memory_space<vmem>>, vector<4x64xbf16>,
    %c32_542 = arith.constant 32 : index
    %c0_543 = arith.constant 0 : index
    %328 = vector.load %arg14[%c32_542, %c0_543] : memref<72x64xbf16, #tpu.memory_space<vmem>>, vector<4x64xbf16>
    %c12_544 = arith.constant 12 : index
    %c512_545 = arith.constant 512 : index
    %329 = vector.load %arg15[%c12_544, %c512_545] : memref<32x576xbf16, #tpu.memory_space<vmem>>, vector<4x64xbf16>
    tpu.vector_store %arg15[%c12_544, %c512_545], %328 {strides = array<i32>} : memref<32x576xbf16, #tpu.memory_space<vmem>>, vector<4x64xbf16>,
    %c36_546 = arith.constant 36 : index
    %c0_547 = arith.constant 0 : index
    %330 = vector.load %arg14[%c36_546, %c0_547] : memref<72x64xbf16, #tpu.memory_space<vmem>>, vector<4x64xbf16>
    %c16_548 = arith.constant 16 : index
    %c0_549 = arith.constant 0 : index
    %331 = vector.load %arg15[%c16_548, %c0_549] : memref<32x576xbf16, #tpu.memory_space<vmem>>, vector<4x64xbf16>
    tpu.vector_store %arg15[%c16_548, %c0_549], %330 {strides = array<i32>} : memref<32x576xbf16, #tpu.memory_space<vmem>>, vector<4x64xbf16>,
    %c37 = arith.constant 37 : index
    %c0_550 = arith.constant 0 : index
    %332 = vector.load %arg14[%c37, %c0_550] : memref<72x64xbf16, #tpu.memory_space<vmem>>, vector<4x64xbf16>
    %c16_551 = arith.constant 16 : index
    %c64_552 = arith.constant 64 : index
    %333 = vector.load %arg15[%c16_551, %c64_552] : memref<32x576xbf16, #tpu.memory_space<vmem>>, vector<4x64xbf16>
    tpu.vector_store %arg15[%c16_551, %c64_552], %332 {strides = array<i32>} : memref<32x576xbf16, #tpu.memory_space<vmem>>, vector<4x64xbf16>,
    %c38 = arith.constant 38 : index
    %c0_553 = arith.constant 0 : index
    %334 = vector.load %arg14[%c38, %c0_553] : memref<72x64xbf16, #tpu.memory_space<vmem>>, vector<4x64xbf16>
    %c16_554 = arith.constant 16 : index
    %c128_555 = arith.constant 128 : index
    %335 = vector.load %arg15[%c16_554, %c128_555] : memref<32x576xbf16, #tpu.memory_space<vmem>>, vector<4x64xbf16>
    tpu.vector_store %arg15[%c16_554, %c128_555], %334 {strides = array<i32>} : memref<32x576xbf16, #tpu.memory_space<vmem>>, vector<4x64xbf16>,
    %c42_556 = arith.constant 42 : index
    %c0_557 = arith.constant 0 : index
    %336 = vector.load %arg14[%c42_556, %c0_557] : memref<72x64xbf16, #tpu.memory_space<vmem>>, vector<4x64xbf16>
    %c16_558 = arith.constant 16 : index
    %c192_559 = arith.constant 192 : index
    %337 = vector.load %arg15[%c16_558, %c192_559] : memref<32x576xbf16, #tpu.memory_space<vmem>>, vector<4x64xbf16>
    tpu.vector_store %arg15[%c16_558, %c192_559], %336 {strides = array<i32>} : memref<32x576xbf16, #tpu.memory_space<vmem>>, vector<4x64xbf16>,
    %c43 = arith.constant 43 : index
    %c0_560 = arith.constant 0 : index
    %338 = vector.load %arg14[%c43, %c0_560] : memref<72x64xbf16, #tpu.memory_space<vmem>>, vector<4x64xbf16>
    %c16_561 = arith.constant 16 : index
    %c256_562 = arith.constant 256 : index
    %339 = vector.load %arg15[%c16_561, %c256_562] : memref<32x576xbf16, #tpu.memory_space<vmem>>, vector<4x64xbf16>
    tpu.vector_store %arg15[%c16_561, %c256_562], %338 {strides = array<i32>} : memref<32x576xbf16, #tpu.memory_space<vmem>>, vector<4x64xbf16>,
    %c44 = arith.constant 44 : index
    %c0_563 = arith.constant 0 : index
    %340 = vector.load %arg14[%c44, %c0_563] : memref<72x64xbf16, #tpu.memory_space<vmem>>, vector<4x64xbf16>
    %c16_564 = arith.constant 16 : index
    %c320_565 = arith.constant 320 : index
    %341 = vector.load %arg15[%c16_564, %c320_565] : memref<32x576xbf16, #tpu.memory_space<vmem>>, vector<4x64xbf16>
    tpu.vector_store %arg15[%c16_564, %c320_565], %340 {strides = array<i32>} : memref<32x576xbf16, #tpu.memory_space<vmem>>, vector<4x64xbf16>,
    %c48_566 = arith.constant 48 : index
    %c0_567 = arith.constant 0 : index
    %342 = vector.load %arg14[%c48_566, %c0_567] : memref<72x64xbf16, #tpu.memory_space<vmem>>, vector<4x64xbf16>
    %c16_568 = arith.constant 16 : index
    %c384_569 = arith.constant 384 : index
    %343 = vector.load %arg15[%c16_568, %c384_569] : memref<32x576xbf16, #tpu.memory_space<vmem>>, vector<4x64xbf16>
    tpu.vector_store %arg15[%c16_568, %c384_569], %342 {strides = array<i32>} : memref<32x576xbf16, #tpu.memory_space<vmem>>, vector<4x64xbf16>,
    %c49_570 = arith.constant 49 : index
    %c0_571 = arith.constant 0 : index
    %344 = vector.load %arg14[%c49_570, %c0_571] : memref<72x64xbf16, #tpu.memory_space<vmem>>, vector<4x64xbf16>
    %c16_572 = arith.constant 16 : index
    %c448_573 = arith.constant 448 : index
    %345 = vector.load %arg15[%c16_572, %c448_573] : memref<32x576xbf16, #tpu.memory_space<vmem>>, vector<4x64xbf16>
    tpu.vector_store %arg15[%c16_572, %c448_573], %344 {strides = array<i32>} : memref<32x576xbf16, #tpu.memory_space<vmem>>, vector<4x64xbf16>,
    %c50_574 = arith.constant 50 : index
    %c0_575 = arith.constant 0 : index
    %346 = vector.load %arg14[%c50_574, %c0_575] : memref<72x64xbf16, #tpu.memory_space<vmem>>, vector<4x64xbf16>
    %c16_576 = arith.constant 16 : index
    %c512_577 = arith.constant 512 : index
    %347 = vector.load %arg15[%c16_576, %c512_577] : memref<32x576xbf16, #tpu.memory_space<vmem>>, vector<4x64xbf16>
    tpu.vector_store %arg15[%c16_576, %c512_577], %346 {strides = array<i32>} : memref<32x576xbf16, #tpu.memory_space<vmem>>, vector<4x64xbf16>,
    %c42_578 = arith.constant 42 : index
    %c0_579 = arith.constant 0 : index
    %348 = vector.load %arg14[%c42_578, %c0_579] : memref<72x64xbf16, #tpu.memory_space<vmem>>, vector<4x64xbf16>
    %c20_580 = arith.constant 20 : index
    %c0_581 = arith.constant 0 : index
    %349 = vector.load %arg15[%c20_580, %c0_581] : memref<32x576xbf16, #tpu.memory_space<vmem>>, vector<4x64xbf16>
    tpu.vector_store %arg15[%c20_580, %c0_581], %348 {strides = array<i32>} : memref<32x576xbf16, #tpu.memory_space<vmem>>, vector<4x64xbf16>,
    %c43_582 = arith.constant 43 : index
    %c0_583 = arith.constant 0 : index
    %350 = vector.load %arg14[%c43_582, %c0_583] : memref<72x64xbf16, #tpu.memory_space<vmem>>, vector<4x64xbf16>
    %c20_584 = arith.constant 20 : index
    %c64_585 = arith.constant 64 : index
    %351 = vector.load %arg15[%c20_584, %c64_585] : memref<32x576xbf16, #tpu.memory_space<vmem>>, vector<4x64xbf16>
    tpu.vector_store %arg15[%c20_584, %c64_585], %350 {strides = array<i32>} : memref<32x576xbf16, #tpu.memory_space<vmem>>, vector<4x64xbf16>,
    %c44_586 = arith.constant 44 : index
    %c0_587 = arith.constant 0 : index
    %352 = vector.load %arg14[%c44_586, %c0_587] : memref<72x64xbf16, #tpu.memory_space<vmem>>, vector<4x64xbf16>
    %c20_588 = arith.constant 20 : index
    %c128_589 = arith.constant 128 : index
    %353 = vector.load %arg15[%c20_588, %c128_589] : memref<32x576xbf16, #tpu.memory_space<vmem>>, vector<4x64xbf16>
    tpu.vector_store %arg15[%c20_588, %c128_589], %352 {strides = array<i32>} : memref<32x576xbf16, #tpu.memory_space<vmem>>, vector<4x64xbf16>,
    %c48_590 = arith.constant 48 : index
    %c0_591 = arith.constant 0 : index
    %354 = vector.load %arg14[%c48_590, %c0_591] : memref<72x64xbf16, #tpu.memory_space<vmem>>, vector<4x64xbf16>
    %c20_592 = arith.constant 20 : index
    %c192_593 = arith.constant 192 : index
    %355 = vector.load %arg15[%c20_592, %c192_593] : memref<32x576xbf16, #tpu.memory_space<vmem>>, vector<4x64xbf16>
    tpu.vector_store %arg15[%c20_592, %c192_593], %354 {strides = array<i32>} : memref<32x576xbf16, #tpu.memory_space<vmem>>, vector<4x64xbf16>,
    %c49_594 = arith.constant 49 : index
    %c0_595 = arith.constant 0 : index
    %356 = vector.load %arg14[%c49_594, %c0_595] : memref<72x64xbf16, #tpu.memory_space<vmem>>, vector<4x64xbf16>
    %c20_596 = arith.constant 20 : index
    %c256_597 = arith.constant 256 : index
    %357 = vector.load %arg15[%c20_596, %c256_597] : memref<32x576xbf16, #tpu.memory_space<vmem>>, vector<4x64xbf16>
    tpu.vector_store %arg15[%c20_596, %c256_597], %356 {strides = array<i32>} : memref<32x576xbf16, #tpu.memory_space<vmem>>, vector<4x64xbf16>,
    %c50_598 = arith.constant 50 : index
    %c0_599 = arith.constant 0 : index
    %358 = vector.load %arg14[%c50_598, %c0_599] : memref<72x64xbf16, #tpu.memory_space<vmem>>, vector<4x64xbf16>
    %c20_600 = arith.constant 20 : index
    %c320_601 = arith.constant 320 : index
    %359 = vector.load %arg15[%c20_600, %c320_601] : memref<32x576xbf16, #tpu.memory_space<vmem>>, vector<4x64xbf16>
    tpu.vector_store %arg15[%c20_600, %c320_601], %358 {strides = array<i32>} : memref<32x576xbf16, #tpu.memory_space<vmem>>, vector<4x64xbf16>,
    %c54_602 = arith.constant 54 : index
    %c0_603 = arith.constant 0 : index
    %360 = vector.load %arg14[%c54_602, %c0_603] : memref<72x64xbf16, #tpu.memory_space<vmem>>, vector<4x64xbf16>
    %c20_604 = arith.constant 20 : index
    %c384_605 = arith.constant 384 : index
    %361 = vector.load %arg15[%c20_604, %c384_605] : memref<32x576xbf16, #tpu.memory_space<vmem>>, vector<4x64xbf16>
    tpu.vector_store %arg15[%c20_604, %c384_605], %360 {strides = array<i32>} : memref<32x576xbf16, #tpu.memory_space<vmem>>, vector<4x64xbf16>,
    %c55 = arith.constant 55 : index
    %c0_606 = arith.constant 0 : index
    %362 = vector.load %arg14[%c55, %c0_606] : memref<72x64xbf16, #tpu.memory_space<vmem>>, vector<4x64xbf16>
    %c20_607 = arith.constant 20 : index
    %c448_608 = arith.constant 448 : index
    %363 = vector.load %arg15[%c20_607, %c448_608] : memref<32x576xbf16, #tpu.memory_space<vmem>>, vector<4x64xbf16>
    tpu.vector_store %arg15[%c20_607, %c448_608], %362 {strides = array<i32>} : memref<32x576xbf16, #tpu.memory_space<vmem>>, vector<4x64xbf16>,
    %c56_609 = arith.constant 56 : index
    %c0_610 = arith.constant 0 : index
    %364 = vector.load %arg14[%c56_609, %c0_610] : memref<72x64xbf16, #tpu.memory_space<vmem>>, vector<4x64xbf16>
    %c20_611 = arith.constant 20 : index
    %c512_612 = arith.constant 512 : index
    %365 = vector.load %arg15[%c20_611, %c512_612] : memref<32x576xbf16, #tpu.memory_space<vmem>>, vector<4x64xbf16>
    tpu.vector_store %arg15[%c20_611, %c512_612], %364 {strides = array<i32>} : memref<32x576xbf16, #tpu.memory_space<vmem>>, vector<4x64xbf16>,
    %c48_613 = arith.constant 48 : index
    %c0_614 = arith.constant 0 : index
    %366 = vector.load %arg14[%c48_613, %c0_614] : memref<72x64xbf16, #tpu.memory_space<vmem>>, vector<4x64xbf16>
    %c24_615 = arith.constant 24 : index
    %c0_616 = arith.constant 0 : index
    %367 = vector.load %arg15[%c24_615, %c0_616] : memref<32x576xbf16, #tpu.memory_space<vmem>>, vector<4x64xbf16>
    tpu.vector_store %arg15[%c24_615, %c0_616], %366 {strides = array<i32>} : memref<32x576xbf16, #tpu.memory_space<vmem>>, vector<4x64xbf16>,
    %c49_617 = arith.constant 49 : index
    %c0_618 = arith.constant 0 : index
    %368 = vector.load %arg14[%c49_617, %c0_618] : memref<72x64xbf16, #tpu.memory_space<vmem>>, vector<4x64xbf16>
    %c24_619 = arith.constant 24 : index
    %c64_620 = arith.constant 64 : index
    %369 = vector.load %arg15[%c24_619, %c64_620] : memref<32x576xbf16, #tpu.memory_space<vmem>>, vector<4x64xbf16>
    tpu.vector_store %arg15[%c24_619, %c64_620], %368 {strides = array<i32>} : memref<32x576xbf16, #tpu.memory_space<vmem>>, vector<4x64xbf16>,
    %c50_621 = arith.constant 50 : index
    %c0_622 = arith.constant 0 : index
    %370 = vector.load %arg14[%c50_621, %c0_622] : memref<72x64xbf16, #tpu.memory_space<vmem>>, vector<4x64xbf16>
    %c24_623 = arith.constant 24 : index
    %c128_624 = arith.constant 128 : index
    %371 = vector.load %arg15[%c24_623, %c128_624] : memref<32x576xbf16, #tpu.memory_space<vmem>>, vector<4x64xbf16>
    tpu.vector_store %arg15[%c24_623, %c128_624], %370 {strides = array<i32>} : memref<32x576xbf16, #tpu.memory_space<vmem>>, vector<4x64xbf16>,
    %c54_625 = arith.constant 54 : index
    %c0_626 = arith.constant 0 : index
    %372 = vector.load %arg14[%c54_625, %c0_626] : memref<72x64xbf16, #tpu.memory_space<vmem>>, vector<4x64xbf16>
    %c24_627 = arith.constant 24 : index
    %c192_628 = arith.constant 192 : index
    %373 = vector.load %arg15[%c24_627, %c192_628] : memref<32x576xbf16, #tpu.memory_space<vmem>>, vector<4x64xbf16>
    tpu.vector_store %arg15[%c24_627, %c192_628], %372 {strides = array<i32>} : memref<32x576xbf16, #tpu.memory_space<vmem>>, vector<4x64xbf16>,
    %c55_629 = arith.constant 55 : index
    %c0_630 = arith.constant 0 : index
    %374 = vector.load %arg14[%c55_629, %c0_630] : memref<72x64xbf16, #tpu.memory_space<vmem>>, vector<4x64xbf16>
    %c24_631 = arith.constant 24 : index
    %c256_632 = arith.constant 256 : index
    %375 = vector.load %arg15[%c24_631, %c256_632] : memref<32x576xbf16, #tpu.memory_space<vmem>>, vector<4x64xbf16>
    tpu.vector_store %arg15[%c24_631, %c256_632], %374 {strides = array<i32>} : memref<32x576xbf16, #tpu.memory_space<vmem>>, vector<4x64xbf16>,
    %c56_633 = arith.constant 56 : index
    %c0_634 = arith.constant 0 : index
    %376 = vector.load %arg14[%c56_633, %c0_634] : memref<72x64xbf16, #tpu.memory_space<vmem>>, vector<4x64xbf16>
    %c24_635 = arith.constant 24 : index
    %c320_636 = arith.constant 320 : index
    %377 = vector.load %arg15[%c24_635, %c320_636] : memref<32x576xbf16, #tpu.memory_space<vmem>>, vector<4x64xbf16>
    tpu.vector_store %arg15[%c24_635, %c320_636], %376 {strides = array<i32>} : memref<32x576xbf16, #tpu.memory_space<vmem>>, vector<4x64xbf16>,
    %c60_637 = arith.constant 60 : index
    %c0_638 = arith.constant 0 : index
    %378 = vector.load %arg14[%c60_637, %c0_638] : memref<72x64xbf16, #tpu.memory_space<vmem>>, vector<4x64xbf16>
    %c24_639 = arith.constant 24 : index
    %c384_640 = arith.constant 384 : index
    %379 = vector.load %arg15[%c24_639, %c384_640] : memref<32x576xbf16, #tpu.memory_space<vmem>>, vector<4x64xbf16>
    tpu.vector_store %arg15[%c24_639, %c384_640], %378 {strides = array<i32>} : memref<32x576xbf16, #tpu.memory_space<vmem>>, vector<4x64xbf16>,
    %c61 = arith.constant 61 : index
    %c0_641 = arith.constant 0 : index
    %380 = vector.load %arg14[%c61, %c0_641] : memref<72x64xbf16, #tpu.memory_space<vmem>>, vector<4x64xbf16>
    %c24_642 = arith.constant 24 : index
    %c448_643 = arith.constant 448 : index
    %381 = vector.load %arg15[%c24_642, %c448_643] : memref<32x576xbf16, #tpu.memory_space<vmem>>, vector<4x64xbf16>
    tpu.vector_store %arg15[%c24_642, %c448_643], %380 {strides = array<i32>} : memref<32x576xbf16, #tpu.memory_space<vmem>>, vector<4x64xbf16>,
    %c62 = arith.constant 62 : index
    %c0_644 = arith.constant 0 : index
    %382 = vector.load %arg14[%c62, %c0_644] : memref<72x64xbf16, #tpu.memory_space<vmem>>, vector<4x64xbf16>
    %c24_645 = arith.constant 24 : index
    %c512_646 = arith.constant 512 : index
    %383 = vector.load %arg15[%c24_645, %c512_646] : memref<32x576xbf16, #tpu.memory_space<vmem>>, vector<4x64xbf16>
    tpu.vector_store %arg15[%c24_645, %c512_646], %382 {strides = array<i32>} : memref<32x576xbf16, #tpu.memory_space<vmem>>, vector<4x64xbf16>,
    %c54_647 = arith.constant 54 : index
    %c0_648 = arith.constant 0 : index
    %384 = vector.load %arg14[%c54_647, %c0_648] : memref<72x64xbf16, #tpu.memory_space<vmem>>, vector<4x64xbf16>
    %c28 = arith.constant 28 : index
    %c0_649 = arith.constant 0 : index
    %385 = vector.load %arg15[%c28, %c0_649] : memref<32x576xbf16, #tpu.memory_space<vmem>>, vector<4x64xbf16>
    tpu.vector_store %arg15[%c28, %c0_649], %384 {strides = array<i32>} : memref<32x576xbf16, #tpu.memory_space<vmem>>, vector<4x64xbf16>,
    %c55_650 = arith.constant 55 : index
    %c0_651 = arith.constant 0 : index
    %386 = vector.load %arg14[%c55_650, %c0_651] : memref<72x64xbf16, #tpu.memory_space<vmem>>, vector<4x64xbf16>
    %c28_652 = arith.constant 28 : index
    %c64_653 = arith.constant 64 : index
    %387 = vector.load %arg15[%c28_652, %c64_653] : memref<32x576xbf16, #tpu.memory_space<vmem>>, vector<4x64xbf16>
    tpu.vector_store %arg15[%c28_652, %c64_653], %386 {strides = array<i32>} : memref<32x576xbf16, #tpu.memory_space<vmem>>, vector<4x64xbf16>,
    %c56_654 = arith.constant 56 : index
    %c0_655 = arith.constant 0 : index
    %388 = vector.load %arg14[%c56_654, %c0_655] : memref<72x64xbf16, #tpu.memory_space<vmem>>, vector<4x64xbf16>
    %c28_656 = arith.constant 28 : index
    %c128_657 = arith.constant 128 : index
    %389 = vector.load %arg15[%c28_656, %c128_657] : memref<32x576xbf16, #tpu.memory_space<vmem>>, vector<4x64xbf16>
    tpu.vector_store %arg15[%c28_656, %c128_657], %388 {strides = array<i32>} : memref<32x576xbf16, #tpu.memory_space<vmem>>, vector<4x64xbf16>,
    %c60_658 = arith.constant 60 : index
    %c0_659 = arith.constant 0 : index
    %390 = vector.load %arg14[%c60_658, %c0_659] : memref<72x64xbf16, #tpu.memory_space<vmem>>, vector<4x64xbf16>
    %c28_660 = arith.constant 28 : index
    %c192_661 = arith.constant 192 : index
    %391 = vector.load %arg15[%c28_660, %c192_661] : memref<32x576xbf16, #tpu.memory_space<vmem>>, vector<4x64xbf16>
    tpu.vector_store %arg15[%c28_660, %c192_661], %390 {strides = array<i32>} : memref<32x576xbf16, #tpu.memory_space<vmem>>, vector<4x64xbf16>,
    %c61_662 = arith.constant 61 : index
    %c0_663 = arith.constant 0 : index
    %392 = vector.load %arg14[%c61_662, %c0_663] : memref<72x64xbf16, #tpu.memory_space<vmem>>, vector<4x64xbf16>
    %c28_664 = arith.constant 28 : index
    %c256_665 = arith.constant 256 : index
    %393 = vector.load %arg15[%c28_664, %c256_665] : memref<32x576xbf16, #tpu.memory_space<vmem>>, vector<4x64xbf16>
    tpu.vector_store %arg15[%c28_664, %c256_665], %392 {strides = array<i32>} : memref<32x576xbf16, #tpu.memory_space<vmem>>, vector<4x64xbf16>,
    %c62_666 = arith.constant 62 : index
    %c0_667 = arith.constant 0 : index
    %394 = vector.load %arg14[%c62_666, %c0_667] : memref<72x64xbf16, #tpu.memory_space<vmem>>, vector<4x64xbf16>
    %c28_668 = arith.constant 28 : index
    %c320_669 = arith.constant 320 : index
    %395 = vector.load %arg15[%c28_668, %c320_669] : memref<32x576xbf16, #tpu.memory_space<vmem>>, vector<4x64xbf16>
    tpu.vector_store %arg15[%c28_668, %c320_669], %394 {strides = array<i32>} : memref<32x576xbf16, #tpu.memory_space<vmem>>, vector<4x64xbf16>,
    %c66_670 = arith.constant 66 : index
    %c0_671 = arith.constant 0 : index
    %396 = vector.load %arg14[%c66_670, %c0_671] : memref<72x64xbf16, #tpu.memory_space<vmem>>, vector<4x64xbf16>
    %c28_672 = arith.constant 28 : index
    %c384_673 = arith.constant 384 : index
    %397 = vector.load %arg15[%c28_672, %c384_673] : memref<32x576xbf16, #tpu.memory_space<vmem>>, vector<4x64xbf16>
    tpu.vector_store %arg15[%c28_672, %c384_673], %396 {strides = array<i32>} : memref<32x576xbf16, #tpu.memory_space<vmem>>, vector<4x64xbf16>,
    %c67 = arith.constant 67 : index
    %c0_674 = arith.constant 0 : index
    %398 = vector.load %arg14[%c67, %c0_674] : memref<72x64xbf16, #tpu.memory_space<vmem>>, vector<4x64xbf16>
    %c28_675 = arith.constant 28 : index
    %c448_676 = arith.constant 448 : index
    %399 = vector.load %arg15[%c28_675, %c448_676] : memref<32x576xbf16, #tpu.memory_space<vmem>>, vector<4x64xbf16>
    tpu.vector_store %arg15[%c28_675, %c448_676], %398 {strides = array<i32>} : memref<32x576xbf16, #tpu.memory_space<vmem>>, vector<4x64xbf16>,
    %c68 = arith.constant 68 : index
    %c0_677 = arith.constant 0 : index
    %400 = vector.load %arg14[%c68, %c0_677] : memref<72x64xbf16, #tpu.memory_space<vmem>>, vector<4x64xbf16>
    %c28_678 = arith.constant 28 : index
    %c512_679 = arith.constant 512 : index
    %401 = vector.load %arg15[%c28_678, %c512_679] : memref<32x576xbf16, #tpu.memory_space<vmem>>, vector<4x64xbf16>
    tpu.vector_store %arg15[%c28_678, %c512_679], %400 {strides = array<i32>} : memref<32x576xbf16, #tpu.memory_space<vmem>>, vector<4x64xbf16>,
    %c0_680 = arith.constant 0 : index
    %c0_681 = arith.constant 0 : index
    %402 = vector.load %arg15[%c0_680, %c0_681] : memref<32x576xbf16, #tpu.memory_space<vmem>>, vector<32x576xbf16>
    %c0_682 = arith.constant 0 : index
    %c0_683 = arith.constant 0 : index
    %403 = vector.load %arg5[%c0_682, %c0_683] : memref<576x64xbf16, #tpu.memory_space<vmem>>, vector<576x64xbf16>
    %cst_684 = arith.constant dense<0.000000e+00> : vector<32x64xf32>
    %404 = tpu.matmul %402, %403, %cst_684 {dimension_numbers = #tpu.dot_dimension_numbers<[1], [0], [0], [1], [0, 0, 1, 1], [], []>} : vector<32x576xbf16>, vector<576x64xbf16>, vector<32x64xf32> -> vector<32x64xf32>
    %c0_685 = arith.constant 0 : index
    %c0_686 = arith.constant 0 : index
    %405 = vector.load %arg6[%c0_685, %c0_686] : memref<1x64xf32, #tpu.memory_space<vmem>>, vector<1x64xf32>
    %406 = vector.broadcast %405 : vector<1x64xf32> to vector<32x64xf32>
    %407 = arith.addf %404, %406 : vector<32x64xf32>
    %cst_687 = arith.constant 0.000000e+00 : f32
    %408 = vector.broadcast %cst_687 : f32 to vector<32x64xf32>
    %409 = arith.maximumf %407, %408 : vector<32x64xf32>
    %410 = arith.truncf %409 : vector<32x64xf32> to vector<32x64xbf16>
    %c0_688 = arith.constant 0 : index
    %c0_689 = arith.constant 0 : index
    %411 = vector.load %arg16[%c0_688, %c0_689] : memref<32x64xbf16, #tpu.memory_space<vmem>>, vector<32x64xbf16>
    tpu.vector_store %arg16[%c0_688, %c0_689], %410 {strides = array<i32>} : memref<32x64xbf16, #tpu.memory_space<vmem>>, vector<32x64xbf16>,
    %c0_690 = arith.constant 0 : index
    %c0_691 = arith.constant 0 : index
    %412 = vector.load %arg16[%c0_690, %c0_691] : memref<32x64xbf16, #tpu.memory_space<vmem>>, vector<1x64xbf16>
    %c0_692 = arith.constant 0 : index
    %c0_693 = arith.constant 0 : index
    %413 = vector.load %arg17[%c0_692, %c0_693] : memref<2x1024xbf16, #tpu.memory_space<vmem>>, vector<1x64xbf16>
    tpu.vector_store %arg17[%c0_692, %c0_693], %412 {strides = array<i32>} : memref<2x1024xbf16, #tpu.memory_space<vmem>>, vector<1x64xbf16>,
    %c1_694 = arith.constant 1 : index
    %c0_695 = arith.constant 0 : index
    %414 = vector.load %arg16[%c1_694, %c0_695] : memref<32x64xbf16, #tpu.memory_space<vmem>>, vector<1x64xbf16>
    %c0_696 = arith.constant 0 : index
    %c64_697 = arith.constant 64 : index
    %415 = vector.load %arg17[%c0_696, %c64_697] : memref<2x1024xbf16, #tpu.memory_space<vmem>>, vector<1x64xbf16>
    tpu.vector_store %arg17[%c0_696, %c64_697], %414 {strides = array<i32>} : memref<2x1024xbf16, #tpu.memory_space<vmem>>, vector<1x64xbf16>,
    %c2_698 = arith.constant 2 : index
    %c0_699 = arith.constant 0 : index
    %416 = vector.load %arg16[%c2_698, %c0_699] : memref<32x64xbf16, #tpu.memory_space<vmem>>, vector<1x64xbf16>
    %c0_700 = arith.constant 0 : index
    %c128_701 = arith.constant 128 : index
    %417 = vector.load %arg17[%c0_700, %c128_701] : memref<2x1024xbf16, #tpu.memory_space<vmem>>, vector<1x64xbf16>
    tpu.vector_store %arg17[%c0_700, %c128_701], %416 {strides = array<i32>} : memref<2x1024xbf16, #tpu.memory_space<vmem>>, vector<1x64xbf16>,
    %c3_702 = arith.constant 3 : index
    %c0_703 = arith.constant 0 : index
    %418 = vector.load %arg16[%c3_702, %c0_703] : memref<32x64xbf16, #tpu.memory_space<vmem>>, vector<1x64xbf16>
    %c0_704 = arith.constant 0 : index
    %c192_705 = arith.constant 192 : index
    %419 = vector.load %arg17[%c0_704, %c192_705] : memref<2x1024xbf16, #tpu.memory_space<vmem>>, vector<1x64xbf16>
    tpu.vector_store %arg17[%c0_704, %c192_705], %418 {strides = array<i32>} : memref<2x1024xbf16, #tpu.memory_space<vmem>>, vector<1x64xbf16>,
    %c4_706 = arith.constant 4 : index
    %c0_707 = arith.constant 0 : index
    %420 = vector.load %arg16[%c4_706, %c0_707] : memref<32x64xbf16, #tpu.memory_space<vmem>>, vector<1x64xbf16>
    %c0_708 = arith.constant 0 : index
    %c256_709 = arith.constant 256 : index
    %421 = vector.load %arg17[%c0_708, %c256_709] : memref<2x1024xbf16, #tpu.memory_space<vmem>>, vector<1x64xbf16>
    tpu.vector_store %arg17[%c0_708, %c256_709], %420 {strides = array<i32>} : memref<2x1024xbf16, #tpu.memory_space<vmem>>, vector<1x64xbf16>,
    %c5 = arith.constant 5 : index
    %c0_710 = arith.constant 0 : index
    %422 = vector.load %arg16[%c5, %c0_710] : memref<32x64xbf16, #tpu.memory_space<vmem>>, vector<1x64xbf16>
    %c0_711 = arith.constant 0 : index
    %c320_712 = arith.constant 320 : index
    %423 = vector.load %arg17[%c0_711, %c320_712] : memref<2x1024xbf16, #tpu.memory_space<vmem>>, vector<1x64xbf16>
    tpu.vector_store %arg17[%c0_711, %c320_712], %422 {strides = array<i32>} : memref<2x1024xbf16, #tpu.memory_space<vmem>>, vector<1x64xbf16>,
    %c6_713 = arith.constant 6 : index
    %c0_714 = arith.constant 0 : index
    %424 = vector.load %arg16[%c6_713, %c0_714] : memref<32x64xbf16, #tpu.memory_space<vmem>>, vector<1x64xbf16>
    %c0_715 = arith.constant 0 : index
    %c384_716 = arith.constant 384 : index
    %425 = vector.load %arg17[%c0_715, %c384_716] : memref<2x1024xbf16, #tpu.memory_space<vmem>>, vector<1x64xbf16>
    tpu.vector_store %arg17[%c0_715, %c384_716], %424 {strides = array<i32>} : memref<2x1024xbf16, #tpu.memory_space<vmem>>, vector<1x64xbf16>,
    %c7_717 = arith.constant 7 : index
    %c0_718 = arith.constant 0 : index
    %426 = vector.load %arg16[%c7_717, %c0_718] : memref<32x64xbf16, #tpu.memory_space<vmem>>, vector<1x64xbf16>
    %c0_719 = arith.constant 0 : index
    %c448_720 = arith.constant 448 : index
    %427 = vector.load %arg17[%c0_719, %c448_720] : memref<2x1024xbf16, #tpu.memory_space<vmem>>, vector<1x64xbf16>
    tpu.vector_store %arg17[%c0_719, %c448_720], %426 {strides = array<i32>} : memref<2x1024xbf16, #tpu.memory_space<vmem>>, vector<1x64xbf16>,
    %c8_721 = arith.constant 8 : index
    %c0_722 = arith.constant 0 : index
    %428 = vector.load %arg16[%c8_721, %c0_722] : memref<32x64xbf16, #tpu.memory_space<vmem>>, vector<1x64xbf16>
    %c0_723 = arith.constant 0 : index
    %c512_724 = arith.constant 512 : index
    %429 = vector.load %arg17[%c0_723, %c512_724] : memref<2x1024xbf16, #tpu.memory_space<vmem>>, vector<1x64xbf16>
    tpu.vector_store %arg17[%c0_723, %c512_724], %428 {strides = array<i32>} : memref<2x1024xbf16, #tpu.memory_space<vmem>>, vector<1x64xbf16>,
    %c9_725 = arith.constant 9 : index
    %c0_726 = arith.constant 0 : index
    %430 = vector.load %arg16[%c9_725, %c0_726] : memref<32x64xbf16, #tpu.memory_space<vmem>>, vector<1x64xbf16>
    %c0_727 = arith.constant 0 : index
    %c576 = arith.constant 576 : index
    %431 = vector.load %arg17[%c0_727, %c576] : memref<2x1024xbf16, #tpu.memory_space<vmem>>, vector<1x64xbf16>
    tpu.vector_store %arg17[%c0_727, %c576], %430 {strides = array<i32>} : memref<2x1024xbf16, #tpu.memory_space<vmem>>, vector<1x64xbf16>,
    %c10_728 = arith.constant 10 : index
    %c0_729 = arith.constant 0 : index
    %432 = vector.load %arg16[%c10_728, %c0_729] : memref<32x64xbf16, #tpu.memory_space<vmem>>, vector<1x64xbf16>
    %c0_730 = arith.constant 0 : index
    %c640_731 = arith.constant 640 : index
    %433 = vector.load %arg17[%c0_730, %c640_731] : memref<2x1024xbf16, #tpu.memory_space<vmem>>, vector<1x64xbf16>
    tpu.vector_store %arg17[%c0_730, %c640_731], %432 {strides = array<i32>} : memref<2x1024xbf16, #tpu.memory_space<vmem>>, vector<1x64xbf16>,
    %c11 = arith.constant 11 : index
    %c0_732 = arith.constant 0 : index
    %434 = vector.load %arg16[%c11, %c0_732] : memref<32x64xbf16, #tpu.memory_space<vmem>>, vector<1x64xbf16>
    %c0_733 = arith.constant 0 : index
    %c704 = arith.constant 704 : index
    %435 = vector.load %arg17[%c0_733, %c704] : memref<2x1024xbf16, #tpu.memory_space<vmem>>, vector<1x64xbf16>
    tpu.vector_store %arg17[%c0_733, %c704], %434 {strides = array<i32>} : memref<2x1024xbf16, #tpu.memory_space<vmem>>, vector<1x64xbf16>,
    %c12_734 = arith.constant 12 : index
    %c0_735 = arith.constant 0 : index
    %436 = vector.load %arg16[%c12_734, %c0_735] : memref<32x64xbf16, #tpu.memory_space<vmem>>, vector<1x64xbf16>
    %c0_736 = arith.constant 0 : index
    %c768_737 = arith.constant 768 : index
    %437 = vector.load %arg17[%c0_736, %c768_737] : memref<2x1024xbf16, #tpu.memory_space<vmem>>, vector<1x64xbf16>
    tpu.vector_store %arg17[%c0_736, %c768_737], %436 {strides = array<i32>} : memref<2x1024xbf16, #tpu.memory_space<vmem>>, vector<1x64xbf16>,
    %c13_738 = arith.constant 13 : index
    %c0_739 = arith.constant 0 : index
    %438 = vector.load %arg16[%c13_738, %c0_739] : memref<32x64xbf16, #tpu.memory_space<vmem>>, vector<1x64xbf16>
    %c0_740 = arith.constant 0 : index
    %c832 = arith.constant 832 : index
    %439 = vector.load %arg17[%c0_740, %c832] : memref<2x1024xbf16, #tpu.memory_space<vmem>>, vector<1x64xbf16>
    tpu.vector_store %arg17[%c0_740, %c832], %438 {strides = array<i32>} : memref<2x1024xbf16, #tpu.memory_space<vmem>>, vector<1x64xbf16>,
    %c14_741 = arith.constant 14 : index
    %c0_742 = arith.constant 0 : index
    %440 = vector.load %arg16[%c14_741, %c0_742] : memref<32x64xbf16, #tpu.memory_space<vmem>>, vector<1x64xbf16>
    %c0_743 = arith.constant 0 : index
    %c896_744 = arith.constant 896 : index
    %441 = vector.load %arg17[%c0_743, %c896_744] : memref<2x1024xbf16, #tpu.memory_space<vmem>>, vector<1x64xbf16>
    tpu.vector_store %arg17[%c0_743, %c896_744], %440 {strides = array<i32>} : memref<2x1024xbf16, #tpu.memory_space<vmem>>, vector<1x64xbf16>,
    %c15 = arith.constant 15 : index
    %c0_745 = arith.constant 0 : index
    %442 = vector.load %arg16[%c15, %c0_745] : memref<32x64xbf16, #tpu.memory_space<vmem>>, vector<1x64xbf16>
    %c0_746 = arith.constant 0 : index
    %c960 = arith.constant 960 : index
    %443 = vector.load %arg17[%c0_746, %c960] : memref<2x1024xbf16, #tpu.memory_space<vmem>>, vector<1x64xbf16>
    tpu.vector_store %arg17[%c0_746, %c960], %442 {strides = array<i32>} : memref<2x1024xbf16, #tpu.memory_space<vmem>>, vector<1x64xbf16>,
    %c16_747 = arith.constant 16 : index
    %c0_748 = arith.constant 0 : index
    %444 = vector.load %arg16[%c16_747, %c0_748] : memref<32x64xbf16, #tpu.memory_space<vmem>>, vector<1x64xbf16>
    %c1_749 = arith.constant 1 : index
    %c0_750 = arith.constant 0 : index
    %445 = vector.load %arg17[%c1_749, %c0_750] : memref<2x1024xbf16, #tpu.memory_space<vmem>>, vector<1x64xbf16>
    tpu.vector_store %arg17[%c1_749, %c0_750], %444 {strides = array<i32>} : memref<2x1024xbf16, #tpu.memory_space<vmem>>, vector<1x64xbf16>,
    %c17_751 = arith.constant 17 : index
    %c0_752 = arith.constant 0 : index
    %446 = vector.load %arg16[%c17_751, %c0_752] : memref<32x64xbf16, #tpu.memory_space<vmem>>, vector<1x64xbf16>
    %c1_753 = arith.constant 1 : index
    %c64_754 = arith.constant 64 : index
    %447 = vector.load %arg17[%c1_753, %c64_754] : memref<2x1024xbf16, #tpu.memory_space<vmem>>, vector<1x64xbf16>
    tpu.vector_store %arg17[%c1_753, %c64_754], %446 {strides = array<i32>} : memref<2x1024xbf16, #tpu.memory_space<vmem>>, vector<1x64xbf16>,
    %c18_755 = arith.constant 18 : index
    %c0_756 = arith.constant 0 : index
    %448 = vector.load %arg16[%c18_755, %c0_756] : memref<32x64xbf16, #tpu.memory_space<vmem>>, vector<1x64xbf16>
    %c1_757 = arith.constant 1 : index
    %c128_758 = arith.constant 128 : index
    %449 = vector.load %arg17[%c1_757, %c128_758] : memref<2x1024xbf16, #tpu.memory_space<vmem>>, vector<1x64xbf16>
    tpu.vector_store %arg17[%c1_757, %c128_758], %448 {strides = array<i32>} : memref<2x1024xbf16, #tpu.memory_space<vmem>>, vector<1x64xbf16>,
    %c19_759 = arith.constant 19 : index
    %c0_760 = arith.constant 0 : index
    %450 = vector.load %arg16[%c19_759, %c0_760] : memref<32x64xbf16, #tpu.memory_space<vmem>>, vector<1x64xbf16>
    %c1_761 = arith.constant 1 : index
    %c192_762 = arith.constant 192 : index
    %451 = vector.load %arg17[%c1_761, %c192_762] : memref<2x1024xbf16, #tpu.memory_space<vmem>>, vector<1x64xbf16>
    tpu.vector_store %arg17[%c1_761, %c192_762], %450 {strides = array<i32>} : memref<2x1024xbf16, #tpu.memory_space<vmem>>, vector<1x64xbf16>,
    %c20_763 = arith.constant 20 : index
    %c0_764 = arith.constant 0 : index
    %452 = vector.load %arg16[%c20_763, %c0_764] : memref<32x64xbf16, #tpu.memory_space<vmem>>, vector<1x64xbf16>
    %c1_765 = arith.constant 1 : index
    %c256_766 = arith.constant 256 : index
    %453 = vector.load %arg17[%c1_765, %c256_766] : memref<2x1024xbf16, #tpu.memory_space<vmem>>, vector<1x64xbf16>
    tpu.vector_store %arg17[%c1_765, %c256_766], %452 {strides = array<i32>} : memref<2x1024xbf16, #tpu.memory_space<vmem>>, vector<1x64xbf16>,
    %c21 = arith.constant 21 : index
    %c0_767 = arith.constant 0 : index
    %454 = vector.load %arg16[%c21, %c0_767] : memref<32x64xbf16, #tpu.memory_space<vmem>>, vector<1x64xbf16>
    %c1_768 = arith.constant 1 : index
    %c320_769 = arith.constant 320 : index
    %455 = vector.load %arg17[%c1_768, %c320_769] : memref<2x1024xbf16, #tpu.memory_space<vmem>>, vector<1x64xbf16>
    tpu.vector_store %arg17[%c1_768, %c320_769], %454 {strides = array<i32>} : memref<2x1024xbf16, #tpu.memory_space<vmem>>, vector<1x64xbf16>,
    %c22 = arith.constant 22 : index
    %c0_770 = arith.constant 0 : index
    %456 = vector.load %arg16[%c22, %c0_770] : memref<32x64xbf16, #tpu.memory_space<vmem>>, vector<1x64xbf16>
    %c1_771 = arith.constant 1 : index
    %c384_772 = arith.constant 384 : index
    %457 = vector.load %arg17[%c1_771, %c384_772] : memref<2x1024xbf16, #tpu.memory_space<vmem>>, vector<1x64xbf16>
    tpu.vector_store %arg17[%c1_771, %c384_772], %456 {strides = array<i32>} : memref<2x1024xbf16, #tpu.memory_space<vmem>>, vector<1x64xbf16>,
    %c23 = arith.constant 23 : index
    %c0_773 = arith.constant 0 : index
    %458 = vector.load %arg16[%c23, %c0_773] : memref<32x64xbf16, #tpu.memory_space<vmem>>, vector<1x64xbf16>
    %c1_774 = arith.constant 1 : index
    %c448_775 = arith.constant 448 : index
    %459 = vector.load %arg17[%c1_774, %c448_775] : memref<2x1024xbf16, #tpu.memory_space<vmem>>, vector<1x64xbf16>
    tpu.vector_store %arg17[%c1_774, %c448_775], %458 {strides = array<i32>} : memref<2x1024xbf16, #tpu.memory_space<vmem>>, vector<1x64xbf16>,
    %c24_776 = arith.constant 24 : index
    %c0_777 = arith.constant 0 : index
    %460 = vector.load %arg16[%c24_776, %c0_777] : memref<32x64xbf16, #tpu.memory_space<vmem>>, vector<1x64xbf16>
    %c1_778 = arith.constant 1 : index
    %c512_779 = arith.constant 512 : index
    %461 = vector.load %arg17[%c1_778, %c512_779] : memref<2x1024xbf16, #tpu.memory_space<vmem>>, vector<1x64xbf16>
    tpu.vector_store %arg17[%c1_778, %c512_779], %460 {strides = array<i32>} : memref<2x1024xbf16, #tpu.memory_space<vmem>>, vector<1x64xbf16>,
    %c25_780 = arith.constant 25 : index
    %c0_781 = arith.constant 0 : index
    %462 = vector.load %arg16[%c25_780, %c0_781] : memref<32x64xbf16, #tpu.memory_space<vmem>>, vector<1x64xbf16>
    %c1_782 = arith.constant 1 : index
    %c576_783 = arith.constant 576 : index
    %463 = vector.load %arg17[%c1_782, %c576_783] : memref<2x1024xbf16, #tpu.memory_space<vmem>>, vector<1x64xbf16>
    tpu.vector_store %arg17[%c1_782, %c576_783], %462 {strides = array<i32>} : memref<2x1024xbf16, #tpu.memory_space<vmem>>, vector<1x64xbf16>,
    %c26_784 = arith.constant 26 : index
    %c0_785 = arith.constant 0 : index
    %464 = vector.load %arg16[%c26_784, %c0_785] : memref<32x64xbf16, #tpu.memory_space<vmem>>, vector<1x64xbf16>
    %c1_786 = arith.constant 1 : index
    %c640_787 = arith.constant 640 : index
    %465 = vector.load %arg17[%c1_786, %c640_787] : memref<2x1024xbf16, #tpu.memory_space<vmem>>, vector<1x64xbf16>
    tpu.vector_store %arg17[%c1_786, %c640_787], %464 {strides = array<i32>} : memref<2x1024xbf16, #tpu.memory_space<vmem>>, vector<1x64xbf16>,
    %c27 = arith.constant 27 : index
    %c0_788 = arith.constant 0 : index
    %466 = vector.load %arg16[%c27, %c0_788] : memref<32x64xbf16, #tpu.memory_space<vmem>>, vector<1x64xbf16>
    %c1_789 = arith.constant 1 : index
    %c704_790 = arith.constant 704 : index
    %467 = vector.load %arg17[%c1_789, %c704_790] : memref<2x1024xbf16, #tpu.memory_space<vmem>>, vector<1x64xbf16>
    tpu.vector_store %arg17[%c1_789, %c704_790], %466 {strides = array<i32>} : memref<2x1024xbf16, #tpu.memory_space<vmem>>, vector<1x64xbf16>,
    %c28_791 = arith.constant 28 : index
    %c0_792 = arith.constant 0 : index
    %468 = vector.load %arg16[%c28_791, %c0_792] : memref<32x64xbf16, #tpu.memory_space<vmem>>, vector<1x64xbf16>
    %c1_793 = arith.constant 1 : index
    %c768_794 = arith.constant 768 : index
    %469 = vector.load %arg17[%c1_793, %c768_794] : memref<2x1024xbf16, #tpu.memory_space<vmem>>, vector<1x64xbf16>
    tpu.vector_store %arg17[%c1_793, %c768_794], %468 {strides = array<i32>} : memref<2x1024xbf16, #tpu.memory_space<vmem>>, vector<1x64xbf16>,
    %c29 = arith.constant 29 : index
    %c0_795 = arith.constant 0 : index
    %470 = vector.load %arg16[%c29, %c0_795] : memref<32x64xbf16, #tpu.memory_space<vmem>>, vector<1x64xbf16>
    %c1_796 = arith.constant 1 : index
    %c832_797 = arith.constant 832 : index
    %471 = vector.load %arg17[%c1_796, %c832_797] : memref<2x1024xbf16, #tpu.memory_space<vmem>>, vector<1x64xbf16>
    tpu.vector_store %arg17[%c1_796, %c832_797], %470 {strides = array<i32>} : memref<2x1024xbf16, #tpu.memory_space<vmem>>, vector<1x64xbf16>,
    %c30_798 = arith.constant 30 : index
    %c0_799 = arith.constant 0 : index
    %472 = vector.load %arg16[%c30_798, %c0_799] : memref<32x64xbf16, #tpu.memory_space<vmem>>, vector<1x64xbf16>
    %c1_800 = arith.constant 1 : index
    %c896_801 = arith.constant 896 : index
    %473 = vector.load %arg17[%c1_800, %c896_801] : memref<2x1024xbf16, #tpu.memory_space<vmem>>, vector<1x64xbf16>
    tpu.vector_store %arg17[%c1_800, %c896_801], %472 {strides = array<i32>} : memref<2x1024xbf16, #tpu.memory_space<vmem>>, vector<1x64xbf16>,
    %c31_802 = arith.constant 31 : index
    %c0_803 = arith.constant 0 : index
    %474 = vector.load %arg16[%c31_802, %c0_803] : memref<32x64xbf16, #tpu.memory_space<vmem>>, vector<1x64xbf16>
    %c1_804 = arith.constant 1 : index
    %c960_805 = arith.constant 960 : index
    %475 = vector.load %arg17[%c1_804, %c960_805] : memref<2x1024xbf16, #tpu.memory_space<vmem>>, vector<1x64xbf16>
    tpu.vector_store %arg17[%c1_804, %c960_805], %474 {strides = array<i32>} : memref<2x1024xbf16, #tpu.memory_space<vmem>>, vector<1x64xbf16>,
    tpu.wait_dma2 semaphore(%arg19 : memref<!tpu.dma_semaphore, #tpu.memory_space<semaphore_mem>>) src(%arg7 : memref<1024x512xbf16, #tpu.memory_space<any>>) dst(%arg18 : memref<1024x512xbf16, #tpu.memory_space<vmem>>)
    %c0_806 = arith.constant 0 : index
    %c0_807 = arith.constant 0 : index
    %476 = vector.load %arg17[%c0_806, %c0_807] : memref<2x1024xbf16, #tpu.memory_space<vmem>>, vector<2x1024xbf16>
    %c0_808 = arith.constant 0 : index
    %c0_809 = arith.constant 0 : index
    %477 = vector.load %arg18[%c0_808, %c0_809] : memref<1024x512xbf16, #tpu.memory_space<vmem>>, vector<1024x512xbf16>
    %cst_810 = arith.constant dense<0.000000e+00> : vector<2x512xf32>
    %478 = tpu.matmul %476, %477, %cst_810 {dimension_numbers = #tpu.dot_dimension_numbers<[1], [0], [0], [1], [0, 0, 1, 1], [], []>} : vector<2x1024xbf16>, vector<1024x512xbf16>, vector<2x512xf32> -> vector<2x512xf32>
    %c0_811 = arith.constant 0 : index
    %c0_812 = arith.constant 0 : index
    %479 = vector.load %arg8[%c0_811, %c0_812] : memref<1x512xf32, #tpu.memory_space<vmem>>, vector<1x512xf32>
    %480 = vector.broadcast %479 : vector<1x512xf32> to vector<2x512xf32>
    %481 = arith.addf %478, %480 : vector<2x512xf32>
    %cst_813 = arith.constant 0.000000e+00 : f32
    %482 = vector.broadcast %cst_813 : f32 to vector<2x512xf32>
    %483 = arith.maximumf %481, %482 : vector<2x512xf32>
    %484 = arith.truncf %483 : vector<2x512xf32> to vector<2x512xbf16>
    %c0_814 = arith.constant 0 : index
    %c0_815 = arith.constant 0 : index
    %485 = vector.load %arg9[%c0_814, %c0_815] : memref<512x128xbf16, #tpu.memory_space<vmem>>, vector<512x128xbf16>
    %cst_816 = arith.constant dense<0.000000e+00> : vector<2x128xf32>
    %486 = tpu.matmul %484, %485, %cst_816 {dimension_numbers = #tpu.dot_dimension_numbers<[1], [0], [0], [1], [0, 0, 1, 1], [], []>} : vector<2x512xbf16>, vector<512x128xbf16>, vector<2x128xf32> -> vector<2x128xf32>
    %c0_817 = arith.constant 0 : index
    %c0_818 = arith.constant 0 : index
    %487 = vector.load %arg10[%c0_817, %c0_818] : memref<1x128xf32, #tpu.memory_space<vmem>>, vector<1x128xf32>
    %488 = vector.broadcast %487 : vector<1x128xf32> to vector<2x128xf32>
    %489 = arith.addf %486, %488 : vector<2x128xf32>
    %c0_819 = arith.constant 0 : index
    %c0_820 = arith.constant 0 : index
    %490 = vector.load %arg11[%c0_819, %c0_820] : memref<2x128xf32, #tpu.memory_space<vmem>>, vector<2x128xf32>
    tpu.vector_store %arg11[%c0_819, %c0_820], %489 {strides = array<i32>} : memref<2x128xf32, #tpu.memory_space<vmem>>, vector<2x128xf32>,
    return
  }
}

</mosaic_0001>

<bundles_post_ra>
// kernel: dqn_forward.1
= control target key start
LH: loop header
LB: loop body
LE: loop exit
PB: predicated region body
PF: predicated region fallthrough
CT: control target
= control target key end

     0   :  { %16 = vsyncpa [#allocation11], 0  ;;  %s14082_s0 = inlined_call_operand.vmem [shape: bf16[4,128,256], index: 0, kind: input, shape index: {}]   ;;  %s14083_s1 = inlined_call_operand.vmem [shape: bf16[4,256,128], index: 1, kind: input, shape index: {}]   ;;  %s14084_s2 = inlined_call_operand.vmem [shape: f32[1,128], index: 2, kind: input, shape index: {}]   ;;  %s14085_s3 = inlined_call_operand.vmem [shape: bf16[1152,64], index: 3, kind: input, shape index: {}]   ;;  %s14086_s4 = inlined_call_operand.vmem [shape: f32[1,64], index: 4, kind: input, shape index: {}]   ;;  %s14087_s5 = inlined_call_operand.vmem [shape: bf16[576,64], index: 5, kind: input, shape index: {}]   ;;  %s14088_s6 = inlined_call_operand.vmem [shape: f32[1,64], index: 6, kind: input, shape index: {}]   ;;  %s14089_s7 = inlined_call_operand.vmem [shape: bf16[1024,512], index: 7, kind: input, shape index: {}]   ;;  %s14090_s8 = inlined_call_operand.vmem [shape: f32[1,512], index: 8, kind: input, shape index: {}]   ;;  %s14091_s9 = inlined_call_operand.vmem [shape: bf16[512,128], index: 9, kind: input, shape index: {}]   ;;  %s14092_s10 = inlined_call_operand.vmem [shape: f32[1,128], index: 10, kind: input, shape index: {}]   ;;  %s14093_s11 = inlined_call_operand.hbm [shape: f32[2,128], index: 11, kind: output, shape index: {}]  }
   0x1   :  { %v10478_v0 = vld [vmem:[%s14089_s7] sm:$0xff]  ;;  %v10483_v1 = vld [vmem:[%s14089_s7 + $0x8] sm:$0xff]  ;;  %v10488_v2 = vld [vmem:[%s14089_s7 + $0x10] sm:$0xff] }
   0x2   :  { %14351 = vst [vmem:[#allocation15_spill] sm:$0xff] %v10478_v0  ;;  %14352 = vst [vmem:[#allocation16_spill] sm:$0xff] %v10483_v1  ;;  %v10493_v3 = vld [vmem:[%s14089_s7 + $0x18] sm:$0xff]  ;;  %v10498_v4 = vld [vmem:[%s14089_s7 + $0x20] sm:$0xff] }
   0x3   :  { %14353 = vst [vmem:[#allocation17_spill] sm:$0xff] %v10488_v2  ;;  %14354 = vst [vmem:[#allocation18_spill] sm:$0xff] %v10493_v3  ;;  %v10503_v5 = vld [vmem:[%s14089_s7 + $0x28] sm:$0xff]  ;;  %v10508_v6 = vld [vmem:[%s14089_s7 + $0x30] sm:$0xff] }
   0x4   :  { %14355 = vst [vmem:[#allocation19_spill] sm:$0xff] %v10498_v4  ;;  %14356 = vst [vmem:[#allocation20_spill] sm:$0xff] %v10503_v5  ;;  %v10513_v7 = vld [vmem:[%s14089_s7 + $0x38] sm:$0xff]  ;;  %v10518_v8 = vld [vmem:[%s14089_s7 + $0x40] sm:$0xff] }
   0x5   :  { %14357 = vst [vmem:[#allocation21_spill] sm:$0xff] %v10508_v6  ;;  %14358 = vst [vmem:[#allocation22_spill] sm:$0xff] %v10513_v7  ;;  %v10523_v9 = vld [vmem:[%s14089_s7 + $0x48] sm:$0xff]  ;;  %v10528_v10 = vld [vmem:[%s14089_s7 + $0x50] sm:$0xff] }
   0x6   :  { %14359 = vst [vmem:[#allocation23_spill] sm:$0xff] %v10518_v8  ;;  %14360 = vst [vmem:[#allocation24_spill] sm:$0xff] %v10523_v9  ;;  %v10533_v11 = vld [vmem:[%s14089_s7 + $0x58] sm:$0xff]  ;;  %v10538_v12 = vld [vmem:[%s14089_s7 + $0x60] sm:$0xff] }
   0x7   :  { %14361 = vst [vmem:[#allocation25_spill] sm:$0xff] %v10528_v10  ;;  %14362 = vst [vmem:[#allocation26_spill] sm:$0xff] %v10533_v11  ;;  %v10543_v13 = vld [vmem:[%s14089_s7 + $0x68] sm:$0xff]  ;;  %v10548_v14 = vld [vmem:[%s14089_s7 + $0x70] sm:$0xff] }
   0x8   :  { %14363 = vst [vmem:[#allocation27_spill] sm:$0xff] %v10538_v12  ;;  %14364 = vst [vmem:[#allocation28_spill] sm:$0xff] %v10543_v13  ;;  %v10553_v15 = vld [vmem:[%s14089_s7 + $0x78] sm:$0xff]  ;;  %v10558_v16 = vld [vmem:[%s14089_s7 + $0x80] sm:$0xff] }
   0x9   :  { %14365 = vst [vmem:[#allocation29_spill] sm:$0xff] %v10548_v14  ;;  %14366 = vst [vmem:[#allocation30_spill] sm:$0xff] %v10553_v15  ;;  %v10563_v17 = vld [vmem:[%s14089_s7 + $0x88] sm:$0xff]  ;;  %v10568_v18 = vld [vmem:[%s14089_s7 + $0x90] sm:$0xff] }
   0xa   :  { %14367 = vst [vmem:[#allocation31_spill] sm:$0xff] %v10558_v16  ;;  %14368 = vst [vmem:[#allocation32_spill] sm:$0xff] %v10563_v17  ;;  %v10573_v19 = vld [vmem:[%s14089_s7 + $0x98] sm:$0xff]  ;;  %v10578_v20 = vld [vmem:[%s14089_s7 + $0xa0] sm:$0xff] }
   0xb   :  { %14369 = vst [vmem:[#allocation33_spill] sm:$0xff] %v10568_v18  ;;  %14370 = vst [vmem:[#allocation34_spill] sm:$0xff] %v10573_v19  ;;  %v10583_v21 = vld [vmem:[%s14089_s7 + $0xa8] sm:$0xff]  ;;  %v10588_v22 = vld [vmem:[%s14089_s7 + $0xb0] sm:$0xff] }
   0xc   :  { %14371 = vst [vmem:[#allocation35_spill] sm:$0xff] %v10578_v20  ;;  %14372 = vst [vmem:[#allocation36_spill] sm:$0xff] %v10583_v21  ;;  %v10593_v23 = vld [vmem:[%s14089_s7 + $0xb8] sm:$0xff]  ;;  %v10598_v24 = vld [vmem:[%s14089_s7 + $0xc0] sm:$0xff] }
   0xd   :  { %14373 = vst [vmem:[#allocation37_spill] sm:$0xff] %v10588_v22  ;;  %14374 = vst [vmem:[#allocation38_spill] sm:$0xff] %v10593_v23  ;;  %v10603_v25 = vld [vmem:[%s14089_s7 + $0xc8] sm:$0xff]  ;;  %v10608_v26 = vld [vmem:[%s14089_s7 + $0xd0] sm:$0xff] }
   0xe   :  { %14375 = vst [vmem:[#allocation39_spill] sm:$0xff] %v10598_v24  ;;  %14376 = vst [vmem:[#allocation40_spill] sm:$0xff] %v10603_v25  ;;  %v10613_v27 = vld [vmem:[%s14089_s7 + $0xd8] sm:$0xff]  ;;  %v10618_v28 = vld [vmem:[%s14089_s7 + $0xe0] sm:$0xff] }
   0xf   :  { %14377 = vst [vmem:[#allocation41_spill] sm:$0xff] %v10608_v26  ;;  %14378 = vst [vmem:[#allocation42_spill] sm:$0xff] %v10613_v27  ;;  %v10623_v29 = vld [vmem:[%s14089_s7 + $0xe8] sm:$0xff]  ;;  %v10628_v30 = vld [vmem:[%s14089_s7 + $0xf0] sm:$0xff] }
  0x10   :  { %14379 = vst [vmem:[#allocation43_spill] sm:$0xff] %v10623_v29  ;;  %v10633_v31 = vld [vmem:[%s14089_s7 + $0xf8] sm:$0xff]  ;;  %v10638_v32 = vld [vmem:[%s14089_s7 + $0x100] sm:$0xff]  ;;  %v10643_v33 = vld [vmem:[%s14089_s7 + $0x108] sm:$0xff] }
  0x11   :  { %14380 = vst [vmem:[#allocation44_spill] sm:$0xff] %v10633_v31  ;;  %14381 = vst [vmem:[#allocation45_spill] sm:$0xff] %v10638_v32  ;;  %v10648_v34 = vld [vmem:[%s14089_s7 + $0x110] sm:$0xff]  ;;  %v10653_v35 = vld [vmem:[%s14089_s7 + $0x118] sm:$0xff] }
  0x12   :  { %14382 = vst [vmem:[#allocation46_spill] sm:$0xff] %v10643_v33  ;;  %14383 = vst [vmem:[#allocation47_spill] sm:$0xff] %v10648_v34  ;;  %v10658_v36 = vld [vmem:[%s14089_s7 + $0x120] sm:$0xff]  ;;  %v10663_v37 = vld [vmem:[%s14089_s7 + $0x128] sm:$0xff] }
  0x13   :  { %14384 = vst [vmem:[#allocation48_spill] sm:$0xff] %v10653_v35  ;;  %14385 = vst [vmem:[#allocation49_spill] sm:$0xff] %v10658_v36  ;;  %v10668_v38 = vld [vmem:[%s14089_s7 + $0x130] sm:$0xff]  ;;  %v10673_v39 = vld [vmem:[%s14089_s7 + $0x138] sm:$0xff] }
  0x14   :  { %14386 = vst [vmem:[#allocation50_spill] sm:$0xff] %v10663_v37  ;;  %14387 = vst [vmem:[#allocation51_spill] sm:$0xff] %v10668_v38  ;;  %v10678_v40 = vld [vmem:[%s14089_s7 + $0x140] sm:$0xff]  ;;  %v10683_v41 = vld [vmem:[%s14089_s7 + $0x148] sm:$0xff] }
  0x15   :  { %14388 = vst [vmem:[#allocation52_spill] sm:$0xff] %v10673_v39  ;;  %14389 = vst [vmem:[#allocation53_spill] sm:$0xff] %v10678_v40  ;;  %v10688_v42 = vld [vmem:[%s14089_s7 + $0x150] sm:$0xff]  ;;  %v10693_v43 = vld [vmem:[%s14089_s7 + $0x158] sm:$0xff] }
  0x16   :  { %14390 = vst [vmem:[#allocation54_spill] sm:$0xff] %v10683_v41  ;;  %14391 = vst [vmem:[#allocation55_spill] sm:$0xff] %v10688_v42  ;;  %v10698_v44 = vld [vmem:[%s14089_s7 + $0x160] sm:$0xff]  ;;  %v10703_v45 = vld [vmem:[%s14089_s7 + $0x168] sm:$0xff] }
  0x17   :  { %14392 = vst [vmem:[#allocation56_spill] sm:$0xff] %v10693_v43  ;;  %14393 = vst [vmem:[#allocation57_spill] sm:$0xff] %v10698_v44  ;;  %v10708_v46 = vld [vmem:[%s14089_s7 + $0x170] sm:$0xff]  ;;  %v10713_v47 = vld [vmem:[%s14089_s7 + $0x178] sm:$0xff] }
  0x18   :  { %14394 = vst [vmem:[#allocation58_spill] sm:$0xff] %v10703_v45  ;;  %14395 = vst [vmem:[#allocation59_spill] sm:$0xff] %v10708_v46  ;;  %v10718_v48 = vld [vmem:[%s14089_s7 + $0x180] sm:$0xff]  ;;  %v10723_v49 = vld [vmem:[%s14089_s7 + $0x188] sm:$0xff] }
  0x19   :  { %14396 = vst [vmem:[#allocation60_spill] sm:$0xff] %v10713_v47  ;;  %14397 = vst [vmem:[#allocation61_spill] sm:$0xff] %v10718_v48  ;;  %v10728_v50 = vld [vmem:[%s14089_s7 + $0x190] sm:$0xff]  ;;  %v10733_v51 = vld [vmem:[%s14089_s7 + $0x198] sm:$0xff] }
  0x1a   :  { %14398 = vst [vmem:[#allocation62_spill] sm:$0xff] %v10723_v49  ;;  %14399 = vst [vmem:[#allocation63_spill] sm:$0xff] %v10728_v50  ;;  %v10738_v52 = vld [vmem:[%s14089_s7 + $0x1a0] sm:$0xff]  ;;  %v10743_v53 = vld [vmem:[%s14089_s7 + $0x1a8] sm:$0xff] }
  0x1b   :  { %14400 = vst [vmem:[#allocation64_spill] sm:$0xff] %v10733_v51  ;;  %14401 = vst [vmem:[#allocation65_spill] sm:$0xff] %v10738_v52  ;;  %v10748_v54 = vld [vmem:[%s14089_s7 + $0x1b0] sm:$0xff]  ;;  %v10753_v55 = vld [vmem:[%s14089_s7 + $0x1b8] sm:$0xff] }
  0x1c   :  { %14402 = vst [vmem:[#allocation66_spill] sm:$0xff] %v10743_v53  ;;  %14403 = vst [vmem:[#allocation67_spill] sm:$0xff] %v10748_v54  ;;  %v10758_v56 = vld [vmem:[%s14089_s7 + $0x1c0] sm:$0xff]  ;;  %v10763_v57 = vld [vmem:[%s14089_s7 + $0x1c8] sm:$0xff] }
  0x1d   :  { %14404 = vst [vmem:[#allocation68_spill] sm:$0xff] %v10753_v55  ;;  %14405 = vst [vmem:[#allocation69_spill] sm:$0xff] %v10758_v56  ;;  %v10768_v58 = vld [vmem:[%s14089_s7 + $0x1d0] sm:$0xff]  ;;  %v10773_v59 = vld [vmem:[%s14089_s7 + $0x1d8] sm:$0xff] }
  0x1e   :  { %14406 = vst [vmem:[#allocation70_spill] sm:$0xff] %v10763_v57  ;;  %14407 = vst [vmem:[#allocation71_spill] sm:$0xff] %v10768_v58  ;;  %v10778_v60 = vld [vmem:[%s14089_s7 + $0x1e0] sm:$0xff]  ;;  %v10783_v61 = vld [vmem:[%s14089_s7 + $0x1e8] sm:$0xff] }
  0x1f   :  { %14408 = vst [vmem:[#allocation72_spill] sm:$0xff] %v10773_v59  ;;  %14409 = vst [vmem:[#allocation73_spill] sm:$0xff] %v10778_v60  ;;  %v10788_v62 = vld [vmem:[%s14089_s7 + $0x1f0] sm:$0xff]  ;;  %v10793_v63 = vld [vmem:[%s14089_s7 + $0x1f8] sm:$0xff] }
  0x20   :  { %14410 = vst [vmem:[#allocation74_spill] sm:$0xff] %v10783_v61  ;;  %14411 = vst [vmem:[#allocation75_spill] sm:$0xff] %v10788_v62  ;;  %v10798_v33 = vld [vmem:[%s14089_s7 + $0x200] sm:$0xff]  ;;  %v10803_v35 = vld [vmem:[%s14089_s7 + $0x208] sm:$0xff] }
  0x21   :  { %14412 = vst [vmem:[#allocation76_spill] sm:$0xff] %v10793_v63  ;;  %14413 = vst [vmem:[#allocation77_spill] sm:$0xff] %v10798_v33  ;;  %v10808_v37 = vld [vmem:[%s14089_s7 + $0x210] sm:$0xff]  ;;  %v10813_v39 = vld [vmem:[%s14089_s7 + $0x218] sm:$0xff] }
  0x22   :  { %14414 = vst [vmem:[#allocation78_spill] sm:$0xff] %v10803_v35  ;;  %14415 = vst [vmem:[#allocation79_spill] sm:$0xff] %v10808_v37  ;;  %v10818_v41 = vld [vmem:[%s14089_s7 + $0x220] sm:$0xff]  ;;  %v10823_v43 = vld [vmem:[%s14089_s7 + $0x228] sm:$0xff] }
  0x23   :  { %14416 = vst [vmem:[#allocation80_spill] sm:$0xff] %v10813_v39  ;;  %14417 = vst [vmem:[#allocation81_spill] sm:$0xff] %v10818_v41  ;;  %v10828_v45 = vld [vmem:[%s14089_s7 + $0x230] sm:$0xff]  ;;  %v10833_v47 = vld [vmem:[%s14089_s7 + $0x238] sm:$0xff] }
  0x24   :  { %14418 = vst [vmem:[#allocation82_spill] sm:$0xff] %v10823_v43  ;;  %14419 = vst [vmem:[#allocation83_spill] sm:$0xff] %v10828_v45  ;;  %v10838_v49 = vld [vmem:[%s14089_s7 + $0x240] sm:$0xff]  ;;  %v10843_v51 = vld [vmem:[%s14089_s7 + $0x248] sm:$0xff] }
  0x25   :  { %14420 = vst [vmem:[#allocation84_spill] sm:$0xff] %v10833_v47  ;;  %14421 = vst [vmem:[#allocation85_spill] sm:$0xff] %v10838_v49  ;;  %v10848_v53 = vld [vmem:[%s14089_s7 + $0x250] sm:$0xff]  ;;  %v10853_v55 = vld [vmem:[%s14089_s7 + $0x258] sm:$0xff] }
  0x26   :  { %14422 = vst [vmem:[#allocation86_spill] sm:$0xff] %v10843_v51  ;;  %14423 = vst [vmem:[#allocation87_spill] sm:$0xff] %v10848_v53  ;;  %v10858_v57 = vld [vmem:[%s14089_s7 + $0x260] sm:$0xff]  ;;  %v10863_v59 = vld [vmem:[%s14089_s7 + $0x268] sm:$0xff] }
  0x27   :  { %14424 = vst [vmem:[#allocation88_spill] sm:$0xff] %v10853_v55  ;;  %14425 = vst [vmem:[#allocation89_spill] sm:$0xff] %v10858_v57  ;;  %v10868_v61 = vld [vmem:[%s14089_s7 + $0x270] sm:$0xff]  ;;  %v10873_v63 = vld [vmem:[%s14089_s7 + $0x278] sm:$0xff] }
  0x28   :  { %14426 = vst [vmem:[#allocation90_spill] sm:$0xff] %v10863_v59  ;;  %14427 = vst [vmem:[#allocation91_spill] sm:$0xff] %v10868_v61  ;;  %v10878_v35 = vld [vmem:[%s14089_s7 + $0x280] sm:$0xff]  ;;  %v10883_v39 = vld [vmem:[%s14089_s7 + $0x288] sm:$0xff] }
  0x29   :  { %14428 = vst [vmem:[#allocation92_spill] sm:$0xff] %v10873_v63  ;;  %14429 = vst [vmem:[#allocation93_spill] sm:$0xff] %v10878_v35  ;;  %v10888_v1 = vld [vmem:[%s14089_s7 + $0x290] sm:$0xff]  ;;  %v10893_v3 = vld [vmem:[%s14089_s7 + $0x298] sm:$0xff] }
  0x2a   :  { %14430 = vst [vmem:[#allocation94_spill] sm:$0xff] %v10883_v39  ;;  %14431 = vst [vmem:[#allocation95_spill] sm:$0xff] %v10888_v1  ;;  %v10898_v43 = vld [vmem:[%s14089_s7 + $0x2a0] sm:$0xff]  ;;  %v10903_v47 = vld [vmem:[%s14089_s7 + $0x2a8] sm:$0xff] }
  0x2b   :  { %14432 = vst [vmem:[#allocation96_spill] sm:$0xff] %v10893_v3  ;;  %14433 = vst [vmem:[#allocation97_spill] sm:$0xff] %v10898_v43  ;;  %v10908_v5 = vld [vmem:[%s14089_s7 + $0x2b0] sm:$0xff]  ;;  %v10913_v7 = vld [vmem:[%s14089_s7 + $0x2b8] sm:$0xff] }
  0x2c   :  { %14434 = vst [vmem:[#allocation98_spill] sm:$0xff] %v10903_v47  ;;  %14435 = vst [vmem:[#allocation99_spill] sm:$0xff] %v10908_v5  ;;  %v10918_v51 = vld [vmem:[%s14089_s7 + $0x2c0] sm:$0xff]  ;;  %v10923_v55 = vld [vmem:[%s14089_s7 + $0x2c8] sm:$0xff] }
  0x2d   :  { %14436 = vst [vmem:[#allocation100_spill] sm:$0xff] %v10913_v7  ;;  %14437 = vst [vmem:[#allocation101_spill] sm:$0xff] %v10918_v51  ;;  %v10928_v9 = vld [vmem:[%s14089_s7 + $0x2d0] sm:$0xff]  ;;  %v10933_v11 = vld [vmem:[%s14089_s7 + $0x2d8] sm:$0xff] }
  0x2e   :  { %14438 = vst [vmem:[#allocation102_spill] sm:$0xff] %v10923_v55  ;;  %14439 = vst [vmem:[#allocation103_spill] sm:$0xff] %v10928_v9  ;;  %v10938_v59 = vld [vmem:[%s14089_s7 + $0x2e0] sm:$0xff]  ;;  %v10943_v63 = vld [vmem:[%s14089_s7 + $0x2e8] sm:$0xff] }
  0x2f   :  { %14440 = vst [vmem:[#allocation104_spill] sm:$0xff] %v10933_v11  ;;  %14441 = vst [vmem:[#allocation105_spill] sm:$0xff] %v10938_v59  ;;  %v10948_v13 = vld [vmem:[%s14089_s7 + $0x2f0] sm:$0xff]  ;;  %v10953_v15 = vld [vmem:[%s14089_s7 + $0x2f8] sm:$0xff] }
  0x30   :  { %14442 = vst [vmem:[#allocation106_spill] sm:$0xff] %v10943_v63  ;;  %14443 = vst [vmem:[#allocation107_spill] sm:$0xff] %v10953_v15  ;;  %v10958_v39 = vld [vmem:[%s14089_s7 + $0x300] sm:$0xff]  ;;  %v10963_v3 = vld [vmem:[%s14089_s7 + $0x308] sm:$0xff] }
  0x31   :  { %14444 = vst [vmem:[#allocation108_spill] sm:$0xff] %v10958_v39  ;;  %14445 = vst [vmem:[#allocation109_spill] sm:$0xff] %v10963_v3  ;;  %v10968_v17 = vld [vmem:[%s14089_s7 + $0x310] sm:$0xff]  ;;  %v10973_v19 = vld [vmem:[%s14089_s7 + $0x318] sm:$0xff] }
  0x32   :  { %14446 = vst [vmem:[#allocation110_spill] sm:$0xff] %v10968_v17  ;;  %14447 = vst [vmem:[#allocation111_spill] sm:$0xff] %v10973_v19  ;;  %v10978_v47 = vld [vmem:[%s14089_s7 + $0x320] sm:$0xff]  ;;  %v10983_v7 = vld [vmem:[%s14089_s7 + $0x328] sm:$0xff] }
  0x33   :  { %14448 = vst [vmem:[#allocation112_spill] sm:$0xff] %v10978_v47  ;;  %14449 = vst [vmem:[#allocation113_spill] sm:$0xff] %v10983_v7  ;;  %v10988_v3 = vld [vmem:[%s14089_s7 + $0x330] sm:$0xff]  ;;  %v10993_v21 = vld [vmem:[%s14089_s7 + $0x338] sm:$0xff] }
  0x34   :  { %14450 = vst [vmem:[#allocation114_spill] sm:$0xff] %v10988_v3  ;;  %14451 = vst [vmem:[#allocation115_spill] sm:$0xff] %v10993_v21  ;;  %v10998_v19 = vld [vmem:[%s14089_s7 + $0x340] sm:$0xff]  ;;  %v11003_v23 = vld [vmem:[%s14089_s7 + $0x348] sm:$0xff] }
  0x35   :  { %14452 = vst [vmem:[#allocation116_spill] sm:$0xff] %v10998_v19  ;;  %14453 = vst [vmem:[#allocation117_spill] sm:$0xff] %v11003_v23  ;;  %v11008_v7 = vld [vmem:[%s14089_s7 + $0x350] sm:$0xff]  ;;  %v11013_v55 = vld [vmem:[%s14089_s7 + $0x358] sm:$0xff] }
  0x36   :  { %14454 = vst [vmem:[#allocation118_spill] sm:$0xff] %v11008_v7  ;;  %14455 = vst [vmem:[#allocation119_spill] sm:$0xff] %v11013_v55  ;;  %v11018_v21 = vld [vmem:[%s14089_s7 + $0x360] sm:$0xff]  ;;  %v11023_v11 = vld [vmem:[%s14089_s7 + $0x368] sm:$0xff] }
  0x37   :  { %14456 = vst [vmem:[#allocation120_spill] sm:$0xff] %v11018_v21  ;;  %14457 = vst [vmem:[#allocation121_spill] sm:$0xff] %v11023_v11  ;;  %v11028_v23 = vld [vmem:[%s14089_s7 + $0x370] sm:$0xff]  ;;  %v11033_v25 = vld [vmem:[%s14089_s7 + $0x378] sm:$0xff] }
  0x38   :  { %14458 = vst [vmem:[#allocation122_spill] sm:$0xff] %v11028_v23  ;;  %14459 = vst [vmem:[#allocation123_spill] sm:$0xff] %v11033_v25  ;;  %v11038_v55 = vld [vmem:[%s14089_s7 + $0x380] sm:$0xff]  ;;  %v11043_v27 = vld [vmem:[%s14089_s7 + $0x388] sm:$0xff] }
  0x39   :  { %14460 = vst [vmem:[#allocation124_spill] sm:$0xff] %v11038_v55  ;;  %14461 = vst [vmem:[#allocation125_spill] sm:$0xff] %v11043_v27  ;;  %v11048_v11 = vld [vmem:[%s14089_s7 + $0x390] sm:$0xff]  ;;  %v11053_v63 = vld [vmem:[%s14089_s7 + $0x398] sm:$0xff] }
  0x3a   :  { %14462 = vst [vmem:[#allocation126_spill] sm:$0xff] %v11048_v11  ;;  %14463 = vst [vmem:[#allocation127_spill] sm:$0xff] %v11053_v63  ;;  %v11058_v25 = vld [vmem:[%s14089_s7 + $0x3a0] sm:$0xff]  ;;  %v11063_v15 = vld [vmem:[%s14089_s7 + $0x3a8] sm:$0xff] }
  0x3b   :  { %14464 = vst [vmem:[#allocation128_spill] sm:$0xff] %v11058_v25  ;;  %14465 = vst [vmem:[#allocation129_spill] sm:$0xff] %v11063_v15  ;;  %v11068_v27 = vld [vmem:[%s14089_s7 + $0x3b0] sm:$0xff]  ;;  %v11073_v29 = vld [vmem:[%s14089_s7 + $0x3b8] sm:$0xff] }
  0x3c   :  { %14466 = vst [vmem:[#allocation130_spill] sm:$0xff] %v11068_v27  ;;  %14467 = vst [vmem:[#allocation131_spill] sm:$0xff] %v11073_v29  ;;  %v11078_v63 = vld [vmem:[%s14089_s7 + $0x3c0] sm:$0xff]  ;;  %v11083_v31 = vld [vmem:[%s14089_s7 + $0x3c8] sm:$0xff] }
  0x3d   :  { %14468 = vst [vmem:[#allocation132_spill] sm:$0xff] %v11078_v63  ;;  %14469 = vst [vmem:[#allocation133_spill] sm:$0xff] %v11083_v31  ;;  %v11088_v15 = vld [vmem:[%s14089_s7 + $0x3d0] sm:$0xff]  ;;  %v11093_v39 = vld [vmem:[%s14089_s7 + $0x3d8] sm:$0xff] }
  0x3e   :  { %14470 = vst [vmem:[#allocation134_spill] sm:$0xff] %v11088_v15  ;;  %14471 = vst [vmem:[#allocation135_spill] sm:$0xff] %v11093_v39  ;;  %v11098_v29 = vld [vmem:[%s14089_s7 + $0x3e0] sm:$0xff]  ;;  %v11103_v17 = vld [vmem:[%s14089_s7 + $0x3e8] sm:$0xff] }
  0x3f   :  { %14472 = vst [vmem:[#allocation136_spill] sm:$0xff] %v11098_v29  ;;  %14473 = vst [vmem:[#allocation137_spill] sm:$0xff] %v11103_v17  ;;  %v11108_v31 = vld [vmem:[%s14089_s7 + $0x3f0] sm:$0xff]  ;;  %v11113_v32 = vld [vmem:[%s14089_s7 + $0x3f8] sm:$0xff] }
  0x40   :  { %14474 = vst [vmem:[#allocation138_spill] sm:$0xff] %v11108_v31  ;;  %14475 = vst [vmem:[#allocation139_spill] sm:$0xff] %v11113_v32  ;;  %v11118_v39 = vld [vmem:[%s14089_s7 + $0x400] sm:$0xff]  ;;  %v11123_v34 = vld [vmem:[%s14089_s7 + $0x408] sm:$0xff] }
  0x41   :  { %14476 = vst [vmem:[#allocation140_spill] sm:$0xff] %v11118_v39  ;;  %14477 = vst [vmem:[#allocation141_spill] sm:$0xff] %v11123_v34  ;;  %v11128_v17 = vld [vmem:[%s14089_s7 + $0x410] sm:$0xff]  ;;  %v11133_v47 = vld [vmem:[%s14089_s7 + $0x418] sm:$0xff] }
  0x42   :  { %14478 = vst [vmem:[#allocation142_spill] sm:$0xff] %v11128_v17  ;;  %14479 = vst [vmem:[#allocation143_spill] sm:$0xff] %v11133_v47  ;;  %v11138_v32 = vld [vmem:[%s14089_s7 + $0x420] sm:$0xff]  ;;  %v11143_v39 = vld [vmem:[%s14089_s7 + $0x428] sm:$0xff] }
  0x43   :  { %14480 = vst [vmem:[#allocation144_spill] sm:$0xff] %v11138_v32  ;;  %14481 = vst [vmem:[#allocation145_spill] sm:$0xff] %v11143_v39  ;;  %v11148_v34 = vld [vmem:[%s14089_s7 + $0x430] sm:$0xff]  ;;  %v11153_v17 = vld [vmem:[%s14089_s7 + $0x438] sm:$0xff] }
  0x44   :  { %14482 = vst [vmem:[#allocation146_spill] sm:$0xff] %v11148_v34  ;;  %14483 = vst [vmem:[#allocation147_spill] sm:$0xff] %v11153_v17  ;;  %v11158_v47 = vld [vmem:[%s14089_s7 + $0x440] sm:$0xff]  ;;  %v11163_v32 = vld [vmem:[%s14089_s7 + $0x448] sm:$0xff] }
  0x45   :  { %14484 = vst [vmem:[#allocation148_spill] sm:$0xff] %v11158_v47  ;;  %14485 = vst [vmem:[#allocation149_spill] sm:$0xff] %v11163_v32  ;;  %v11168_v39 = vld [vmem:[%s14089_s7 + $0x450] sm:$0xff]  ;;  %v11173_v34 = vld [vmem:[%s14089_s7 + $0x458] sm:$0xff] }
  0x46   :  { %14486 = vst [vmem:[#allocation150_spill] sm:$0xff] %v11168_v39  ;;  %14487 = vst [vmem:[#allocation151_spill] sm:$0xff] %v11173_v34  ;;  %v11178_v17 = vld [vmem:[%s14089_s7 + $0x460] sm:$0xff]  ;;  %v11183_v47 = vld [vmem:[%s14089_s7 + $0x468] sm:$0xff] }
  0x47   :  { %14488 = vst [vmem:[#allocation152_spill] sm:$0xff] %v11178_v17  ;;  %14489 = vst [vmem:[#allocation153_spill] sm:$0xff] %v11183_v47  ;;  %v11188_v32 = vld [vmem:[%s14089_s7 + $0x470] sm:$0xff]  ;;  %v11193_v39 = vld [vmem:[%s14089_s7 + $0x478] sm:$0xff] }
  0x48   :  { %14490 = vst [vmem:[#allocation154_spill] sm:$0xff] %v11188_v32  ;;  %14491 = vst [vmem:[#allocation155_spill] sm:$0xff] %v11193_v39  ;;  %v11198_v34 = vld [vmem:[%s14089_s7 + $0x480] sm:$0xff]  ;;  %v11203_v17 = vld [vmem:[%s14089_s7 + $0x488] sm:$0xff] }
  0x49   :  { %14492 = vst [vmem:[#allocation156_spill] sm:$0xff] %v11198_v34  ;;  %14493 = vst [vmem:[#allocation157_spill] sm:$0xff] %v11203_v17  ;;  %v11208_v47 = vld [vmem:[%s14089_s7 + $0x490] sm:$0xff]  ;;  %v11213_v32 = vld [vmem:[%s14089_s7 + $0x498] sm:$0xff] }
  0x4a   :  { %14494 = vst [vmem:[#allocation158_spill] sm:$0xff] %v11208_v47  ;;  %14495 = vst [vmem:[#allocation159_spill] sm:$0xff] %v11213_v32  ;;  %v11218_v39 = vld [vmem:[%s14089_s7 + $0x4a0] sm:$0xff]  ;;  %v11223_v34 = vld [vmem:[%s14089_s7 + $0x4a8] sm:$0xff] }
  0x4b   :  { %14496 = vst [vmem:[#allocation160_spill] sm:$0xff] %v11218_v39  ;;  %14497 = vst [vmem:[#allocation161_spill] sm:$0xff] %v11223_v34  ;;  %v11228_v17 = vld [vmem:[%s14089_s7 + $0x4b0] sm:$0xff]  ;;  %v11233_v47 = vld [vmem:[%s14089_s7 + $0x4b8] sm:$0xff] }
  0x4c   :  { %14498 = vst [vmem:[#allocation162_spill] sm:$0xff] %v11228_v17  ;;  %14499 = vst [vmem:[#allocation163_spill] sm:$0xff] %v11233_v47  ;;  %v11238_v32 = vld [vmem:[%s14089_s7 + $0x4c0] sm:$0xff]  ;;  %v11243_v39 = vld [vmem:[%s14089_s7 + $0x4c8] sm:$0xff] }
  0x4d   :  { %14500 = vst [vmem:[#allocation164_spill] sm:$0xff] %v11238_v32  ;;  %14501 = vst [vmem:[#allocation165_spill] sm:$0xff] %v11243_v39  ;;  %v11248_v34 = vld [vmem:[%s14089_s7 + $0x4d0] sm:$0xff]  ;;  %v11253_v17 = vld [vmem:[%s14089_s7 + $0x4d8] sm:$0xff] }
  0x4e   :  { %14502 = vst [vmem:[#allocation166_spill] sm:$0xff] %v11248_v34  ;;  %14503 = vst [vmem:[#allocation167_spill] sm:$0xff] %v11253_v17  ;;  %v11258_v47 = vld [vmem:[%s14089_s7 + $0x4e0] sm:$0xff]  ;;  %v11263_v32 = vld [vmem:[%s14089_s7 + $0x4e8] sm:$0xff] }
  0x4f   :  { %14504 = vst [vmem:[#allocation168_spill] sm:$0xff] %v11258_v47  ;;  %14505 = vst [vmem:[#allocation169_spill] sm:$0xff] %v11263_v32  ;;  %v11268_v39 = vld [vmem:[%s14089_s7 + $0x4f0] sm:$0xff]  ;;  %v11273_v34 = vld [vmem:[%s14089_s7 + $0x4f8] sm:$0xff] }
  0x50   :  { %14506 = vst [vmem:[#allocation170_spill] sm:$0xff] %v11268_v39  ;;  %14507 = vst [vmem:[#allocation171_spill] sm:$0xff] %v11273_v34  ;;  %v11278_v17 = vld [vmem:[%s14089_s7 + $0x500] sm:$0xff]  ;;  %v11283_v47 = vld [vmem:[%s14089_s7 + $0x508] sm:$0xff] }
  0x51   :  { %14508 = vst [vmem:[#allocation172_spill] sm:$0xff] %v11278_v17  ;;  %14509 = vst [vmem:[#allocation173_spill] sm:$0xff] %v11283_v47  ;;  %v11288_v32 = vld [vmem:[%s14089_s7 + $0x510] sm:$0xff]  ;;  %v11293_v39 = vld [vmem:[%s14089_s7 + $0x518] sm:$0xff] }
  0x52   :  { %14510 = vst [vmem:[#allocation174_spill] sm:$0xff] %v11288_v32  ;;  %14511 = vst [vmem:[#allocation175_spill] sm:$0xff] %v11293_v39  ;;  %v11298_v34 = vld [vmem:[%s14089_s7 + $0x520] sm:$0xff]  ;;  %v11303_v17 = vld [vmem:[%s14089_s7 + $0x528] sm:$0xff] }
  0x53   :  { %14512 = vst [vmem:[#allocation176_spill] sm:$0xff] %v11298_v34  ;;  %14513 = vst [vmem:[#allocation177_spill] sm:$0xff] %v11303_v17  ;;  %v11308_v47 = vld [vmem:[%s14089_s7 + $0x530] sm:$0xff]  ;;  %v11313_v32 = vld [vmem:[%s14089_s7 + $0x538] sm:$0xff] }
  0x54   :  { %14514 = vst [vmem:[#allocation178_spill] sm:$0xff] %v11308_v47  ;;  %14515 = vst [vmem:[#allocation179_spill] sm:$0xff] %v11313_v32  ;;  %v11318_v39 = vld [vmem:[%s14089_s7 + $0x540] sm:$0xff]  ;;  %v11323_v34 = vld [vmem:[%s14089_s7 + $0x548] sm:$0xff] }
  0x55   :  { %14516 = vst [vmem:[#allocation180_spill] sm:$0xff] %v11318_v39  ;;  %14517 = vst [vmem:[#allocation181_spill] sm:$0xff] %v11323_v34  ;;  %v11328_v17 = vld [vmem:[%s14089_s7 + $0x550] sm:$0xff]  ;;  %v11333_v47 = vld [vmem:[%s14089_s7 + $0x558] sm:$0xff] }
  0x56   :  { %14518 = vst [vmem:[#allocation182_spill] sm:$0xff] %v11328_v17  ;;  %14519 = vst [vmem:[#allocation183_spill] sm:$0xff] %v11333_v47  ;;  %v11338_v32 = vld [vmem:[%s14089_s7 + $0x560] sm:$0xff]  ;;  %v11343_v39 = vld [vmem:[%s14089_s7 + $0x568] sm:$0xff] }
  0x57   :  { %14520 = vst [vmem:[#allocation184_spill] sm:$0xff] %v11338_v32  ;;  %14521 = vst [vmem:[#allocation185_spill] sm:$0xff] %v11343_v39  ;;  %v11348_v34 = vld [vmem:[%s14089_s7 + $0x570] sm:$0xff]  ;;  %v11353_v17 = vld [vmem:[%s14089_s7 + $0x578] sm:$0xff] }
  0x58   :  { %14522 = vst [vmem:[#allocation186_spill] sm:$0xff] %v11348_v34  ;;  %14523 = vst [vmem:[#allocation187_spill] sm:$0xff] %v11353_v17  ;;  %v11358_v47 = vld [vmem:[%s14089_s7 + $0x580] sm:$0xff]  ;;  %v11363_v32 = vld [vmem:[%s14089_s7 + $0x588] sm:$0xff] }
  0x59   :  { %14524 = vst [vmem:[#allocation188_spill] sm:$0xff] %v11358_v47  ;;  %14525 = vst [vmem:[#allocation189_spill] sm:$0xff] %v11363_v32  ;;  %v11368_v39 = vld [vmem:[%s14089_s7 + $0x590] sm:$0xff]  ;;  %v11373_v34 = vld [vmem:[%s14089_s7 + $0x598] sm:$0xff] }
  0x5a   :  { %14526 = vst [vmem:[#allocation190_spill] sm:$0xff] %v11368_v39  ;;  %14527 = vst [vmem:[#allocation191_spill] sm:$0xff] %v11373_v34  ;;  %v11378_v17 = vld [vmem:[%s14089_s7 + $0x5a0] sm:$0xff]  ;;  %v11383_v47 = vld [vmem:[%s14089_s7 + $0x5a8] sm:$0xff] }
  0x5b   :  { %14528 = vst [vmem:[#allocation192_spill] sm:$0xff] %v11378_v17  ;;  %14529 = vst [vmem:[#allocation193_spill] sm:$0xff] %v11383_v47  ;;  %v11388_v32 = vld [vmem:[%s14089_s7 + $0x5b0] sm:$0xff]  ;;  %v11393_v39 = vld [vmem:[%s14089_s7 + $0x5b8] sm:$0xff] }
  0x5c   :  { %14530 = vst [vmem:[#allocation194_spill] sm:$0xff] %v11388_v32  ;;  %14531 = vst [vmem:[#allocation195_spill] sm:$0xff] %v11393_v39  ;;  %v11398_v34 = vld [vmem:[%s14089_s7 + $0x5c0] sm:$0xff]  ;;  %v11403_v17 = vld [vmem:[%s14089_s7 + $0x5c8] sm:$0xff] }
  0x5d   :  { %14532 = vst [vmem:[#allocation196_spill] sm:$0xff] %v11398_v34  ;;  %14533 = vst [vmem:[#allocation197_spill] sm:$0xff] %v11403_v17  ;;  %v11408_v47 = vld [vmem:[%s14089_s7 + $0x5d0] sm:$0xff]  ;;  %v11413_v32 = vld [vmem:[%s14089_s7 + $0x5d8] sm:$0xff] }
  0x5e   :  { %14534 = vst [vmem:[#allocation198_spill] sm:$0xff] %v11408_v47  ;;  %14535 = vst [vmem:[#allocation199_spill] sm:$0xff] %v11413_v32  ;;  %v11418_v39 = vld [vmem:[%s14089_s7 + $0x5e0] sm:$0xff]  ;;  %v11423_v34 = vld [vmem:[%s14089_s7 + $0x5e8] sm:$0xff] }
  0x5f   :  { %14536 = vst [vmem:[#allocation200_spill] sm:$0xff] %v11418_v39  ;;  %14537 = vst [vmem:[#allocation201_spill] sm:$0xff] %v11423_v34  ;;  %v11428_v17 = vld [vmem:[%s14089_s7 + $0x5f0] sm:$0xff]  ;;  %v11433_v47 = vld [vmem:[%s14089_s7 + $0x5f8] sm:$0xff] }
  0x60   :  { %14538 = vst [vmem:[#allocation202_spill] sm:$0xff] %v11428_v17  ;;  %14539 = vst [vmem:[#allocation203_spill] sm:$0xff] %v11433_v47  ;;  %v11438_v32 = vld [vmem:[%s14089_s7 + $0x600] sm:$0xff]  ;;  %v11443_v39 = vld [vmem:[%s14089_s7 + $0x608] sm:$0xff] }
  0x61   :  { %14540 = vst [vmem:[#allocation204_spill] sm:$0xff] %v11438_v32  ;;  %14541 = vst [vmem:[#allocation205_spill] sm:$0xff] %v11443_v39  ;;  %v11448_v34 = vld [vmem:[%s14089_s7 + $0x610] sm:$0xff]  ;;  %v11453_v17 = vld [vmem:[%s14089_s7 + $0x618] sm:$0xff] }
  0x62   :  { %14542 = vst [vmem:[#allocation206_spill] sm:$0xff] %v11448_v34  ;;  %14543 = vst [vmem:[#allocation207_spill] sm:$0xff] %v11453_v17  ;;  %v11458_v47 = vld [vmem:[%s14089_s7 + $0x620] sm:$0xff]  ;;  %v11463_v32 = vld [vmem:[%s14089_s7 + $0x628] sm:$0xff] }
  0x63   :  { %14544 = vst [vmem:[#allocation208_spill] sm:$0xff] %v11458_v47  ;;  %14545 = vst [vmem:[#allocation209_spill] sm:$0xff] %v11463_v32  ;;  %v11468_v39 = vld [vmem:[%s14089_s7 + $0x630] sm:$0xff]  ;;  %v11473_v34 = vld [vmem:[%s14089_s7 + $0x638] sm:$0xff] }
  0x64   :  { %14546 = vst [vmem:[#allocation210_spill] sm:$0xff] %v11468_v39  ;;  %14547 = vst [vmem:[#allocation211_spill] sm:$0xff] %v11473_v34  ;;  %v11478_v17 = vld [vmem:[%s14089_s7 + $0x640] sm:$0xff]  ;;  %v11483_v47 = vld [vmem:[%s14089_s7 + $0x648] sm:$0xff] }
  0x65   :  { %14548 = vst [vmem:[#allocation212_spill] sm:$0xff] %v11478_v17  ;;  %14549 = vst [vmem:[#allocation213_spill] sm:$0xff] %v11483_v47  ;;  %v11488_v32 = vld [vmem:[%s14089_s7 + $0x650] sm:$0xff]  ;;  %v11493_v39 = vld [vmem:[%s14089_s7 + $0x658] sm:$0xff] }
  0x66   :  { %14550 = vst [vmem:[#allocation214_spill] sm:$0xff] %v11488_v32  ;;  %14551 = vst [vmem:[#allocation215_spill] sm:$0xff] %v11493_v39  ;;  %v11498_v34 = vld [vmem:[%s14089_s7 + $0x660] sm:$0xff]  ;;  %v11503_v17 = vld [vmem:[%s14089_s7 + $0x668] sm:$0xff] }
  0x67   :  { %14552 = vst [vmem:[#allocation216_spill] sm:$0xff] %v11498_v34  ;;  %14553 = vst [vmem:[#allocation217_spill] sm:$0xff] %v11503_v17  ;;  %v11508_v47 = vld [vmem:[%s14089_s7 + $0x670] sm:$0xff]  ;;  %v11513_v32 = vld [vmem:[%s14089_s7 + $0x678] sm:$0xff] }
  0x68   :  { %14554 = vst [vmem:[#allocation218_spill] sm:$0xff] %v11508_v47  ;;  %14555 = vst [vmem:[#allocation219_spill] sm:$0xff] %v11513_v32  ;;  %v11518_v39 = vld [vmem:[%s14089_s7 + $0x680] sm:$0xff]  ;;  %v11523_v34 = vld [vmem:[%s14089_s7 + $0x688] sm:$0xff] }
  0x69   :  { %14556 = vst [vmem:[#allocation220_spill] sm:$0xff] %v11518_v39  ;;  %14557 = vst [vmem:[#allocation221_spill] sm:$0xff] %v11523_v34  ;;  %v11528_v17 = vld [vmem:[%s14089_s7 + $0x690] sm:$0xff]  ;;  %v11533_v47 = vld [vmem:[%s14089_s7 + $0x698] sm:$0xff] }
  0x6a   :  { %14558 = vst [vmem:[#allocation222_spill] sm:$0xff] %v11528_v17  ;;  %14559 = vst [vmem:[#allocation223_spill] sm:$0xff] %v11533_v47  ;;  %v11538_v32 = vld [vmem:[%s14089_s7 + $0x6a0] sm:$0xff]  ;;  %v11543_v39 = vld [vmem:[%s14089_s7 + $0x6a8] sm:$0xff] }
  0x6b   :  { %14560 = vst [vmem:[#allocation224_spill] sm:$0xff] %v11538_v32  ;;  %14561 = vst [vmem:[#allocation225_spill] sm:$0xff] %v11543_v39  ;;  %v11548_v34 = vld [vmem:[%s14089_s7 + $0x6b0] sm:$0xff]  ;;  %v11553_v17 = vld [vmem:[%s14089_s7 + $0x6b8] sm:$0xff] }
  0x6c   :  { %14562 = vst [vmem:[#allocation226_spill] sm:$0xff] %v11548_v34  ;;  %14563 = vst [vmem:[#allocation227_spill] sm:$0xff] %v11553_v17  ;;  %v11558_v47 = vld [vmem:[%s14089_s7 + $0x6c0] sm:$0xff]  ;;  %v11563_v32 = vld [vmem:[%s14089_s7 + $0x6c8] sm:$0xff] }
  0x6d   :  { %14564 = vst [vmem:[#allocation228_spill] sm:$0xff] %v11558_v47  ;;  %14565 = vst [vmem:[#allocation229_spill] sm:$0xff] %v11563_v32  ;;  %v11568_v39 = vld [vmem:[%s14089_s7 + $0x6d0] sm:$0xff]  ;;  %v11573_v34 = vld [vmem:[%s14089_s7 + $0x6d8] sm:$0xff] }
  0x6e   :  { %14566 = vst [vmem:[#allocation230_spill] sm:$0xff] %v11568_v39  ;;  %14567 = vst [vmem:[#allocation231_spill] sm:$0xff] %v11573_v34  ;;  %v11578_v17 = vld [vmem:[%s14089_s7 + $0x6e0] sm:$0xff]  ;;  %v11583_v47 = vld [vmem:[%s14089_s7 + $0x6e8] sm:$0xff] }
  0x6f   :  { %14568 = vst [vmem:[#allocation232_spill] sm:$0xff] %v11578_v17  ;;  %14569 = vst [vmem:[#allocation233_spill] sm:$0xff] %v11583_v47  ;;  %v11588_v32 = vld [vmem:[%s14089_s7 + $0x6f0] sm:$0xff]  ;;  %v11593_v39 = vld [vmem:[%s14089_s7 + $0x6f8] sm:$0xff] }
  0x70   :  { %14570 = vst [vmem:[#allocation234_spill] sm:$0xff] %v11588_v32  ;;  %14571 = vst [vmem:[#allocation235_spill] sm:$0xff] %v11593_v39  ;;  %v11598_v34 = vld [vmem:[%s14089_s7 + $0x700] sm:$0xff]  ;;  %v11603_v17 = vld [vmem:[%s14089_s7 + $0x708] sm:$0xff] }
  0x71   :  { %14572 = vst [vmem:[#allocation236_spill] sm:$0xff] %v11598_v34  ;;  %14573 = vst [vmem:[#allocation237_spill] sm:$0xff] %v11603_v17  ;;  %v11608_v47 = vld [vmem:[%s14089_s7 + $0x710] sm:$0xff]  ;;  %v11613_v32 = vld [vmem:[%s14089_s7 + $0x718] sm:$0xff] }
  0x72   :  { %14574 = vst [vmem:[#allocation238_spill] sm:$0xff] %v11608_v47  ;;  %14575 = vst [vmem:[#allocation239_spill] sm:$0xff] %v11613_v32  ;;  %v11618_v39 = vld [vmem:[%s14089_s7 + $0x720] sm:$0xff]  ;;  %v11623_v34 = vld [vmem:[%s14089_s7 + $0x728] sm:$0xff] }
  0x73   :  { %14576 = vst [vmem:[#allocation240_spill] sm:$0xff] %v11618_v39  ;;  %14577 = vst [vmem:[#allocation241_spill] sm:$0xff] %v11623_v34  ;;  %v11628_v17 = vld [vmem:[%s14089_s7 + $0x730] sm:$0xff]  ;;  %v11633_v47 = vld [vmem:[%s14089_s7 + $0x738] sm:$0xff] }
  0x74   :  { %14578 = vst [vmem:[#allocation242_spill] sm:$0xff] %v11628_v17  ;;  %14579 = vst [vmem:[#allocation243_spill] sm:$0xff] %v11633_v47  ;;  %v11638_v32 = vld [vmem:[%s14089_s7 + $0x740] sm:$0xff]  ;;  %v11643_v39 = vld [vmem:[%s14089_s7 + $0x748] sm:$0xff] }
  0x75   :  { %14580 = vst [vmem:[#allocation244_spill] sm:$0xff] %v11638_v32  ;;  %14581 = vst [vmem:[#allocation245_spill] sm:$0xff] %v11643_v39  ;;  %v11648_v34 = vld [vmem:[%s14089_s7 + $0x750] sm:$0xff]  ;;  %v11653_v17 = vld [vmem:[%s14089_s7 + $0x758] sm:$0xff] }
  0x76   :  { %14582 = vst [vmem:[#allocation246_spill] sm:$0xff] %v11648_v34  ;;  %14583 = vst [vmem:[#allocation247_spill] sm:$0xff] %v11653_v17  ;;  %v11658_v47 = vld [vmem:[%s14089_s7 + $0x760] sm:$0xff]  ;;  %v11663_v32 = vld [vmem:[%s14089_s7 + $0x768] sm:$0xff] }
  0x77   :  { %14584 = vst [vmem:[#allocation248_spill] sm:$0xff] %v11658_v47  ;;  %14585 = vst [vmem:[#allocation249_spill] sm:$0xff] %v11663_v32  ;;  %v11668_v39 = vld [vmem:[%s14089_s7 + $0x770] sm:$0xff]  ;;  %v11673_v34 = vld [vmem:[%s14089_s7 + $0x778] sm:$0xff] }
  0x78   :  { %14586 = vst [vmem:[#allocation250_spill] sm:$0xff] %v11668_v39  ;;  %14587 = vst [vmem:[#allocation251_spill] sm:$0xff] %v11673_v34  ;;  %v11678_v17 = vld [vmem:[%s14089_s7 + $0x780] sm:$0xff]  ;;  %v11683_v47 = vld [vmem:[%s14089_s7 + $0x788] sm:$0xff] }
  0x79   :  { %14588 = vst [vmem:[#allocation252_spill] sm:$0xff] %v11678_v17  ;;  %14589 = vst [vmem:[#allocation253_spill] sm:$0xff] %v11683_v47  ;;  %v11688_v32 = vld [vmem:[%s14089_s7 + $0x790] sm:$0xff]  ;;  %v11693_v39 = vld [vmem:[%s14089_s7 + $0x798] sm:$0xff] }
  0x7a   :  { %14590 = vst [vmem:[#allocation254_spill] sm:$0xff] %v11688_v32  ;;  %14591 = vst [vmem:[#allocation255_spill] sm:$0xff] %v11693_v39  ;;  %v11698_v34 = vld [vmem:[%s14089_s7 + $0x7a0] sm:$0xff]  ;;  %v11703_v17 = vld [vmem:[%s14089_s7 + $0x7a8] sm:$0xff] }
  0x7b   :  { %14592 = vst [vmem:[#allocation256_spill] sm:$0xff] %v11698_v34  ;;  %14593 = vst [vmem:[#allocation257_spill] sm:$0xff] %v11703_v17  ;;  %v11708_v47 = vld [vmem:[%s14089_s7 + $0x7b0] sm:$0xff]  ;;  %v11713_v32 = vld [vmem:[%s14089_s7 + $0x7b8] sm:$0xff] }
  0x7c   :  { %14594 = vst [vmem:[#allocation258_spill] sm:$0xff] %v11708_v47  ;;  %14595 = vst [vmem:[#allocation259_spill] sm:$0xff] %v11713_v32  ;;  %v11718_v39 = vld [vmem:[%s14089_s7 + $0x7c0] sm:$0xff]  ;;  %v11723_v34 = vld [vmem:[%s14089_s7 + $0x7c8] sm:$0xff] }
  0x7d   :  { %14596 = vst [vmem:[#allocation260_spill] sm:$0xff] %v11718_v39  ;;  %14597 = vst [vmem:[#allocation261_spill] sm:$0xff] %v11723_v34  ;;  %v11728_v17 = vld [vmem:[%s14089_s7 + $0x7d0] sm:$0xff]  ;;  %v11733_v47 = vld [vmem:[%s14089_s7 + $0x7d8] sm:$0xff] }
  0x7e   :  { %14598 = vst [vmem:[#allocation262_spill] sm:$0xff] %v11728_v17  ;;  %14599 = vst [vmem:[#allocation263_spill] sm:$0xff] %v11733_v47  ;;  %v11738_v32 = vld [vmem:[%s14089_s7 + $0x7e0] sm:$0xff]  ;;  %v11743_v39 = vld [vmem:[%s14089_s7 + $0x7e8] sm:$0xff] }
  0x7f   :  { %14600 = vst [vmem:[#allocation264_spill] sm:$0xff] %v11738_v32  ;;  %14601 = vst [vmem:[#allocation265_spill] sm:$0xff] %v11743_v39  ;;  %v11748_v34 = vld [vmem:[%s14089_s7 + $0x7f0] sm:$0xff]  ;;  %v11753_v17 = vld [vmem:[%s14089_s7 + $0x7f8] sm:$0xff] }
  0x80   :  { %14602 = vst [vmem:[#allocation266_spill] sm:$0xff] %v11748_v34  ;;  %14603 = vst [vmem:[#allocation267_spill] sm:$0xff] %v11753_v17 }
  0x81   :  { %590 = vsyncadd [#allocation9], 32768  ;;  %v10014_v47 = vld [vmem:[%s14083_s1 + $0xf8] sm:$0xff]   ;;  %v10018_v17 = vld [vmem:[%s14083_s1 + $0xf0] sm:$0xff]   ;;  %vm10411_vm0 = vmmov 0   ;;  %vm4155_vm1 = vcmask 519168  }
  0x82   :  { %v10015_v32 = vld [vmem:[%s14083_s1 + $0x78] sm:$0xff]   ;;  %9402 = vmatprep.subr.bf16.mxu0 %v10014_v47  ;;  %v10019_v3 = vld [vmem:[%s14083_s1 + $0x70] sm:$0xff]   ;;  %v12329_v51 = vld [vmem:[%s14084_s2] ss:$0 sm:$0xff]  ;;  %vm4166_vm2 = vcmask 517120   ;;  %vm4193_vm3 = vcmask 1040384  }
  0x83   :  { %v10016_v39 = vld [vmem:[%s14083_s1 + $0xb8] sm:$0xff]   ;;  %9466 = vmatprep.subr.bf16.mxu1 %v10015_v32  ;;  %v10020_v47 = vld [vmem:[%s14083_s1 + $0xb0] sm:$0xff]   ;;  %vm4194_vm4 = vcmask 1044484   ;;  %vm4281_vm5 = vcmask 519170   ;;  %vm4285_vm6 = vsmask.f32 2304 }
  0x84   :  { %v10017_v34 = vld [vmem:[%s14083_s1 + $0x38] sm:$0xff]   ;;  %9403 = vmatpush3.bf16.msra.mxu0 %v10016_v39  ;;  %v10021_v32 = vld [vmem:[%s14083_s1 + $0x30] sm:$0xff]   ;;  %v10022_v39 = vld [vmem:[%s14083_s1 + $0xe8] sm:$0xff]   ;;  %vm4286_vm7 = vsmask.f32 6416  ;;  %s10412_s20 = smov 64  }
  0x85   :  { %9467 = vmatpush3.bf16.msra.mxu1 %v10017_v34  ;;  %9404 = vmatprep.subr.bf16.mxu0 %v10018_v17  ;;  %v10023_v34 = vld [vmem:[%s14083_s1 + $0x68] sm:$0xff]   ;;  %v10053_v36 = vld [vmem:[%s14083_s1 + $0x138] sm:$0xff]   ;;  %vm12892_vm8 = vmor %vm4193_vm3, %vm4194_vm4  ;;  %vm4238_vm9 = vsmask.f32 1280  ;;  %vm4239_vm10 = vsmask.f32 5392 }
  0x86   :  { %9468 = vmatprep.subr.bf16.mxu1 %v10019_v3  ;;  %v10024_v17 = vld [vmem:[%s14083_s1 + $0xa8] sm:$0xff]   ;;  %v10080_v38 = vld [vmem:[%s14082_s0 + $0xb0] ss:$8 sps:$4 sm:$0xff]   ;;  %vm12924_vm11 = vmor %vm4285_vm6, %vm4286_vm7  ;;  %vm4273_vm13 = vcmask 1042432   ;;  %vm4274_vm14 = vcmask 1046532   ;;  %vm5240_vm15 = vcmask 523264  }
  0x87   :  { %v10025_v3 = vld [vmem:[%s14083_s1 + $0x28] sm:$0xff]   ;;  %v10120_v19 = vld [vmem:[%s14082_s0 + $0xf0] ss:$8 sps:$4 sm:$0xff]   ;;  %vm12946_vm12 = vmor %vm4238_vm9, %vm4239_vm10  ;;  %vm4206_vm3 = vsmask.f32 256 }
  0x88   :  { %9405 = vmatpush3.bf16.msra.mxu0 %v10020_v47  ;;  %v10026_v47 = vld [vmem:[%s14083_s1 + $0xe0] sm:$0xff]   ;;  %vm4207_vm4 = vsmask.f32 4368  ;;  %vm4320_vm6 = vsmask.f32 3328 }
  0x89   :  { %9469 = vmatpush3.bf16.msra.mxu1 %v10021_v32  ;;  %9406 = vmatprep.subr.bf16.mxu0 %v10022_v39  ;;  %v10027_v32 = vld [vmem:[%s14083_s1 + $0x60] sm:$0xff]   ;;  %vm4321_vm7 = vsmask.f32 7440  ;;  %vm13083_vm9 = vmor %vm4206_vm3, %vm4207_vm4 }
  0x8a   :  { %9470 = vmatprep.subr.bf16.mxu1 %v10023_v34  ;;  %v10028_v39 = vld [vmem:[%s14083_s1 + $0xa0] sm:$0xff]   ;;  %vm13097_vm10 = vmor %vm4320_vm6, %vm4321_vm7 }
  0x8b   :  { %v10029_v34 = vld [vmem:[%s14083_s1 + $0x20] sm:$0xff]  }
  0x8c   :  { %9407 = vmatpush3.bf16.msra.mxu0 %v10024_v17  ;;  %v10030_v17 = vld [vmem:[%s14083_s1 + $0xd8] sm:$0xff]  }
  0x8d   :  { %9471 = vmatpush3.bf16.msra.mxu1 %v10025_v3  ;;  %9408 = vmatprep.subr.bf16.mxu0 %v10026_v47  ;;  %v10031_v3 = vld [vmem:[%s14083_s1 + $0x58] sm:$0xff]  }
  0x8e   :  { %9472 = vmatprep.subr.bf16.mxu1 %v10027_v32  ;;  %v10032_v47 = vld [vmem:[%s14083_s1 + $0x98] sm:$0xff]  }
  0x8f   :  { %v10033_v32 = vld [vmem:[%s14083_s1 + $0x18] sm:$0xff]  }
  0x90   :  { %9409 = vmatpush3.bf16.msra.mxu0 %v10028_v39  ;;  %v10034_v39 = vld [vmem:[%s14083_s1 + $0xd0] sm:$0xff]  }
  0x91   :  { %9473 = vmatpush3.bf16.msra.mxu1 %v10029_v34  ;;  %9410 = vmatprep.subr.bf16.mxu0 %v10030_v17  ;;  %v10035_v34 = vld [vmem:[%s14083_s1 + $0x50] sm:$0xff]  }
  0x92   :  { %9474 = vmatprep.subr.bf16.mxu1 %v10031_v3  ;;  %v10036_v17 = vld [vmem:[%s14083_s1 + $0x90] sm:$0xff]  }
  0x93   :  { %v10037_v3 = vld [vmem:[%s14083_s1 + $0x10] sm:$0xff]  }
  0x94   :  { %9411 = vmatpush3.bf16.msra.mxu0 %v10032_v47  ;;  %v10038_v47 = vld [vmem:[%s14083_s1 + $0xc8] sm:$0xff]  }
  0x95   :  { %9475 = vmatpush3.bf16.msra.mxu1 %v10033_v32  ;;  %9412 = vmatprep.subr.bf16.mxu0 %v10034_v39  ;;  %v10039_v32 = vld [vmem:[%s14083_s1 + $0x48] sm:$0xff]  }
  0x96   :  { %9476 = vmatprep.subr.bf16.mxu1 %v10035_v34  ;;  %v10040_v39 = vld [vmem:[%s14083_s1 + $0x88] sm:$0xff]  }
  0x97   :  { %v10041_v34 = vld [vmem:[%s14083_s1 + $0x8] sm:$0xff]  }
  0x98   :  { %9413 = vmatpush3.bf16.msra.mxu0 %v10036_v17  ;;  %v10042_v17 = vld [vmem:[%s14083_s1 + $0xc0] sm:$0xff]  }
  0x99   :  { %9477 = vmatpush3.bf16.msra.mxu1 %v10037_v3  ;;  %9414 = vmatprep.subr.bf16.mxu0 %v10038_v47  ;;  %v10043_v3 = vld [vmem:[%s14083_s1 + $0x40] sm:$0xff]  }
  0x9a   :  { %9478 = vmatprep.subr.bf16.mxu1 %v10039_v32  ;;  %v10044_v47 = vld [vmem:[%s14083_s1 + $0x80] sm:$0xff]  }
  0x9b   :  { %v10045_v32 = vld [vmem:[%s14083_s1] sm:$0xff]  }
  0x9c   :  { %9415 = vmatpush3.bf16.msra.mxu0 %v10040_v39  ;;  %v10046_v39 = vld [vmem:[%s14082_s0 + $0x80] ss:$8 sps:$4 sm:$0xff]  }
  0x9d   :  { %9479 = vmatpush3.bf16.msra.mxu1 %v10041_v34  ;;  %9416 = vmatprep.subr.bf16.mxu0 %v10042_v17  ;;  %v10048_v34 = vld [vmem:[%s14082_s0 + $0x84] ss:$8 sps:$4 sm:$0xff]   ;;  %v10049_v17 = vld [vmem:[%s14082_s0] ss:$8 sps:$4 sm:$0xff]  }
  0x9e   :  { %9480 = vmatprep.subr.bf16.mxu1 %v10043_v3  ;;  %v10051_v3 = vld [vmem:[%s14082_s0 + $0x4] ss:$8 sps:$4 sm:$0xff]   ;;  %897 = vmatprep.mubr.bf16.mxu0 %v10048_v34  ;;  %v10055_v34 = vld [vmem:[%s14083_s1 + $0x1b8] sm:$0xff]  }
  0x9f   :  { %1170 = vmatprep.mubr.bf16.mxu1 %v10051_v3  ;;  %v10060_v3 = vld [vmem:[%s14082_s0 + $0x90] ss:$8 sps:$4 sm:$0xff]  }
  0xa0   :  { %9417 = vmatpush3.bf16.msra.mxu0 %v10044_v47  ;;  %v10052_v47 = vld [vmem:[%s14083_s1 + $0x178] sm:$0xff]  }
  0xa1   :  { %9481 = vmatpush3.bf16.msra.mxu1 %v10045_v32  ;;  %9530 = vmatprep.subr.bf16.mxu0 %v10052_v47  ;;  %v10054_v32 = vld [vmem:[%s14083_s1 + $0x1f8] sm:$0xff]   ;;  %v10062_v47 = vld [vmem:[%s14083_s1 + $0x170] sm:$0xff]  }
  0xa2   :  { %9594 = vmatprep.subr.bf16.mxu1 %v10054_v32  ;;  %v10063_v32 = vld [vmem:[%s14083_s1 + $0x130] sm:$0xff]  }
  0xa3   :  { %898 = vmatmul.mubr.bf16.vlgmr.msra.gmra.mxu0 %v10046_v39  ;;  %v10056_v39 = vld [vmem:[%s14082_s0 + $0x94] ss:$8 sps:$4 sm:$0xff]  }
  0xa4   :  { %1171 = vmatmul.mubr.bf16.vlgmr.msra.gmra.mxu1 %v10049_v17  ;;  %9531 = vmatpush3.bf16.msra.mxu0 %v10053_v36  ;;  %v10058_v17 = vld [vmem:[%s14082_s0 + $0x14] ss:$8 sps:$4 sm:$0xff]   ;;  %v10061_v36 = vld [vmem:[%s14082_s0 + $0x10] ss:$8 sps:$4 sm:$0xff]  }
  0xa5   :  { %9595 = vmatpush3.bf16.msra.mxu1 %v10055_v34  ;;  %905 = vmatprep.mubr.bf16.mxu0 %v10056_v39  ;;  %v10064_v34 = vld [vmem:[%s14083_s1 + $0x1f0] sm:$0xff]  }
  0xa6   :  { %1178 = vmatprep.mubr.bf16.mxu1 %v10058_v17  ;;  %9532 = vmatprep.subr.bf16.mxu0 %v10062_v47  ;;  %v10065_v39 = vld [vmem:[%s14083_s1 + $0x1b0] sm:$0xff]   ;;  %v10066_v17 = vld [vmem:[%s14082_s0 + $0xa4] ss:$8 sps:$4 sm:$0xff]   ;;  %v10070_v47 = vld [vmem:[%s14082_s0 + $0xa0] ss:$8 sps:$4 sm:$0xff]  }
  0xa7   :  { %9596 = vmatprep.subr.bf16.mxu1 %v10064_v34  ;;  %v10073_v34 = vld [vmem:[%s14083_s1 + $0x128] sm:$0xff]  }
  0xa8   :  { %9533 = vmatpush3.bf16.msra.mxu0 %v10063_v32  ;;  %v10072_v32 = vld [vmem:[%s14083_s1 + $0x168] sm:$0xff]  }
  0xa9   :  { %9597 = vmatpush3.bf16.msra.mxu1 %v10065_v39  ;;  %9534 = vmatprep.subr.bf16.mxu0 %v10072_v32  ;;  %v10074_v39 = vld [vmem:[%s14083_s1 + $0x1e8] sm:$0xff]   ;;  %v10078_v32 = vld [vmem:[%s14082_s0 + $0x34] ss:$8 sps:$4 sm:$0xff]  }
  0xaa   :  { %9598 = vmatprep.subr.bf16.mxu1 %v10074_v39  ;;  %v10084_v39 = vld [vmem:[%s14083_s1 + $0x1e0] sm:$0xff]  }
  0xab   :  { %906 = vmatmul.mubr.bf16.gmra.mxu0 %v10060_v3  ;;  %v10068_v3 = vld [vmem:[%s14082_s0 + $0x24] ss:$8 sps:$4 sm:$0xff]  }
  0xac   :  { %1179 = vmatmul.mubr.bf16.gmra.mxu1 %v10061_v36  ;;  %913 = vmatprep.mubr.bf16.mxu0 %v10066_v17  ;;  %v10071_v36 = vld [vmem:[%s14082_s0 + $0x20] ss:$8 sps:$4 sm:$0xff]  }
  0xad   :  { %1186 = vmatprep.mubr.bf16.mxu1 %v10068_v3  ;;  %v10075_v17 = vld [vmem:[%s14083_s1 + $0x1a8] sm:$0xff]   ;;  %9535 = vmatpush3.bf16.msra.mxu0 %v10073_v34  ;;  %v10076_v3 = vld [vmem:[%s14082_s0 + $0xb4] ss:$8 sps:$4 sm:$0xff]   ;;  %v10083_v34 = vld [vmem:[%s14083_s1 + $0x120] sm:$0xff]  }
  0xae   :  { %9599 = vmatpush3.bf16.msra.mxu1 %v10075_v17  ;;  %v10085_v17 = vld [vmem:[%s14083_s1 + $0x1a0] sm:$0xff]  }
  0xaf   :  { %9600 = vmatprep.subr.bf16.mxu1 %v10084_v39  ;;  %v10093_v39 = vld [vmem:[%s14083_s1 + $0x118] sm:$0xff]  }
  0xb2   :  { %9601 = vmatpush3.bf16.msra.mxu1 %v10085_v17  ;;  %v10095_v17 = vld [vmem:[%s14083_s1 + $0x198] sm:$0xff]  }
  0xb3   :  { %914 = vmatmul.mubr.bf16.gmra.mxu0 %v10070_v47  ;;  %v10081_v47 = vld [vmem:[%s14082_s0 + $0x30] ss:$8 sps:$4 sm:$0xff]  }
  0xb4   :  { %1187 = vmatmul.mubr.bf16.gmra.mxu1 %v10071_v36  ;;  %921 = vmatprep.mubr.bf16.mxu0 %v10076_v3  ;;  %v10082_v36 = vld [vmem:[%s14083_s1 + $0x160] sm:$0xff]  }
  0xb5   :  { %1194 = vmatprep.mubr.bf16.mxu1 %v10078_v32  ;;  %9536 = vmatprep.subr.bf16.mxu0 %v10082_v36  ;;  %v10086_v3 = vld [vmem:[%s14082_s0 + $0xc4] ss:$8 sps:$4 sm:$0xff]   ;;  %v10090_v36 = vld [vmem:[%s14082_s0 + $0xc0] ss:$8 sps:$4 sm:$0xff]  }
  0xb6   :  { %9537 = vmatpush3.bf16.msra.mxu0 %v10083_v34  ;;  %v10088_v32 = vld [vmem:[%s14082_s0 + $0x44] ss:$8 sps:$4 sm:$0xff]   ;;  %v10092_v34 = vld [vmem:[%s14083_s1 + $0x158] sm:$0xff]  }
  0xb7   :  { %9538 = vmatprep.subr.bf16.mxu0 %v10092_v34  ;;  %v10102_v34 = vld [vmem:[%s14083_s1 + $0x150] sm:$0xff]  }
  0xba   :  { %9539 = vmatpush3.bf16.msra.mxu0 %v10093_v39  ;;  %v10100_v39 = vld [vmem:[%s14082_s0 + $0xd0] ss:$8 sps:$4 sm:$0xff]  }
  0xbb   :  { %922 = vmatmul.mubr.bf16.gmra.mxu0 %v10080_v38  ;;  %v10091_v38 = vld [vmem:[%s14082_s0 + $0x40] ss:$8 sps:$4 sm:$0xff]   ;;  %9540 = vmatprep.subr.bf16.mxu0 %v10102_v34 }
  0xbc   :  { %1195 = vmatmul.mubr.bf16.gmra.mxu1 %v10081_v47  ;;  %929 = vmatprep.mubr.bf16.mxu0 %v10086_v3  ;;  %v10094_v47 = vld [vmem:[%s14083_s1 + $0x1d8] sm:$0xff]   ;;  %v10112_v34 = vld [vmem:[%s14083_s1 + $0x148] sm:$0xff]  }
  0xbd   :  { %1202 = vmatprep.mubr.bf16.mxu1 %v10088_v32  ;;  %9602 = vmatprep.subr.bf16.mxu1 %v10094_v47  ;;  %v10096_v3 = vld [vmem:[%s14082_s0 + $0xd4] ss:$8 sps:$4 sm:$0xff]  }
  0xbe   :  { %9603 = vmatpush3.bf16.msra.mxu1 %v10095_v17  ;;  %v10098_v32 = vld [vmem:[%s14082_s0 + $0x54] ss:$8 sps:$4 sm:$0xff]   ;;  %v10101_v17 = vld [vmem:[%s14082_s0 + $0x50] ss:$8 sps:$4 sm:$0xff]  }
  0xbf   :  { %v10103_v47 = vld [vmem:[%s14083_s1 + $0x110] sm:$0xff]  }
  0xc0   :  { %9541 = vmatpush3.bf16.msra.mxu0 %v10103_v47  ;;  %v10113_v47 = vld [vmem:[%s14083_s1 + $0x108] sm:$0xff]  }
  0xc1   :  { %9542 = vmatprep.subr.bf16.mxu0 %v10112_v34  ;;  %v10122_v34 = vld [vmem:[%s14083_s1 + $0x140] sm:$0xff]  }
  0xc3   :  { %930 = vmatmul.mubr.bf16.gmra.mxu0 %v10090_v36  ;;  %v10104_v36 = vld [vmem:[%s14083_s1 + $0x1d0] sm:$0xff]  }
  0xc4   :  { %1203 = vmatmul.mubr.bf16.gmra.mxu1 %v10091_v38  ;;  %937 = vmatprep.mubr.bf16.mxu0 %v10096_v3  ;;  %v10105_v38 = vld [vmem:[%s14083_s1 + $0x190] sm:$0xff]   ;;  %v10106_v3 = vld [vmem:[%s14082_s0 + $0xe4] ss:$8 sps:$4 sm:$0xff]  }
  0xc5   :  { %1210 = vmatprep.mubr.bf16.mxu1 %v10098_v32  ;;  %9604 = vmatprep.subr.bf16.mxu1 %v10104_v36  ;;  %v10108_v32 = vld [vmem:[%s14082_s0 + $0x64] ss:$8 sps:$4 sm:$0xff]  }
  0xc6   :  { %9605 = vmatpush3.bf16.msra.mxu1 %v10105_v38  ;;  %v10114_v36 = vld [vmem:[%s14083_s1 + $0x1c8] sm:$0xff]   ;;  %9543 = vmatpush3.bf16.msra.mxu0 %v10113_v47  ;;  %v10123_v47 = vld [vmem:[%s14083_s1 + $0x100] sm:$0xff]  }
  0xc7   :  { %v10115_v38 = vld [vmem:[%s14083_s1 + $0x188] sm:$0xff]   ;;  %9606 = vmatprep.subr.bf16.mxu1 %v10114_v36  ;;  %9544 = vmatprep.subr.bf16.mxu0 %v10122_v34  ;;  %v10124_v36 = vld [vmem:[%s14083_s1 + $0x1c0] sm:$0xff]  }
  0xc8   :  { %v10129_v34 = vld [vmem:[%s14082_s0 + $0x180] ss:$8 sps:$4 sm:$0xff]  }
  0xca   :  { %9607 = vmatpush3.bf16.msra.mxu1 %v10115_v38  ;;  %v10125_v38 = vld [vmem:[%s14083_s1 + $0x180] sm:$0xff]   ;;  %9545 = vmatpush3.bf16.msra.mxu0 %v10123_v47  ;;  %v10132_v47 = vld [vmem:[%s14082_s0 + $0x114] ss:$8 sps:$4 sm:$0xff]  }
  0xcb   :  { %938 = vmatmul.mubr.bf16.gmra.mxu0 %v10100_v39  ;;  %v10110_v39 = vld [vmem:[%s14082_s0 + $0xe0] ss:$8 sps:$4 sm:$0xff]   ;;  %9608 = vmatprep.subr.bf16.mxu1 %v10124_v36  ;;  %v10134_v36 = vld [vmem:[%s14082_s0 + $0x194] ss:$8 sps:$4 sm:$0xff]  }
  0xcc   :  { %1211 = vmatmul.mubr.bf16.gmra.mxu1 %v10101_v17  ;;  %945 = vmatprep.mubr.bf16.mxu0 %v10106_v3  ;;  %v10111_v17 = vld [vmem:[%s14082_s0 + $0x60] ss:$8 sps:$4 sm:$0xff]   ;;  %v10116_v3 = vld [vmem:[%s14082_s0 + $0xf4] ss:$8 sps:$4 sm:$0xff]  }
  0xcd   :  { %1218 = vmatprep.mubr.bf16.mxu1 %v10108_v32  ;;  %v10118_v32 = vld [vmem:[%s14082_s0 + $0x74] ss:$8 sps:$4 sm:$0xff]  }
  0xce   :  { %9609 = vmatpush3.bf16.msra.mxu1 %v10125_v38  ;;  %v10137_v38 = vld [vmem:[%s14082_s0 + $0x190] ss:$8 sps:$4 sm:$0xff]  }
  0xd3   :  { %946 = vmatmul.mubr.bf16.gmra.mxu0 %v10110_v39  ;;  %v10121_v39 = vld [vmem:[%s14082_s0 + $0x70] ss:$8 sps:$4 sm:$0xff]  }
  0xd4   :  { %1219 = vmatmul.mubr.bf16.gmra.mxu1 %v10111_v17  ;;  %953 = vmatprep.mubr.bf16.mxu0 %v10116_v3  ;;  %v10128_v17 = vld [vmem:[%s14082_s0 + $0x104] ss:$8 sps:$4 sm:$0xff]  }
  0xd5   :  { %1226 = vmatprep.mubr.bf16.mxu1 %v10118_v32  ;;  %v10131_v3 = vld [vmem:[%s14082_s0 + $0x184] ss:$8 sps:$4 sm:$0xff]   ;;  %v10126_v32 = vld [vmem:[%s14082_s0 + $0x100] ss:$8 sps:$4 sm:$0xff]  }
  0xdb   :  { %954 = vmatmul.mubr.bf16.gmra.mxu0 %v10120_v19  ;;  %v10136_v19 = vld [vmem:[%s14082_s0 + $0x110] ss:$8 sps:$4 sm:$0xff]  }
  0xdc   :  { %1227 = vmatmul.mubr.bf16.gmra.mxu1 %v10121_v39  ;;  %1493 = vmatprep.mubr.bf16.mxu0 %v10128_v17  ;;  %v10138_v39 = vld [vmem:[%s14082_s0 + $0x124] ss:$8 sps:$4 sm:$0xff]  }
  0xdd   :  { %1832 = vmatprep.mubr.bf16.mxu1 %v10131_v3  ;;  %v10140_v17 = vld [vmem:[%s14082_s0 + $0x1a4] ss:$8 sps:$4 sm:$0xff]   ;;  %v10142_v3 = vld [vmem:[%s14082_s0 + $0x120] ss:$8 sps:$4 sm:$0xff]  }
  0xe3   :  { %1494 = vmatmul.mubr.bf16.vlgmr.msra.gmra.mxu0 %v10126_v32  ;;  %v10143_v32 = vld [vmem:[%s14082_s0 + $0x1a0] ss:$8 sps:$4 sm:$0xff]  }
  0xe4   :  { %1833 = vmatmul.mubr.bf16.vlgmr.msra.gmra.mxu1 %v10129_v34  ;;  %1501 = vmatprep.mubr.bf16.mxu0 %v10132_v47  ;;  %v10144_v34 = vld [vmem:[%s14082_s0 + $0x134] ss:$8 sps:$4 sm:$0xff]  }
  0xe5   :  { %1840 = vmatprep.mubr.bf16.mxu1 %v10134_v36  ;;  %v10146_v47 = vld [vmem:[%s14082_s0 + $0x1b4] ss:$8 sps:$4 sm:$0xff]   ;;  %v10148_v36 = vld [vmem:[%s14082_s0 + $0x130] ss:$8 sps:$4 sm:$0xff]  }
  0xeb   :  { %1502 = vmatmul.mubr.bf16.gmra.mxu0 %v10136_v19  ;;  %v10149_v19 = vld [vmem:[%s14082_s0 + $0x1b0] ss:$8 sps:$4 sm:$0xff]  }
  0xec   :  { %1841 = vmatmul.mubr.bf16.gmra.mxu1 %v10137_v38  ;;  %1509 = vmatprep.mubr.bf16.mxu0 %v10138_v39  ;;  %v10150_v38 = vld [vmem:[%s14082_s0 + $0x144] ss:$8 sps:$4 sm:$0xff]  }
  0xed   :  { %1848 = vmatprep.mubr.bf16.mxu1 %v10140_v17  ;;  %v10152_v39 = vld [vmem:[%s14082_s0 + $0x1c4] ss:$8 sps:$4 sm:$0xff]   ;;  %v10154_v17 = vld [vmem:[%s14082_s0 + $0x140] ss:$8 sps:$4 sm:$0xff]  }
  0xf3   :  { %1510 = vmatmul.mubr.bf16.gmra.mxu0 %v10142_v3  ;;  %v10155_v3 = vld [vmem:[%s14082_s0 + $0x1c0] ss:$8 sps:$4 sm:$0xff]  }
  0xf4   :  { %1849 = vmatmul.mubr.bf16.gmra.mxu1 %v10143_v32  ;;  %1517 = vmatprep.mubr.bf16.mxu0 %v10144_v34  ;;  %v10156_v32 = vld [vmem:[%s14082_s0 + $0x154] ss:$8 sps:$4 sm:$0xff]  }
  0xf5   :  { %1856 = vmatprep.mubr.bf16.mxu1 %v10146_v47  ;;  %v10158_v34 = vld [vmem:[%s14082_s0 + $0x1d4] ss:$8 sps:$4 sm:$0xff]   ;;  %v10160_v47 = vld [vmem:[%s14082_s0 + $0x150] ss:$8 sps:$4 sm:$0xff]  }
  0xfb   :  { %1518 = vmatmul.mubr.bf16.gmra.mxu0 %v10148_v36  ;;  %v10161_v36 = vld [vmem:[%s14082_s0 + $0x1d0] ss:$8 sps:$4 sm:$0xff]  }
  0xfc   :  { %1857 = vmatmul.mubr.bf16.gmra.mxu1 %v10149_v19  ;;  %1525 = vmatprep.mubr.bf16.mxu0 %v10150_v38  ;;  %v10162_v19 = vld [vmem:[%s14082_s0 + $0x164] ss:$8 sps:$4 sm:$0xff]  }
  0xfd   :  { %1864 = vmatprep.mubr.bf16.mxu1 %v10152_v39  ;;  %v10164_v38 = vld [vmem:[%s14082_s0 + $0x1e4] ss:$8 sps:$4 sm:$0xff]   ;;  %v10166_v39 = vld [vmem:[%s14082_s0 + $0x160] ss:$8 sps:$4 sm:$0xff]  }
 0x103   :  { %1526 = vmatmul.mubr.bf16.gmra.mxu0 %v10154_v17  ;;  %v10167_v17 = vld [vmem:[%s14082_s0 + $0x1e0] ss:$8 sps:$4 sm:$0xff]  }
 0x104   :  { %1865 = vmatmul.mubr.bf16.gmra.mxu1 %v10155_v3  ;;  %1533 = vmatprep.mubr.bf16.mxu0 %v10156_v32  ;;  %v10168_v3 = vld [vmem:[%s14082_s0 + $0x174] ss:$8 sps:$4 sm:$0xff]  }
 0x105   :  { %1872 = vmatprep.mubr.bf16.mxu1 %v10158_v34  ;;  %v10171_v32 = vld [vmem:[%s14082_s0 + $0x1f4] ss:$8 sps:$4 sm:$0xff]   ;;  %v10170_v34 = vld [vmem:[%s14082_s0 + $0x170] ss:$8 sps:$4 sm:$0xff]  }
 0x10b   :  { %1534 = vmatmul.mubr.bf16.gmra.mxu0 %v10160_v47  ;;  %v10173_v47 = vld [vmem:[%s14082_s0 + $0x1f0] ss:$8 sps:$4 sm:$0xff]  }
 0x10c   :  { %1873 = vmatmul.mubr.bf16.gmra.mxu1 %v10161_v36  ;;  %1541 = vmatprep.mubr.bf16.mxu0 %v10162_v19  ;;  %v10174_v36 = vld [vmem:[%s14085_s3 + $0x78] sm:$0xff]  }
 0x10d   :  { %1880 = vmatprep.mubr.bf16.mxu1 %v10164_v38  ;;  %v10175_v19 = vld [vmem:[%s14085_s3 + $0x38] sm:$0xff]   ;;  %9658 = vmatprep.subr.bf16.mxu0 %v10174_v36  ;;  %v10185_v36 = vld [vmem:[%s14085_s3 + $0xa8] sm:$0xff]  }
 0x10e   :  { %9659 = vmatpush3.bf16.msra.mxu0 %v10175_v19  ;;  %v10178_v38 = vld [vmem:[%s14085_s3 + $0xf8] sm:$0xff]   ;;  %v10180_v19 = vld [vmem:[%s14085_s3 + $0x68] sm:$0xff]  }
 0x10f   :  { %9704 = vmatprep.subr.bf16.mxu1 %v10178_v38  ;;  %v10181_v38 = vld [vmem:[%s14085_s3 + $0x28] sm:$0xff]  }
 0x113   :  { %1542 = vmatmul.mubr.bf16.gmra.mxu0 %v10166_v39  ;;  %v10179_v39 = vld [vmem:[%s14085_s3 + $0xb8] sm:$0xff]  }
 0x114   :  { %1881 = vmatmul.mubr.bf16.gmra.mxu1 %v10167_v17  ;;  %1549 = vmatprep.mubr.bf16.mxu0 %v10168_v3  ;;  %v10176_v17 = vld [vmem:[%s14085_s3 + $0x70] sm:$0xff]  }
 0x115   :  { %1888 = vmatprep.mubr.bf16.mxu1 %v10171_v32  ;;  %9705 = vmatpush3.bf16.msra.mxu1 %v10179_v39  ;;  %v10177_v3 = vld [vmem:[%s14085_s3 + $0x30] sm:$0xff]   ;;  %v10188_v39 = vld [vmem:[%s14085_s3 + $0xe0] sm:$0xff]  }
 0x116   :  { %v10182_v32 = vld [vmem:[%s14085_s3 + $0xf0] sm:$0xff]   ;;  %9660 = vmatprep.subr.bf16.mxu0 %v10176_v17  ;;  %v10189_v17 = vld [vmem:[%s14085_s3 + $0xa0] sm:$0xff]  }
 0x117   :  { %9661 = vmatpush3.bf16.msra.mxu0 %v10177_v3  ;;  %9706 = vmatprep.subr.bf16.mxu1 %v10182_v32  ;;  %v10186_v3 = vld [vmem:[%s14085_s3 + $0x60] sm:$0xff]  }
 0x118   :  { %9662 = vmatprep.subr.bf16.mxu0 %v10180_v19  ;;  %v10187_v32 = vld [vmem:[%s14085_s3 + $0x20] sm:$0xff]   ;;  %v10193_v19 = vld [vmem:[%s14085_s3 + $0x18] sm:$0xff]  }
 0x11b   :  { %1550 = vmatmul.mubr.bf16.gmra.mxu0 %v10170_v34  ;;  %v10183_v34 = vld [vmem:[%s14085_s3 + $0xb0] sm:$0xff]  }
 0x11c   :  { %1889 = vmatmul.mubr.bf16.gmra.mxu1 %v10173_v47  ;;  %v10184_v47 = vld [vmem:[%s14085_s3 + $0xe8] sm:$0xff]   ;;  %9663 = vmatpush3.bf16.msra.mxu0 %v10181_v38  ;;  %v10194_v38 = vld [vmem:[%s14085_s3 + $0xd0] sm:$0xff]  }
 0x11d   :  { %9707 = vmatpush3.bf16.msra.mxu1 %v10183_v34  ;;  %9664 = vmatprep.subr.bf16.mxu0 %v10186_v3  ;;  %v10190_v34 = vld [vmem:[%s14085_s3 + $0xd8] sm:$0xff]   ;;  %v10197_v3 = vld [vmem:[%s14085_s3 + $0x10] sm:$0xff]  }
 0x11e   :  { %9708 = vmatprep.subr.bf16.mxu1 %v10184_v47  ;;  %v10191_v47 = vld [vmem:[%s14085_s3 + $0x98] sm:$0xff]  }
 0x120   :  { %9665 = vmatpush3.bf16.msra.mxu0 %v10187_v32  ;;  %v10198_v32 = vld [vmem:[%s14085_s3 + $0xc8] sm:$0xff]  }
 0x121   :  { %9709 = vmatpush3.bf16.msra.mxu1 %v10185_v36  ;;  %v10192_v36 = vld [vmem:[%s14085_s3 + $0x58] sm:$0xff]  }
 0x122   :  { %9710 = vmatprep.subr.bf16.mxu1 %v10188_v39  ;;  %9666 = vmatprep.subr.bf16.mxu0 %v10192_v36  ;;  %v10195_v39 = vld [vmem:[%s14085_s3 + $0x90] sm:$0xff]   ;;  %v10201_v36 = vld [vmem:[%s14085_s3 + $0x8] sm:$0xff]  }
 0x124   :  { %9667 = vmatpush3.bf16.msra.mxu0 %v10193_v19  ;;  %v10202_v19 = vld [vmem:[%s14085_s3 + $0xc0] sm:$0xff]  }
 0x125   :  { %9711 = vmatpush3.bf16.msra.mxu1 %v10189_v17  ;;  %v10196_v17 = vld [vmem:[%s14085_s3 + $0x50] sm:$0xff]  }
 0x126   :  { %9712 = vmatprep.subr.bf16.mxu1 %v10190_v34  ;;  %9668 = vmatprep.subr.bf16.mxu0 %v10196_v17  ;;  %v10199_v34 = vld [vmem:[%s14085_s3 + $0x88] sm:$0xff]   ;;  %v10205_v17 = vld [vmem:[%s14085_s3] sm:$0xff]  }
 0x128   :  { %9669 = vmatpush3.bf16.msra.mxu0 %v10197_v3 }
 0x129   :  { %9713 = vmatpush3.bf16.msra.mxu1 %v10191_v47  ;;  %v10200_v47 = vld [vmem:[%s14085_s3 + $0x48] sm:$0xff]  }
 0x12a   :  { %9714 = vmatprep.subr.bf16.mxu1 %v10194_v38  ;;  %9670 = vmatprep.subr.bf16.mxu0 %v10200_v47  ;;  %v10203_v38 = vld [vmem:[%s14085_s3 + $0x80] sm:$0xff]  }
 0x12c   :  { %9671 = vmatpush3.bf16.msra.mxu0 %v10201_v36 }
 0x12d   :  { %9715 = vmatpush3.bf16.msra.mxu1 %v10195_v39  ;;  %v10204_v39 = vld [vmem:[%s14085_s3 + $0x40] sm:$0xff]  }
 0x12e   :  { %9716 = vmatprep.subr.bf16.mxu1 %v10198_v32  ;;  %9672 = vmatprep.subr.bf16.mxu0 %v10204_v39 }
 0x130   :  { %9673 = vmatpush3.bf16.msra.mxu0 %v10205_v17 }
 0x131   :  { %9717 = vmatpush3.bf16.msra.mxu1 %v10199_v34 }
 0x132   :  { %9718 = vmatprep.subr.bf16.mxu1 %v10202_v19 }
 0x135   :  { %9719 = vmatpush3.bf16.msra.mxu1 %v10203_v38 }
 0x163   :  { %v9418_v3 = vpop.f32.mrf.mxu0 }
 0x164   :  { %v9482_v32 = vpop.f32.mrf.mxu1 }
 0x165   :  { %v9419_v34 = vpop.f32.mrf.mxu0 }
 0x166   :  { %v9420_v47 = vadd.f32 %v9419_v34, %v9418_v3  ;;  %v9483_v36 = vpop.f32.mrf.mxu1 }
 0x167   :  { %v9484_v7 = vadd.f32 %v9483_v36, %v9482_v32  ;;  %v12235_v40 = vpop.f32.mrf.mxu0 }
 0x168   :  { %v12237_v19 = vpop.f32.mrf.mxu1 }
 0x169   :  { %v12239_v42 = vadd.f32 %v9484_v7, %v9420_v47  ;;  %v12241_v21 = vpop.f32.mrf.mxu0 }
 0x16a   :  { %v12243_v38 = vpop.f32.mrf.mxu1  ;;  %v9423_v1 = vadd.f32 %v12241_v21, %v12235_v40 }
 0x16b   :  { %v9424_v23 = vpop.f32.mrf.mxu0 }
 0x16c   :  { %v9488_v44 = vpop.f32.mrf.mxu1 }
 0x16d   :  { %v9425_v39 = vpop.f32.mrf.mxu0 }
 0x16e   :  { %v9426_v17 = vadd.f32 %v9425_v39, %v9424_v23  ;;  %v9489_v46 = vpop.f32.mrf.mxu1  ;;  %v10222_v39 = vld [vmem:[%s14085_s3 + $0x1f8] sm:$0xff]  }
 0x16f   :  { %v9490_v55 = vadd.f32 %v9489_v46, %v9488_v44  ;;  %v12245_v11 = vpop.f32.mrf.mxu0  ;;  %v10218_v44 = vld [vmem:[%s14085_s3 + $0x178] sm:$0xff]   ;;  %9796 = vmatprep.subr.bf16.mxu1 %v10222_v39 }
 0x170   :  { %v12247_v3 = vpop.f32.mrf.mxu1  ;;  %9750 = vmatprep.subr.bf16.mxu0 %v10218_v44 }
 0x171   :  { %v12249_v32 = vadd.f32 %v9490_v55, %v9426_v17  ;;  %v12251_v34 = vpop.f32.mrf.mxu0 }
 0x172   :  { %v12253_v7 = vpop.f32.mrf.mxu1 }
 0x173   :  { %v9430_v47 = vpop.f32.mrf.mxu0 }
 0x174   :  { %v9494_v36 = vpop.f32.mrf.mxu1 }
 0x175   :  { %v9431_v48 = vpop.f32.mrf.mxu0 }
 0x176   :  { %v9432_v50 = vadd.f32 %v9431_v48, %v9430_v47  ;;  %v9495_v25 = vpop.f32.mrf.mxu1 }
 0x177   :  { %v9496_v27 = vadd.f32 %v9495_v25, %v9494_v36  ;;  %v12255_v52 = vpop.f32.mrf.mxu0 }
 0x178   :  { %v12257_v23 = vpop.f32.mrf.mxu1 }
 0x179   :  { %v12262_v46 = vadd.f32 %v9496_v27, %v9432_v50  ;;  %v12264_v55 = vpop.f32.mrf.mxu0 }
 0x17a   :  { %v12269_v17 = vpop.f32.mrf.mxu1 }
 0x17b   :  { %v9436_v25 = vpop.f32.mrf.mxu0 }
 0x17c   :  { %v9500_v48 = vpop.f32.mrf.mxu1 }
 0x17d   :  { %v9437_v47 = vpop.f32.mrf.mxu0 }
 0x17e   :  { %v9438_v36 = vadd.f32 %v9437_v47, %v9436_v25  ;;  %v9501_v54 = vpop.f32.mrf.mxu1 }
 0x17f   :  { %v9502_v63 = vadd.f32 %v9501_v54, %v9500_v48  ;;  %v12271_v15 = vpop.f32.mrf.mxu0 }
 0x180   :  { %v12273_v27 = vpop.f32.mrf.mxu1 }
 0x181   :  { %v12275_v50 = vadd.f32 %v9502_v63, %v9438_v36  ;;  %v12277_v56 = vpop.f32.mrf.mxu0 }
 0x182   :  { %v12279_v58 = vpop.f32.mrf.mxu1 }
 0x183   :  { %v9442_v29 = vpop.f32.mrf.mxu0 }
 0x184   :  { %v9506_v31 = vpop.f32.mrf.mxu1 }
 0x185   :  { %v9443_v44 = vpop.f32.mrf.mxu0 }
 0x186   :  { %v9444_v60 = vadd.f32 %v9443_v44, %v9442_v29  ;;  %v9507_v39 = vpop.f32.mrf.mxu1 }
 0x187   :  { %v9508_v62 = vadd.f32 %v9507_v39, %v9506_v31  ;;  %v12281_v33 = vpop.f32.mrf.mxu0 }
 0x188   :  { %v12283_v25 = vpop.f32.mrf.mxu1 }
 0x189   :  { %v12285_v54 = vadd.f32 %v9508_v62, %v9444_v60  ;;  %v12287_v48 = vpop.f32.mrf.mxu0 }
 0x18a   :  { %v12289_v63 = vpop.f32.mrf.mxu1 }
 0x18b   :  { %v9448_v47 = vpop.f32.mrf.mxu0 }
 0x18c   :  { %v9512_v36 = vpop.f32.mrf.mxu1 }
 0x18d   :  { %v9449_v37 = vpop.f32.mrf.mxu0 }
 0x18e   :  { %v9450_v0 = vadd.f32 %v9449_v37, %v9448_v47  ;;  %v9513_v2 = vpop.f32.mrf.mxu1 }
 0x18f   :  { %v9514_v41 = vadd.f32 %v9513_v2, %v9512_v36  ;;  %v12291_v45 = vpop.f32.mrf.mxu0 }
 0x190   :  { %v12293_v29 = vpop.f32.mrf.mxu1 }
 0x191   :  { %v12295_v31 = vadd.f32 %v9514_v41, %v9450_v0  ;;  %v12297_v44 = vpop.f32.mrf.mxu0 }
 0x192   :  { %v12299_v60 = vpop.f32.mrf.mxu1 }
 0x193   :  { %v9454_v62 = vpop.f32.mrf.mxu0 }
 0x194   :  { %v9518_v39 = vpop.f32.mrf.mxu1 }
 0x195   :  { %v9455_v4 = vpop.f32.mrf.mxu0 }
 0x196   :  { %v9456_v6 = vadd.f32 %v9455_v4, %v9454_v62  ;;  %v9519_v49 = vpop.f32.mrf.mxu1 }
 0x197   :  { %v9520_v53 = vadd.f32 %v9519_v49, %v9518_v39  ;;  %v12301_v8 = vpop.f32.mrf.mxu0 }
 0x198   :  { %v12303_v37 = vpop.f32.mrf.mxu1 }
 0x199   :  { %v12305_v2 = vadd.f32 %v9520_v53, %v9456_v6  ;;  %v12307_v47 = vpop.f32.mrf.mxu0 }
 0x19a   :  { %v12309_v0 = vpop.f32.mrf.mxu1 }
 0x19b   :  { %v9460_v41 = vpop.f32.mrf.mxu0 }
 0x19c   :  { %v9524_v36 = vpop.f32.mrf.mxu1 }
 0x19d   :  { %v9461_v10 = vpop.f32.mrf.mxu0 }
 0x19e   :  { %v9462_v57 = vadd.f32 %v9461_v10, %v9460_v41  ;;  %v9525_v61 = vpop.f32.mrf.mxu1  ;;  %v9487_v10 = vadd.f32 %v12243_v38, %v12237_v19  ;;  %v9429_v38 = vadd.f32 %v12251_v34, %v12245_v11 }
 0x19f   :  { %v9526_v12 = vadd.f32 %v9525_v61, %v9524_v36  ;;  %v12311_v14 = vpop.f32.mrf.mxu0 }
 0x1a0   :  { %v12313_v4 = vpop.f32.mrf.mxu1  ;;  %v1176_v43 = vadd.f32 %v9487_v10, %v9423_v1 }
 0x1a1   :  { %v12315_v49 = vadd.f32 %v9526_v12, %v9462_v57  ;;  %v12317_v62 = vpop.f32.mrf.mxu0 }
 0x1a2   :  { %v12319_v6 = vpop.f32.mrf.mxu1 }
 0x1a3   :  { %v9546_v53 = vpop.f32.mrf.mxu0 }
 0x1a4   :  { %v9610_v39 = vpop.f32.mrf.mxu1 }
 0x1a5   :  { %v9547_v35 = vpop.f32.mrf.mxu0 }
 0x1a6   :  { %v9548_v61 = vadd.f32 %v9547_v35, %v9546_v53  ;;  %v9611_v41 = vpop.f32.mrf.mxu1 }
 0x1a7   :  { %v9549_v36 = vpop.f32.mrf.mxu0  ;;  %v9612_v12 = vadd.f32 %v9611_v41, %v9610_v39 }
 0x1a8   :  { %v1558_v16 = vadd.f32 %v9548_v61, %v12239_v42  ;;  %v9613_v57 = vpop.f32.mrf.mxu1  ;;  %v9493_v42 = vadd.f32 %v12253_v7, %v12247_v3 }
 0x1a9   :  { %v9550_v18 = vpop.f32.mrf.mxu0 }
 0x1aa   :  { %v1897_v5 = vadd.f32 %v9612_v12, %v1558_v16  ;;  %v9551_v20 = vadd.f32 %v9550_v18, %v9549_v36  ;;  %v9614_v22 = vpop.f32.mrf.mxu1 }
 0x1ab   :  { %v9552_v21 = vpop.f32.mrf.mxu0  ;;  %v9615_v19 = vadd.f32 %v9614_v22, %v9613_v57 }
 0x1ac   :  { %v1559_v40 = vadd.f32 %v9551_v20, %v1176_v43  ;;  %v9616_v35 = vpop.f32.mrf.mxu1  ;;  %v1920_v1 = vadd.f32 %v12329_v51, %v1897_v5  ;;  %v1184_v43 = vadd.f32 %v9493_v42, %v9429_v38 }
 0x1ad   :  { %v9553_v53 = vpop.f32.mrf.mxu0 }
 0x1ae   :  { %v1898_v16 = vadd.f32 %v9615_v19, %v1559_v40  ;;  %v9554_v18 = vadd.f32 %v9553_v53, %v9552_v21  ;;  %v9617_v39 = vpop.f32.mrf.mxu1  ;;  %v1936_v12 = vmax.f32 %v1920_v1, 0.0  ;;  %v9435_v19 = vadd.f32 %v12264_v55, %v12255_v52 }
 0x1af   :  { %v9555_v10 = vpop.f32.mrf.mxu0  ;;  %v9618_v20 = vadd.f32 %v9617_v39, %v9616_v35  ;;  %v9441_v52 = vadd.f32 %v12277_v56, %v12271_v15 }
 0x1b0   :  { %v1921_v61 = vadd.f32 %v12329_v51, %v1898_v16  ;;  %v1560_v41 = vadd.f32 %v9554_v18, %v12249_v32  ;;  %v9619_v22 = vpop.f32.mrf.mxu1  ;;  %v9499_v32 = vadd.f32 %v12269_v17, %v12257_v23  ;;  %v9505_v23 = vadd.f32 %v12279_v58, %v12273_v27 }
 0x1b1   :  { %v9556_v36 = vpop.f32.mrf.mxu0 }
 0x1b2   :  { %v1937_v11 = vmax.f32 %v1921_v61, 0.0  ;;  %v1899_v34 = vadd.f32 %v9618_v20, %v1560_v41  ;;  %v9557_v57 = vadd.f32 %v9556_v36, %v9555_v10  ;;  %v9620_v3 = vpop.f32.mrf.mxu1  ;;  %v1192_v41 = vadd.f32 %v9499_v32, %v9435_v19 }
 0x1b3   :  { %v9558_v7 = vpop.f32.mrf.mxu0  ;;  %v9621_v40 = vadd.f32 %v9620_v3, %v9619_v22  ;;  %v9447_v19 = vadd.f32 %v12287_v48, %v12281_v33 }
 0x1b4   :  { %v9358_v9 = vpack.c.bf16 %v1937_v11, %v1936_v12  ;;  %v1561_v5 = vadd.f32 %v9557_v57, %v1184_v43  ;;  %v9622_v21 = vpop.f32.mrf.mxu1  ;;  %v1922_v38 = vadd.f32 %v12329_v51, %v1899_v34  ;;  %v1200_v57 = vadd.f32 %v9505_v23, %v9441_v52 }
 0x1b5   :  { %v9559_v35 = vpop.f32.mrf.mxu0 }
 0x1b6   :  { %9359 = vst [vmem:[#allocation2] sm:$0xff] %v9358_v9   ;;  %v1900_v42 = vadd.f32 %v9621_v40, %v1561_v5  ;;  %v9560_v53 = vadd.f32 %v9559_v35, %v9558_v7  ;;  %v9623_v1 = vpop.f32.mrf.mxu1  ;;  %v1938_v55 = vmax.f32 %v1922_v38, 0.0 }
 0x1b7   :  { %v9561_v16 = vpop.f32.mrf.mxu0  ;;  %v9624_v10 = vadd.f32 %v9623_v1, %v9622_v21 }
 0x1b8   :  { %v1923_v18 = vadd.f32 %v12329_v51, %v1900_v42  ;;  %v1562_v39 = vadd.f32 %v9560_v53, %v12262_v46  ;;  %v9625_v61 = vpop.f32.mrf.mxu1 }
 0x1b9   :  { %v9562_v9 = vpop.f32.mrf.mxu0 }
 0x1ba   :  { %v1939_v17 = vmax.f32 %v1923_v18, 0.0  ;;  %v1901_v20 = vadd.f32 %v9624_v10, %v1562_v39  ;;  %v9563_v22 = vadd.f32 %v9562_v9, %v9561_v16  ;;  %v9626_v43 = vpop.f32.mrf.mxu1  ;;  %v9511_v16 = vadd.f32 %v12289_v63, %v12283_v25 }
 0x1bb   :  { %v9564_v36 = vpop.f32.mrf.mxu0  ;;  %v9627_v34 = vadd.f32 %v9626_v43, %v9625_v61 }
 0x1bc   :  { %v9363_v12 = vpack.c.bf16 %v1939_v17, %v1938_v55  ;;  %v1563_v11 = vadd.f32 %v9563_v22, %v1192_v41  ;;  %v9628_v46 = vpop.f32.mrf.mxu1  ;;  %v1924_v56 = vadd.f32 %v12329_v51, %v1901_v20 }
 0x1bd   :  { %v2034_v3 = vld [vmem:[#allocation2] sm:$0xf]  ;;  %v2100_v7 = vld [vmem:[#allocation2 + $0x4] sm:$0xf]  ;;  %v9565_v5 = vpop.f32.mrf.mxu0 }
 0x1be   :  { %v2102_v40 = vshrl.u32 %v2100_v7, 16  ;;  %v2105_v15 = vshll.u32 %v2100_v7, 16  ;;  %9395 = vst [vmem:[#allocation2 + $0x8] sm:$0xff] %v9363_v12   ;;  %v1902_v58 = vadd.f32 %v9627_v34, %v1563_v11  ;;  %v9629_v27 = vpop.f32.mrf.mxu1  ;;  %v2046_v21 = vld [vmem:[#allocation2] sm:$0xe]  ;;  %v9566_v32 = vadd.f32 %v9565_v5, %v9564_v36 }
 0x1bf   :  { %v9567_v35 = vpop.f32.mrf.mxu0  ;;  %v8779_v38 = vrot.slane %v2046_v21, 9  ;;  %v2052_v42 = vld [vmem:[#allocation2 + $0x4] sm:$0x7]  ;;  %v2036_v1 = vshrl.u32 %v2034_v3, 16  ;;  %v2032_v61 = vld [vmem:[#allocation2] sm:$0x7]  ;;  %v9630_v33 = vadd.f32 %v9629_v27, %v9628_v46 }
 0x1c0   :  { %v2114_v53 = vld [vmem:[#allocation2 + $0x4] sm:$0xe]  ;;  %v1925_v18 = vadd.f32 %v12329_v51, %v1902_v58  ;;  %v9631_v39 = vpop.f32.mrf.mxu1  ;;  %2053 = vst [vmem:[#allocation3 + $0xc] sm:$0x7] %v2052_v42  ;;  %v2039_v41 = vshll.u32 %v2034_v3, 16  ;;  %v1564_v23 = vadd.f32 %v9566_v32, %v12275_v50  ;;  %v2104_v55 = vrot.slane %v2102_v40, 5 }
 0x1c1   :  { %v2116_v10 = vrot.slane %v2114_v53, 6  ;;  %v2092_v52 = vld [vmem:[#allocation2 + $0x4] sm:$0x7]  ;;  %v9568_v48 = vpop.f32.mrf.mxu0  ;;  %2051 = vst [vmem:[#allocation3 + $0x8] sm:$0x7] %v8779_v38  ;;  %v1940_v17 = vmax.f32 %v1924_v56, 0.0  ;;  %v9453_v53 = vadd.f32 %v12297_v44, %v12291_v45 }
 0x1c2   :  { %2033 = vst [vmem:[#allocation3] sm:$0x7] %v2032_v61  ;;  %v2094_v9 = vrot.slane %v2092_v52, 5  ;;  %v1941_v20 = vmax.f32 %v1925_v18, 0.0  ;;  %v9569_v22 = vadd.f32 %v9568_v48, %v9567_v35  ;;  %v9632_v25 = vpop.f32.mrf.mxu1  ;;  %v1903_v43 = vadd.f32 %v9630_v33, %v1564_v23 }
 0x1c3   :  { %v2117_v63 = vrot.slane %v2116_v10, 4  ;;  %2120 = vst [vmem:[#allocation3 + $0x8] sm:$0x8] %v2116_v10  ;;  %v9570_v36 = vpop.f32.mrf.mxu0  ;;  %v2038_v12 = vrot.slane %v2036_v1, 4  ;;  %v2107_v34 = vrot.slane %v2105_v15, 6  ;;  %v9633_v46 = vadd.f32 %v9632_v25, %v9631_v39 }
 0x1c4   :  { %v2095_v11 = vrot.slane %v2094_v9, 4  ;;  %2098 = vst [vmem:[#allocation3] sm:$0x8] %v2094_v9  ;;  %v9368_v3 = vpack.c.bf16 %v1941_v20, %v1940_v17  ;;  %v1565_v50 = vadd.f32 %v9569_v22, %v1200_v57  ;;  %v9634_v7 = vpop.f32.mrf.mxu1  ;;  %v2041_v5 = vrot.slane %v2039_v41, 5 }
 0x1c5   :  { %2121 = vst [vmem:[#allocation3 + $0x2c] sm:$0x3] %v2117_v63  ;;  %v2086_v58 = vld [vmem:[#allocation2 + $0x8] sm:$0xe]  ;;  %v1926_v40 = vadd.f32 %v12329_v51, %v1903_v43  ;;  %v9571_v56 = vpop.f32.mrf.mxu0  ;;  %v12357_v27 = vor.u32 %v2107_v34, %v2104_v55  ;;  %v2174_v38 = vld [vmem:[#allocation2 + $0xc] sm:$0xe]  ;;  %v1208_v57 = vadd.f32 %v9511_v16, %v9447_v19  ;;  %v9517_v19 = vadd.f32 %v12299_v60, %v12293_v29 }
 0x1c6   :  { %2099 = vst [vmem:[#allocation3 + $0x24] sm:$0x3] %v2095_v11  ;;  %v8781_v21 = vrot.slane %v2086_v58, 9  ;;  %9396 = vst [vmem:[#allocation2 + $0x10] sm:$0xff] %v9368_v3   ;;  %v1904_v32 = vadd.f32 %v9633_v46, %v1565_v50  ;;  %v9635_v35 = vpop.f32.mrf.mxu1  ;;  %v9572_v42 = vadd.f32 %v9571_v56, %v9570_v36  ;;  %v2176_v1 = vrot.slane %v2174_v38, 6 }
 0x1c7   :  { %v9573_v15 = vpop.f32.mrf.mxu0  ;;  %2112 = vst [vmem:[#allocation3 + $0x4] sm:$0x8] %v12357_v27  ;;  %v2042_v39 = vor.u32 %v2041_v5, %v2038_v12  ;;  %v12362_v10 = vld [vmem:[#allocation2 + $0x8] sm:$0xf]  ;;  %v1942_v61 = vmax.f32 %v1926_v40, 0.0  ;;  %v9636_v23 = vadd.f32 %v9635_v35, %v9634_v7  ;;  %v1216_v58 = vadd.f32 %v9517_v19, %v9453_v53 }
 0x1c8   :  { %2091 = vst [vmem:[#allocation3 + $0x20] sm:$0x7] %v8781_v21  ;;  %v9637_v18 = vpop.f32.mrf.mxu1  ;;  %v1927_v41 = vadd.f32 %v12329_v51, %v1904_v32  ;;  %v1566_v52 = vadd.f32 %v9572_v42, %v12285_v54  ;;  %v2122_v48 = vld [vmem:[#allocation2 + $0x8] sm:$0x7]  ;;  %v2177_v16 = vrot.slane %v2176_v1, 4  ;;  %v2192_v3 = vshrl.u32 %v12362_v10, 16 }
 0x1c9   :  { %v9574_v33 = vpop.f32.mrf.mxu0  ;;  %2180 = vst [vmem:[#allocation3 + $0x20] sm:$0x8] %v2176_v1  ;;  %v2124_v9 = vrot.slane %v2122_v48, 5  ;;  %v12368_v55 = vld [vmem:[#allocation2 + $0x8] sm:$0xe]  ;;  %v2043_v60 = vrot.slane %v2042_v39, 4  ;;  %v9459_v38 = vadd.f32 %v12307_v47, %v12301_v8  ;;  %v9523_v42 = vadd.f32 %v12309_v0, %v12303_v37 }
 0x1ca   :  { %v9575_v45 = vadd.f32 %v9574_v33, %v9573_v15  ;;  %v9638_v44 = vpop.f32.mrf.mxu1  ;;  %v12370_v17 = vld [vmem:[#allocation2 + $0xc] sm:$0x7]  ;;  %v1943_v20 = vmax.f32 %v1927_v41, 0.0  ;;  %v1905_v22 = vadd.f32 %v9636_v23, %v1566_v52  ;;  %v2206_v54 = vrot.slane %v12368_v55, 7  ;;  %2181 = vst [vmem:[#allocation3 + $0x44] sm:$0x3] %v2177_v16 }
 0x1cb   :  { %v9639_v25 = vadd.f32 %v9638_v44, %v9637_v18  ;;  %v9576_v63 = vpop.f32.mrf.mxu0  ;;  %v2125_v12 = vrot.slane %v2124_v9, 4  ;;  %2128 = vst [vmem:[#allocation3 + $0xc] sm:$0x8] %v2124_v9  ;;  %v2214_v29 = vrot.slane %v12370_v17, 6  ;;  %v2287_v11 = vld [vmem:[#allocation2 + $0xc] sm:$0xe] }
 0x1cc   :  { %v1567_v43 = vadd.f32 %v9575_v45, %v1208_v57  ;;  %v9640_v36 = vpop.f32.mrf.mxu1  ;;  %v12374_v34 = vld [vmem:[#allocation2 + $0x4] sm:$0xf]  ;;  %v9373_v46 = vpack.c.bf16 %v1943_v20, %v1942_v61  ;;  %v1928_v7 = vadd.f32 %v12329_v51, %v1905_v22  ;;  %2210 = vst [vmem:[#allocation3 + $0x2c] sm:$0xc] %v2206_v54  ;;  %2288 = vst [vmem:[#allocation3 + $0x50] sm:$0xe] %v2287_v11 }
 0x1cd   :  { %v12377_v50 = vld [vmem:[#allocation2 + $0x10] sm:$0xe]  ;;  %v9577_v5 = vpop.f32.mrf.mxu0  ;;  %v2195_v40 = vshll.u32 %v12362_v10, 16  ;;  %2129 = vst [vmem:[#allocation3 + $0x30] sm:$0x3] %v2125_v12  ;;  %v2056_v47 = vshrl.u32 %v12374_v34, 16 }
 0x1ce   :  { %v14346_v56 = vrot.slane %v12377_v50, 7  ;;  %v1906_v21 = vadd.f32 %v9639_v25, %v1567_v43  ;;  %v9641_v32 = vpop.f32.mrf.mxu1  ;;  %2218 = vst [vmem:[#allocation3 + $0x30] sm:$0xc] %v2214_v29  ;;  %2045 = vst [vmem:[#allocation3 + $0x4] sm:$0x7] %v2043_v60  ;;  %v9578_v57 = vadd.f32 %v9577_v5, %v9576_v63  ;;  %v1944_v39 = vmax.f32 %v1928_v7, 0.0 }
 0x1cf   :  { %v2182_v35 = vld [vmem:[#allocation2 + $0x8] sm:$0x7]  ;;  %9397 = vst [vmem:[#allocation2 + $0x18] sm:$0xff] %v9373_v46   ;;  %v9579_v53 = vpop.f32.mrf.mxu0  ;;  %v2272_v1 = vld [vmem:[#allocation2 + $0xc] sm:$0x7]  ;;  %v9642_v61 = vadd.f32 %v9641_v32, %v9640_v36  ;;  %v2109_v52 = vrot.slane %v12357_v27, 4  ;;  %v1224_v7 = vadd.f32 %v9523_v42, %v9459_v38  ;;  %v12411_v5 = vadd.f32 %v12317_v62, %v12311_v14 }
 0x1d0   :  { %v12390_v15 = vld [vmem:[#allocation2 + $0x8] sm:$0xf]  ;;  %v12392_v18 = vld [vmem:[#allocation2 + $0xc] sm:$0xf]  ;;  %2270 = vst [vmem:[#allocation3 + $0x44] sm:$0xc] %v14346_v56  ;;  %v1929_v10 = vadd.f32 %v12329_v51, %v1906_v21  ;;  %v9643_v41 = vpop.f32.mrf.mxu1  ;;  %v1568_v37 = vadd.f32 %v9578_v57, %v12295_v31  ;;  %v9529_v62 = vadd.f32 %v12319_v6, %v12313_v4 }
 0x1d1   :  { %v2323_v8 = vld [vmem:[#allocation2 + $0x10] sm:$0x7]  ;;  %v9580_v0 = vpop.f32.mrf.mxu0  ;;  %v2184_v23 = vrot.slane %v2182_v35, 6  ;;  %v2194_v33 = vrot.slane %v2192_v3, 6  ;;  %v2197_v45 = vrot.slane %v2195_v40, 7  ;;  %v2274_v44 = vrot.slane %v2272_v1, 7 }
 0x1d2   :  { %2324 = vst [vmem:[#allocation3 + $0x6c] sm:$0x7] %v2323_v8  ;;  %v1945_v48 = vmax.f32 %v1929_v10, 0.0  ;;  %v9581_v19 = vadd.f32 %v9580_v0, %v9579_v53  ;;  %v9644_v16 = vpop.f32.mrf.mxu1  ;;  %v2132_v9 = vshrl.u32 %v12390_v15, 16  ;;  %v12401_v20 = vld [vmem:[#allocation2 + $0xc] sm:$0xf]  ;;  %v1907_v22 = vadd.f32 %v9642_v61, %v1568_v37 }
 0x1d3   :  { %v9582_v25 = vpop.f32.mrf.mxu0  ;;  %2113 = vst [vmem:[#allocation3 + $0x28] sm:$0x3] %v2109_v52  ;;  %2188 = vst [vmem:[#allocation3 + $0x24] sm:$0xc] %v2184_v23  ;;  %v2185_v31 = vrot.slane %v2184_v23, 4  ;;  %v2279_v63 = vshrl.u32 %v12392_v18, 16  ;;  %v9645_v12 = vadd.f32 %v9644_v16, %v9643_v41  ;;  %v2198_v11 = vor.u32 %v2197_v45, %v2194_v33 }
 0x1d4   :  { %v12404_v27 = vld [vmem:[#allocation2 + $0x14] sm:$0xf]  ;;  %v9378_v43 = vpack.c.bf16 %v1945_v48, %v1944_v39  ;;  %v1569_v36 = vadd.f32 %v9581_v19, %v1216_v58  ;;  %v9646_v60 = vpop.f32.mrf.mxu1  ;;  %2276 = vst [vmem:[#allocation3 + $0x48] sm:$0xe] %v2274_v44  ;;  %v10223_v46 = vld [vmem:[%s14085_s3 + $0x1b8] sm:$0xff]   ;;  %v1930_v40 = vadd.f32 %v12329_v51, %v1907_v22  ;;  %v2135_v57 = vshll.u32 %v12390_v15, 16 }
 0x1d5   :  { %v2343_v3 = vld [vmem:[#allocation2 + $0x14] sm:$0x7]  ;;  %v10206_v21 = vld [vmem:[#allocation3 + $0x8] ss:$36 sps:$4 sm:$0xff]   ;;  %v9583_v35 = vpop.f32.mrf.mxu0  ;;  %2189 = vst [vmem:[#allocation3 + $0x48] sm:$0x1] %v2185_v31 }
 0x1d6   :  { %v10208_v32 = vld [vmem:[#allocation3 + $0xc] ss:$36 sps:$4 sm:$0xff]   ;;  %v2281_v58 = vrot.slane %v2279_v63, 7  ;;  %2344 = vst [vmem:[#allocation3 + $0x78] sm:$0x7] %v2343_v3  ;;  %v2162_v53 = vshrl.u32 %v12401_v20, 16  ;;  %v1908_v39 = vadd.f32 %v9645_v12, %v1569_v36  ;;  %v9584_v38 = vadd.f32 %v9583_v35, %v9582_v25  ;;  %v9647_v42 = vpop.f32.mrf.mxu1 }
 0x1d7   :  { %v2325_v1 = vld [vmem:[#allocation2 + $0x10] sm:$0xf]  ;;  %9398 = vst [vmem:[#allocation2 + $0x20] sm:$0xff] %v9378_v43   ;;  %2202 = vst [vmem:[#allocation3 + $0x28] sm:$0xc] %v2198_v11  ;;  %v2393_v10 = vshrl.u32 %v12404_v27, 16  ;;  %3853 = vmatprep.mubr.bf16.mxu1 %v10208_v32  ;;  %v9585_v41 = vpop.f32.mrf.mxu0  ;;  %v9648_v33 = vadd.f32 %v9647_v42, %v9646_v60 }
 0x1d8   :  { %v10228_v14 = vld [vmem:[%s14085_s3 + $0x1f0] sm:$0xff]   ;;  %v2396_v61 = vshll.u32 %v12404_v27, 16  ;;  %v2282_v8 = vshll.u32 %v12392_v18, 16  ;;  %v1946_v0 = vmax.f32 %v1930_v40, 0.0  ;;  %v1931_v52 = vadd.f32 %v12329_v51, %v1908_v39  ;;  %3854 = vmatmul.mubr.bf16.vlgmr.msra.gmra.mxu1 %v10206_v21  ;;  %v9649_v48 = vpop.f32.mrf.mxu1  ;;  %v2072_v19 = vld [vmem:[#allocation2 + $0x8] sm:$0x7] }
 0x1d9   :  { %v12424_v37 = vld [vmem:[#allocation2 + $0x14] sm:$0x7]  ;;  %v1570_v23 = vadd.f32 %v9584_v38, %v12305_v2  ;;  %v9586_v4 = vpop.f32.mrf.mxu0  ;;  %v2199_v6 = vrot.slane %v2198_v11, 4  ;;  %v2327_v45 = vshrl.u32 %v2325_v1, 16  ;;  %v2330_v44 = vshll.u32 %v2325_v1, 16  ;;  %9797 = vmatpush3.bf16.msra.mxu1 %v10223_v46  ;;  %v10234_v27 = vld [vmem:[%s14085_s3 + $0x1e8] sm:$0xff]  }
 0x1da   :  { %v2284_v16 = vor.u32 %v2282_v8, %v2281_v58  ;;  %v10232_v18 = vld [vmem:[%s14085_s3 + $0x1b0] sm:$0xff]   ;;  %2073 = vst [vmem:[#allocation3 + $0x18] sm:$0x7] %v2072_v19  ;;  %v1947_v22 = vmax.f32 %v1931_v52, 0.0  ;;  %v9587_v31 = vadd.f32 %v9586_v4, %v9585_v41  ;;  %v9650_v63 = vpop.f32.mrf.mxu1  ;;  %v2385_v2 = vrot.slane %v12424_v37, 5  ;;  %9798 = vmatprep.subr.bf16.mxu1 %v10228_v14  ;;  %v10236_v46 = vld [vmem:[%s14085_s3 + $0x1a8] sm:$0xff]  }
 0x1db   :  { %v1909_v25 = vadd.f32 %v9648_v33, %v1570_v23  ;;  %v2165_v43 = vshll.u32 %v12401_v20, 16  ;;  %v12436_v36 = vld [vmem:[#allocation2 + $0xc] sm:$0xf]  ;;  %v9588_v12 = vpop.f32.mrf.mxu0  ;;  %2203 = vst [vmem:[#allocation3 + $0x4c] sm:$0x1] %v2199_v6  ;;  %v2329_v60 = vrot.slane %v2327_v45, 4  ;;  %v9651_v14 = vadd.f32 %v9650_v63, %v9649_v48 }
 0x1dc   :  { %2286 = vst [vmem:[#allocation3 + $0x4c] sm:$0xe] %v2284_v16  ;;  %v2332_v11 = vrot.slane %v2330_v44, 5  ;;  %v2395_v3 = vrot.slane %v2393_v10, 5  ;;  %v9383_v40 = vpack.c.bf16 %v1947_v22, %v1946_v0  ;;  %v1571_v32 = vadd.f32 %v9587_v31, %v1224_v7  ;;  %v9652_v35 = vpop.f32.mrf.mxu1  ;;  %2389 = vst [vmem:[#allocation3 + $0x6c] sm:$0x8] %v2385_v2 }
 0x1dd   :  { %v12442_v21 = vadd.f32 %v12329_v51, %v1909_v25  ;;  %v2398_v58 = vrot.slane %v2396_v61, 6  ;;  %v2289_v1 = vld [vmem:[#allocation2 + $0x10] sm:$0x7]  ;;  %v10238_v39 = vld [vmem:[%s14085_s3 + $0x1e0] sm:$0xff]   ;;  %v2363_v38 = vld [vmem:[#allocation2 + $0x18] sm:$0x7]  ;;  %v9589_v10 = vpop.f32.mrf.mxu0  ;;  %9799 = vmatpush3.bf16.msra.mxu1 %v10232_v18  ;;  %v1232_v7 = vadd.f32 %v9529_v62, %v12411_v5 }
 0x1de   :  { %v12449_v42 = vld [vmem:[#allocation2 + $0x20] sm:$0xf]  ;;  %v2333_v41 = vor.u32 %v2332_v11, %v2329_v60  ;;  %v2337_v8 = vld [vmem:[#allocation2 + $0x10] sm:$0xe]  ;;  %v12451_v0 = vld [vmem:[#allocation2 + $0x14] sm:$0xe]  ;;  %v9653_v33 = vpop.f32.mrf.mxu1  ;;  %9800 = vmatprep.subr.bf16.mxu1 %v10234_v27  ;;  %v1910_v16 = vadd.f32 %v9651_v14, %v1571_v32  ;;  %v9590_v45 = vadd.f32 %v9589_v10, %v9588_v12 }
 0x1df   :  { %2364 = vst [vmem:[#allocation3 + $0x84] sm:$0x7] %v2363_v38  ;;  %v2222_v61 = vshrl.u32 %v12436_v36, 16  ;;  %v2483_v52 = vshrl.u32 %v12449_v42, 16  ;;  %v2486_v23 = vshll.u32 %v12449_v42, 16  ;;  %9399 = vst [vmem:[#allocation2 + $0x28] sm:$0xff] %v9383_v40   ;;  %v9591_v44 = vpop.f32.mrf.mxu0  ;;  %v9654_v18 = vadd.f32 %v9653_v33, %v9652_v35 }
 0x1e0   :  { %v12457_v19 = vld [vmem:[#allocation2 + $0x18] sm:$0x7]  ;;  %v1948_v48 = vmax.f32 %v12442_v21, 0.0  ;;  %v10209_v4 = vld [vmem:[#allocation3] ss:$36 sps:$4 sm:$0xff]   ;;  %v2334_v62 = vrot.slane %v2333_v41, 4  ;;  %v2399_v22 = vor.u32 %v2398_v58, %v2395_v3  ;;  %v9655_v25 = vpop.f32.mrf.mxu1  ;;  %v1933_v55 = vadd.f32 %v12329_v51, %v1910_v16 }
 0x1e1   :  { %v10211_v6 = vld [vmem:[#allocation3 + $0x4] ss:$36 sps:$4 sm:$0xff]   ;;  %v10219_v5 = vld [vmem:[%s14085_s3 + $0x138] sm:$0xff]   ;;  %v2207_v31 = vrot.slane %v2206_v54, 4  ;;  %v2215_v63 = vrot.slane %v2214_v29, 4  ;;  %v10220_v27 = vld [vmem:[%s14085_s3 + $0x170] sm:$0xff]   ;;  %v1572_v17 = vadd.f32 %v9590_v45, %v12315_v49  ;;  %v9592_v54 = vpop.f32.mrf.mxu0  ;;  %9801 = vmatpush3.bf16.msra.mxu1 %v10236_v46 }
 0x1e2   :  { %v10239_v12 = vld [vmem:[%s14085_s3 + $0x1a0] sm:$0xff]   ;;  %v10245_v60 = vld [vmem:[%s14085_s3 + $0x1d8] sm:$0xff]   ;;  %v12476_v11 = vld [vmem:[#allocation2 + $0x10] sm:$0xf]  ;;  %3781 = vmatprep.mubr.bf16.mxu0 %v10211_v6  ;;  %v2291_v29 = vrot.slane %v2289_v1, 7  ;;  %v8782_v3 = vrot.slane %v2337_v8, 9  ;;  %v9593_v35 = vadd.f32 %v9592_v54, %v9591_v44  ;;  %v9656_v1 = vpop.f32.mrf.mxu1  ;;  %9802 = vmatprep.subr.bf16.mxu1 %v10238_v39 }
 0x1e3   :  { %v10221_v40 = vld [vmem:[%s14085_s3 + $0x130] sm:$0xff]   ;;  %v12483_v21 = vld [vmem:[#allocation2 + $0x20] sm:$0x7]  ;;  %v12485_v32 = vld [vmem:[#allocation2 + $0x18] sm:$0xf]  ;;  %3782 = vmatmul.mubr.bf16.vlgmr.msra.gmra.mxu0 %v10209_v4  ;;  %v2407_v49 = vrot.slane %v12451_v0, 6  ;;  %v1911_v10 = vadd.f32 %v9654_v18, %v1572_v17  ;;  %v9657_v41 = vadd.f32 %v9656_v1, %v9655_v25 }
 0x1e4   :  { %2336 = vst [vmem:[#allocation3 + $0x70] sm:$0x7] %v2334_v62  ;;  %2403 = vst [vmem:[#allocation3 + $0x70] sm:$0x8] %v2399_v22  ;;  %v2415_v58 = vrot.slane %v12457_v19, 5  ;;  %v2386_v38 = vrot.slane %v2385_v2, 4  ;;  %9751 = vmatpush3.bf16.msra.mxu0 %v10219_v5  ;;  %v1573_v4 = vadd.f32 %v9593_v35, %v1232_v7 }
 0x1e5   :  { %2211 = vst [vmem:[#allocation3 + $0x50] sm:$0x1] %v2207_v31  ;;  %2219 = vst [vmem:[#allocation3 + $0x54] sm:$0x1] %v2215_v63  ;;  %v10227_v46 = vld [vmem:[%s14085_s3 + $0x168] sm:$0xff]   ;;  %v1949_v14 = vmax.f32 %v1933_v55, 0.0  ;;  %9752 = vmatprep.subr.bf16.mxu0 %v10220_v27  ;;  %v1934_v5 = vadd.f32 %v12329_v51, %v1911_v10  ;;  %9803 = vmatpush3.bf16.msra.mxu1 %v10239_v12 }
 0x1e6   :  { %v12494_v42 = vld [vmem:[#allocation2 + $0x1c] sm:$0xf]  ;;  %2293 = vst [vmem:[#allocation3 + $0x54] sm:$0xe] %v2291_v29  ;;  %2342 = vst [vmem:[#allocation3 + $0x74] sm:$0x7] %v8782_v3  ;;  %v1912_v25 = vadd.f32 %v9657_v41, %v1573_v4  ;;  %9804 = vmatprep.subr.bf16.mxu1 %v10245_v60 }
 0x1e7   :  { %v2400_v8 = vrot.slane %v2399_v22, 4  ;;  %v2578_v33 = vld [vmem:[#allocation2 + $0x24] sm:$0xe]  ;;  %2411 = vst [vmem:[#allocation3 + $0x74] sm:$0x8] %v2407_v49  ;;  %v2475_v37 = vrot.slane %v12483_v21, 6  ;;  %v9388_v18 = vpack.c.bf16 %v1949_v14, %v1948_v48 }
 0x1e8   :  { %2419 = vst [vmem:[#allocation3 + $0x78] sm:$0x8] %v2415_v58  ;;  %2390 = vst [vmem:[#allocation3 + $0x90] sm:$0x3] %v2386_v38  ;;  %v2485_v2 = vrot.slane %v2483_v52, 6  ;;  %v2488_v39 = vrot.slane %v2486_v23, 7  ;;  %9753 = vmatpush3.bf16.msra.mxu0 %v10221_v40  ;;  %v1935_v60 = vadd.f32 %v12329_v51, %v1912_v25 }
 0x1e9   :  { %2579 = vst [vmem:[#allocation3 + $0xbc] sm:$0xe] %v2578_v33  ;;  %v10248_v6 = vld [vmem:[%s14085_s3 + $0x198] sm:$0xff]   ;;  %v2304_v16 = vld [vmem:[#allocation2 + $0x10] sm:$0xe]  ;;  %v2225_v7 = vshll.u32 %v12436_v36, 16  ;;  %9754 = vmatprep.subr.bf16.mxu0 %v10227_v46 }
 0x1ea   :  { %v2252_v45 = vshrl.u32 %v12476_v11, 16  ;;  %v12506_v44 = vld [vmem:[#allocation2 + $0x28] sm:$0xe]  ;;  %2404 = vst [vmem:[#allocation3 + $0x94] sm:$0x3] %v2400_v8  ;;  %v2255_v52 = vshll.u32 %v12476_v11, 16  ;;  %v2489_v54 = vor.u32 %v2488_v39, %v2485_v2  ;;  %9805 = vmatpush3.bf16.msra.mxu1 %v10248_v6 }
 0x1eb   :  { %v2563_v62 = vld [vmem:[#allocation2 + $0x24] sm:$0x7]  ;;  %2305 = vst [vmem:[#allocation3 + $0x5c] sm:$0xe] %v2304_v16  ;;  %v14345_v22 = vrot.slane %v12506_v44, 7  ;;  %v10231_v31 = vld [vmem:[%s14085_s3 + $0x128] sm:$0xff]  }
 0x1ec   :  { %2479 = vst [vmem:[#allocation3 + $0x90] sm:$0xc] %v2475_v37  ;;  %v10235_v48 = vld [vmem:[%s14085_s3 + $0x160] sm:$0xff]   ;;  %v10253_v63 = vld [vmem:[%s14085_s3 + $0x1d0] sm:$0xff]   ;;  %v2453_v12 = vshrl.u32 %v12494_v42, 16  ;;  %9400 = vst [vmem:[#allocation2 + $0x30] sm:$0xff] %v9388_v18   ;;  %9755 = vmatpush3.bf16.msra.mxu0 %v10231_v31 }
 0x1ed   :  { %v2568_v55 = vld [vmem:[#allocation2 + $0x24] sm:$0xf]  ;;  %v2612_v17 = vld [vmem:[#allocation2 + $0x2c] sm:$0xe]  ;;  %v10255_v29 = vld [vmem:[%s14085_s3 + $0x190] sm:$0xff]   ;;  %v2476_v3 = vrot.slane %v2475_v37, 4  ;;  %9806 = vmatprep.subr.bf16.mxu1 %v10253_v63  ;;  %9756 = vmatprep.subr.bf16.mxu0 %v10235_v48 }
 0x1ee   :  { %2613 = vst [vmem:[#allocation3 + $0xd4] sm:$0xe] %v2612_v17  ;;  %2561 = vst [vmem:[#allocation3 + $0xb0] sm:$0xc] %v14345_v22  ;;  %v2565_v21 = vrot.slane %v2563_v62, 7  ;;  %v10258_v40 = vld [vmem:[%s14085_s3 + $0x1c8] sm:$0xff]   ;;  %9807 = vmatpush3.bf16.msra.mxu1 %v10255_v29 }
 0x1ef   :  { %v2495_v35 = vld [vmem:[#allocation2 + $0x20] sm:$0xe]  ;;  %v12529_v1 = vld [vmem:[#allocation2 + $0x24] sm:$0x7]  ;;  %v2456_v38 = vshll.u32 %v12494_v42, 16  ;;  %v1950_v10 = vmax.f32 %v1934_v5, 0.0  ;;  %9808 = vmatprep.subr.bf16.mxu1 %v10258_v40 }
 0x1f0   :  { %v12535_v14 = vld [vmem:[#allocation2 + $0x24] sm:$0xf]  ;;  %v10212_v41 = vld [vmem:[#allocation3 + $0x4c] ss:$36 sps:$4 sm:$0xff]   ;;  %v2490_v8 = vrot.slane %v2489_v54, 4  ;;  %v1951_v33 = vmax.f32 %v1935_v60, 0.0 }
 0x1f1   :  { %2493 = vst [vmem:[#allocation3 + $0x94] sm:$0xc] %v2489_v54  ;;  %v10237_v51 = vld [vmem:[%s14085_s3 + $0x120] sm:$0xff]   ;;  %v10214_v46 = vld [vmem:[#allocation3 + $0x48] ss:$36 sps:$4 sm:$0xff]   ;;  %v2570_v4 = vshrl.u32 %v2568_v55, 16  ;;  %3789 = vmatprep.mubr.bf16.mxu0 %v10212_v41 }
 0x1f2   :  { %2480 = vst [vmem:[#allocation3 + $0xb4] sm:$0x1] %v2476_v3  ;;  %2567 = vst [vmem:[#allocation3 + $0xb4] sm:$0xe] %v2565_v21  ;;  %v2573_v37 = vshll.u32 %v2568_v55, 16  ;;  %v10240_v2 = vld [vmem:[%s14085_s3 + $0x158] sm:$0xff]   ;;  %3790 = vmatmul.mubr.bf16.gmra.mxu0 %v10214_v46  ;;  %v9393_v5 = vpack.c.bf16 %v1951_v33, %v1950_v10 }
 0x1f3   :  { %v10215_v39 = vld [vmem:[#allocation3 + $0x54] ss:$36 sps:$4 sm:$0xff]   ;;  %2494 = vst [vmem:[#allocation3 + $0xb8] sm:$0x1] %v2490_v8  ;;  %v2408_v18 = vrot.slane %v2407_v49, 4  ;;  %v10260_v6 = vld [vmem:[%s14085_s3 + $0x188] sm:$0xff]   ;;  %9757 = vmatpush3.bf16.msra.mxu0 %v10237_v51 }
 0x1f4   :  { %v10217_v16 = vld [vmem:[#allocation3 + $0x50] ss:$36 sps:$4 sm:$0xff]   ;;  %v2572_v62 = vrot.slane %v2570_v4, 7  ;;  %v2416_v25 = vrot.slane %v2415_v58, 4  ;;  %v2497_v55 = vrot.slane %v2495_v35, 7  ;;  %v10268_v17 = vld [vmem:[%s14085_s3 + $0x1c0] sm:$0xff]   ;;  %3861 = vmatprep.mubr.bf16.mxu1 %v10215_v39  ;;  %9758 = vmatprep.subr.bf16.mxu0 %v10240_v2 }
 0x1f5   :  { %v2580_v63 = vld [vmem:[#allocation2 + $0x28] sm:$0x7]  ;;  %2412 = vst [vmem:[#allocation3 + $0x98] sm:$0x3] %v2408_v18  ;;  %v2505_v49 = vrot.slane %v12529_v1, 6  ;;  %v10243_v19 = vld [vmem:[%s14085_s3 + $0x118] sm:$0xff]   ;;  %3862 = vmatmul.mubr.bf16.gmra.mxu1 %v10217_v16 }
 0x1f6   :  { %v12553_v0 = vld [vmem:[#allocation2 + $0x28] sm:$0xf]  ;;  %v2582_v31 = vrot.slane %v2580_v63, 7  ;;  %v2634_v54 = vld [vmem:[#allocation2 + $0x2c] sm:$0x7]  ;;  %9401 = vst [vmem:[#allocation2 + $0x38] sm:$0xff] %v9393_v5   ;;  %v2575_v21 = vor.u32 %v2573_v37, %v2572_v62  ;;  %9809 = vmatpush3.bf16.msra.mxu1 %v10260_v6 }
 0x1f7   :  { %v12561_v60 = vld [vmem:[#allocation2 + $0x2c] sm:$0xf]  ;;  %v2668_v3 = vld [vmem:[#allocation2 + $0x30] sm:$0xe]  ;;  %2420 = vst [vmem:[#allocation3 + $0x9c] sm:$0x3] %v2416_v25  ;;  %9810 = vmatprep.subr.bf16.mxu1 %v10268_v17  ;;  %9759 = vmatpush3.bf16.msra.mxu0 %v10243_v19 }
 0x1f8   :  { %2501 = vst [vmem:[#allocation3 + $0x98] sm:$0xc] %v2497_v55  ;;  %2635 = vst [vmem:[#allocation3 + $0xe4] sm:$0x7] %v2634_v54  ;;  %v10251_v35 = vld [vmem:[%s14085_s3 + $0x150] sm:$0xff]   ;;  %v8787_v1 = vrot.slane %v2668_v3, 9 }
 0x1f9   :  { %v12566_v29 = vld [vmem:[#allocation2 + $0x30] sm:$0xf]  ;;  %v2498_v10 = vrot.slane %v2497_v55, 4  ;;  %2509 = vst [vmem:[#allocation3 + $0x9c] sm:$0xc] %v2505_v49  ;;  %v10270_v8 = vld [vmem:[%s14085_s3 + $0x180] sm:$0xff]   ;;  %9760 = vmatprep.subr.bf16.mxu0 %v10251_v35 }
 0x1fa   :  { %2584 = vst [vmem:[#allocation3 + $0xc0] sm:$0xe] %v2582_v31  ;;  %v2628_v41 = vld [vmem:[#allocation2 + $0x28] sm:$0xe]  ;;  %v12575_v37 = vld [vmem:[#allocation2 + $0x34] sm:$0xe]  ;;  %9811 = vmatpush3.bf16.msra.mxu1 %v10270_v8 }
 0x1fb   :  { %v12573_v4 = vld [vmem:[#allocation2 + $0x28] sm:$0xf]  ;;  %2577 = vst [vmem:[#allocation3 + $0xb8] sm:$0xe] %v2575_v21  ;;  %v2684_v40 = vshrl.u32 %v12561_v60, 16  ;;  %v2687_v39 = vshll.u32 %v12561_v60, 16 }
 0x1fc   :  { %2673 = vst [vmem:[#allocation3 + $0xf8] sm:$0x7] %v8787_v1  ;;  %v12579_v51 = vld [vmem:[#allocation2 + $0x34] sm:$0xf]  ;;  %v14344_v16 = vrot.slane %v12575_v37, 6  ;;  %v2506_v25 = vrot.slane %v2505_v49, 4 }
 0x1fd   :  { %2502 = vst [vmem:[#allocation3 + $0xbc] sm:$0x1] %v2498_v10  ;;  %v10252_v18 = vld [vmem:[%s14085_s3 + $0x110] sm:$0xff]   ;;  %v8785_v55 = vrot.slane %v2628_v41, 9  ;;  %v2696_v63 = vld [vmem:[#allocation2 + $0x2c] sm:$0xe] }
 0x1fe   :  { %v2772_v2 = vld [vmem:[#allocation2 + $0x30] sm:$0xf]  ;;  %2762 = vst [vmem:[#allocation3 + $0xf8] sm:$0x8] %v14344_v16  ;;  %2510 = vst [vmem:[#allocation3 + $0xc0] sm:$0x1] %v2506_v25  ;;  %9761 = vmatpush3.bf16.msra.mxu0 %v10252_v18 }
 0x1ff   :  { %v2704_v31 = vld [vmem:[#allocation2 + $0x30] sm:$0x7]  ;;  %2633 = vst [vmem:[#allocation3 + $0xe0] sm:$0x7] %v8785_v55  ;;  %v2698_v6 = vrot.slane %v2696_v63, 6  ;;  %v10257_v17 = vld [vmem:[%s14085_s3 + $0x148] sm:$0xff]  }
 0x200   :  { %v12589_v54 = vld [vmem:[#allocation2 + $0x30] sm:$0xe]  ;;  %v2706_v3 = vrot.slane %v2704_v31, 5  ;;  %v12597_v1 = vld [vmem:[#allocation2 + $0x38] sm:$0xe]  ;;  %v2618_v19 = vshrl.u32 %v12573_v4, 16  ;;  %9762 = vmatprep.subr.bf16.mxu0 %v10257_v17 }
 0x201   :  { %v2788_v21 = vrot.slane %v12589_v54, 7  ;;  %v12599_v10 = vld [vmem:[#allocation2 + $0x34] sm:$0x7]  ;;  %v10259_v41 = vld [vmem:[%s14085_s3 + $0x108] sm:$0xff]   ;;  %v2774_v25 = vshrl.u32 %v2772_v2, 16  ;;  %v2777_v55 = vshll.u32 %v2772_v2, 16 }
 0x202   :  { %v12605_v35 = vld [vmem:[#allocation2 + $0x34] sm:$0xf]  ;;  %v14347_v63 = vrot.slane %v12597_v1, 7  ;;  %2702 = vst [vmem:[#allocation3 + $0xe0] sm:$0x8] %v2698_v6  ;;  %v10269_v31 = vld [vmem:[%s14085_s3 + $0x140] sm:$0xff]   ;;  %9763 = vmatpush3.bf16.msra.mxu0 %v10259_v41 }
 0x203   :  { %2710 = vst [vmem:[#allocation3 + $0xe4] sm:$0x8] %v2706_v3  ;;  %2792 = vst [vmem:[#allocation3 + $0x104] sm:$0xc] %v2788_v21  ;;  %v10224_v16 = vld [vmem:[#allocation3 + $0x94] ss:$36 sps:$4 sm:$0xff]   ;;  %9764 = vmatprep.subr.bf16.mxu0 %v10269_v31 }
 0x204   :  { %v2699_v22 = vrot.slane %v2698_v6, 4  ;;  %2852 = vst [vmem:[#allocation3 + $0x11c] sm:$0xc] %v14347_v63  ;;  %v10226_v8 = vld [vmem:[#allocation3 + $0x90] ss:$36 sps:$4 sm:$0xff]   ;;  %v2707_v2 = vrot.slane %v2706_v3, 4  ;;  %3797 = vmatprep.mubr.bf16.mxu0 %v10224_v16 }
 0x205   :  { %v2796_v56 = vrot.slane %v12599_v10, 6  ;;  %v2614_v62 = vld [vmem:[#allocation2 + $0x28] sm:$0x7]  ;;  %v2620_v5 = vrot.slane %v2618_v19, 4  ;;  %v2621_v49 = vshll.u32 %v12573_v4, 16  ;;  %v2686_v48 = vrot.slane %v2684_v40, 5  ;;  %3798 = vmatmul.mubr.bf16.gmra.mxu0 %v10226_v8 }
 0x206   :  { %2703 = vst [vmem:[#allocation3 + $0x104] sm:$0x3] %v2699_v22  ;;  %2615 = vst [vmem:[#allocation3 + $0xd8] sm:$0x7] %v2614_v62  ;;  %v2674_v60 = vld [vmem:[#allocation2 + $0x2c] sm:$0x7] }
 0x207   :  { %v2689_v58 = vrot.slane %v2687_v39, 6  ;;  %v10271_v18 = vld [vmem:[%s14085_s3 + $0x100] sm:$0xff]   ;;  %v12620_v6 = vld [vmem:[#allocation2 + $0x8] sm:$0xf]  ;;  %2711 = vst [vmem:[#allocation3 + $0x108] sm:$0x3] %v2707_v2 }
 0x208   :  { %2800 = vst [vmem:[#allocation3 + $0x108] sm:$0xc] %v2796_v56  ;;  %v2676_v3 = vrot.slane %v2674_v60, 5  ;;  %v2764_v17 = vld [vmem:[#allocation2 + $0x30] sm:$0x7]  ;;  %v2776_v16 = vrot.slane %v2774_v25, 6  ;;  %9765 = vmatpush3.bf16.msra.mxu0 %v10271_v18 }
 0x209   :  { %v2779_v22 = vrot.slane %v2777_v55, 7  ;;  %v2861_v62 = vshrl.u32 %v12605_v35, 16  ;;  %v10229_v10 = vld [vmem:[#allocation3 + $0x9c] ss:$36 sps:$4 sm:$0xff]   ;;  %v2623_v19 = vrot.slane %v2621_v49, 5  ;;  %v2690_v40 = vor.u32 %v2689_v58, %v2686_v48 }
 0x20a   :  { %v10233_v4 = vld [vmem:[#allocation3 + $0x98] ss:$36 sps:$4 sm:$0xff]   ;;  %v2152_v39 = vld [vmem:[#allocation2 + $0xc] sm:$0x7]  ;;  %v12623_v63 = vld [vmem:[#allocation2 + $0x34] sm:$0xf]  ;;  %3869 = vmatprep.mubr.bf16.mxu1 %v10229_v10 }
 0x20b   :  { %v2677_v33 = vrot.slane %v2676_v3, 4  ;;  %2680 = vst [vmem:[#allocation3 + $0xd8] sm:$0x8] %v2676_v3  ;;  %v2766_v46 = vrot.slane %v2764_v17, 6  ;;  %v2780_v8 = vor.u32 %v2779_v22, %v2776_v16  ;;  %v2854_v2 = vld [vmem:[#allocation2 + $0x34] sm:$0x7]  ;;  %v2624_v60 = vor.u32 %v2623_v19, %v2620_v5  ;;  %3870 = vmatmul.mubr.bf16.gmra.mxu1 %v10233_v4 }
 0x20c   :  { %v2863_v27 = vrot.slane %v2861_v62, 7  ;;  %v2691_v25 = vrot.slane %v2690_v40, 4  ;;  %2694 = vst [vmem:[#allocation3 + $0xdc] sm:$0x8] %v2690_v40  ;;  %v2856_v55 = vrot.slane %v2854_v2, 7  ;;  %v2864_v23 = vshll.u32 %v12605_v35, 16 }
 0x20d   :  { %v2869_v49 = vld [vmem:[#allocation2 + $0x34] sm:$0xe]  ;;  %2681 = vst [vmem:[#allocation3 + $0xfc] sm:$0x3] %v2677_v33  ;;  %2770 = vst [vmem:[#allocation3 + $0xfc] sm:$0xc] %v2766_v46 }
 0x20e   :  { %2784 = vst [vmem:[#allocation3 + $0x100] sm:$0xc] %v2780_v8  ;;  %v2767_v58 = vrot.slane %v2766_v46, 4  ;;  %v2781_v48 = vrot.slane %v2780_v8, 4  ;;  %v2789_v41 = vrot.slane %v2788_v21, 4  ;;  %v2797_v3 = vrot.slane %v2796_v56, 4 }
 0x20f   :  { %2870 = vst [vmem:[#allocation3 + $0x128] sm:$0xe] %v2869_v49  ;;  %v2871_v31 = vld [vmem:[#allocation2 + $0x38] sm:$0x7]  ;;  %v2625_v17 = vrot.slane %v2624_v60, 4  ;;  %v2866_v5 = vor.u32 %v2864_v23, %v2863_v27  ;;  %v2076_v35 = vshrl.u32 %v12620_v6, 16 }
 0x210   :  { %2695 = vst [vmem:[#allocation3 + $0x100] sm:$0x3] %v2691_v25  ;;  %2858 = vst [vmem:[#allocation3 + $0x120] sm:$0xe] %v2856_v55  ;;  %v2873_v16 = vrot.slane %v2871_v31, 7  ;;  %v2079_v46 = vshll.u32 %v12620_v6, 16 }
 0x211   :  { %v2242_v22 = vld [vmem:[#allocation2 + $0x10] sm:$0x7]  ;;  %v2066_v62 = vld [vmem:[#allocation2 + $0x4] sm:$0xe]  ;;  %2771 = vst [vmem:[#allocation3 + $0x120] sm:$0x1] %v2767_v58 }
 0x212   :  { %2785 = vst [vmem:[#allocation3 + $0x124] sm:$0x1] %v2781_v48  ;;  %2793 = vst [vmem:[#allocation3 + $0x128] sm:$0x1] %v2789_v41  ;;  %v2154_v33 = vrot.slane %v2152_v39, 5  ;;  %v2164_v56 = vrot.slane %v2162_v53, 5 }
 0x213   :  { %2801 = vst [vmem:[#allocation3 + $0x12c] sm:$0x1] %v2797_v3  ;;  %v2167_v54 = vrot.slane %v2165_v43, 6  ;;  %v2144_v23 = vld [vmem:[#allocation2 + $0x8] sm:$0xe]  ;;  %v10410_v27 = vmov 0.0  }
 0x214   :  { %9961 = vmatprep.subr.bf16.mxu0 %v10410_v27  ;;  %v2804_v21 = vshrl.u32 %v12623_v63, 16  ;;  %v2807_v18 = vshll.u32 %v12623_v63, 16  ;;  %v10241_v10 = vld [vmem:[#allocation3 + $0xe4] ss:$36 sps:$4 sm:$0xff]   ;;  %2627 = vst [vmem:[#allocation3 + $0xdc] sm:$0x7] %v2625_v17 }
 0x215   :  { %2868 = vst [vmem:[#allocation3 + $0x124] sm:$0xe] %v2866_v5  ;;  %2875 = vst [vmem:[#allocation3 + $0x12c] sm:$0xe] %v2873_v16  ;;  %v2078_v6 = vrot.slane %v2076_v35, 4  ;;  %v2081_v19 = vrot.slane %v2079_v46, 5  ;;  %v2168_v53 = vor.u32 %v2167_v54, %v2164_v56  ;;  %3877 = vmatprep.mubr.bf16.mxu1 %v10241_v10 }
 0x216   :  { %v10244_v4 = vld [vmem:[#allocation3 + $0xe0] ss:$36 sps:$4 sm:$0xff]   ;;  %v2155_v40 = vrot.slane %v2154_v33, 4  ;;  %2158 = vst [vmem:[#allocation3 + $0x18] sm:$0x8] %v2154_v33  ;;  %v2244_v20 = vrot.slane %v2242_v22, 6 }
 0x217   :  { %v2254_v43 = vrot.slane %v2252_v45, 6  ;;  %v2257_v39 = vrot.slane %v2255_v52, 7  ;;  %v2058_v8 = vrot.slane %v2056_v47, 4  ;;  %v2059_v2 = vshll.u32 %v12374_v34, 16  ;;  %v12644_v60 = vld [vmem:[#allocation2 + $0xc] sm:$0xe]  ;;  %3878 = vmatmul.mubr.bf16.gmra.mxu1 %v10244_v4 }
 0x218   :  { %v12646_v25 = vld [vmem:[#allocation2 + $0x14] sm:$0xf]  ;;  %v2082_v55 = vor.u32 %v2081_v19, %v2078_v6  ;;  %2159 = vst [vmem:[#allocation3 + $0x3c] sm:$0x3] %v2155_v40  ;;  %v2169_v49 = vrot.slane %v2168_v53, 4  ;;  %v8780_v58 = vrot.slane %v2066_v62, 9 }
 0x219   :  { %2172 = vst [vmem:[#allocation3 + $0x1c] sm:$0x8] %v2168_v53  ;;  %2248 = vst [vmem:[#allocation3 + $0x3c] sm:$0xc] %v2244_v20  ;;  %v2134_v45 = vrot.slane %v2132_v9, 5  ;;  %v2258_v52 = vor.u32 %v2257_v39, %v2254_v43  ;;  %v2061_v48 = vrot.slane %v2059_v2, 5 }
 0x21a   :  { %v2306_v11 = vld [vmem:[#allocation2 + $0x14] sm:$0x7]  ;;  %v2137_v47 = vrot.slane %v2135_v57, 6  ;;  %v2146_v34 = vrot.slane %v2144_v23, 6  ;;  %v2595_v41 = vld [vmem:[#allocation2 + $0x28] sm:$0xe] }
 0x21b   :  { %v2365_v3 = vld [vmem:[#allocation2 + $0x18] sm:$0xf]  ;;  %v2083_v31 = vrot.slane %v2082_v55, 4  ;;  %2173 = vst [vmem:[#allocation3 + $0x40] sm:$0x3] %v2169_v49  ;;  %v2224_v17 = vrot.slane %v2222_v61, 6  ;;  %v2062_v15 = vor.u32 %v2061_v48, %v2058_v8 }
 0x21c   :  { %2071 = vst [vmem:[#allocation3 + $0x14] sm:$0x7] %v8780_v58  ;;  %v2227_v5 = vrot.slane %v2225_v7, 7  ;;  %v2236_v9 = vrot.slane %v12644_v60, 7  ;;  %2596 = vst [vmem:[#allocation3 + $0xc8] sm:$0xe] %v2595_v41  ;;  %v2138_v57 = vor.u32 %v2137_v47, %v2134_v45 }
 0x21d   :  { %v12657_v16 = vld [vmem:[#allocation2 + $0x38] sm:$0xf]  ;;  %2262 = vst [vmem:[#allocation3 + $0x40] sm:$0xc] %v2258_v52  ;;  %v2147_v35 = vrot.slane %v2146_v34, 4  ;;  %v2245_v22 = vrot.slane %v2244_v20, 4 }
 0x21e   :  { %2150 = vst [vmem:[#allocation3 + $0x14] sm:$0x8] %v2146_v34  ;;  %v12659_v62 = vld [vmem:[#allocation2 + $0x1c] sm:$0x7]  ;;  %v2654_v46 = vld [vmem:[#allocation2 + $0x30] sm:$0x7]  ;;  %v2228_v61 = vor.u32 %v2227_v5, %v2224_v17 }
 0x21f   :  { %v10246_v33 = vld [vmem:[#allocation3 + $0xdc] ss:$36 sps:$4 sm:$0xff]   ;;  %2085 = vst [vmem:[#allocation3 + $0x1c] sm:$0x7] %v2083_v31  ;;  %2240 = vst [vmem:[#allocation3 + $0x38] sm:$0xc] %v2236_v9 }
 0x220   :  { %v10249_v56 = vld [vmem:[#allocation3 + $0xd8] ss:$36 sps:$4 sm:$0xff]   ;;  %v2259_v36 = vrot.slane %v2258_v52, 4  ;;  %2655 = vst [vmem:[#allocation3 + $0xf0] sm:$0x7] %v2654_v46  ;;  %v12661_v7 = vld [vmem:[#allocation3 + $0x120] sm:$0xff]  ;;  %3805 = vmatprep.mubr.bf16.mxu0 %v10246_v33 }
 0x221   :  { %v2946_v54 = vld [vmem:[#allocation3 + $0x128] sm:$0xff]  ;;  %v2063_v23 = vrot.slane %v2062_v15, 4  ;;  %v2139_v10 = vrot.slane %v2138_v57, 4  ;;  %2142 = vst [vmem:[#allocation3 + $0x10] sm:$0x8] %v2138_v57  ;;  %v2308_v6 = vrot.slane %v2306_v11, 7  ;;  %v8826_v20 = vcombine.high %v12661_v7, %v12661_v7  ;;  %3806 = vmatmul.mubr.bf16.gmra.mxu0 %v10249_v56 }
 0x222   :  { %2151 = vst [vmem:[#allocation3 + $0x38] sm:$0x3] %v2147_v35  ;;  %2249 = vst [vmem:[#allocation3 + $0x60] sm:$0x1] %v2245_v22  ;;  %v2313_v4 = vshrl.u32 %v12646_v25, 16  ;;  %v2834_v53 = vshrl.u32 %v12657_v16, 16  ;;  %v8828_v43 = vcombine.high %v2946_v54, %v2946_v54  ;;  %v8827_v39 = vcombine.low %v2946_v54, %v2946_v54 }
 0x223   :  { %v2294_v19 = vld [vmem:[#allocation2 + $0x10] sm:$0xf]  ;;  %v2345_v40 = vld [vmem:[#allocation2 + $0x14] sm:$0xf]  ;;  %2232 = vst [vmem:[#allocation3 + $0x34] sm:$0xc] %v2228_v61  ;;  %3813 = vmatprep.mubr.bf16.mxu0 %v8826_v20  ;;  %v8825_v57 = vcombine.low %v12661_v7, %v12661_v7 }
 0x224   :  { %2263 = vst [vmem:[#allocation3 + $0x64] sm:$0x1] %v2259_v36  ;;  %2065 = vst [vmem:[#allocation3 + $0x10] sm:$0x7] %v2063_v23  ;;  %v2315_v8 = vrot.slane %v2313_v4, 7  ;;  %v2316_v2 = vshll.u32 %v12646_v25, 16  ;;  %3885 = vmatprep.mubr.bf16.mxu1 %v8828_v43 }
 0x225   :  { %2143 = vst [vmem:[#allocation3 + $0x34] sm:$0x3] %v2139_v10  ;;  %2310 = vst [vmem:[#allocation3 + $0x60] sm:$0xe] %v2308_v6  ;;  %v2367_v60 = vshrl.u32 %v2365_v3, 16  ;;  %v2370_v55 = vshll.u32 %v2365_v3, 16  ;;  %3886 = vmatmul.mubr.bf16.gmra.mxu1 %v8827_v39 }
 0x226   :  { %v2357_v49 = vld [vmem:[#allocation2 + $0x14] sm:$0xe]  ;;  %v2445_v58 = vrot.slane %v12659_v62, 5  ;;  %v2455_v45 = vrot.slane %v2453_v12, 5  ;;  %v2458_v11 = vrot.slane %v2456_v38, 6  ;;  %v2229_v52 = vrot.slane %v2228_v61, 4 }
 0x227   :  { %v12673_v48 = vld [vmem:[#allocation2 + $0x18] sm:$0xe]  ;;  %v2318_v47 = vor.u32 %v2316_v2, %v2315_v8  ;;  %v2369_v34 = vrot.slane %v2367_v60, 4  ;;  %v2372_v41 = vrot.slane %v2370_v55, 5  ;;  %v2237_v25 = vrot.slane %v2236_v9, 4  ;;  %v10287_v63 = vld [vmem:[%s14085_s3 + $0x220] sm:$0xff]  }
 0x228   :  { %v2886_v31 = vld [vmem:[#allocation2 + $0x38] sm:$0xe]  ;;  %v2837_v3 = vshll.u32 %v12657_v16, 16  ;;  %2449 = vst [vmem:[#allocation3 + $0x84] sm:$0x8] %v2445_v58  ;;  %v2459_v17 = vor.u32 %v2458_v11, %v2455_v45  ;;  %v2296_v5 = vshrl.u32 %v2294_v19, 16 }
 0x229   :  { %2233 = vst [vmem:[#allocation3 + $0x58] sm:$0x1] %v2229_v52  ;;  %v2347_v15 = vshrl.u32 %v2345_v40, 16  ;;  %v2533_v12 = vld [vmem:[#allocation2 + $0x28] sm:$0x7]  ;;  %v2373_v35 = vor.u32 %v2372_v41, %v2369_v34  ;;  %v2299_v9 = vshll.u32 %v2294_v19, 16  ;;  %3814 = vmatmul.mubr.bf16.gmra.mxu0 %v8825_v57 }
 0x22a   :  { %2887 = vst [vmem:[#allocation3 + $0x134] sm:$0xe] %v2886_v31  ;;  %v12676_v42 = vld [vmem:[#allocation2 + $0x2c] sm:$0xf]  ;;  %v10263_v38 = vld [vmem:[#allocation3 + $0x1c] ss:$36 sps:$4 sm:$0xff]  }
 0x22b   :  { %2320 = vst [vmem:[#allocation3 + $0x64] sm:$0xe] %v2318_v47  ;;  %2241 = vst [vmem:[#allocation3 + $0x5c] sm:$0x1] %v2237_v25  ;;  %v2350_v22 = vshll.u32 %v2345_v40, 16  ;;  %v2298_v62 = vrot.slane %v2296_v5, 7  ;;  %3997 = vmatprep.mubr.bf16.mxu1 %v10263_v38 }
 0x22c   :  { %2463 = vst [vmem:[#allocation3 + $0x88] sm:$0x8] %v2459_v17  ;;  %v2349_v46 = vrot.slane %v2347_v15, 4  ;;  %v8783_v33 = vrot.slane %v2357_v49, 9  ;;  %v14604_v56 = vshrl.u32 %v12485_v32, 16  ;;  %v2374_v36 = vrot.slane %v2373_v35, 4 }
 0x22d   :  { %v2352_v54 = vrot.slane %v2350_v22, 5  ;;  %v14605_v23 = vshll.u32 %v12485_v32, 16  ;;  %v2437_v7 = vrot.slane %v12673_v48, 6  ;;  %v2597_v6 = vld [vmem:[#allocation2 + $0x2c] sm:$0x7]  ;;  %v2301_v40 = vor.u32 %v2299_v9, %v2298_v62 }
 0x22e   :  { %v2425_v61 = vrot.slane %v14604_v56, 5  ;;  %v12685_v4 = vld [vmem:[#allocation2 + $0x28] sm:$0xf]  ;;  %v12687_v19 = vld [vmem:[#allocation2 + $0x30] sm:$0xf]  ;;  %v2446_v20 = vrot.slane %v2445_v58, 4 }
 0x22f   :  { %v2428_v10 = vrot.slane %v14605_v23, 6  ;;  %2362 = vst [vmem:[#allocation3 + $0x80] sm:$0x7] %v8783_v33  ;;  %v2460_v43 = vrot.slane %v2459_v17, 4  ;;  %v2525_v39 = vld [vmem:[#allocation2 + $0x24] sm:$0xe]  ;;  %v2353_v2 = vor.u32 %v2352_v54, %v2349_v46 }
 0x230   :  { %v10267_v8 = vld [vmem:[#allocation3 + $0x14] ss:$36 sps:$4 sm:$0xff]   ;;  %2376 = vst [vmem:[#allocation3 + $0x88] sm:$0x7] %v2374_v36  ;;  %2441 = vst [vmem:[#allocation3 + $0x80] sm:$0x8] %v2437_v7 }
 0x231   :  { %v2429_v60 = vor.u32 %v2428_v10, %v2425_v61  ;;  %v2535_v32 = vrot.slane %v2533_v12, 6  ;;  %v14606_v55 = vshrl.u32 %v12553_v0, 16  ;;  %v2321_v45 = vld [vmem:[#allocation2 + $0x14] sm:$0xe]  ;;  %v10261_v11 = vld [vmem:[#allocation3 + $0x18] ss:$36 sps:$4 sm:$0xff]   ;;  %3925 = vmatprep.mubr.bf16.mxu0 %v10267_v8 }
 0x232   :  { %2303 = vst [vmem:[#allocation3 + $0x58] sm:$0xe] %v2301_v40  ;;  %2450 = vst [vmem:[#allocation3 + $0xa8] sm:$0x3] %v2446_v20  ;;  %v14607_v52 = vshll.u32 %v12553_v0, 16  ;;  %v2599_v48 = vrot.slane %v2597_v6, 7  ;;  %3998 = vmatmul.mubr.bf16.vlgmr.msra.gmra.mxu1 %v10261_v11 }
 0x233   :  { %v2545_v49 = vrot.slane %v14606_v55, 6  ;;  %2464 = vst [vmem:[#allocation3 + $0xac] sm:$0x3] %v2460_v43  ;;  %v2604_v47 = vshrl.u32 %v12676_v42, 16  ;;  %v2607_v34 = vshll.u32 %v12676_v42, 16  ;;  %v2354_v41 = vrot.slane %v2353_v2, 4 }
 0x234   :  { %v2548_v58 = vrot.slane %v14607_v52, 7  ;;  %2322 = vst [vmem:[#allocation3 + $0x68] sm:$0xe] %v2321_v45  ;;  %2433 = vst [vmem:[#allocation3 + $0x7c] sm:$0x8] %v2429_v60  ;;  %v2536_v25 = vrot.slane %v2535_v32, 4 }
 0x235   :  { %2539 = vst [vmem:[#allocation3 + $0xa8] sm:$0xc] %v2535_v32  ;;  %v2430_v31 = vrot.slane %v2429_v60, 4  ;;  %v2438_v17 = vrot.slane %v2437_v7, 4  ;;  %v2734_v5 = vld [vmem:[#allocation2 + $0x34] sm:$0x7] }
 0x236   :  { %v10276_v0 = vld [vmem:[%s14085_s3 + $0x238] sm:$0xff]   ;;  %v2549_v15 = vor.u32 %v2548_v58, %v2545_v49  ;;  %2601 = vst [vmem:[#allocation3 + $0xcc] sm:$0xe] %v2599_v48  ;;  %v2606_v12 = vrot.slane %v2604_v47, 7  ;;  %v14608_v38 = vshrl.u32 %v12535_v14, 16  ;;  %v14609_v57 = vshll.u32 %v12535_v14, 16 }
 0x237   :  { %2356 = vst [vmem:[#allocation3 + $0x7c] sm:$0x7] %v2354_v41  ;;  %2540 = vst [vmem:[#allocation3 + $0xcc] sm:$0x1] %v2536_v25  ;;  %v2527_v9 = vrot.slane %v2525_v39, 7  ;;  %v2587_v22 = vshrl.u32 %v12685_v4, 16 }
 0x238   :  { %v2515_v42 = vrot.slane %v14608_v38, 6  ;;  %v2518_v35 = vrot.slane %v14609_v57, 7  ;;  %2434 = vst [vmem:[#allocation3 + $0xa0] sm:$0x3] %v2430_v31  ;;  %2442 = vst [vmem:[#allocation3 + $0xa4] sm:$0x3] %v2438_v17  ;;  %v2609_v54 = vor.u32 %v2607_v34, %v2606_v12 }
 0x239   :  { %v2590_v62 = vshll.u32 %v12685_v4, 16  ;;  %v2658_v46 = vshrl.u32 %v12687_v19, 16  ;;  %v12705_v33 = vld [vmem:[#allocation2 + $0x38] sm:$0x7]  ;;  %v2636_v56 = vld [vmem:[#allocation2 + $0x2c] sm:$0xf] }
 0x23a   :  { %v10265_v61 = vld [vmem:[#allocation3 + $0x10] ss:$36 sps:$4 sm:$0xff]   ;;  %v2550_v36 = vrot.slane %v2549_v15, 4  ;;  %2553 = vst [vmem:[#allocation3 + $0xac] sm:$0xc] %v2549_v15  ;;  %v2519_v14 = vor.u32 %v2518_v35, %v2515_v42  ;;  %v2661_v23 = vshll.u32 %v12687_v19, 16 }
 0x23b   :  { %v2648_v10 = vld [vmem:[#allocation2 + $0x2c] sm:$0xe]  ;;  %v2918_v7 = vld [vmem:[#allocation3 + $0x60] sm:$0xff]  ;;  %v2528_v6 = vrot.slane %v2527_v9, 4  ;;  %2531 = vst [vmem:[#allocation3 + $0xa4] sm:$0xc] %v2527_v9  ;;  %3926 = vmatmul.mubr.bf16.vlgmr.msra.gmra.mxu0 %v10265_v61 }
 0x23c   :  { %v2589_v40 = vrot.slane %v2587_v22, 7  ;;  %v2660_v20 = vrot.slane %v2658_v46, 4  ;;  %v2736_v43 = vrot.slane %v2734_v5, 5  ;;  %v2923_v4 = vld [vmem:[#allocation3 + $0x84] sm:$0xff]  ;;  %2554 = vst [vmem:[#allocation3 + $0xd0] sm:$0x1] %v2550_v36  ;;  %9962 = vmatpush3.bf16.msra.mxu0 %v10276_v0 }
 0x23d   :  { %v10272_v39 = vld [vmem:[#allocation3 + $0x64] ss:$36 sps:$4 sm:$0xff]   ;;  %2611 = vst [vmem:[#allocation3 + $0xd0] sm:$0xe] %v2609_v54  ;;  %v2520_v8 = vrot.slane %v2519_v14, 4  ;;  %v2663_v2 = vrot.slane %v2661_v23, 5  ;;  %v8804_v55 = vcombine.low %v2918_v7, %v2923_v4  ;;  %9963 = vmatprep.subr.bf16.mxu0 %v10410_v27 }
 0x23e   :  { %2523 = vst [vmem:[#allocation3 + $0xa0] sm:$0xc] %v2519_v14  ;;  %v14610_v60 = vshrl.u32 %v12579_v51, 16  ;;  %2532 = vst [vmem:[#allocation3 + $0xc8] sm:$0x1] %v2528_v6  ;;  %v2592_v19 = vor.u32 %v2590_v62, %v2589_v40  ;;  %v2737_v49 = vrot.slane %v2736_v43, 4  ;;  %4005 = vmatprep.mubr.bf16.mxu1 %v10272_v39 }
 0x23f   :  { %2740 = vst [vmem:[#allocation3 + $0xf0] sm:$0x8] %v2736_v43  ;;  %v14611_v45 = vshll.u32 %v12579_v51, 16  ;;  %v10277_v52 = vld [vmem:[%s14085_s3 + $0x230] sm:$0xff]   ;;  %2524 = vst [vmem:[#allocation3 + $0xc4] sm:$0x1] %v2520_v8  ;;  %v2664_v58 = vor.u32 %v2663_v2, %v2660_v20  ;;  %4006 = vmatmul.mubr.bf16.gmra.mxu1 %v8804_v55 }
 0x240   :  { %v2746_v32 = vrot.slane %v14610_v60, 5  ;;  %v2826_v48 = vrot.slane %v12705_v33, 6  ;;  %v2836_v47 = vrot.slane %v2834_v53, 6  ;;  %v2839_v34 = vrot.slane %v2837_v3, 7  ;;  %2594 = vst [vmem:[#allocation3 + $0xc4] sm:$0xe] %v2592_v19  ;;  %9964 = vmatpush3.bf16.msra.mxu0 %v10277_v52 }
 0x241   :  { %v2749_v11 = vrot.slane %v14611_v45, 6  ;;  %2741 = vst [vmem:[#allocation3 + $0x114] sm:$0x3] %v2737_v49  ;;  %v2638_v41 = vshrl.u32 %v2636_v56, 16  ;;  %v2641_v25 = vshll.u32 %v2636_v56, 16  ;;  %v8786_v31 = vrot.slane %v2648_v10, 9  ;;  %9965 = vmatprep.subr.bf16.mxu0 %v10410_v27 }
 0x242   :  { %v2726_v17 = vld [vmem:[#allocation2 + $0x30] sm:$0xe]  ;;  %v12721_v5 = vld [vmem:[#allocation2 + $0x3c] sm:$0xf]  ;;  %v10283_v53 = vld [vmem:[%s14085_s3 + $0x228] sm:$0xff]   ;;  %v2665_v15 = vrot.slane %v2664_v58, 4  ;;  %v2840_v16 = vor.u32 %v2839_v34, %v2836_v47 }
 0x243   :  { %v2750_v51 = vor.u32 %v2749_v11, %v2746_v32  ;;  %v10274_v0 = vld [vmem:[#allocation3 + $0x5c] ss:$36 sps:$4 sm:$0xff]   ;;  %2830 = vst [vmem:[#allocation3 + $0x114] sm:$0xc] %v2826_v48  ;;  %v2816_v3 = vld [vmem:[#allocation2 + $0x34] sm:$0xe] }
 0x244   :  { %v2640_v38 = vrot.slane %v2638_v41, 4  ;;  %v2643_v42 = vrot.slane %v2641_v25, 5  ;;  %2653 = vst [vmem:[#allocation3 + $0xec] sm:$0x7] %v8786_v31  ;;  %v14612_v57 = vshrl.u32 %v12566_v29, 16  ;;  %3933 = vmatprep.mubr.bf16.mxu0 %v10274_v0  ;;  %v14613_v62 = vshll.u32 %v12566_v29, 16  ;;  %9966 = vmatpush3.bf16.msra.mxu0 %v10283_v53 }
 0x245   :  { %v2751_v12 = vrot.slane %v2750_v51, 4  ;;  %2754 = vst [vmem:[#allocation3 + $0xf4] sm:$0x8] %v2750_v51  ;;  %v2888_v9 = vld [vmem:[#allocation2 + $0x3c] sm:$0x7]  ;;  %v2728_v33 = vrot.slane %v2726_v17, 6  ;;  %9967 = vmatprep.subr.bf16.mxu0 %v10410_v27 }
 0x246   :  { %v2716_v35 = vrot.slane %v14612_v57, 5  ;;  %v10280_v22 = vld [vmem:[#allocation3 + $0x58] ss:$36 sps:$4 sm:$0xff]   ;;  %2667 = vst [vmem:[#allocation3 + $0xf4] sm:$0x7] %v2665_v15  ;;  %v2719_v46 = vrot.slane %v14613_v62, 6  ;;  %v2644_v14 = vor.u32 %v2643_v42, %v2640_v38 }
 0x247   :  { %2844 = vst [vmem:[#allocation3 + $0x118] sm:$0xc] %v2840_v16  ;;  %v2806_v56 = vrot.slane %v2804_v21, 6  ;;  %v2809_v61 = vrot.slane %v2807_v18, 7  ;;  %v2933_v36 = vld [vmem:[#allocation3 + $0xcc] sm:$0xff]  ;;  %v2818_v23 = vrot.slane %v2816_v3, 7  ;;  %3934 = vmatmul.mubr.bf16.gmra.mxu0 %v10280_v22 }
 0x248   :  { %v10278_v54 = vld [vmem:[#allocation3 + $0xac] ss:$36 sps:$4 sm:$0xff]   ;;  %2755 = vst [vmem:[#allocation3 + $0x118] sm:$0x3] %v2751_v12  ;;  %v2827_v10 = vrot.slane %v2826_v48, 4  ;;  %v2720_v6 = vor.u32 %v2719_v46, %v2716_v35  ;;  %v2729_v40 = vrot.slane %v2728_v33, 4  ;;  %9968 = vmatpush3.bf16.msra.mxu0 %v10287_v63 }
 0x249   :  { %v2876_v7 = vld [vmem:[#allocation2 + $0x38] sm:$0xf]  ;;  %2732 = vst [vmem:[#allocation3 + $0xec] sm:$0x8] %v2728_v33  ;;  %v2810_v29 = vor.u32 %v2809_v61, %v2806_v56  ;;  %v2928_v43 = vld [vmem:[#allocation3 + $0xa8] sm:$0xff]  ;;  %4013 = vmatprep.mubr.bf16.mxu1 %v10278_v54  ;;  %v2645_v21 = vrot.slane %v2644_v14, 4  ;;  %9969 = vmatprep.subr.bf16.mxu0 %v10410_v27 }
 0x24a   :  { %v2377_v20 = vld [vmem:[#allocation2 + $0x18] sm:$0xe]  ;;  %2822 = vst [vmem:[#allocation3 + $0x110] sm:$0xc] %v2818_v23  ;;  %2831 = vst [vmem:[#allocation3 + $0x138] sm:$0x1] %v2827_v10  ;;  %v8813_v2 = vcombine.low %v2928_v43, %v2933_v36 }
 0x24b   :  { %v2841_v18 = vrot.slane %v2840_v16, 4  ;;  %v2890_v4 = vrot.slane %v2888_v9, 7  ;;  %v2895_v39 = vshrl.u32 %v12721_v5, 16  ;;  %v10281_v8 = vld [vmem:[#allocation3 + $0xa4] ss:$36 sps:$4 sm:$0xff]   ;;  %v2721_v60 = vrot.slane %v2720_v6, 4 }
 0x24c   :  { %2724 = vst [vmem:[#allocation3 + $0xe8] sm:$0x8] %v2720_v6  ;;  %2733 = vst [vmem:[#allocation3 + $0x110] sm:$0x3] %v2729_v40  ;;  %v2465_v32 = vld [vmem:[#allocation2 + $0x1c] sm:$0xe]  ;;  %3941 = vmatprep.mubr.bf16.mxu0 %v10281_v8  ;;  %4014 = vmatmul.mubr.bf16.gmra.mxu1 %v8813_v2 }
 0x24d   :  { %2814 = vst [vmem:[#allocation3 + $0x10c] sm:$0xc] %v2810_v29  ;;  %2647 = vst [vmem:[#allocation3 + $0xe8] sm:$0x7] %v2645_v21  ;;  %v2897_v55 = vrot.slane %v2895_v39, 7  ;;  %v2898_v19 = vshll.u32 %v12721_v5, 16 }
 0x24e   :  { %2845 = vst [vmem:[#allocation3 + $0x13c] sm:$0x1] %v2841_v18  ;;  %2892 = vst [vmem:[#allocation3 + $0x138] sm:$0xe] %v2890_v4  ;;  %v2811_v49 = vrot.slane %v2810_v29, 4  ;;  %v2819_v45 = vrot.slane %v2818_v23, 4 }
 0x24f   :  { %2725 = vst [vmem:[#allocation3 + $0x10c] sm:$0x3] %v2721_v60  ;;  %v2878_v11 = vshrl.u32 %v2876_v7, 16  ;;  %v14614_v52 = vrot.slane %v12377_v50, 7  ;;  %v8784_v48 = vrot.slane %v2377_v20, 9  ;;  %v2900_v47 = vor.u32 %v2898_v19, %v2897_v55  ;;  %v10290_v5 = vld [vmem:[%s14085_s3 + $0x218] sm:$0xff]  }
 0x250   :  { %2815 = vst [vmem:[#allocation3 + $0x130] sm:$0x1] %v2811_v49  ;;  %2823 = vst [vmem:[#allocation3 + $0x134] sm:$0x1] %v2819_v45  ;;  %v2467_v34 = vrot.slane %v2465_v32, 6  ;;  %v14615_v51 = vrot.slane %v12506_v44, 7  ;;  %9970 = vmatpush3.bf16.msra.mxu0 %v10290_v5 }
 0x251   :  { %v2267_v58 = vrot.slane %v14614_v52, 4  ;;  %v14616_v25 = vrot.slane %v12575_v37, 6  ;;  %v10284_v17 = vld [vmem:[#allocation3 + $0xf4] ss:$36 sps:$4 sm:$0xff]   ;;  %v2880_v0 = vrot.slane %v2878_v11, 7  ;;  %v2881_v50 = vshll.u32 %v2876_v7, 16  ;;  %9971 = vmatprep.subr.bf16.mxu0 %v10410_v27 }
 0x252   :  { %v2558_v41 = vrot.slane %v14615_v51, 4  ;;  %2382 = vst [vmem:[#allocation3 + $0x8c] sm:$0x7] %v8784_v48  ;;  %v14617_v53 = vrot.slane %v12597_v1, 7  ;;  %v2943_v16 = vld [vmem:[#allocation3 + $0x114] sm:$0xff]  ;;  %v2468_v44 = vrot.slane %v2467_v34, 4  ;;  %4021 = vmatprep.mubr.bf16.mxu1 %v10284_v17 }
 0x253   :  { %v2759_v31 = vrot.slane %v14616_v25, 4  ;;  %2271 = vst [vmem:[#allocation3 + $0x68] sm:$0x1] %v2267_v58  ;;  %v10286_v3 = vld [vmem:[#allocation3 + $0xa0] ss:$36 sps:$4 sm:$0xff]   ;;  %v2883_v37 = vor.u32 %v2881_v50, %v2880_v0  ;;  %v2938_v12 = vld [vmem:[#allocation3 + $0xf0] sm:$0xff] }
 0x254   :  { %v2849_v15 = vrot.slane %v14617_v53, 4  ;;  %2902 = vst [vmem:[#allocation3 + $0x13c] sm:$0xe] %v2900_v47  ;;  %2471 = vst [vmem:[#allocation3 + $0x8c] sm:$0x8] %v2467_v34  ;;  %3942 = vmatmul.mubr.bf16.gmra.mxu0 %v10286_v3  ;;  %v8822_v38 = vcombine.low %v2938_v12, %v2943_v16  ;;  %v10294_v1 = vld [vmem:[%s14085_s3 + $0x210] sm:$0xff]  }
 0x255   :  { %2562 = vst [vmem:[#allocation3 + $0xd4] sm:$0x1] %v2558_v41  ;;  %2763 = vst [vmem:[#allocation3 + $0x11c] sm:$0x3] %v2759_v31  ;;  %v10288_v42 = vld [vmem:[#allocation3 + $0xec] ss:$36 sps:$4 sm:$0xff]   ;;  %9972 = vmatpush3.bf16.msra.mxu0 %v10294_v1 }
 0x256   :  { %2853 = vst [vmem:[#allocation3 + $0x140] sm:$0x1] %v2849_v15  ;;  %2472 = vst [vmem:[#allocation3 + $0xb0] sm:$0x3] %v2468_v44  ;;  %4022 = vmatmul.mubr.bf16.gmra.mxu1 %v8822_v38  ;;  %3949 = vmatprep.mubr.bf16.mxu0 %v10288_v42  ;;  %v10296_v35 = vld [vmem:[%s14085_s3 + $0x208] sm:$0xff]   ;;  %v10298_v56 = vld [vmem:[%s14085_s3 + $0x200] sm:$0xff]  }
 0x257   :  { %2885 = vst [vmem:[#allocation3 + $0x130] sm:$0xe] %v2883_v37  ;;  %v10292_v22 = vld [vmem:[#allocation3 + $0xe8] ss:$36 sps:$4 sm:$0xff]   ;;  %9973 = vmatprep.subr.bf16.mxu0 %v10410_v27  ;;  %v10299_v36 = vld [vmem:[#allocation3 + $0x20] ss:$36 sps:$4 sm:$0xff]  }
 0x258   :  { %v12773_v21 = vld [vmem:[%s14086_s4] ss:$0 sm:$0xff]  ;;  %v10305_v0 = vld [vmem:[%s14087_s5 + $0x118] sm:$0xff]   ;;  %v10306_v50 = vld [vmem:[%s14087_s5 + $0x110] sm:$0xff]  }
 0x259   :  { %9974 = vmatpush3.bf16.msra.mxu0 %v10296_v35  ;;  %v10307_v15 = vld [vmem:[%s14087_s5 + $0x108] sm:$0xff]   ;;  %v10308_v37 = vld [vmem:[%s14087_s5 + $0x100] sm:$0xff]  }
 0x25a   :  { %9975 = vmatprep.subr.bf16.mxu0 %v10410_v27 }
 0x25b   :  { %v2948_v57 = vld [vmem:[#allocation3 + $0x138] sm:$0xff]  ;;  %v10300_v54 = vld [vmem:[#allocation3 + $0x68] ss:$36 sps:$4 sm:$0xff]  }
 0x25c   :  { %v8832_v9 = vcombine.high %v2948_v57, %v2948_v57  ;;  %3950 = vmatmul.mubr.bf16.gmra.mxu0 %v10292_v22  ;;  %v8831_v33 = vcombine.low %v2948_v57, %v2948_v57  ;;  %v10302_v23 = vld [vmem:[#allocation3 + $0xf8] ss:$36 sps:$4 sm:$0xff]  }
 0x25d   :  { %9976 = vmatpush3.bf16.msra.mxu0 %v10298_v56  ;;  %v10301_v14 = vld [vmem:[#allocation3 + $0xb0] ss:$36 sps:$4 sm:$0xff]   ;;  %v10303_v10 = vld [vmem:[#allocation3 + $0x140] ss:$0 sps:$4 sm:$0xff]  }
 0x25e   :  { %4029 = vmatprep.mubr.bf16.mxu1 %v8832_v9  ;;  %v2947_v62 = vld [vmem:[#allocation3 + $0x130] sm:$0xff]  ;;  %9997 = vmatprep.subr.bf16.mxu0 %v10305_v0 }
 0x25f   :  { %v8830_v46 = vcombine.high %v2947_v62, %v2947_v62  ;;  %4030 = vmatmul.mubr.bf16.gmra.mxu1 %v8831_v33  ;;  %v8829_v61 = vcombine.low %v2947_v62, %v2947_v62 }
 0x261   :  { %3957 = vmatprep.mubr.bf16.mxu0 %v8830_v46 }
 0x264   :  { %3958 = vmatmul.mubr.bf16.gmra.mxu0 %v8829_v61 }
 0x265   :  { %9977 = vmatprep.mubr.msk.bf16.mxu0 %vm10411_vm0, %v10410_v27 }
 0x26c   :  { %9978 = vmatmul.mubr.bf16.vlgmr.msra.gmra.mxu0 %v10299_v36 }
 0x26d   :  { %9981 = vmatprep.mubr.msk.bf16.mxu0 %vm10411_vm0, %v10410_v27  ;;  %9998 = vmatpush3.bf16.msra.mxu0 %v10305_v0 }
 0x26e   :  { %9999 = vmatprep.subr.bf16.mxu0 %v10306_v50 }
 0x271   :  { %10000 = vmatpush3.bf16.msra.mxu0 %v10306_v50 }
 0x272   :  { %10001 = vmatprep.subr.bf16.mxu0 %v10307_v15 }
 0x274   :  { %9982 = vmatmul.mubr.bf16.gmra.mxu0 %v10300_v54 }
 0x275   :  { %9985 = vmatprep.mubr.msk.bf16.mxu0 %vm10411_vm0, %v10410_v27  ;;  %10002 = vmatpush3.bf16.msra.mxu0 %v10307_v15 }
 0x276   :  { %10003 = vmatprep.subr.bf16.mxu0 %v10308_v37 }
 0x279   :  { %10004 = vmatpush3.bf16.msra.mxu0 %v10308_v37 }
 0x27c   :  { %9986 = vmatmul.mubr.bf16.gmra.mxu0 %v10301_v14 }
 0x27d   :  { %9989 = vmatprep.mubr.msk.bf16.mxu0 %vm10411_vm0, %v10410_v27 }
 0x284   :  { %9990 = vmatmul.mubr.bf16.gmra.mxu0 %v10302_v23 }
 0x285   :  { %9993 = vmatprep.mubr.msk.bf16.mxu0 %vm10411_vm0, %v10410_v27  ;;  %vm12991_vm0 = vmor %vm4273_vm13, %vm4274_vm14  ;;  %vm5802_vm13 = vsmask.f32 7938 }
 0x28c   :  { %9994 = vmatmul.mubr.bf16.gmra.mxu0 %v10303_v10 }
 0x298   :  { %v9720_v7 = vpop.f32.mrf.mxu1 }
 0x29a   :  { %v9721_v6 = vpop.f32.mrf.mxu1 }
 0x29b   :  { %v9722_v40 = vadd.f32 %v9721_v6, %v9720_v7 }
 0x29c   :  { %v9723_v29 = vpop.f32.mrf.mxu1 }
 0x29e   :  { %v9724_v20 = vpop.f32.mrf.mxu1 }
 0x29f   :  { %v9725_v43 = vadd.f32 %v9724_v20, %v9723_v29 }
 0x2a3   :  { %v9674_v63 = vpop.f32.mrf.mxu0 }
 0x2a5   :  { %v9675_v18 = vpop.f32.mrf.mxu0 }
 0x2a6   :  { %v9676_v4 = vadd.f32 %v9675_v18, %v9674_v63 }
 0x2a7   :  { %v9677_v39 = vpop.f32.mrf.mxu0 }
 0x2a8   :  { %v3784_v8 = vadd.f32 %v9676_v4, %v12773_v21 }
 0x2a9   :  { %v9678_v27 = vpop.f32.mrf.mxu0 }
 0x2aa   :  { %v9679_v2 = vadd.f32 %v9678_v27, %v9677_v39  ;;  %v12776_v60 = vadd.f32 %v9722_v40, %v3784_v8 }
 0x2ac   :  { %v3787_v32 = vadd.f32 %v9679_v2, %v12773_v21 }
 0x2ae   :  { %v12779_v19 = vadd.f32 %v9725_v43, %v3787_v32 }
 0x2b2   :  { %v9680_v55 = vpop.f32.mrf.mxu0 }
 0x2b4   :  { %v9681_v49 = vpop.f32.mrf.mxu0 }
 0x2b5   :  { %v9726_v45 = vpop.f32.mrf.mxu1  ;;  %v9682_v11 = vadd.f32 %v9681_v49, %v9680_v55 }
 0x2b6   :  { %v9683_v52 = vpop.f32.mrf.mxu0 }
 0x2b7   :  { %v9727_v58 = vpop.f32.mrf.mxu1  ;;  %v3792_v48 = vadd.f32 %v9682_v11, %v12773_v21 }
 0x2b8   :  { %v9728_v47 = vadd.f32 %v9727_v58, %v9726_v45  ;;  %v9684_v34 = vpop.f32.mrf.mxu0 }
 0x2b9   :  { %v9729_v51 = vpop.f32.mrf.mxu1  ;;  %v9685_v25 = vadd.f32 %v9684_v34, %v9683_v52 }
 0x2ba   :  { %v12782_v41 = vadd.f32 %v9728_v47, %v3792_v48 }
 0x2bb   :  { %v9730_v31 = vpop.f32.mrf.mxu1  ;;  %v3795_v17 = vadd.f32 %v9685_v25, %v12773_v21  ;;  %v10311_v25 = vld [vmem:[%s14087_s5 + $0x38] sm:$0xff]  }
 0x2bc   :  { %v9731_v5 = vadd.f32 %v9730_v31, %v9729_v51  ;;  %v10310_v51 = vld [vmem:[%s14087_s5 + $0x78] sm:$0xff]   ;;  %v10312_v31 = vld [vmem:[%s14087_s5 + $0x70] sm:$0xff]  }
 0x2bd   :  { %9855 = vmatprep.subr.bf16.mxu1 %v10310_v51 }
 0x2be   :  { %v12791_v53 = vadd.f32 %v9731_v5, %v3795_v17  ;;  %9856 = vmatpush3.bf16.msra.mxu1 %v10311_v25 }
 0x2bf   :  { %9857 = vmatprep.subr.bf16.mxu1 %v10312_v31 }
 0x2c5   :  { %v9686_v16 = vpop.f32.mrf.mxu0 }
 0x2c7   :  { %v9687_v3 = vpop.f32.mrf.mxu0 }
 0x2c8   :  { %v9688_v44 = vadd.f32 %v9687_v3, %v9686_v16  ;;  %v10314_v16 = vld [vmem:[%s14087_s5 + $0x68] sm:$0xff]  }
 0x2c9   :  { %v9689_v38 = vpop.f32.mrf.mxu0 }
 0x2ca   :  { %v3800_v1 = vadd.f32 %v9688_v44, %v12773_v21 }
 0x2cb   :  { %v9732_v12 = vpop.f32.mrf.mxu1  ;;  %v9690_v57 = vpop.f32.mrf.mxu0 }
 0x2cc   :  { %v9691_v9 = vadd.f32 %v9690_v57, %v9689_v38 }
 0x2cd   :  { %v9733_v42 = vpop.f32.mrf.mxu1 }
 0x2ce   :  { %v9734_v35 = vadd.f32 %v9733_v42, %v9732_v12  ;;  %v3803_v46 = vadd.f32 %v9691_v9, %v12773_v21  ;;  %v10315_v12 = vld [vmem:[%s14087_s5 + $0x28] sm:$0xff]  }
 0x2cf   :  { %v9735_v22 = vpop.f32.mrf.mxu1 }
 0x2d0   :  { %v12800_v62 = vadd.f32 %v9734_v35, %v3800_v1 }
 0x2d1   :  { %v9736_v33 = vpop.f32.mrf.mxu1 }
 0x2d2   :  { %v9737_v56 = vadd.f32 %v9736_v33, %v9735_v22 }
 0x2d4   :  { %v12803_v36 = vadd.f32 %v9737_v56, %v3803_v46 }
 0x2d7   :  { %v9738_v61 = vpop.f32.mrf.mxu1 }
 0x2d9   :  { %v9739_v54 = vpop.f32.mrf.mxu1 }
 0x2da   :  { %v9740_v14 = vadd.f32 %v9739_v54, %v9738_v61 }
 0x2db   :  { %v9741_v23 = vpop.f32.mrf.mxu1 }
 0x2dd   :  { %v9742_v7 = vpop.f32.mrf.mxu1 }
 0x2de   :  { %v9743_v40 = vadd.f32 %v9742_v7, %v9741_v23 }
 0x2e1   :  { %v9692_v10 = vpop.f32.mrf.mxu0 }
 0x2e3   :  { %v9693_v6 = vpop.f32.mrf.mxu0 }
 0x2e4   :  { %v9694_v29 = vadd.f32 %v9693_v6, %v9692_v10 }
 0x2e5   :  { %v9744_v20 = vpop.f32.mrf.mxu1  ;;  %v9695_v43 = vpop.f32.mrf.mxu0 }
 0x2e6   :  { %v3808_v63 = vadd.f32 %v9694_v29, %v12773_v21 }
 0x2e7   :  { %v9745_v18 = vpop.f32.mrf.mxu1  ;;  %v9696_v4 = vpop.f32.mrf.mxu0 }
 0x2e8   :  { %v9746_v39 = vadd.f32 %v9745_v18, %v9744_v20  ;;  %v9697_v8 = vadd.f32 %v9696_v4, %v9695_v43  ;;  %v12806_v2 = vadd.f32 %v9740_v14, %v3808_v63 }
 0x2e9   :  { %v9747_v27 = vpop.f32.mrf.mxu1  ;;  %v9698_v32 = vpop.f32.mrf.mxu0 }
 0x2ea   :  { %v3811_v55 = vadd.f32 %v9697_v8, %v12773_v21 }
 0x2eb   :  { %v9748_v49 = vpop.f32.mrf.mxu1  ;;  %v9699_v45 = vpop.f32.mrf.mxu0 }
 0x2ec   :  { %v9700_v11 = vadd.f32 %v9699_v45, %v9698_v32  ;;  %v12809_v58 = vadd.f32 %v9743_v40, %v3811_v55 }
 0x2ed   :  { %v9701_v48 = vpop.f32.mrf.mxu0 }
 0x2ee   :  { %v3816_v47 = vadd.f32 %v9700_v11, %v12773_v21  ;;  %v10313_v21 = vld [vmem:[%s14087_s5 + $0x30] sm:$0xff]  }
 0x2ef   :  { %v9702_v17 = vpop.f32.mrf.mxu0  ;;  %9858 = vmatpush3.bf16.msra.mxu1 %v10313_v21 }
 0x2f0   :  { %v12821_v0 = vadd.f32 %v9746_v39, %v3816_v47  ;;  %9859 = vmatprep.subr.bf16.mxu1 %v10314_v16 }
 0x2f2   :  { %v9812_v52 = vpop.f32.mrf.mxu1 }
 0x2f3   :  { %9860 = vmatpush3.bf16.msra.mxu1 %v10315_v12 }
 0x2f4   :  { %v9813_v34 = vpop.f32.mrf.mxu1 }
 0x2f5   :  { %v9814_v51 = vadd.f32 %v9813_v34, %v9812_v52 }
 0x2f6   :  { %v9815_v5 = vpop.f32.mrf.mxu1 }
 0x2f8   :  { %v9816_v15 = vpop.f32.mrf.mxu1 }
 0x2f9   :  { %v9817_v12 = vadd.f32 %v9816_v15, %v9815_v5 }
 0x2fb   :  { %v9766_v50 = vpop.f32.mrf.mxu0 }
 0x2fd   :  { %v9767_v3 = vpop.f32.mrf.mxu0 }
 0x2fe   :  { %v9768_v27 = vadd.f32 %v9767_v3, %v9766_v50 }
 0x2ff   :  { %v9818_v44 = vpop.f32.mrf.mxu1  ;;  %v9769_v37 = vpop.f32.mrf.mxu0 }
 0x300   :  { %v3928_v11 = vadd.f32 %v9768_v27, %v12776_v60 }
 0x301   :  { %v9819_v38 = vpop.f32.mrf.mxu1  ;;  %v9770_v1 = vpop.f32.mrf.mxu0 }
 0x302   :  { %v9771_v48 = vadd.f32 %v9770_v1, %v9769_v37  ;;  %v4000_v21 = vadd.f32 %v9814_v51, %v3928_v11  ;;  %v9820_v60 = vadd.f32 %v9819_v38, %v9818_v44 }
 0x303   :  { %v9821_v42 = vpop.f32.mrf.mxu1 }
 0x304   :  { %v3931_v31 = vadd.f32 %v9771_v48, %v12779_v19  ;;  %v10316_v19 = vld [vmem:[%s14087_s5 + $0x60] sm:$0xff]  }
 0x305   :  { %v9822_v35 = vpop.f32.mrf.mxu1  ;;  %9861 = vmatprep.subr.bf16.mxu1 %v10316_v19 }
 0x306   :  { %v4003_v26 = vadd.f32 %v9817_v12, %v3931_v31 }
 0x307   :  { %v9772_v57 = vpop.f32.mrf.mxu0 }
 0x309   :  { %v9773_v9 = vpop.f32.mrf.mxu0 }
 0x30a   :  { %v9774_v17 = vadd.f32 %v9773_v9, %v9772_v57 }
 0x30b   :  { %v9775_v46 = vpop.f32.mrf.mxu0 }
 0x30c   :  { %v12832_v22 = vpop.f32.mrf.mxu1  ;;  %v3936_v3 = vadd.f32 %v9774_v17, %v12782_v41 }
 0x30d   :  { %v9776_v56 = vpop.f32.mrf.mxu0 }
 0x30e   :  { %v12834_v33 = vpop.f32.mrf.mxu1  ;;  %v4008_v41 = vadd.f32 %v9820_v60, %v3936_v3 }
 0x310   :  { %v12836_v61 = vpop.f32.mrf.mxu1 }
 0x312   :  { %v12838_v14 = vpop.f32.mrf.mxu1 }
 0x313   :  { %v9829_v31 = vadd.f32 %v12838_v14, %v12836_v61 }
 0x314   :  { %v9778_v54 = vpop.f32.mrf.mxu0 }
 0x316   :  { %v9779_v23 = vpop.f32.mrf.mxu0  ;;  %v12840_v10 = vpop.f32.mrf.mxu1 }
 0x317   :  { %v9780_v5 = vadd.f32 %v9779_v23, %v9778_v54 }
 0x318   :  { %v9781_v7 = vpop.f32.mrf.mxu0  ;;  %v12842_v6 = vpop.f32.mrf.mxu1 }
 0x319   :  { %v3944_v38 = vadd.f32 %v9780_v5, %v12800_v62  ;;  %v10319_v62 = vld [vmem:[%s14087_s5 + $0x18] sm:$0xff]  }
 0x31a   :  { %v9782_v40 = vpop.f32.mrf.mxu0  ;;  %v12844_v29 = vpop.f32.mrf.mxu1 }
 0x31c   :  { %v12846_v20 = vpop.f32.mrf.mxu0  ;;  %v12848_v43 = vpop.f32.mrf.mxu1 }
 0x31e   :  { %v9785_v63 = vpop.f32.mrf.mxu0 }
 0x31f   :  { %v12850_v18 = vpop.f32.mrf.mxu1  ;;  %v9786_v27 = vadd.f32 %v9785_v63, %v12846_v20 }
 0x320   :  { %v12852_v4 = vpop.f32.mrf.mxu0 }
 0x321   :  { %v12854_v39 = vpop.f32.mrf.mxu1  ;;  %v3952_v61 = vadd.f32 %v9786_v27, %v12806_v2 }
 0x322   :  { %v12856_v8 = vpop.f32.mrf.mxu0 }
 0x323   :  { %v9839_v32 = vpop.f32.mrf.mxu1  ;;  %v9789_v14 = vadd.f32 %v12856_v8, %v12852_v4 }
 0x324   :  { %v12858_v55 = vpop.f32.mrf.mxu0  ;;  %v9777_v32 = vadd.f32 %v9776_v56, %v9775_v46 }
 0x325   :  { %v9840_v49 = vpop.f32.mrf.mxu1 }
 0x326   :  { %v12860_v45 = vpop.f32.mrf.mxu0  ;;  %v3939_v34 = vadd.f32 %v9777_v32, %v12791_v53 }
 0x328   :  { %v9793_v47 = vpop.f32.mrf.mxu0 }
 0x32a   :  { %v9794_v25 = vpop.f32.mrf.mxu0 }
 0x32c   :  { %v4071_v16 = vpop.f32.mrf.mxu0 }
 0x32d   :  { %v4072_v24 = vadd.f32 %v4071_v16, %v4000_v21 }
 0x32e   :  { %v9979_v50 = vpop.f32.mrf.mxu0 }
 0x32f   :  { %v4109_v49 = vmax.f32 %v4072_v24, 0.0  ;;  %v9823_v24 = vadd.f32 %v9822_v35, %v9821_v42  ;;  %v9826_v42 = vadd.f32 %v12834_v33, %v12832_v22 }
 0x330   :  { %v4074_v59 = vpop.f32.mrf.mxu0 }
 0x331   :  { %v9342_v37 = vpack.c.bf16 %v4109_v49, %v4109_v49  ;;  %v4075_v1 = vadd.f32 %v4074_v59, %v4003_v26  ;;  %v10317_v26 = vld [vmem:[%s14087_s5 + $0x20] sm:$0xff]   ;;  %v9783_v59 = vadd.f32 %v9782_v40, %v9781_v7  ;;  %v4011_v56 = vadd.f32 %v9823_v24, %v3939_v34  ;;  %v10318_v7 = vld [vmem:[%s14087_s5 + $0x58] sm:$0xff]  }
 0x332   :  { %v9980_v52 = vpop.f32.mrf.mxu0  ;;  %9862 = vmatpush3.bf16.msra.mxu1 %v10317_v26  ;;  %v4016_v33 = vadd.f32 %v9826_v42, %v3944_v38  ;;  %v3955_v38 = vadd.f32 %v9789_v14, %v12809_v58 }
 0x333   :  { %4156 = vst.msk [vmem:[#allocation4] sm:$0xf] %vm4155_vm1, %v9342_v37  ;;  %v4110_v15 = vmax.f32 %v4075_v1, 0.0  ;;  %v3947_v40 = vadd.f32 %v9783_v59, %v12803_v36  ;;  %9863 = vmatprep.subr.bf16.mxu1 %v10318_v7  ;;  %v9832_v36 = vadd.f32 %v12842_v6, %v12840_v10  ;;  %v9792_v10 = vadd.f32 %v12860_v45, %v12858_v55  ;;  %v10320_v59 = vld [vmem:[%s14087_s5 + $0x50] sm:$0xff]  }
 0x334   :  { %v4079_v57 = vpop.f32.mrf.mxu0 }
 0x335   :  { %v9343_v9 = vpack.c.bf16 %v4110_v15, %v4110_v15  ;;  %v4080_v46 = vadd.f32 %v4079_v57, %v4008_v41  ;;  %v4019_v37 = vadd.f32 %v9829_v31, %v3947_v40 }
 0x336   :  { %v9983_v44 = vpop.f32.mrf.mxu0  ;;  %9864 = vmatpush3.bf16.msra.mxu1 %v10319_v62 }
 0x337   :  { %4157 = vst.msk [vmem:[#allocation4 + $0x4] sm:$0xf] %vm4155_vm1, %v9343_v9  ;;  %v4111_v53 = vmax.f32 %v4080_v46, 0.0  ;;  %v9835_v44 = vadd.f32 %v12848_v43, %v12844_v29  ;;  %9865 = vmatprep.subr.bf16.mxu1 %v10320_v59 }
 0x338   :  { %v4082_v54 = vpop.f32.mrf.mxu0 }
 0x339   :  { %v9344_v35 = vpack.c.bf16 %v4111_v53, %v4111_v53  ;;  %v4083_v23 = vadd.f32 %v4082_v54, %v4011_v56  ;;  %v3960_v53 = vadd.f32 %v9792_v10, %v12821_v0  ;;  %v4027_v10 = vadd.f32 %v9835_v44, %v3955_v38 }
 0x33a   :  { %v9984_v11 = vpop.f32.mrf.mxu0  ;;  %v4168_v48 = vld [vmem:[#allocation4] sm:$0x7]  ;;  %v4189_v63 = vld [vmem:[#allocation4] sm:$0x8] }
 0x33b   :  { %4158 = vst.msk [vmem:[#allocation4 + $0x8] sm:$0xf] %vm4155_vm1, %v9344_v35  ;;  %v4112_v22 = vmax.f32 %v4083_v23, 0.0  ;;  %v4170_v47 = vshrl.u32 %v4168_v48, 16  ;;  %v4173_v51 = vshll.u32 %v4168_v48, 16  ;;  %v8916_v2 = vrot.slane %v4189_v63, 11 }
 0x33c   :  { %v4183_v25 = vld [vmem:[#allocation4] sm:$0x6]  ;;  %v4087_v20 = vpop.f32.mrf.mxu0  ;;  %v4283_v49 = vld [vmem:[#allocation4] sm:$0x8]  ;;  %v4024_v35 = vadd.f32 %v9832_v36, %v3952_v61 }
 0x33d   :  { %v8915_v17 = vrot.slane %v4183_v25, 9  ;;  %v4165_v21 = vld [vmem:[#allocation4] sm:$0x3]  ;;  %v9345_v16 = vpack.c.bf16 %v4112_v22, %v4112_v22  ;;  %v4088_v12 = vadd.f32 %v4087_v20, %v4016_v33  ;;  %v4172_v3 = vrot.slane %v4170_v47, 4  ;;  %v10321_v20 = vld [vmem:[%s14087_s5 + $0x10] sm:$0xff]  }
 0x33e   :  { %v4175_v32 = vrot.slane %v4173_v51, 5  ;;  %4167 = vst.msk [vmem:[#allocation5] sm:$0x3] %vm4166_vm2, %v4165_v21  ;;  %v9987_v6 = vpop.f32.mrf.mxu0  ;;  %v4312_v60 = vld [vmem:[#allocation4 + $0x4] sm:$0xc]  ;;  %v4289_v5 = vshrl.u32 %v4283_v49, 16  ;;  %v9838_v49 = vadd.f32 %v12854_v39, %v12850_v18  ;;  %9866 = vmatpush3.bf16.msra.mxu1 %v10321_v20 }
 0x33f   :  { %v4190_v1 = vld [vmem:[#allocation4 + $0x4] sm:$0x1]  ;;  %v4259_v52 = vld [vmem:[#allocation4 + $0x4] sm:$0x8]  ;;  %4188 = vst.msk [vmem:[#allocation5 + $0x4] sm:$0x3] %vm4166_vm2, %v8915_v17  ;;  %4314 = vrot.lane.b32.xlu1 %v4312_v60, %s10412_s20 }
 0x340   :  { %4159 = vst.msk [vmem:[#allocation4 + $0xc] sm:$0xf] %vm4155_vm1, %v9345_v16  ;;  %v4113_v19 = vmax.f32 %v4088_v12, 0.0  ;;  %v4198_v4 = vrot.slane %v4190_v1, 7  ;;  %v4176_v8 = vor.u32 %v4175_v32, %v4172_v3  ;;  %v4284_v34 = vld [vmem:[#allocation4 + $0x4] sm:$0x3]  ;;  %v4090_v55 = vpop.f32.mrf.mxu0 }
 0x341   :  { %v8919_v45 = vrot.slane %v4259_v52, 11  ;;  %v4294_v15 = vshrl.u32 %v4284_v34, 16  ;;  %v4297_v41 = vshll.u32 %v4284_v34, 16  ;;  %v4091_v24 = vadd.f32 %v4090_v55, %v4019_v37  ;;  %v4376_v26 = vld [vmem:[#allocation4 + $0x4] sm:$0xc] }
 0x342   :  { %v9346_v57 = vpack.c.bf16 %v4113_v19, %v4113_v19  ;;  %v4199_v9 = vsel %vm12892_vm8, %v8916_v2, %v4198_v4  ;;  %v4177_v46 = vrot.slane %v4176_v8, 4  ;;  %v4368_v56 = vld [vmem:[#allocation4 + $0x8] sm:$0xc]  ;;  %v9988_v54 = vpop.f32.mrf.mxu0  ;;  %v4260_v42 = vld [vmem:[#allocation4 + $0x8] sm:$0x1]  ;;  %v4379_v0 = vshrl.u32 %v4376_v26, 16 }
 0x343   :  { %4200 = vrot.lane.b32.xlu0 %v4199_v9, %s10412_s20  ;;  %v4406_v23 = vld [vmem:[#allocation4 + $0x8] sm:$0x6]  ;;  %4369 = vst.msk [vmem:[#allocation5 + $0x10] sm:$0xc] %vm4281_vm5, %v4368_v56  ;;  %v4114_v7 = vmax.f32 %v4091_v24, 0.0  ;;  %v4265_v62 = vrot.slane %v4260_v42, 7  ;;  %v4032_v8 = vadd.f32 %v9838_v49, %v3960_v53 }
 0x344   :  { %4160 = vst.msk [vmem:[#allocation4 + $0x10] sm:$0xf] %vm4155_vm1, %v9346_v57  ;;  %v8925_v40 = vrot.slane %v4406_v23, 9  ;;  %v4296_v27 = vrot.slane %v4294_v15, 5  ;;  %v4377_v29 = vld [vmem:[#allocation4 + $0x8] sm:$0x1]  ;;  %v4095_v58 = vpop.f32.mrf.mxu0 }
 0x345   :  { %v4299_v43 = vrot.slane %v4297_v41, 6  ;;  %v4382_v11 = vshll.u32 %v4376_v26, 16  ;;  %v4388_v48 = vshll.u32 %v4377_v29, 16  ;;  %v12917_v22 = vld [vmem:[#allocation4 + $0x8] sm:$0xe]  ;;  %v9347_v33 = vpack.c.bf16 %v4114_v7, %v4114_v7 }
 0x346   :  { %v4266_v47 = vsel %vm12892_vm8, %v8919_v45, %v4265_v62  ;;  %v4096_v51 = vadd.f32 %v4095_v58, %v4024_v35  ;;  %4410 = vrot.lane.b32.xlu1 %v8925_v40, %s10412_s20  ;;  %v8921_v31 = vrot.slane %v4289_v5, 9  ;;  %v4236_v36 = vld [vmem:[#allocation4 + $0x4] sm:$0xc]  ;;  %v9991_v17 = vpop.f32.mrf.mxu0  ;;  %v4381_v16 = vrot.slane %v4379_v0, 6  ;;  %v4237_v6 = vld [vmem:[#allocation4 + $0x8] sm:$0x1] }
 0x347   :  { %v4450_v63 = vld [vmem:[#allocation4 + $0xc] sm:$0x6]  ;;  %4268 = vst.msk [vmem:[#allocation5 + $0x10] sm:$0x3] %vm4166_vm2, %v4266_v47  ;;  %4178 = vrot.lane.b32.xlu0 %v4177_v46, %s10412_s20  ;;  %v4300_v21 = vor.u32 %v4299_v43, %v4296_v27  ;;  %v4384_v12 = vrot.slane %v4382_v11, 7  ;;  %v4463_v3 = vshrl.u32 %v12917_v22, 16 }
 0x348   :  { %v10322_v32 = vld [vmem:[%s14087_s5 + $0x48] sm:$0xff]   ;;  %v8927_v61 = vrot.slane %v4450_v63, 9  ;;  %4161 = vst.msk [vmem:[#allocation4 + $0x14] sm:$0xf] %vm4155_vm1, %v9347_v33  ;;  %v4115_v14 = vmax.f32 %v4096_v51, 0.0  ;;  %v4098_v60 = vpop.f32.mrf.mxu0  ;;  %v4390_v52 = vrot.slane %v4388_v48, 7 }
 0x349   :  { %v4301_v37 = vsel %vm12924_vm11, %v8921_v31, %v4300_v21  ;;  %v4385_v1 = vor.u32 %v4384_v12, %v4381_v16  ;;  %v4475_v19 = vld [vmem:[#allocation4 + $0xc] sm:$0x3]  ;;  %v4242_v2 = vshrl.u32 %v4236_v36, 16  ;;  %9867 = vmatprep.subr.bf16.mxu1 %v10322_v32  ;;  %v4099_v18 = vadd.f32 %v4098_v60, %v4027_v10  ;;  %v12950_v55 = vld [vmem:[#allocation4 + $0x8] sm:$0xe]  ;;  %v10324_v35 = vld [vmem:[%s14087_s5 + $0x40] sm:$0xff]  }
 0x34a   :  { %4455 = vst.msk [vmem:[#allocation5 + $0x24] sm:$0x3] %vm4166_vm2, %v8927_v61  ;;  %v9348_v4 = vpack.c.bf16 %v4115_v14, %v4115_v14  ;;  %4302 = vrot.lane.b32.xlu1 %v4301_v37, %s10412_s20  ;;  %v4245_v34 = vshll.u32 %v4236_v36, 16  ;;  %v10323_v45 = vld [vmem:[%s14087_s5 + $0x8] sm:$0xff]   ;;  %v9992_v15 = vpop.f32.mrf.mxu0  ;;  %v4465_v57 = vrot.slane %v4463_v3, 7  ;;  %v4251_v9 = vshll.u32 %v4237_v6, 16 }
 0x34b   :  { %v4530_v5 = vld [vmem:[#allocation4 + $0x10] sm:$0x3]  ;;  %v4386_v41 = vrot.slane %v4385_v1, 4  ;;  %v4244_v24 = vrot.slane %v4242_v2, 6  ;;  %v4116_v26 = vmax.f32 %v4099_v18, 0.0  ;;  %v4477_v59 = vrot.slane %v4475_v19, 6  ;;  %9868 = vmatpush3.bf16.msra.mxu1 %v10323_v45 }
 0x34c   :  { %v4532_v46 = vrot.slane %v4530_v5, 6  ;;  %4162 = vst.msk [vmem:[#allocation4 + $0x18] sm:$0xf] %vm4155_vm1, %v9348_v4  ;;  %v4247_v44 = vrot.slane %v4245_v34, 7  ;;  %v4541_v38 = vld [vmem:[#allocation4 + $0x10] sm:$0xc]  ;;  %v4103_v56 = vpop.f32.mrf.mxu0  ;;  %9869 = vmatprep.subr.bf16.mxu1 %v10324_v35 }
 0x34d   :  { %v4391_v53 = vsel %vm12946_vm12, %v4386_v41, %v4390_v52  ;;  %v4466_v54 = vshll.u32 %v12917_v22, 16  ;;  %v4358_v42 = vshrl.u32 %v12950_v55, 16  ;;  %v9349_v23 = vpack.c.bf16 %v4116_v26, %v4116_v26  ;;  %v10325_v27 = vld [vmem:[%s14087_s5] sm:$0xff]   ;;  %v10329_v22 = vld [vmem:[%s14087_s5 + $0xf8] sm:$0xff]   ;;  %v4339_v17 = vld [vmem:[#allocation4 + $0x4] sm:$0x8] }
 0x34e   :  { %4534 = vst.msk [vmem:[#allocation5 + $0x24] sm:$0xc] %vm4281_vm5, %v4532_v46  ;;  %4392 = vrot.lane.b32.xlu0 %v4391_v53, %s10412_s20  ;;  %v4104_v7 = vadd.f32 %v4103_v56, %v4032_v8  ;;  %4478 = vrot.lane.b32.xlu1 %v4477_v59, %s10412_s20  ;;  %v4248_v62 = vor.u32 %v4247_v44, %v4244_v24  ;;  %v4253_v40 = vrot.slane %v4251_v9, 7  ;;  %v9995_v29 = vpop.f32.mrf.mxu0  ;;  %v4544_v58 = vshrl.u32 %v4541_v38, 16  ;;  %v4340_v21 = vld [vmem:[#allocation4 + $0x8] sm:$0x1] }
 0x34f   :  { %v4547_v43 = vshll.u32 %v4541_v38, 16  ;;  %4163 = vst.msk [vmem:[#allocation4 + $0x1c] sm:$0xf] %vm4155_vm1, %v9349_v23  ;;  %v4468_v11 = vor.u32 %v4466_v54, %v4465_v57  ;;  %9870 = vmatpush3.bf16.msra.mxu1 %v10325_v27  ;;  %v4360_v47 = vrot.slane %v4358_v42, 7  ;;  %v4542_v51 = vld [vmem:[#allocation4 + $0x14] sm:$0x1] }
 0x350   :  { %v4117_v0 = vmax.f32 %v4104_v7, 0.0  ;;  %v4249_v48 = vrot.slane %v4248_v62, 4  ;;  %v4106_v33 = vpop.f32.mrf.mxu0  ;;  %v4546_v31 = vrot.slane %v4544_v58, 6  ;;  %v12976_v16 = vld [vmem:[#allocation4 + $0x14] sm:$0xe]  ;;  %9883 = vmatprep.subr.bf16.mxu1 %v10329_v22  ;;  %v4361_v61 = vshll.u32 %v12950_v55, 16 }
 0x351   :  { %v4549_v36 = vrot.slane %v4547_v43, 7  ;;  %v12978_v12 = vld [vmem:[#allocation4] sm:$0x8]  ;;  %v4224_v49 = vld [vmem:[#allocation4 + $0x4] sm:$0x3]  ;;  %v4553_v60 = vshll.u32 %v4542_v51, 16 }
 0x352   :  { %v9350_v20 = vpack.c.bf16 %v4117_v0, %v4117_v0  ;;  %4469 = vrot.lane.b32.xlu0 %v4468_v11, %s10412_s20  ;;  %v4254_v63 = vsel %vm12946_vm12, %v4249_v48, %v4253_v40  ;;  %v9996_v32 = vpop.f32.mrf.mxu0  ;;  %v4436_v14 = vld [vmem:[#allocation4 + $0xc] sm:$0x7]  ;;  %v4571_v6 = vld [vmem:[#allocation4 + $0x14] sm:$0x6]  ;;  %v4363_v1 = vor.u32 %v4361_v61, %v4360_v47  ;;  %v4345_v52 = vrot.slane %v4340_v21, 5 }
 0x353   :  { %v4615_v3 = vld [vmem:[#allocation4 + $0x18] sm:$0x6]  ;;  %4255 = vrot.lane.b32.xlu1 %v4254_v63, %s10412_s20  ;;  %v4550_v2 = vor.u32 %v4549_v36, %v4546_v31  ;;  %v4628_v4 = vshrl.u32 %v12976_v16, 16  ;;  %v4438_v34 = vshrl.u32 %v4436_v14, 16  ;;  %v4441_v55 = vshll.u32 %v4436_v14, 16 }
 0x354   :  { %v8934_v10 = vrot.slane %v4615_v3, 9  ;;  %4164 = vst.msk [vmem:[#allocation4 + $0x20] sm:$0xf] %vm4155_vm1, %v9350_v20  ;;  %v4702_v37 = vld [vmem:[#allocation4 + $0x18] sm:$0x7]  ;;  %v8922_v5 = vrot.slane %v4339_v17, 9 }
 0x355   :  { %v10304_v19 = vld [vmem:[#allocation5 + $0x10] ss:$20 sps:$4 sm:$0xff]   ;;  %v4704_v18 = vshrl.u32 %v4702_v37, 16  ;;  %v4707_v8 = vshll.u32 %v4702_v37, 16  ;;  %v8920_v15 = vrot.slane %v12978_v12, 9  ;;  %v8932_v24 = vrot.slane %v4571_v6, 9 }
 0x356   :  { %4620 = vst.msk [vmem:[#allocation5 + $0x38] sm:$0x3] %vm4166_vm2, %v8934_v10  ;;  %4226 = vrot.lane.b32.xlu0 %v4224_v49, %s10412_s20  ;;  %v4695_v45 = vld [vmem:[#allocation4 + $0x1c] sm:$0x3]  ;;  %10005 = vmatprep.mubr.msk.bf16.mxu0 %vm5240_vm15, %v10304_v19  ;;  %v4555_v9 = vrot.slane %v4553_v60, 7  ;;  %v4631_v26 = vshll.u32 %v12976_v16, 16  ;;  %v4346_v44 = vsel %vm12991_vm0, %v8922_v5, %v4345_v52 }
 0x357   :  { %4364 = vrot.lane.b32.xlu1 %v4363_v1, %s10412_s20  ;;  %v4697_v41 = vrot.slane %v4695_v45, 6  ;;  %v4640_v46 = vld [vmem:[#allocation4 + $0x18] sm:$0x3]  ;;  %v4783_v59 = vld [vmem:[#allocation4 + $0x1c] sm:$0x8]  ;;  %v4551_v38 = vrot.slane %v4550_v2, 4 }
 0x358   :  { %v4630_v53 = vrot.slane %v4628_v4, 7  ;;  %v4804_v56 = vld [vmem:[#allocation4 + $0x1c] sm:$0x3]  ;;  %v4511_v54 = vld [vmem:[#allocation4 + $0x10] sm:$0x3]  ;;  %v4706_v42 = vrot.slane %v4704_v18, 4 }
 0x359   :  { %4699 = vst.msk [vmem:[#allocation5 + $0x38] sm:$0xc] %vm4281_vm5, %v4697_v41  ;;  %v4709_v35 = vrot.slane %v4707_v8, 5  ;;  %v4803_v23 = vld [vmem:[#allocation4 + $0x18] sm:$0x8]  ;;  %v4440_v7 = vrot.slane %v4438_v34, 4  ;;  %v4556_v33 = vsel %vm12946_vm12, %v4551_v38, %v4555_v9 }
 0x35a   :  { %4347 = vrot.lane.b32.xlu0 %v4346_v44, %s10412_s20  ;;  %v4443_v62 = vrot.slane %v4441_v55, 5  ;;  %v4811_v29 = vshrl.u32 %v4804_v56, 16  ;;  %v4814_v58 = vshll.u32 %v4804_v56, 16  ;;  %v13001_v43 = vld [vmem:[#allocation4 + $0x8] sm:$0xc]  ;;  %v8941_v0 = vrot.slane %v4783_v59, 11 }
 0x35b   :  { %v4784_v40 = vld [vmem:[#allocation4 + $0x20] sm:$0x1]  ;;  %v4881_v27 = vld [vmem:[#allocation4 + $0x20] sm:$0xc]  ;;  %4575 = vrot.lane.b32.xlu1 %v8932_v24, %s10412_s20  ;;  %v4722_v48 = vld [vmem:[#allocation4 + $0x18] sm:$0x8]  ;;  %v4633_v51 = vor.u32 %v4631_v26, %v4630_v53  ;;  %v4710_v17 = vor.u32 %v4709_v35, %v4706_v42 }
 0x35c   :  { %v4789_v11 = vrot.slane %v4784_v40, 7  ;;  %4882 = vst.msk [vmem:[#allocation5 + $0x4c] sm:$0xc] %vm4281_vm5, %v4881_v27  ;;  %v4510_v22 = vld [vmem:[#allocation4 + $0xc] sm:$0x8]  ;;  %v4642_v47 = vrot.slane %v4640_v46, 6  ;;  %v4444_v10 = vor.u32 %v4443_v62, %v4440_v7 }
 0x35d   :  { %v4723_v31 = vld [vmem:[#allocation4 + $0x1c] sm:$0x1]  ;;  %v4806_v36 = vshrl.u32 %v4803_v23, 16  ;;  %v4601_v20 = vld [vmem:[#allocation4 + $0x18] sm:$0x7]  ;;  %v4518_v21 = vshrl.u32 %v4511_v54, 16 }
 0x35e   :  { %v4790_v63 = vsel %vm12892_vm8, %v8941_v0, %v4789_v11  ;;  %4557 = vrot.lane.b32.xlu0 %v4556_v33, %s10412_s20  ;;  %v4521_v16 = vshll.u32 %v4511_v54, 16  ;;  %v13009_v3 = vld [vmem:[#allocation4 + $0xc] sm:$0x6]  ;;  %v4675_v32 = vld [vmem:[#allocation4 + $0x18] sm:$0x8]  ;;  %v13013_v61 = vrot.slane %v4811_v29, 5 }
 0x35f   :  { %v4676_v49 = vld [vmem:[#allocation4 + $0x1c] sm:$0x3]  ;;  %4792 = vst.msk [vmem:[#allocation5 + $0x4c] sm:$0x3] %vm4166_vm2, %v4790_v63  ;;  %4643 = vrot.lane.b32.xlu1 %v4642_v47, %s10412_s20  ;;  %v13015_v14 = vrot.slane %v4814_v58, 6  ;;  %v4513_v6 = vshrl.u32 %v4510_v22, 16 }
 0x360   :  { %v13017_v60 = vld [vmem:[#allocation4 + $0x14] sm:$0xc]  ;;  %v4828_v37 = vld [vmem:[#allocation4 + $0x1c] sm:$0xc]  ;;  %v8938_v1 = vrot.slane %v4722_v48, 11  ;;  %v4728_v52 = vrot.slane %v4723_v31, 7 }
 0x361   :  { %v8926_v19 = vrot.slane %v13001_v43, 10  ;;  %v4603_v2 = vshrl.u32 %v4601_v20, 16  ;;  %v4763_v4 = vld [vmem:[#allocation4 + $0x1c] sm:$0xc]  ;;  %v8943_v18 = vrot.slane %v4806_v36, 9  ;;  %v4606_v8 = vshll.u32 %v4601_v20, 16 }
 0x362   :  { %v4678_v34 = vshrl.u32 %v4675_v32, 16  ;;  %v4683_v55 = vshrl.u32 %v4676_v49, 16  ;;  %4634 = vrot.lane.b32.xlu0 %v4633_v51, %s10412_s20  ;;  %v4711_v45 = vrot.slane %v4710_v17, 4  ;;  %v4520_v5 = vrot.slane %v4518_v21, 5  ;;  %v13021_v9 = vld [vmem:[#allocation4 + $0x18] sm:$0x6] }
 0x363   :  { %v4523_v41 = vrot.slane %v4521_v16, 6  ;;  %v4686_v24 = vshll.u32 %v4676_v49, 16  ;;  %4830 = vrot.lane.b32.xlu1 %v4828_v37, %s10412_s20  ;;  %v4817_v46 = vor.u32 %v13015_v14, %v13013_v61  ;;  %v4445_v26 = vrot.slane %v4444_v10, 4  ;;  %v4307_v38 = vld [vmem:[#allocation4 + $0x4] sm:$0x3] }
 0x364   :  { %v8929_v59 = vrot.slane %v4513_v6, 9  ;;  %v4495_v44 = vrot.slane %v13009_v3, 7  ;;  %v13027_v53 = vrot.slane %v4603_v2, 4  ;;  %v8933_v56 = vrot.slane %v13017_v60, 10  ;;  %v4396_v35 = vld [vmem:[#allocation4 + $0x4] sm:$0x8] }
 0x365   :  { %v4766_v54 = vshrl.u32 %v4763_v4, 16  ;;  %v4769_v42 = vshll.u32 %v4763_v4, 16  ;;  %v13030_v23 = vrot.slane %v4606_v8, 5  ;;  %v13032_v7 = vrot.slane %v4678_v34, 9  ;;  %v4397_v27 = vld [vmem:[#allocation4 + $0x8] sm:$0x1] }
 0x366   :  { %v13034_v62 = vrot.slane %v4683_v55, 5  ;;  %v4660_v40 = vrot.slane %v13021_v9, 7  ;;  %4712 = vrot.lane.b32.xlu0 %v4711_v45, %s10412_s20  ;;  %v4729_v29 = vsel %vm12892_vm8, %v8938_v1, %v4728_v52  ;;  %v10309_v58 = vld [vmem:[#allocation5 + $0x38] ss:$20 sps:$4 sm:$0xff]   ;;  %v4524_v0 = vor.u32 %v4523_v41, %v4520_v5  ;;  %v4204_v22 = vld [vmem:[#allocation4] sm:$0x8] }
 0x367   :  { %v13040_v11 = vrot.slane %v4686_v24, 6  ;;  %v4309_v48 = vrot.slane %v4307_v38, 6  ;;  %4730 = vrot.lane.b32.xlu1 %v4729_v29, %s10412_s20  ;;  %v13043_v33 = vld [vmem:[#allocation4 + $0x20] sm:$0x1]  ;;  %v8924_v47 = vrot.slane %v4396_v35, 11  ;;  %v4402_v51 = vrot.slane %v4397_v27, 7  ;;  %10006 = vmatmul.mubr.msk.bf16.vlgmr.msra.gmra.mxu0 %vm5240_vm15, %v10309_v58 }
 0x368   :  { %v4270_v31 = vld [vmem:[#allocation4 + $0x4] sm:$0x1]  ;;  %v4370_v36 = vld [vmem:[#allocation4 + $0x4] sm:$0xc]  ;;  %v13046_v20 = vrot.slane %v4766_v54, 6  ;;  %v13048_v63 = vrot.slane %v4769_v42, 7  ;;  %v4818_v49 = vsel %vm12924_vm11, %v8943_v18, %v4817_v46  ;;  %v4525_v37 = vsel %vm12924_vm11, %v8929_v59, %v4524_v0 }
 0x369   :  { %v13050_v17 = vld [vmem:[#allocation4 + $0x20] sm:$0xe]  ;;  %4311 = vst.msk [vmem:[#allocation5 + $0x4] sm:$0xc] %vm4281_vm5, %v4309_v48  ;;  %v4278_v21 = vrot.slane %v4270_v31, 5  ;;  %v8923_v16 = vrot.slane %v4370_v36, 10  ;;  %v4403_v61 = vsel %vm12892_vm8, %v8924_v47, %v4402_v51  ;;  %v4609_v8 = vor.u32 %v13030_v23, %v13027_v53 }
 0x36a   :  { %v4473_v32 = vld [vmem:[#allocation4 + $0x8] sm:$0xc]  ;;  %v4230_v10 = vld [vmem:[#allocation4 + $0x4] sm:$0xc]  ;;  %v4205_v6 = vld [vmem:[#allocation4 + $0x4] sm:$0x3]  ;;  %4819 = vrot.lane.b32.xlu0 %v4818_v49, %s10412_s20 }
 0x36b   :  { %4474 = vst.msk [vmem:[#allocation5 + $0x18] sm:$0xc] %vm4281_vm5, %v4473_v32  ;;  %v4456_v14 = vld [vmem:[#allocation4 + $0x8] sm:$0x6]  ;;  %v4279_v1 = vsel %vm12991_vm0, %v8920_v15, %v4278_v21  ;;  %v8918_v2 = vrot.slane %v4230_v10, 10  ;;  %4446 = vrot.lane.b32.xlu1 %v4445_v26, %s10412_s20  ;;  %v4210_v34 = vshrl.u32 %v4204_v22, 16  ;;  %v4772_v26 = vor.u32 %v13048_v63, %v13046_v20 }
 0x36c   :  { %4405 = vst.msk [vmem:[#allocation5 + $0x18] sm:$0x3] %vm4166_vm2, %v4403_v61  ;;  %4375 = vst.msk [vmem:[#allocation5 + $0x14] sm:$0x3] %vm4166_vm2, %v8923_v16  ;;  %v4458_v52 = vrot.slane %v4456_v14, 7  ;;  %v4215_v55 = vshrl.u32 %v4205_v6, 16  ;;  %v4689_v21 = vor.u32 %v13040_v11, %v13034_v62 }
 0x36d   :  { %v4351_v4 = vld [vmem:[#allocation4 + $0x8] sm:$0x6]  ;;  %v4318_v18 = vld [vmem:[#allocation4 + $0x4] sm:$0xc]  ;;  %4282 = vst.msk [vmem:[#allocation5] sm:$0xc] %vm4281_vm5, %v4279_v1 }
 0x36e   :  { %v4353_v45 = vrot.slane %v4351_v4, 7  ;;  %v4319_v12 = vld [vmem:[#allocation4 + $0x8] sm:$0x1]  ;;  %v4775_v5 = vshll.u32 %v13043_v33, 16  ;;  %4460 = vst.msk [vmem:[#allocation5 + $0x14] sm:$0xc] %vm4281_vm5, %v4458_v52  ;;  %4430 = vrot.lane.b32.xlu0 %v8926_v19, %s10412_s20 }
 0x36f   :  { %4235 = vst.msk [vmem:[#allocation5 + $0xc] sm:$0x3] %vm4166_vm2, %v8918_v2  ;;  %v4324_v15 = vshrl.u32 %v4318_v18, 16  ;;  %v4327_v41 = vshll.u32 %v4318_v18, 16  ;;  %v4333_v24 = vshll.u32 %v4319_v12, 16  ;;  %v4871_v59 = vshrl.u32 %v13050_v17, 16  ;;  %4526 = vrot.lane.b32.xlu1 %v4525_v37, %s10412_s20 }
 0x370   :  { %v4561_v46 = vld [vmem:[#allocation4 + $0x10] sm:$0x8]  ;;  %v4217_v38 = vrot.slane %v4215_v55, 7  ;;  %v4218_v53 = vshll.u32 %v4205_v6, 16  ;;  %4355 = vst.msk [vmem:[#allocation5 + $0xc] sm:$0xc] %vm4281_vm5, %v4353_v45 }
 0x371   :  { %v4562_v54 = vld [vmem:[#allocation4 + $0x14] sm:$0x1]  ;;  %v4326_v35 = vrot.slane %v4324_v15, 4  ;;  %v4329_v23 = vrot.slane %v4327_v41, 5  ;;  %v8931_v27 = vrot.slane %v4561_v46, 11  ;;  %v8917_v0 = vrot.slane %v4210_v34, 11 }
 0x372   :  { %v4567_v29 = vrot.slane %v4562_v54, 7  ;;  %v4535_v58 = vld [vmem:[#allocation4 + $0x10] sm:$0xc]  ;;  %v4220_v48 = vor.u32 %v4218_v53, %v4217_v38  ;;  %v4638_v33 = vld [vmem:[#allocation4 + $0x14] sm:$0xc]  ;;  %v4335_v19 = vrot.slane %v4333_v24, 5  ;;  %4496 = vrot.lane.b32.xlu0 %v4495_v44, %s10412_s20  ;;  %v4690_v34 = vsel %vm12924_vm11, %v13032_v7, %v4689_v21 }
 0x373   :  { %v8930_v22 = vrot.slane %v4535_v58, 10  ;;  %v4621_v47 = vld [vmem:[#allocation4 + $0x14] sm:$0x6]  ;;  %v4330_v43 = vor.u32 %v4329_v23, %v4326_v35  ;;  %4639 = vst.msk [vmem:[#allocation5 + $0x2c] sm:$0xc] %vm4281_vm5, %v4638_v33  ;;  %v4610_v63 = vrot.slane %v4609_v8, 4 }
 0x374   :  { %v4568_v51 = vsel %vm12892_vm8, %v8931_v27, %v4567_v29  ;;  %v4623_v31 = vrot.slane %v4621_v47, 7  ;;  %v4823_v36 = vld [vmem:[#allocation4 + $0x1c] sm:$0x3]  ;;  %v4700_v20 = vld [vmem:[#allocation4 + $0x18] sm:$0x3]  ;;  %v4221_v16 = vsel %vm13083_vm9, %v8917_v0, %v4220_v48  ;;  %v4773_v62 = vrot.slane %v4772_v26, 4 }
 0x375   :  { %4570 = vst.msk [vmem:[#allocation5 + $0x2c] sm:$0x3] %vm4166_vm2, %v4568_v51  ;;  %4540 = vst.msk [vmem:[#allocation5 + $0x28] sm:$0x3] %vm4166_vm2, %v8930_v22  ;;  %v4825_v50 = vrot.slane %v4823_v36, 6  ;;  %v4777_v11 = vrot.slane %v4775_v5, 7  ;;  %4611 = vrot.lane.b32.xlu1 %v4610_v63, %s10412_s20 }
 0x376   :  { %4701 = vst.msk [vmem:[#allocation5 + $0x3c] sm:$0x3] %vm4166_vm2, %v4700_v20  ;;  %v4716_v49 = vld [vmem:[#allocation4 + $0x18] sm:$0x6]  ;;  %v4793_v61 = vld [vmem:[#allocation4 + $0x18] sm:$0x8]  ;;  %4595 = vrot.lane.b32.xlu0 %v8933_v56, %s10412_s20 }
 0x377   :  { %4223 = vst.msk [vmem:[#allocation5 + $0x8] sm:$0x3] %vm4166_vm2, %v4221_v16  ;;  %v4331_v14 = vrot.slane %v4330_v43, 4  ;;  %v8937_v10 = vrot.slane %v4716_v49, 9  ;;  %v4794_v6 = vld [vmem:[#allocation4 + $0x1c] sm:$0x1]  ;;  %v4778_v54 = vsel %vm12946_vm12, %v4773_v62, %v4777_v11 }
 0x378   :  { %4625 = vst.msk [vmem:[#allocation5 + $0x28] sm:$0xc] %vm4281_vm5, %v4623_v31  ;;  %4827 = vst.msk [vmem:[#allocation5 + $0x40] sm:$0xc] %vm4281_vm5, %v4825_v50  ;;  %v8942_v37 = vrot.slane %v4793_v61, 9  ;;  %v4799_v1 = vrot.slane %v4794_v6, 5 }
 0x379   :  { %v4434_v52 = vld [vmem:[#allocation4 + $0xc] sm:$0x3]  ;;  %v4414_v2 = vld [vmem:[#allocation4 + $0x8] sm:$0xe]  ;;  %v4336_v3 = vsel %vm13097_vm10, %v4331_v14, %v4335_v19  ;;  %4721 = vst.msk [vmem:[#allocation5 + $0x40] sm:$0x3] %vm4166_vm2, %v8937_v10  ;;  %4691 = vrot.lane.b32.xlu1 %v4690_v34, %s10412_s20 }
 0x37a   :  { %4435 = vst.msk [vmem:[#allocation5 + $0x20] sm:$0x3] %vm4166_vm2, %v4434_v52  ;;  %v4416_v44 = vshrl.u32 %v4414_v2, 16  ;;  %v4419_v4 = vshll.u32 %v4414_v2, 16  ;;  %v4500_v18 = vld [vmem:[#allocation4 + $0xc] sm:$0x8]  ;;  %v4800_v55 = vsel %vm12991_vm0, %v8942_v37, %v4799_v1  ;;  %4661 = vrot.lane.b32.xlu0 %v4660_v40, %s10412_s20 }
 0x37b   :  { %v4501_v8 = vld [vmem:[#allocation4 + $0x10] sm:$0x1]  ;;  %4338 = vst.msk [vmem:[#allocation5 + $0x8] sm:$0xc] %vm4281_vm5, %v4336_v3  ;;  %v8928_v45 = vrot.slane %v4500_v18, 9  ;;  %v4873_v26 = vrot.slane %v4871_v59, 7 }
 0x37c   :  { %v4506_v12 = vrot.slane %v4501_v8, 5  ;;  %v4482_v5 = vld [vmem:[#allocation4 + $0xc] sm:$0x7]  ;;  %v4599_v15 = vld [vmem:[#allocation4 + $0x18] sm:$0x3]  ;;  %v4418_v41 = vrot.slane %v4416_v44, 5 }
 0x37d   :  { %4802 = vst.msk [vmem:[#allocation5 + $0x3c] sm:$0xc] %vm4281_vm5, %v4800_v55  ;;  %v4421_v24 = vrot.slane %v4419_v4, 6  ;;  %v4484_v46 = vshrl.u32 %v4482_v5, 16  ;;  %v4487_v25 = vshll.u32 %v4482_v5, 16  ;;  %4779 = vrot.lane.b32.xlu1 %v4778_v54, %s10412_s20  ;;  %v4874_v20 = vshll.u32 %v13050_v17, 16 }
 0x37e   :  { %4600 = vst.msk [vmem:[#allocation5 + $0x34] sm:$0x3] %vm4166_vm2, %v4599_v15  ;;  %v4579_v7 = vld [vmem:[#allocation4 + $0x14] sm:$0xe]  ;;  %v4507_v38 = vsel %vm12991_vm0, %v8928_v45, %v4506_v12  ;;  %v4665_v56 = vld [vmem:[#allocation4 + $0x18] sm:$0x8] }
 0x37f   :  { %v4581_v53 = vshrl.u32 %v4579_v7, 16  ;;  %v4584_v60 = vshll.u32 %v4579_v7, 16  ;;  %v4853_v35 = vld [vmem:[#allocation4 + $0x20] sm:$0x1]  ;;  %v4422_v23 = vor.u32 %v4421_v24, %v4418_v41  ;;  %4509 = vst.msk [vmem:[#allocation5 + $0x20] sm:$0xc] %vm4281_vm5, %v4507_v38  ;;  %v4876_v14 = vor.u32 %v4874_v20, %v4873_v26 }
 0x380   :  { %v4486_v27 = vrot.slane %v4484_v46, 6  ;;  %v4489_v29 = vrot.slane %v4487_v25, 7  ;;  %v4666_v58 = vld [vmem:[#allocation4 + $0x1c] sm:$0x1]  ;;  %v8935_v22 = vrot.slane %v4665_v56, 9  ;;  %v4858_v17 = vrot.slane %v4853_v35, 5 }
 0x381   :  { %v4583_v0 = vrot.slane %v4581_v53, 5  ;;  %v4586_v48 = vrot.slane %v4584_v60, 6  ;;  %v4671_v59 = vrot.slane %v4666_v58, 5  ;;  %v4647_v33 = vld [vmem:[#allocation4 + $0x18] sm:$0x7]  ;;  %v4423_v43 = vrot.slane %v4422_v23, 4  ;;  %4877 = vrot.lane.b32.xlu1 %v4876_v14, %s10412_s20 }
 0x382   :  { %v4852_v47 = vld [vmem:[#allocation4 + $0x1c] sm:$0x8]  ;;  %v4490_v39 = vor.u32 %v4489_v29, %v4486_v27  ;;  %v4649_v19 = vshrl.u32 %v4647_v33, 16  ;;  %v4652_v51 = vshll.u32 %v4647_v33, 16  ;;  %v4751_v36 = vld [vmem:[#allocation4 + $0x1c] sm:$0x3] }
 0x383   :  { %v4757_v31 = vld [vmem:[#allocation4 + $0x1c] sm:$0xc]  ;;  %v4587_v63 = vor.u32 %v4586_v48, %v4583_v0  ;;  %v4672_v21 = vsel %vm12991_vm0, %v8935_v22, %v4671_v59  ;;  %v4734_v50 = vld [vmem:[#allocation4 + $0x18] sm:$0x8]  ;;  %v4735_v49 = vld [vmem:[#allocation4 + $0x1c] sm:$0x3]  ;;  %4753 = vrot.lane.b32.xlu0 %v4751_v36, %s10412_s20 }
 0x384   :  { %v8940_v16 = vrot.slane %v4757_v31, 10  ;;  %4425 = vst.msk [vmem:[#allocation5 + $0x1c] sm:$0x3] %vm4166_vm2, %v4423_v43  ;;  %v4651_v9 = vrot.slane %v4649_v19, 6  ;;  %v4654_v40 = vrot.slane %v4652_v51, 7  ;;  %v4737_v61 = vshrl.u32 %v4734_v50, 16 }
 0x385   :  { %4492 = vst.msk [vmem:[#allocation5 + $0x1c] sm:$0xc] %vm4281_vm5, %v4490_v39  ;;  %4674 = vst.msk [vmem:[#allocation5 + $0x34] sm:$0xc] %vm4281_vm5, %v4672_v21  ;;  %v4742_v62 = vshrl.u32 %v4735_v49, 16  ;;  %v4588_v10 = vrot.slane %v4587_v63, 4 }
 0x386   :  { %v4864_v11 = vld [vmem:[#allocation4 + $0x20] sm:$0x6]  ;;  %4762 = vst.msk [vmem:[#allocation5 + $0x48] sm:$0x3] %vm4166_vm2, %v8940_v16  ;;  %v4834_v37 = vld [vmem:[#allocation4 + $0x1c] sm:$0xc]  ;;  %v4655_v1 = vor.u32 %v4654_v40, %v4651_v9 }
 0x387   :  { %v4866_v6 = vrot.slane %v4864_v11, 7  ;;  %v4744_v52 = vrot.slane %v4742_v62, 7  ;;  %v4745_v2 = vshll.u32 %v4735_v49, 16  ;;  %v4835_v3 = vld [vmem:[#allocation4 + $0x20] sm:$0x1]  ;;  %v4837_v44 = vshrl.u32 %v4834_v37, 16 }
 0x388   :  { %v8944_v4 = vrot.slane %v4852_v47, 9  ;;  %4590 = vst.msk [vmem:[#allocation5 + $0x30] sm:$0x3] %vm4166_vm2, %v4588_v10  ;;  %v4840_v18 = vshll.u32 %v4834_v37, 16  ;;  %v4846_v8 = vshll.u32 %v4835_v3, 16  ;;  %v8939_v34 = vrot.slane %v4737_v61, 11 }
 0x389   :  { %4868 = vst.msk [vmem:[#allocation5 + $0x48] sm:$0xc] %vm4281_vm5, %v4866_v6  ;;  %4657 = vst.msk [vmem:[#allocation5 + $0x30] sm:$0xc] %vm4281_vm5, %v4655_v1  ;;  %v4747_v55 = vor.u32 %v4745_v2, %v4744_v52  ;;  %v4839_v45 = vrot.slane %v4837_v44, 4  ;;  %vm4305_vm8 = vcmask 1043970  }
 0x38a   :  { %v4859_v12 = vsel %vm12991_vm0, %v8944_v4, %v4858_v17  ;;  %v4842_v5 = vrot.slane %v4840_v18, 5  ;;  %v4848_v24 = vrot.slane %v4846_v8, 5  ;;  %vm4181_vm11 = vcmask 1041920   ;;  %v10330_v23 = vld [vmem:[%s14087_s5 + $0xb8] sm:$0xff]   ;;  %v10331_v48 = vld [vmem:[%s14087_s5 + $0xf0] sm:$0xff]   ;;  %v10333_v47 = vld [vmem:[%s14087_s5 + $0xe8] sm:$0xff]  }
 0x38b   :  { %4860 = vrot.lane.b32.xlu0 %v4859_v12, %s10412_s20  ;;  %v4748_v15 = vsel %vm13083_vm9, %v8939_v34, %v4747_v55  ;;  %v10332_v59 = vld [vmem:[%s14087_s5 + $0xb0] sm:$0xff]   ;;  %v10334_v39 = vld [vmem:[%s14087_s5 + $0xa8] sm:$0xff]   ;;  %v10335_v51 = vld [vmem:[%s14087_s5 + $0xe0] sm:$0xff]  }
 0x38c   :  { %4750 = vst.msk [vmem:[#allocation5 + $0x44] sm:$0x3] %vm4166_vm2, %v4748_v15  ;;  %v4843_v41 = vor.u32 %v4842_v5, %v4839_v45  ;;  %v10336_v36 = vld [vmem:[%s14087_s5 + $0xa0] sm:$0xff]   ;;  %v10337_v63 = vld [vmem:[%s14087_s5 + $0xd8] sm:$0xff]   ;;  %v10339_v49 = vld [vmem:[%s14087_s5 + $0xd0] sm:$0xff]   ;;  %vm5419_vm2 = vcmask 516096  }
 0x38d   :  { %v10338_v16 = vld [vmem:[%s14087_s5 + $0x98] sm:$0xff]   ;;  %v10340_v40 = vld [vmem:[%s14087_s5 + $0x90] sm:$0xff]   ;;  %v10343_v62 = vld [vmem:[%s14087_s5 + $0xc8] sm:$0xff]  }
 0x38e   :  { %v4844_v46 = vrot.slane %v4843_v41, 4  ;;  %v10344_v11 = vld [vmem:[%s14087_s5 + $0x88] sm:$0xff]   ;;  %v10345_v52 = vld [vmem:[%s14087_s5 + $0xc0] sm:$0xff]   ;;  %vm13334_vm14 = vmand %vm5419_vm2, %vm5802_vm13 }
 0x38f   :  { %v10346_v3 = vld [vmem:[%s14087_s5 + $0x80] sm:$0xff]  }
 0x390   :  { %v4849_v25 = vsel %vm13097_vm10, %v4844_v46, %v4848_v24 }
 0x391   :  { %4851 = vst.msk [vmem:[#allocation5 + $0x44] sm:$0xc] %vm4281_vm5, %v4849_v25  ;;  %vm13250_vm5 = vmand %vm5419_vm2, %vm4206_vm3 }
 0x3b1   :  { %v4315_v7 = vpop.permute.xlu1 %4314 }
 0x3b2   :  { %4317 = vst.msk [vmem:[#allocation5 + $0x4] sm:$0xc] %vm4305_vm8, %v4315_v7 }
 0x3b5   :  { %v4201_v57 = vpop.permute.xlu0 %4200 }
 0x3b6   :  { %4203 = vst.msk [vmem:[#allocation5 + $0x4] sm:$0x3] %vm4181_vm11, %v4201_v57 }
 0x3b8   :  { %v4411_v42 = vpop.permute.xlu1 %4410 }
 0x3b9   :  { %4413 = vst.msk [vmem:[#allocation5 + $0x18] sm:$0x3] %vm4181_vm11, %v4411_v42  ;;  %v4179_v26 = vpop.permute.xlu0 %4178 }
 0x3ba   :  { %4182 = vst.msk [vmem:[#allocation5] sm:$0x3] %vm4181_vm11, %v4179_v26 }
 0x3bc   :  { %v4303_v38 = vpop.permute.xlu1 %4302 }
 0x3bd   :  { %4306 = vst.msk [vmem:[#allocation5] sm:$0xc] %vm4305_vm8, %v4303_v38 }
 0x3c0   :  { %v4393_v32 = vpop.permute.xlu0 %4392  ;;  %v4479_v53 = vpop.permute.xlu1 %4478 }
 0x3c1   :  { %4395 = vst.msk [vmem:[#allocation5 + $0x14] sm:$0x3] %vm4181_vm11, %v4393_v32 }
 0x3c2   :  { %4481 = vst.msk [vmem:[#allocation5 + $0x18] sm:$0xc] %vm4305_vm8, %v4479_v53  ;;  %v8945_v53 = vld [vmem:[%s14088_s6] ss:$0 sm:$0xff] }
 0x3c4   :  { %v4470_v60 = vpop.permute.xlu0 %4469 }
 0x3c5   :  { %4472 = vst.msk [vmem:[#allocation5 + $0x14] sm:$0xc] %vm4305_vm8, %v4470_v60  ;;  %v4256_v56 = vpop.permute.xlu1 %4255 }
 0x3c6   :  { %4258 = vst.msk [vmem:[#allocation5 + $0xc] sm:$0x3] %vm4181_vm11, %v4256_v56 }
 0x3c8   :  { %v4227_v54 = vpop.permute.xlu0 %4226 }
 0x3c9   :  { %4229 = vst.msk [vmem:[#allocation5 + $0x8] sm:$0x3] %vm4181_vm11, %v4227_v54  ;;  %v4365_v35 = vpop.permute.xlu1 %4364  ;;  %v10328_v58 = vld [vmem:[#allocation5 + $0x4] ss:$20 sps:$4 sm:$0xff]  }
 0x3ca   :  { %4367 = vst.msk [vmem:[#allocation5 + $0xc] sm:$0xc] %vm4305_vm8, %v4365_v35  ;;  %5279 = vmatprep.mubr.bf16.mxu1 %v10328_v58 }
 0x3cc   :  { %v4348_v27 = vpop.permute.xlu0 %4347  ;;  %v10326_v29 = vld [vmem:[#allocation5] ss:$20 sps:$4 sm:$0xff]  }
 0x3cd   :  { %4350 = vst.msk [vmem:[#allocation5 + $0x8] sm:$0xc] %vm4305_vm8, %v4348_v27  ;;  %v4576_v0 = vpop.permute.xlu1 %4575  ;;  %5280 = vmatmul.mubr.bf16.vlgmr.msra.gmra.mxu1 %v10326_v29 }
 0x3ce   :  { %4578 = vst.msk [vmem:[#allocation5 + $0x2c] sm:$0x3] %vm4181_vm11, %v4576_v0  ;;  %9884 = vmatpush3.bf16.msra.mxu1 %v10330_v23 }
 0x3cf   :  { %9885 = vmatprep.subr.bf16.mxu1 %v10331_v48 }
 0x3d0   :  { %v4558_v22 = vpop.permute.xlu0 %4557 }
 0x3d1   :  { %4560 = vst.msk [vmem:[#allocation5 + $0x28] sm:$0x3] %vm4181_vm11, %v4558_v22  ;;  %v4644_v33 = vpop.permute.xlu1 %4643 }
 0x3d2   :  { %4646 = vst.msk [vmem:[#allocation5 + $0x2c] sm:$0xc] %vm4305_vm8, %v4644_v33  ;;  %9886 = vmatpush3.bf16.msra.mxu1 %v10332_v59 }
 0x3d3   :  { %9887 = vmatprep.subr.bf16.mxu1 %v10333_v47 }
 0x3d4   :  { %v4635_v43 = vpop.permute.xlu0 %4634 }
 0x3d5   :  { %4637 = vst.msk [vmem:[#allocation5 + $0x28] sm:$0xc] %vm4305_vm8, %v4635_v43  ;;  %v4831_v19 = vpop.permute.xlu1 %4830 }
 0x3d6   :  { %4833 = vst.msk [vmem:[#allocation5 + $0x40] sm:$0xc] %vm4305_vm8, %v4831_v19  ;;  %9888 = vmatpush3.bf16.msra.mxu1 %v10334_v39  ;;  %v10413_v39 = vmov 1966171168  }
 0x3d7   :  { %9889 = vmatprep.subr.bf16.mxu1 %v10335_v51  ;;  %v5434_v19 = vunpack.c.l.s4 %v10413_v39  ;;  %v5436_v51 = vlaneseq  ;;  %v5570_v39 = vld [vmem:[#allocation7 + $0x3] sm:$0x1] }
 0x3d8   :  { %v4713_v31 = vpop.permute.xlu0 %4712 }
 0x3d9   :  { %4715 = vst.msk [vmem:[#allocation5 + $0x3c] sm:$0x3] %vm4181_vm11, %v4713_v31  ;;  %v4731_v20 = vpop.permute.xlu1 %4730 }
 0x3da   :  { %4733 = vst.msk [vmem:[#allocation5 + $0x40] sm:$0x3] %vm4181_vm11, %v4731_v20  ;;  %9890 = vmatpush3.bf16.msra.mxu1 %v10336_v36 }
 0x3db   :  { %9891 = vmatprep.subr.bf16.mxu1 %v10337_v63 }
 0x3dc   :  { %v4820_v21 = vpop.permute.xlu0 %4819  ;;  %v4889_v17 = vld [vmem:[#allocation5 + $0x28] sm:$0xff] }
 0x3dd   :  { %4822 = vst.msk [vmem:[#allocation5 + $0x3c] sm:$0xc] %vm4305_vm8, %v4820_v21  ;;  %v4447_v50 = vpop.permute.xlu1 %4446  ;;  %v5435_v21 = vunpack.c.0.s8 %v5434_v19  ;;  %v5651_v19 = vld [vmem:[#allocation7 + $0x5] sm:$0x1] }
 0x3de   :  { %4449 = vst.msk [vmem:[#allocation5 + $0x20] sm:$0x3] %vm4181_vm11, %v4447_v50  ;;  %9892 = vmatpush3.bf16.msra.mxu1 %v10338_v16  ;;  %v13242_v16 = vshrl.u32 %v5436_v51, 7 }
 0x3df   :  { %9893 = vmatprep.subr.bf16.mxu1 %v10339_v49 }
 0x3e0   :  { %v4431_v9 = vpop.permute.xlu0 %4430 }
 0x3e1   :  { %4433 = vst.msk [vmem:[#allocation5 + $0x1c] sm:$0x3] %vm4181_vm11, %v4431_v9  ;;  %v4527_v61 = vpop.permute.xlu1 %4526  ;;  %v10341_v6 = vld [vmem:[#allocation5 + $0x2c] ss:$20 sps:$4 sm:$0xff]  }
 0x3e2   :  { %4529 = vst.msk [vmem:[#allocation5 + $0x20] sm:$0xc] %vm4305_vm8, %v4527_v61  ;;  %9894 = vmatpush3.bf16.msra.mxu1 %v10340_v40  ;;  %5287 = vmatprep.mubr.bf16.mxu1 %v10341_v6  ;;  %v13246_v40 = vsub.s32 %v5435_v21, %v13242_v16 }
 0x3e3   :  { %9895 = vmatprep.subr.bf16.mxu1 %v10343_v62 }
 0x3e4   :  { %v4497_v14 = vpop.permute.xlu0 %4496  ;;  %v4892_v10 = vld [vmem:[#allocation5 + $0x3c] sm:$0xff] }
 0x3e5   :  { %4499 = vst.msk [vmem:[#allocation5 + $0x1c] sm:$0xc] %vm4305_vm8, %v4497_v14  ;;  %v8951_v1 = vcombine.low %v4889_v17, %v4892_v10  ;;  %v5421_v14 = vld [vmem:[#allocation7] sm:$0x1] }
 0x3e6   :  { %9896 = vmatpush3.bf16.msra.mxu1 %v10344_v11 }
 0x3e7   :  { %v4612_v37 = vpop.permute.xlu1 %4611  ;;  %5288 = vmatmul.mubr.bf16.gmra.mxu1 %v8951_v1  ;;  %9897 = vmatprep.subr.bf16.mxu1 %v10345_v52 }
 0x3e8   :  { %4614 = vst.msk [vmem:[#allocation5 + $0x34] sm:$0x3] %vm4181_vm11, %v4612_v37  ;;  %v4596_v2 = vpop.permute.xlu0 %4595 }
 0x3e9   :  { %4598 = vst.msk [vmem:[#allocation5 + $0x30] sm:$0x3] %vm4181_vm11, %v4596_v2  ;;  %v10349_v8 = vld [vmem:[#allocation5 + $0xc] ss:$20 sps:$4 sm:$0xff]  }
 0x3ea   :  { %9898 = vmatpush3.bf16.msra.mxu1 %v10346_v3  ;;  %5328 = vmatprep.mubr.bf16.mxu1 %v10349_v8 }
 0x3eb   :  { %v4692_v44 = vpop.permute.xlu1 %4691 }
 0x3ec   :  { %4694 = vst.msk [vmem:[#allocation5 + $0x34] sm:$0xc] %vm4305_vm8, %v4692_v44  ;;  %v4662_v4 = vpop.permute.xlu0 %4661  ;;  %v10347_v18 = vld [vmem:[#allocation5 + $0x8] ss:$20 sps:$4 sm:$0xff]  }
 0x3ed   :  { %4664 = vst.msk [vmem:[#allocation5 + $0x30] sm:$0xc] %vm4305_vm8, %v4662_v4 }
 0x3ef   :  { %v4780_v34 = vpop.permute.xlu1 %4779  ;;  %5329 = vmatmul.mubr.bf16.vlgmr.msra.gmra.mxu1 %v10347_v18 }
 0x3f0   :  { %4782 = vst.msk [vmem:[#allocation5 + $0x48] sm:$0x3] %vm4181_vm11, %v4780_v34 }
 0x3f3   :  { %v4878_v45 = vpop.permute.xlu1 %4877 }
 0x3f4   :  { %4880 = vst.msk [vmem:[#allocation5 + $0x48] sm:$0xc] %vm4305_vm8, %v4878_v45 }
 0x3f5   :  { %v4754_v55 = vpop.permute.xlu0 %4753 }
 0x3f6   :  { %4756 = vst.msk [vmem:[#allocation5 + $0x44] sm:$0x3] %vm4181_vm11, %v4754_v55  ;;  %v5471_v55 = vld [vmem:[#allocation7 + $0x1] sm:$0x1] }
 0x3fb   :  { %v10352_v15 = vld [vmem:[#allocation5 + $0x34] ss:$20 sps:$4 sm:$0xff]  }
 0x3fc   :  { %5336 = vmatprep.mubr.bf16.mxu1 %v10352_v15 }
 0x3fd   :  { %v4861_v12 = vpop.permute.xlu0 %4860 }
 0x3fe   :  { %4863 = vst.msk [vmem:[#allocation5 + $0x44] sm:$0xc] %vm4305_vm8, %v4861_v12 }
 0x405   :  { %v10350_v5 = vld [vmem:[#allocation5 + $0x30] ss:$20 sps:$4 sm:$0xff]  }
 0x406   :  { %5337 = vmatmul.mubr.bf16.gmra.mxu1 %v10350_v5 }
 0x427   :  { %v10007_v26 = vpop.f32.mrf.mxu0 }
 0x429   :  { %v5379_v56 = vpop.f32.mrf.mxu0 }
 0x42b   :  { %v13239_v0 = vpop.f32.mrf.mxu0 }
 0x42d   :  { %v5382_v31 = vpop.f32.mrf.mxu0 }
 0x48d   :  { %v9871_v41 = vpop.f32.mrf.mxu1 }
 0x48f   :  { %v9872_v24 = vpop.f32.mrf.mxu1 }
 0x490   :  { %v9873_v32 = vadd.f32 %v9872_v24, %v9871_v41 }
 0x491   :  { %v9874_v46 = vpop.f32.mrf.mxu1 }
 0x492   :  { %v5282_v35 = vadd.f32 %v9873_v32, %v8945_v53 }
 0x493   :  { %v9875_v25 = vpop.f32.mrf.mxu1 }
 0x494   :  { %v9876_v23 = vadd.f32 %v9875_v25, %v9874_v46 }
 0x496   :  { %v5285_v22 = vadd.f32 %v9876_v23, %v8945_v53 }
 0x4a7   :  { %v9877_v7 = vpop.f32.mrf.mxu1 }
 0x4a9   :  { %v9878_v57 = vpop.f32.mrf.mxu1 }
 0x4aa   :  { %v9879_v50 = vadd.f32 %v9878_v57, %v9877_v7  ;;  %v5520_v7 = vld [vmem:[#allocation7 + $0x2] sm:$0x1] }
 0x4ab   :  { %v9880_v42 = vpop.f32.mrf.mxu1 }
 0x4ac   :  { %v5290_v17 = vadd.f32 %v9879_v50, %v8945_v53 }
 0x4ad   :  { %v9881_v38 = vpop.f32.mrf.mxu1 }
 0x4ae   :  { %v9882_v61 = vadd.f32 %v9881_v38, %v9880_v42  ;;  %v5603_v42 = vld [vmem:[#allocation7 + $0x4] sm:$0x1] }
 0x4af   :  { %v9899_v60 = vpop.f32.mrf.mxu1 }
 0x4b0   :  { %v5293_v4 = vadd.f32 %v9882_v61, %v8945_v53 }
 0x4b1   :  { %v9900_v54 = vpop.f32.mrf.mxu1 }
 0x4b2   :  { %v9901_v27 = vadd.f32 %v9900_v54, %v9899_v60 }
 0x4b3   :  { %v9902_v29 = vpop.f32.mrf.mxu1 }
 0x4b4   :  { %v5331_v58 = vadd.f32 %v9901_v27, %v5282_v35 }
 0x4b5   :  { %v9903_v48 = vpop.f32.mrf.mxu1 }
 0x4b6   :  { %v5380_v59 = vadd.f32 %v5379_v56, %v5331_v58  ;;  %v9904_v33 = vadd.f32 %v9903_v48, %v9902_v29 }
 0x4b8   :  { %v5394_v47 = vmax.f32 %v5380_v59, 0.0  ;;  %v5334_v43 = vadd.f32 %v9904_v33, %v5285_v22 }
 0x4ba   :  { %v9351_v36 = vpack.c.bf16 %v5394_v47, %v5394_v47  ;;  %v5383_v20 = vadd.f32 %v5382_v31, %v5334_v43 }
 0x4bc   :  { %5414 = vst.msk [vmem:[#allocation6] sm:$0xf] %vm4155_vm1, %v9351_v36  ;;  %v5395_v63 = vmax.f32 %v5383_v20, 0.0  ;;  %v5700_v36 = vld [vmem:[#allocation7 + $0x6] sm:$0x1] }
 0x4be   :  { %v9352_v49 = vpack.c.bf16 %v5395_v63, %v5395_v63 }
 0x4c0   :  { %5415 = vst.msk [vmem:[#allocation6 + $0x4] sm:$0xf] %vm4155_vm1, %v9352_v49 }
 0x4c3   :  { %v8998_v37 = vld.sshfl [vmem:[#allocation6] sm:$0x1 pattern:$0x75316420] }
 0x4c4   :  { %v5418_v1 = vld [vmem:[#allocation6] sm:$0x1]  ;;  %v5439_v2 = vrot.slane %v8998_v37, %v13246_v40  ;;  %v9001_v3 = vld.sshfl [vmem:[#allocation6] sm:$0x10 pattern:$0x75316420] }
 0x4c5   :  { %v5422_v44 = vsel %vm13250_vm5, %v5418_v1, %v5421_v14  ;;  %v5483_v8 = vcombine.high %v9001_v3, %v9001_v3  ;;  %v9004_v34 = vld.sshfl [vmem:[#allocation6] sm:$0x2 pattern:$0x75316420] }
 0x4c6   :  { %v9905_v9 = vpop.f32.mrf.mxu1  ;;  %5423 = vst [vmem:[#allocation7] sm:$0x1] %v5422_v44  ;;  %v5441_v5 = vshrl.u32 %v5439_v2, 16  ;;  %v5538_v15 = vrot.slane %v9004_v34, %v13246_v40 }
 0x4c7   :  { %v9007_v41 = vld.sshfl [vmem:[#allocation6] sm:$0x20 pattern:$0x75316420]  ;;  %v5490_v24 = vrot.slane %v5483_v8, %v13246_v40  ;;  %v5602_v57 = vld [vmem:[#allocation6 + $0x4] sm:$0x1] }
 0x4c8   :  { %v9906_v62 = vpop.f32.mrf.mxu1  ;;  %v5582_v46 = vcombine.high %v9007_v41, %v9007_v41  ;;  %v9009_v25 = vld.sshfl [vmem:[#allocation6 + $0x4] sm:$0x1 pattern:$0x75316420]  ;;  %5445 = vrot.lane.b32.xlu0 %v5441_v5, %s10412_s20  ;;  %v5539_v53 = vcombine.high %v5538_v15, %v5538_v15  ;;  %v5604_v31 = vsel %vm13250_vm5, %v5602_v57, %v5603_v42 }
 0x4c9   :  { %v9907_v10 = vadd.f32 %v9906_v62, %v9905_v9  ;;  %v9012_v60 = vld.sshfl [vmem:[#allocation6 + $0x4] sm:$0x10 pattern:$0x75316420]  ;;  %v5492_v56 = vshrl.u32 %v5490_v24, 16  ;;  %v5472_v23 = vsel %vm13250_vm5, %v5490_v24, %v5471_v55  ;;  %v5621_v48 = vrot.slane %v9009_v25, %v13246_v40 }
 0x4ca   :  { %v9908_v6 = vpop.f32.mrf.mxu1  ;;  %v5663_v54 = vcombine.high %v9012_v60, %v9012_v60  ;;  %v9015_v35 = vld.sshfl [vmem:[#allocation6 + $0x4] sm:$0x2 pattern:$0x75316420]  ;;  %v5541_v58 = vshrl.u32 %v5539_v53, 16 }
 0x4cb   :  { %v5339_v52 = vadd.f32 %v9907_v10, %v5290_v17  ;;  %v9018_v22 = vld.sshfl [vmem:[#allocation6 + $0x4] sm:$0x20 pattern:$0x75316420]  ;;  %5473 = vst [vmem:[#allocation7 + $0x1] sm:$0x1] %v5472_v23  ;;  %5496 = vrot.lane.b32.xlu1 %v5492_v56, %s10412_s20  ;;  %v5718_v47 = vrot.slane %v9015_v35, %v13246_v40 }
 0x4cc   :  { %v9909_v18 = vpop.f32.mrf.mxu1  ;;  %v5670_v33 = vrot.slane %v5663_v54, %v13246_v40  ;;  %v5762_v43 = vcombine.high %v9018_v22, %v9018_v22  ;;  %5545 = vrot.lane.b32.xlu0 %v5541_v58, %s10412_s20  ;;  %5605 = vst [vmem:[#allocation7 + $0x4] sm:$0x1] %v5604_v31  ;;  %v5623_v49 = vshrl.u32 %v5621_v48, 16  ;;  %v5750_v62 = vld [vmem:[#allocation7 + $0x7] sm:$0x1] }
 0x4cd   :  { %v5388_v45 = vadd.f32 %v10007_v26, %v5339_v52  ;;  %v9910_v12 = vadd.f32 %v9909_v18, %v9908_v6  ;;  %v5589_v26 = vrot.slane %v5582_v46, %v13246_v40  ;;  %v5719_v63 = vcombine.high %v5718_v47, %v5718_v47 }
 0x4ce   :  { %v5769_v21 = vrot.slane %v5762_v43, %v13246_v40  ;;  %v5652_v61 = vsel %vm13250_vm5, %v5670_v33, %v5651_v19  ;;  %v5672_v10 = vshrl.u32 %v5670_v33, 16 }
 0x4cf   :  { %v5396_v38 = vmax.f32 %v5388_v45, 0.0  ;;  %v5342_v32 = vadd.f32 %v9910_v12, %v5293_v4  ;;  %v5590_v59 = vcombine.high %v5589_v26, %v5589_v26  ;;  %5653 = vst [vmem:[#allocation7 + $0x5] sm:$0x1] %v5652_v61  ;;  %v5701_v17 = vsel %vm13250_vm5, %v5719_v63, %v5700_v36  ;;  %v5450_v26 = vld [vmem:[#allocation7] sm:$0x1] }
 0x4d0   :  { %v5770_v14 = vcombine.high %v5769_v21, %v5769_v21  ;;  %5627 = vrot.lane.b32.xlu0 %v5623_v49, %s10412_s20  ;;  %5702 = vst [vmem:[#allocation7 + $0x6] sm:$0x1] %v5701_v17  ;;  %v5721_v37 = vshrl.u32 %v5719_v63, 16 }
 0x4d1   :  { %v9353_v27 = vpack.c.bf16 %v5396_v38, %v5396_v38  ;;  %v5391_v29 = vadd.f32 %v13239_v0, %v5342_v32  ;;  %v5521_v0 = vsel %vm13250_vm5, %v5539_v53, %v5520_v7  ;;  %v5592_v20 = vshrl.u32 %v5590_v59, 16 }
 0x4d2   :  { %5522 = vst [vmem:[#allocation7 + $0x2] sm:$0x1] %v5521_v0  ;;  %v5571_v9 = vsel %vm13250_vm5, %v5590_v59, %v5570_v39  ;;  %v5751_v6 = vsel %vm13250_vm5, %v5770_v14, %v5750_v62  ;;  %v5772_v2 = vshrl.u32 %v5770_v14, 16  ;;  %v5499_v23 = vld [vmem:[#allocation7 + $0x1] sm:$0x1] }
 0x4d3   :  { %5416 = vst.msk [vmem:[#allocation6 + $0x8] sm:$0xf] %vm4155_vm1, %v9353_v27  ;;  %v5397_v51 = vmax.f32 %v5391_v29, 0.0  ;;  %5596 = vrot.lane.b32.xlu1 %v5592_v20, %s10412_s20  ;;  %5572 = vst [vmem:[#allocation7 + $0x3] sm:$0x1] %v5571_v9 }
 0x4d4   :  { %5752 = vst [vmem:[#allocation7 + $0x7] sm:$0x1] %v5751_v6  ;;  %5725 = vrot.lane.b32.xlu0 %v5721_v37, %s10412_s20  ;;  %v5630_v39 = vld [vmem:[#allocation7 + $0x4] sm:$0x1] }
 0x4d5   :  { %v9354_v50 = vpack.c.bf16 %v5397_v51, %v5397_v51 }
 0x4d6   :  { %v5679_v20 = vld [vmem:[#allocation7 + $0x5] sm:$0x1] }
 0x4d7   :  { %5417 = vst.msk [vmem:[#allocation6 + $0xc] sm:$0xf] %vm4155_vm1, %v9354_v50  ;;  %5676 = vrot.lane.b32.xlu1 %v5672_v10, %s10412_s20  ;;  %vm5448_vm1 = vcmask 1040896   ;;  %v5728_v9 = vld [vmem:[#allocation7 + $0x6] sm:$0x1] }
 0x4d8   :  { %vm13322_vm12 = vmand %vm5448_vm1, %vm4206_vm3 }
 0x4d9   :  { %v5548_v29 = vld [vmem:[#allocation7 + $0x2] sm:$0x1]  ;;  %vm13358_vm15 = vmand %vm5448_vm1, %vm5802_vm13 }
 0x4da   :  { %v9021_v1 = vld.sshfl [vmem:[#allocation6 + $0x8] sm:$0x1 pattern:$0x75316420]  ;;  %v5599_v59 = vld [vmem:[#allocation7 + $0x3] sm:$0x1] }
 0x4db   :  { %v9023_v52 = vld.sshfl [vmem:[#allocation6 + $0x8] sm:$0x10 pattern:$0x75316420]  ;;  %v5822_v4 = vrot.slane %v9021_v1, %v13246_v40  ;;  %5776 = vrot.lane.b32.xlu1 %v5772_v2, %s10412_s20  ;;  %v5779_v37 = vld [vmem:[#allocation7 + $0x7] sm:$0x1] }
 0x4dc   :  { %v5863_v3 = vcombine.high %v9023_v52, %v9023_v52  ;;  %v9025_v44 = vld.sshfl [vmem:[#allocation6 + $0x8] sm:$0x2 pattern:$0x75316420] }
 0x4dd   :  { %v5916_v18 = vrot.slane %v9025_v44, %v13246_v40  ;;  %v9027_v8 = vld.sshfl [vmem:[#allocation6 + $0x8] sm:$0x20 pattern:$0x75316420]  ;;  %5823 = vrot.lane.b32.xlu0 %v5822_v4, %s10412_s20  ;;  %v5799_v47 = vshll.u32 %v5822_v4, 16 }
 0x4de   :  { %v5958_v11 = vcombine.high %v9027_v8, %v9027_v8  ;;  %v5870_v34 = vrot.slane %v5863_v3, %v13246_v40  ;;  %v9029_v45 = vld.sshfl [vmem:[#allocation6 + $0xc] sm:$0x1 pattern:$0x75316420] }
 0x4df   :  { %v9031_v12 = vld.sshfl [vmem:[#allocation6 + $0xc] sm:$0x10 pattern:$0x75316420]  ;;  %v5917_v5 = vcombine.high %v5916_v18, %v5916_v18  ;;  %v13299_v7 = vrot.slane %v9029_v45, %v13246_v40 }
 0x4e0   :  { %v5965_v55 = vrot.slane %v5958_v11, %v13246_v40  ;;  %v9035_v15 = vld.sshfl [vmem:[#allocation6 + $0xc] sm:$0x20 pattern:$0x75316420]  ;;  %5871 = vrot.lane.b32.xlu1 %v5870_v34, %s10412_s20  ;;  %v6051_v46 = vcombine.high %v9031_v12, %v9031_v12  ;;  %v5848_v36 = vshll.u32 %v5870_v34, 16 }
 0x4e1   :  { %v9033_v41 = vld.sshfl [vmem:[#allocation6 + $0xc] sm:$0x2 pattern:$0x75316420]  ;;  %5918 = vrot.lane.b32.xlu0 %v5917_v5, %s10412_s20  ;;  %v6146_v25 = vcombine.high %v9035_v15, %v9035_v15  ;;  %v5895_v50 = vshll.u32 %v5917_v5, 16  ;;  %v5990_v2 = vshll.u32 %v13299_v7, 16 }
 0x4e2   :  { %v13296_v24 = vcombine.high %v5965_v55, %v5965_v55  ;;  %v6104_v57 = vrot.slane %v9033_v41, %v13246_v40  ;;  %v13307_v42 = vrot.slane %v6051_v46, %v13246_v40 }
 0x4e3   :  { %v6153_v38 = vrot.slane %v6146_v25, %v13246_v40 }
 0x4e4   :  { %5967 = vrot.lane.b32.xlu1 %v13296_v24, %s10412_s20  ;;  %v13310_v32 = vcombine.high %v6104_v57, %v6104_v57  ;;  %v5943_v6 = vshll.u32 %v13296_v24, 16  ;;  %v6036_v55 = vshll.u32 %v13307_v42, 16 }
 0x4e5   :  { %6012 = vrot.lane.b32.xlu0 %v13299_v7, %s10412_s20  ;;  %v13316_v53 = vcombine.high %v6153_v38, %v6153_v38 }
 0x4e6   :  { %v6083_v15 = vshll.u32 %v13310_v32, 16 }
 0x4e7   :  { %v6131_v38 = vshll.u32 %v13316_v53, 16 }
 0x4e8   :  { %6059 = vrot.lane.b32.xlu1 %v13307_v42, %s10412_s20 }
 0x4e9   :  { %6106 = vrot.lane.b32.xlu0 %v13310_v32, %s10412_s20 }
 0x4ec   :  { %6155 = vrot.lane.b32.xlu1 %v13316_v53, %s10412_s20 }
 0x53a   :  { %v5446_v56 = vpop.permute.xlu0 %5445 }
 0x53b   :  { %v5451_v54 = vsel %vm13322_vm12, %v5446_v56, %v5450_v26 }
 0x53c   :  { %5452 = vst [vmem:[#allocation7] sm:$0x1] %v5451_v54 }
 0x53d   :  { %v5497_v35 = vpop.permute.xlu1 %5496 }
 0x53e   :  { %v5500_v27 = vsel %vm13322_vm12, %v5497_v35, %v5499_v23  ;;  %v5546_v58 = vpop.permute.xlu0 %5545 }
 0x53f   :  { %5501 = vst [vmem:[#allocation7 + $0x1] sm:$0x1] %v5500_v27  ;;  %v5549_v48 = vsel %vm13322_vm12, %v5546_v58, %v5548_v29 }
 0x540   :  { %5550 = vst [vmem:[#allocation7 + $0x2] sm:$0x1] %v5549_v48 }
 0x542   :  { %v5628_v19 = vpop.permute.xlu0 %5627 }
 0x543   :  { %v5804_v51 = vld [vmem:[#allocation7] sm:$0x1]  ;;  %v5631_v0 = vsel %vm13322_vm12, %v5628_v19, %v5630_v39  ;;  %v9065_v19 = vcombine.high %v10618_v28, %v10628_v30 }
 0x544   :  { %v5805_v31 = vsel %vm13334_vm14, %v5799_v47, %v5804_v51  ;;  %5632 = vst [vmem:[#allocation7 + $0x4] sm:$0x1] %v5631_v0  ;;  %v14638_v51 = vld [vmem:[#allocation105_spill] sm:$0xff] }
 0x545   :  { %v5597_v33 = vpop.permute.xlu1 %5596  ;;  %5806 = vst [vmem:[#allocation7] sm:$0x1] %v5805_v31  ;;  %v9129_v0 = vcombine.high %v14638_v51, %v10948_v13  ;;  %v9064_v31 = vcombine.low %v10618_v28, %v10628_v30 }
 0x546   :  { %v5600_v43 = vsel %vm13322_vm12, %v5597_v33, %v5599_v59  ;;  %v5851_v21 = vld [vmem:[#allocation7 + $0x1] sm:$0x1]  ;;  %v5726_v61 = vpop.permute.xlu0 %5725 }
 0x547   :  { %5601 = vst [vmem:[#allocation7 + $0x3] sm:$0x1] %v5600_v43  ;;  %v5852_v62 = vsel %vm13334_vm14, %v5848_v36, %v5851_v21  ;;  %v5898_v14 = vld [vmem:[#allocation7 + $0x2] sm:$0x1]  ;;  %v5729_v17 = vsel %vm13322_vm12, %v5726_v61, %v5728_v9  ;;  %v9128_v36 = vcombine.low %v14638_v51, %v10948_v13 }
 0x548   :  { %5853 = vst [vmem:[#allocation7 + $0x1] sm:$0x1] %v5852_v62  ;;  %v5899_v10 = vsel %vm13334_vm14, %v5895_v50, %v5898_v14  ;;  %5730 = vst [vmem:[#allocation7 + $0x6] sm:$0x1] %v5729_v17 }
 0x549   :  { %v5677_v63 = vpop.permute.xlu1 %5676  ;;  %5900 = vst [vmem:[#allocation7 + $0x2] sm:$0x1] %v5899_v10 }
 0x54a   :  { %v5680_v49 = vsel %vm13322_vm12, %v5677_v63, %v5679_v20 }
 0x54b   :  { %5681 = vst [vmem:[#allocation7 + $0x5] sm:$0x1] %v5680_v49  ;;  %v5993_v8 = vld [vmem:[#allocation7 + $0x4] sm:$0x1] }
 0x54c   :  { %v5994_v11 = vsel %vm13334_vm14, %v5990_v2, %v5993_v8  ;;  %v5827_v34 = vld [vmem:[#allocation7] sm:$0x1] }
 0x54d   :  { %v5777_v1 = vpop.permute.xlu1 %5776  ;;  %5995 = vst [vmem:[#allocation7 + $0x4] sm:$0x1] %v5994_v11 }
 0x54e   :  { %v5946_v52 = vld [vmem:[#allocation7 + $0x3] sm:$0x1]  ;;  %v5780_v3 = vsel %vm13322_vm12, %v5777_v1, %v5779_v37 }
 0x54f   :  { %v5824_v4 = vpop.permute.xlu0 %5823  ;;  %v5947_v18 = vsel %vm13334_vm14, %v5943_v6, %v5946_v52  ;;  %5781 = vst [vmem:[#allocation7 + $0x7] sm:$0x1] %v5780_v3  ;;  %v6086_v46 = vld [vmem:[#allocation7 + $0x6] sm:$0x1]  ;;  %v5874_v25 = vld [vmem:[#allocation7 + $0x1] sm:$0x1] }
 0x550   :  { %5948 = vst [vmem:[#allocation7 + $0x3] sm:$0x1] %v5947_v18  ;;  %v5828_v45 = vsel %vm13358_vm15, %v5824_v4, %v5827_v34  ;;  %v6087_v7 = vsel %vm13334_vm14, %v6083_v15, %v6086_v46  ;;  %v5921_v42 = vld [vmem:[#allocation7 + $0x2] sm:$0x1] }
 0x551   :  { %5829 = vst [vmem:[#allocation7] sm:$0x1] %v5828_v45  ;;  %6088 = vst [vmem:[#allocation7 + $0x6] sm:$0x1] %v6087_v7 }
 0x552   :  { %v5872_v12 = vpop.permute.xlu1 %5871  ;;  %v6039_v5 = vld [vmem:[#allocation7 + $0x5] sm:$0x1] }
 0x553   :  { %v5919_v41 = vpop.permute.xlu0 %5918  ;;  %v6040_v24 = vsel %vm13334_vm14, %v6036_v55, %v6039_v5  ;;  %v5875_v57 = vsel %vm13358_vm15, %v5872_v12, %v5874_v25 }
 0x554   :  { %6041 = vst [vmem:[#allocation7 + $0x5] sm:$0x1] %v6040_v24  ;;  %5876 = vst [vmem:[#allocation7 + $0x1] sm:$0x1] %v5875_v57  ;;  %v5922_v32 = vsel %vm13358_vm15, %v5919_v41, %v5921_v42  ;;  %v6015_v27 = vld [vmem:[#allocation7 + $0x4] sm:$0x1] }
 0x555   :  { %5923 = vst [vmem:[#allocation7 + $0x2] sm:$0x1] %v5922_v32 }
 0x556   :  { %v5968_v60 = vpop.permute.xlu1 %5967  ;;  %v6134_v56 = vld [vmem:[#allocation7 + $0x7] sm:$0x1] }
 0x557   :  { %v6013_v26 = vpop.permute.xlu0 %6012  ;;  %v6135_v54 = vsel %vm13334_vm14, %v6131_v38, %v6134_v56  ;;  %v5970_v35 = vld [vmem:[#allocation7 + $0x3] sm:$0x1] }
 0x558   :  { %6136 = vst [vmem:[#allocation7 + $0x7] sm:$0x1] %v6135_v54  ;;  %v5971_v23 = vsel %vm13358_vm15, %v5968_v60, %v5970_v35  ;;  %v6016_v53 = vsel %vm13358_vm15, %v6013_v26, %v6015_v27  ;;  %v6109_v59 = vld [vmem:[#allocation7 + $0x6] sm:$0x1] }
 0x559   :  { %5972 = vst [vmem:[#allocation7 + $0x3] sm:$0x1] %v5971_v23  ;;  %6017 = vst [vmem:[#allocation7 + $0x4] sm:$0x1] %v6016_v53 }
 0x55a   :  { %v6060_v29 = vpop.permute.xlu1 %6059 }
 0x55b   :  { %v6062_v58 = vld [vmem:[#allocation7 + $0x5] sm:$0x1]  ;;  %v6107_v33 = vpop.permute.xlu0 %6106 }
 0x55c   :  { %v6063_v48 = vsel %vm13358_vm15, %v6060_v29, %v6062_v58  ;;  %v6110_v22 = vsel %vm13358_vm15, %v6107_v33, %v6109_v59 }
 0x55d   :  { %6064 = vst [vmem:[#allocation7 + $0x5] sm:$0x1] %v6063_v48  ;;  %6111 = vst [vmem:[#allocation7 + $0x6] sm:$0x1] %v6110_v22 }
 0x55e   :  { %v6156_v43 = vpop.permute.xlu1 %6155 }
 0x55f   :  { %v6158_v47 = vld [vmem:[#allocation7 + $0x7] sm:$0x1] }
 0x560   :  { %v6159_v39 = vsel %vm13358_vm15, %v6156_v43, %v6158_v47 }
 0x561   :  { %6160 = vst [vmem:[#allocation7 + $0x7] sm:$0x1] %v6159_v39 }
 0x562   :  { %10406 = dma.done.wait [#allocation9], 32768 }
 0x563   :  { %10407 = vsyncadd [#allocation9], 4294934528  ;;  %v14639_v20 = vld [vmem:[#allocation41_spill] sm:$0xff]  ;;  %v14640_v63 = vld [vmem:[#allocation39_spill] sm:$0xff]  ;;  %7782 = vmatprep.subr.bf16.mxu1 %v9065_v19  ;;  %7823 = vmatprep.subr.bf16.mxu0 %v9129_v0  ;;  %s10414_s27 = smov [#allocation10]  }
 0x564   :  { %v9061_v21 = vcombine.high %v14640_v63, %v14639_v20  ;;  %v14641_v50 = vld [vmem:[#allocation103_spill] sm:$0xff]  ;;  %v14642_v49 = vld [vmem:[#allocation101_spill] sm:$0xff]  ;;  %7783 = vmatpush1.bf16.msra.mxu1 %v9064_v31  ;;  %7824 = vmatpush1.bf16.msra.mxu0 %v9128_v36  ;;  %v9060_v61 = vcombine.low %v14640_v63, %v14639_v20  ;;  %s8468_s28 = sshll.u32 %s10414_s27, 4  ;;  %s8469_s28 = int_to_ptr.vmem [resolvable:$true] %s8468_s28 }
 0x565   :  { %v9125_v9 = vcombine.high %v14642_v49, %v14641_v50  ;;  %v9124_v28 = vcombine.low %v14642_v49, %v14641_v50  ;;  %v14643_v13 = vld [vmem:[#allocation37_spill] sm:$0xff]  ;;  %v14644_v30 = vld [vmem:[#allocation35_spill] sm:$0xff]  ;;  %v14670_v50 = vld [vmem:[#allocation136_spill] sm:$0xff]  ;;  %s10386_s29 = scalar_lea.vmem %s8469_s28, 32  ;;  %p10391_p1 = scmp.lt.s32.totalorder %s8469_s28, %s8469_s28 }
 0x566   :  { %7784 = vmatprep.subr.bf16.mxu1 %v9061_v21  ;;  %v9057_v62 = vcombine.high %v14644_v30, %v14643_v13  ;;  %v14645_v14 = vld [vmem:[#allocation99_spill] sm:$0xff]  ;;  %v14646_v17 = vld [vmem:[#allocation97_spill] sm:$0xff]  ;;  %v9056_v6 = vcombine.low %v14644_v30, %v14643_v13  ;;  %v14669_v21 = vld [vmem:[#allocation138_spill] sm:$0xff]  ;;  %p10387_p0 = scmp.ne.s32.totalorder %s8469_s28, %s10386_s29  ;;  %p10392_p2 = scmp.lt.s32.totalorder %s10386_s29, %s10386_s29 }
 0x567   :  { %7825 = vmatprep.subr.bf16.mxu0 %v9125_v9  ;;  %v9121_v10 = vcombine.high %v14646_v17, %v14645_v14  ;;  %v9120_v37 = vcombine.low %v14646_v17, %v14645_v14  ;;  %v14647_v1 = vld [vmem:[#allocation33_spill] sm:$0xff]  ;;  %v14648_v52 = vld [vmem:[#allocation31_spill] sm:$0xff]  ;;  %v9161_v49 = vcombine.high %v14670_v50, %v14669_v21  ;;  %v14674_v14 = vld [vmem:[#allocation132_spill] sm:$0xff] }
 0x568   :  { %7785 = vmatpush1.bf16.msra.mxu1 %v9060_v61  ;;  %7826 = vmatpush1.bf16.msra.mxu0 %v9124_v28  ;;  %v9053_v2 = vcombine.high %v14648_v52, %v14647_v1  ;;  %v14649_v3 = vld [vmem:[#allocation95_spill] sm:$0xff]  ;;  %v14650_v44 = vld [vmem:[#allocation93_spill] sm:$0xff]  ;;  %v9052_v18 = vcombine.low %v14648_v52, %v14647_v1  ;;  %v9160_v61 = vcombine.low %v14670_v50, %v14669_v21  ;;  %v14698_v21 = vld [vmem:[#allocation108_spill] sm:$0xff]  ;;  %p10393_p3 = por %p10392_p2, %p10391_p1 }
 0x569   :  { %7786 = vmatprep.subr.bf16.mxu1 %v9057_v62  ;;  %7827 = vmatprep.subr.bf16.mxu0 %v9121_v10  ;;  %v9117_v4 = vcombine.high %v14650_v44, %v14649_v3  ;;  %v9116_v8 = vcombine.low %v14650_v44, %v14649_v3  ;;  %v14651_v11 = vld [vmem:[#allocation29_spill] sm:$0xff]  ;;  %v14652_v34 = vld [vmem:[#allocation27_spill] sm:$0xff]  ;;  %v14673_v62 = vld [vmem:[#allocation134_spill] sm:$0xff] }
 0x56a   :  { %v9049_v55 = vcombine.high %v14652_v34, %v14651_v11  ;;  %v14653_v45 = vld [vmem:[#allocation91_spill] sm:$0xff]  ;;  %v14654_v12 = vld [vmem:[#allocation89_spill] sm:$0xff]  ;;  %v9048_v41 = vcombine.low %v14652_v34, %v14651_v11  ;;  %v9157_v17 = vcombine.high %v14674_v14, %v14673_v62  ;;  %v14678_v3 = vld [vmem:[#allocation128_spill] sm:$0xff]  ;;  %p10394_p4 = pnand %p10393_p3, %p10387_p0 }
 0x56b   :  { %v9113_v5 = vcombine.high %v14654_v12, %v14653_v45  ;;  %v13427_v15 = vld [vmem:[#allocation7] sm:$0xff]  ;;  %v9112_v24 = vcombine.low %v14654_v12, %v14653_v45  ;;  %v14656_v25 = vld [vmem:[#allocation23_spill] sm:$0xff]  ;;  %v14682_v45 = vld [vmem:[#allocation124_spill] sm:$0xff] }
 0x56c   :  { %7787 = vmatpush1.bf16.msra.mxu1 %v9056_v6  ;;  %7828 = vmatpush1.bf16.msra.mxu0 %v9120_v37  ;;  %v14655_v46 = vld [vmem:[#allocation25_spill] sm:$0xff]  ;;  %v14657_v57 = vld [vmem:[#allocation87_spill] sm:$0xff]  ;;  %v13439_v32 = vrot.slane %v13427_v15, %v13246_v40  ;;  %v9156_v6 = vcombine.low %v14674_v14, %v14673_v62  ;;  %v14701_v14 = vld [vmem:[#allocation234_spill] sm:$0xff] }
 0x56d   :  { %7788 = vmatprep.subr.bf16.mxu1 %v9053_v2  ;;  %7829 = vmatprep.subr.bf16.mxu0 %v9117_v4  ;;  %v9045_v7 = vcombine.high %v14656_v25, %v14655_v46  ;;  %v14658_v42 = vld [vmem:[#allocation85_spill] sm:$0xff]  ;;  %v9044_v60 = vcombine.low %v14656_v25, %v14655_v46  ;;  %v14660_v54 = vld [vmem:[#allocation19_spill] sm:$0xff]  ;;  %v14677_v2 = vld [vmem:[#allocation130_spill] sm:$0xff] }
 0x56e   :  { %v9109_v38 = vcombine.high %v14658_v42, %v14657_v57  ;;  %v9108_v56 = vcombine.low %v14658_v42, %v14657_v57  ;;  %v14659_v26 = vld [vmem:[#allocation21_spill] sm:$0xff]  ;;  %v14661_v23 = vld [vmem:[#allocation83_spill] sm:$0xff]  ;;  %v6460_v29 = vcombine.high %v13439_v32, %v13439_v32  ;;  %v9153_v44 = vcombine.high %v14678_v3, %v14677_v2  ;;  %v14686_v57 = vld [vmem:[#allocation120_spill] sm:$0xff] }
 0x56f   :  { %v9041_v35 = vcombine.high %v14660_v54, %v14659_v26  ;;  %v14662_v27 = vld [vmem:[#allocation81_spill] sm:$0xff]  ;;  %v9040_v48 = vcombine.low %v14660_v54, %v14659_v26  ;;  %v14664_v22 = vld [vmem:[#allocation15_spill] sm:$0xff] }
 0x570   :  { %7789 = vmatpush1.bf16.msra.mxu1 %v9052_v18  ;;  %7830 = vmatpush1.bf16.msra.mxu0 %v9116_v8  ;;  %v9105_v53 = vcombine.high %v14662_v27, %v14661_v23  ;;  %v13452_v58 = vrot.slane %v6460_v29, %v13246_v40  ;;  %v9104_v59 = vcombine.low %v14662_v27, %v14661_v23  ;;  %v14663_v33 = vld [vmem:[#allocation17_spill] sm:$0xff]  ;;  %v14665_v43 = vld [vmem:[#allocation79_spill] sm:$0xff]  ;;  %v14690_v23 = vld [vmem:[#allocation116_spill] sm:$0xff] }
 0x571   :  { %7790 = vmatprep.subr.bf16.mxu1 %v9049_v55  ;;  %7831 = vmatprep.subr.bf16.mxu0 %v9113_v5  ;;  %v9037_v47 = vcombine.high %v14664_v22, %v14663_v33  ;;  %v14666_v39 = vld [vmem:[#allocation77_spill] sm:$0xff]  ;;  %v9036_v0 = vcombine.low %v14664_v22, %v14663_v33  ;;  %v14667_v36 = vld [vmem:[#allocation75_spill] sm:$0xff]  ;;  %v9152_v18 = vcombine.low %v14678_v3, %v14677_v2  ;;  %v14681_v55 = vld [vmem:[#allocation126_spill] sm:$0xff] }
 0x572   :  { %v9101_v19 = vcombine.high %v14666_v39, %v14665_v43  ;;  %v13464_v51 = vcombine.high %v13452_v58, %v13452_v58  ;;  %7814 = vmatprep.mubr.bf16.mxu1 %v13452_v58  ;;  %v9100_v31 = vcombine.low %v14666_v39, %v14665_v43  ;;  %v14668_v20 = vld [vmem:[#allocation73_spill] sm:$0xff]  ;;  %v14671_v28 = vld [vmem:[#allocation71_spill] sm:$0xff]  ;;  %v9149_v12 = vcombine.high %v14682_v45, %v14681_v55  ;;  %v14694_v43 = vld [vmem:[#allocation112_spill] sm:$0xff] }
 0x573   :  { %v9097_v63 = vcombine.high %v14668_v20, %v14667_v36  ;;  %v9096_v9 = vcombine.low %v14668_v20, %v14667_v36  ;;  %v14672_v13 = vld [vmem:[#allocation69_spill] sm:$0xff]  ;;  %v14675_v37 = vld [vmem:[#allocation67_spill] sm:$0xff]  ;;  %v14704_v2 = vld [vmem:[#allocation164_spill] sm:$0xff] }
 0x574   :  { %7791 = vmatpush1.bf16.msra.mxu1 %v9048_v41  ;;  %7832 = vmatpush1.bf16.msra.mxu0 %v9112_v24  ;;  %v9093_v30 = vcombine.high %v14672_v13, %v14671_v28  ;;  %v9092_v10 = vcombine.low %v14672_v13, %v14671_v28  ;;  %v14676_v1 = vld [vmem:[#allocation65_spill] sm:$0xff]  ;;  %v14679_v8 = vld [vmem:[#allocation63_spill] sm:$0xff]  ;;  %v9148_v41 = vcombine.low %v14682_v45, %v14681_v55  ;;  %v14699_v13 = vld [vmem:[#allocation170_spill] sm:$0xff] }
 0x575   :  { %7792 = vmatprep.subr.bf16.mxu1 %v9045_v7  ;;  %7833 = vmatprep.subr.bf16.mxu0 %v9109_v38  ;;  %v9089_v52 = vcombine.high %v14676_v1, %v14675_v37  ;;  %v9088_v4 = vcombine.low %v14676_v1, %v14675_v37  ;;  %v14680_v11 = vld [vmem:[#allocation61_spill] sm:$0xff]  ;;  %v14683_v24 = vld [vmem:[#allocation59_spill] sm:$0xff]  ;;  %v14685_v7 = vld [vmem:[#allocation122_spill] sm:$0xff] }
 0x576   :  { %7855 = vmatprep.mubr.bf16.mxu0 %v13464_v51  ;;  %v9085_v34 = vcombine.high %v14680_v11, %v14679_v8  ;;  %v9084_v5 = vcombine.low %v14680_v11, %v14679_v8  ;;  %v14684_v46 = vld [vmem:[#allocation57_spill] sm:$0xff]  ;;  %v9145_v42 = vcombine.high %v14686_v57, %v14685_v7  ;;  %v14707_v55 = vld [vmem:[#allocation162_spill] sm:$0xff]  ;;  %v14708_v45 = vld [vmem:[#allocation160_spill] sm:$0xff] }
 0x577   :  { %v9081_v25 = vcombine.high %v14684_v46, %v14683_v24  ;;  %v9080_v38 = vcombine.low %v14684_v46, %v14683_v24  ;;  %v14688_v26 = vld [vmem:[#allocation53_spill] sm:$0xff]  ;;  %v9184_v46 = vcombine.low %v14708_v45, %v14707_v55 }
 0x578   :  { %7793 = vmatpush1.bf16.msra.mxu1 %v9044_v60  ;;  %7834 = vmatpush1.bf16.msra.mxu0 %v9108_v56  ;;  %v9144_v60 = vcombine.low %v14686_v57, %v14685_v7  ;;  %v14687_v56 = vld [vmem:[#allocation55_spill] sm:$0xff]  ;;  %v14692_v33 = vld [vmem:[#allocation49_spill] sm:$0xff]  ;;  %v14711_v7 = vld [vmem:[#allocation158_spill] sm:$0xff] }
 0x579   :  { %7794 = vmatprep.subr.bf16.mxu1 %v9041_v35  ;;  %7835 = vmatprep.subr.bf16.mxu0 %v9105_v53  ;;  %v9077_v54 = vcombine.high %v14688_v26, %v14687_v56  ;;  %v14689_v35 = vld [vmem:[#allocation118_spill] sm:$0xff]  ;;  %v6445_v53 = vcombine.high %v13427_v15, %v13427_v15  ;;  %v9076_v29 = vcombine.low %v14688_v26, %v14687_v56  ;;  %v14696_v36 = vld [vmem:[#allocation45_spill] sm:$0xff]  ;;  %v14712_v57 = vld [vmem:[#allocation156_spill] sm:$0xff] }
 0x57a   :  { %v9141_v27 = vcombine.high %v14690_v23, %v14689_v35  ;;  %v9180_v26 = vcombine.low %v14712_v57, %v14711_v7 }
 0x57c   :  { %7795 = vmatpush1.bf16.msra.mxu1 %v9040_v48  ;;  %7836 = vmatpush1.bf16.msra.mxu0 %v9104_v59  ;;  %v9140_v48 = vcombine.low %v14690_v23, %v14689_v35  ;;  %v14691_v59 = vld [vmem:[#allocation51_spill] sm:$0xff]  ;;  %v14715_v35 = vld [vmem:[#allocation154_spill] sm:$0xff]  ;;  %v14716_v23 = vld [vmem:[#allocation152_spill] sm:$0xff] }
 0x57d   :  { %7796 = vmatprep.subr.bf16.mxu1 %v9037_v47  ;;  %7837 = vmatprep.subr.bf16.mxu0 %v9101_v19  ;;  %v9073_v22 = vcombine.high %v14692_v33, %v14691_v59  ;;  %v14693_v47 = vld [vmem:[#allocation114_spill] sm:$0xff]  ;;  %v13527_v19 = vrot.slane %v6445_v53, %v13246_v40  ;;  %v9072_v15 = vcombine.low %v14692_v33, %v14691_v59 }
 0x57e   :  { %v9137_v39 = vcombine.high %v14694_v43, %v14693_v47  ;;  %v14717_v53 = vld [vmem:[#allocation218_spill] sm:$0xff]  ;;  %v9176_v59 = vcombine.low %v14716_v23, %v14715_v35 }
 0x580   :  { %7797 = vmatpush1.bf16.msra.mxu1 %v9036_v0  ;;  %7838 = vmatpush1.bf16.msra.mxu0 %v9100_v31  ;;  %v9136_v0 = vcombine.low %v14694_v43, %v14693_v47  ;;  %v14695_v31 = vld [vmem:[#allocation47_spill] sm:$0xff]  ;;  %v14720_v47 = vld [vmem:[#allocation148_spill] sm:$0xff] }
 0x581   :  { %7798 = vmatprep.subr.bf16.mxu1 %v9097_v63  ;;  %7839 = vmatprep.subr.bf16.mxu0 %v9161_v49  ;;  %v9069_v20 = vcombine.high %v14696_v36, %v14695_v31  ;;  %v14697_v63 = vld [vmem:[#allocation110_spill] sm:$0xff]  ;;  %v6461_v49 = vcombine.high %v13527_v19, %v13527_v19 }
 0x582   :  { %v9133_v50 = vcombine.high %v14698_v21, %v14697_v63  ;;  %v9132_v28 = vcombine.low %v14698_v21, %v14697_v63  ;;  %v14724_v63 = vld [vmem:[#allocation144_spill] sm:$0xff] }
 0x584   :  { %7799 = vmatpush2.bf16.msra.mxu1 %v9096_v9  ;;  %7840 = vmatpush2.bf16.msra.mxu0 %v9160_v61  ;;  %v13541_v9 = vrot.slane %v13439_v32, %v13246_v40  ;;  %v9068_v61 = vcombine.low %v14696_v36, %v14695_v31 }
 0x585   :  { %7800 = vmatprep.subr.bf16.mxu1 %v9093_v30  ;;  %7841 = vmatprep.subr.bf16.mxu0 %v9157_v17  ;;  %v14700_v30 = vld [vmem:[#allocation168_spill] sm:$0xff] }
 0x586   :  { %v9193_v62 = vcombine.high %v14700_v30, %v14699_v13  ;;  %v14702_v17 = vld [vmem:[#allocation232_spill] sm:$0xff]  ;;  %v13556_v32 = vcombine.high %v13541_v9, %v13541_v9  ;;  %v9192_v37 = vcombine.low %v14700_v30, %v14699_v13  ;;  %v14727_v30 = vld [vmem:[#allocation142_spill] sm:$0xff] }
 0x587   :  { %v9256_v1 = vcombine.low %v14702_v17, %v14701_v14 }
 0x588   :  { %7801 = vmatpush2.bf16.msra.mxu1 %v9092_v10  ;;  %7842 = vmatpush2.bf16.msra.mxu0 %v9156_v6  ;;  %v9257_v10 = vcombine.high %v14702_v17, %v14701_v14  ;;  %v13552_v6 = vrot.slane %v6461_v49, %v13246_v40  ;;  %v14726_v49 = vld [vmem:[#allocation208_spill] sm:$0xff]  ;;  %v14729_v17 = vld [vmem:[#allocation206_spill] sm:$0xff] }
 0x589   :  { %7802 = vmatprep.subr.bf16.mxu1 %v9089_v52  ;;  %7843 = vmatprep.subr.bf16.mxu0 %v9153_v44  ;;  %v14703_v52 = vld [vmem:[#allocation166_spill] sm:$0xff] }
 0x58a   :  { %v9189_v3 = vcombine.high %v14704_v2, %v14703_v52  ;;  %v14705_v44 = vld [vmem:[#allocation230_spill] sm:$0xff]  ;;  %v13568_v8 = vcombine.high %v13552_v6, %v13552_v6  ;;  %v9188_v11 = vcombine.low %v14704_v2, %v14703_v52 }
 0x58b   :  { %v14731_v2 = vld [vmem:[#allocation202_spill] sm:$0xff] }
 0x58c   :  { %7803 = vmatpush2.bf16.msra.mxu1 %v9088_v4  ;;  %7844 = vmatpush2.bf16.msra.mxu0 %v9152_v18  ;;  %v14706_v4 = vld [vmem:[#allocation228_spill] sm:$0xff] }
 0x58d   :  { %7804 = vmatprep.subr.bf16.mxu1 %v9085_v34  ;;  %7845 = vmatprep.subr.bf16.mxu0 %v9149_v12  ;;  %v9253_v18 = vcombine.high %v14706_v4, %v14705_v44  ;;  %v9252_v34 = vcombine.low %v14706_v4, %v14705_v44  ;;  %v9185_v12 = vcombine.high %v14708_v45, %v14707_v55  ;;  %v14733_v4 = vld [vmem:[#allocation266_spill] sm:$0xff] }
 0x58e   :  { %v14735_v45 = vld [vmem:[#allocation198_spill] sm:$0xff] }
 0x590   :  { %7805 = vmatpush2.bf16.msra.mxu1 %v9084_v5  ;;  %7846 = vmatpush2.bf16.msra.mxu0 %v9148_v41  ;;  %v14709_v5 = vld [vmem:[#allocation226_spill] sm:$0xff]  ;;  %v14710_v41 = vld [vmem:[#allocation224_spill] sm:$0xff] }
 0x591   :  { %7806 = vmatprep.subr.bf16.mxu1 %v9081_v25  ;;  %7847 = vmatprep.subr.bf16.mxu0 %v9145_v42  ;;  %v9249_v24 = vcombine.high %v14710_v41, %v14709_v5  ;;  %v9248_v25 = vcombine.low %v14710_v41, %v14709_v5  ;;  %v9181_v42 = vcombine.high %v14712_v57, %v14711_v7  ;;  %v14737_v41 = vld [vmem:[#allocation262_spill] sm:$0xff] }
 0x592   :  { %v14739_v57 = vld [vmem:[#allocation194_spill] sm:$0xff] }
 0x594   :  { %7807 = vmatpush2.bf16.msra.mxu1 %v9080_v38  ;;  %7848 = vmatpush2.bf16.msra.mxu0 %v9144_v60  ;;  %v14713_v38 = vld [vmem:[#allocation222_spill] sm:$0xff]  ;;  %v14714_v60 = vld [vmem:[#allocation220_spill] sm:$0xff] }
 0x595   :  { %7808 = vmatprep.subr.bf16.mxu1 %v9077_v54  ;;  %7849 = vmatprep.subr.bf16.mxu0 %v9141_v27  ;;  %v9245_v56 = vcombine.high %v14714_v60, %v14713_v38  ;;  %v9244_v54 = vcombine.low %v14714_v60, %v14713_v38  ;;  %v9177_v27 = vcombine.high %v14716_v23, %v14715_v35  ;;  %v14741_v60 = vld [vmem:[#allocation258_spill] sm:$0xff] }
 0x596   :  { %v14743_v23 = vld [vmem:[#allocation190_spill] sm:$0xff] }
 0x598   :  { %7809 = vmatpush2.bf16.msra.mxu1 %v9076_v29  ;;  %7850 = vmatpush2.bf16.msra.mxu0 %v9140_v48  ;;  %v14718_v29 = vld [vmem:[#allocation216_spill] sm:$0xff] }
 0x599   :  { %7810 = vmatprep.subr.bf16.mxu1 %v9073_v22  ;;  %7851 = vmatprep.subr.bf16.mxu0 %v9137_v39  ;;  %v9241_v48 = vcombine.high %v14718_v29, %v14717_v53  ;;  %v9240_v33 = vcombine.low %v14718_v29, %v14717_v53  ;;  %v14719_v22 = vld [vmem:[#allocation150_spill] sm:$0xff] }
 0x59a   :  { %v9173_v43 = vcombine.high %v14720_v47, %v14719_v22  ;;  %v14721_v39 = vld [vmem:[#allocation214_spill] sm:$0xff]  ;;  %v9172_v31 = vcombine.low %v14720_v47, %v14719_v22 }
 0x59b   :  { %v14745_v29 = vld [vmem:[#allocation254_spill] sm:$0xff] }
 0x59c   :  { %7811 = vmatpush2.bf16.msra.mxu1 %v9072_v15  ;;  %7852 = vmatpush2.bf16.msra.mxu0 %v9136_v0  ;;  %v14722_v15 = vld [vmem:[#allocation212_spill] sm:$0xff]  ;;  %v14747_v47 = vld [vmem:[#allocation186_spill] sm:$0xff] }
 0x59d   :  { %7812 = vmatprep.subr.bf16.mxu1 %v9069_v20  ;;  %7853 = vmatprep.subr.bf16.mxu0 %v9133_v50  ;;  %v9237_v0 = vcombine.high %v14722_v15, %v14721_v39  ;;  %v9236_v36 = vcombine.low %v14722_v15, %v14721_v39  ;;  %v14723_v20 = vld [vmem:[#allocation146_spill] sm:$0xff] }
 0x59e   :  { %v9169_v21 = vcombine.high %v14724_v63, %v14723_v20  ;;  %v14725_v50 = vld [vmem:[#allocation210_spill] sm:$0xff] }
 0x59f   :  { %v9232_v13 = vcombine.low %v14726_v49, %v14725_v50  ;;  %v14749_v15 = vld [vmem:[#allocation250_spill] sm:$0xff] }
 0x5a0   :  { %7813 = vmatpush2.bf16.msra.mxu1 %v9068_v61  ;;  %7854 = vmatpush2.bf16.msra.mxu0 %v9132_v28  ;;  %v9233_v61 = vcombine.high %v14726_v49, %v14725_v50  ;;  %v9168_v28 = vcombine.low %v14724_v63, %v14723_v20  ;;  %v14751_v63 = vld [vmem:[#allocation182_spill] sm:$0xff] }
 0x5a1   :  { %7864 = vmatprep.subr.bf16.mxu1 %v9193_v62  ;;  %7905 = vmatprep.subr.bf16.mxu0 %v9257_v10  ;;  %v14728_v62 = vld [vmem:[#allocation140_spill] sm:$0xff]  ;;  %v14753_v49 = vld [vmem:[#allocation246_spill] sm:$0xff] }
 0x5a2   :  { %v9165_v14 = vcombine.high %v14728_v62, %v14727_v30  ;;  %v14730_v10 = vld [vmem:[#allocation204_spill] sm:$0xff] }
 0x5a3   :  { %7815 = vmatmul.mubr.bf16.vlgmr.msra.gmra.mxu1 %v13541_v9  ;;  %7856 = vmatmul.mubr.bf16.vlgmr.msra.gmra.mxu0 %v13556_v32  ;;  %v9228_v52 = vcombine.low %v14730_v10, %v14729_v17 }
 0x5a4   :  { %7865 = vmatpush1.bf16.msra.mxu1 %v9192_v37  ;;  %7906 = vmatpush1.bf16.msra.mxu0 %v9256_v1  ;;  %v9229_v37 = vcombine.high %v14730_v10, %v14729_v17  ;;  %v9164_v1 = vcombine.low %v14728_v62, %v14727_v30  ;;  %v14755_v62 = vld [vmem:[#allocation178_spill] sm:$0xff] }
 0x5a5   :  { %7866 = vmatprep.subr.bf16.mxu1 %v9189_v3  ;;  %7907 = vmatprep.subr.bf16.mxu0 %v9253_v18  ;;  %v14732_v3 = vld [vmem:[#allocation200_spill] sm:$0xff]  ;;  %v14757_v10 = vld [vmem:[#allocation242_spill] sm:$0xff] }
 0x5a6   :  { %7896 = vmatprep.mubr.bf16.mxu1 %v13552_v6  ;;  %7937 = vmatprep.mubr.bf16.mxu0 %v13568_v8  ;;  %v9225_v44 = vcombine.high %v14732_v3, %v14731_v2  ;;  %v14734_v18 = vld [vmem:[#allocation264_spill] sm:$0xff] }
 0x5a7   :  { %v9288_v55 = vcombine.low %v14734_v18, %v14733_v4 }
 0x5a8   :  { %7867 = vmatpush1.bf16.msra.mxu1 %v9188_v11  ;;  %7908 = vmatpush1.bf16.msra.mxu0 %v9252_v34  ;;  %v9289_v11 = vcombine.high %v14734_v18, %v14733_v4  ;;  %v9224_v34 = vcombine.low %v14732_v3, %v14731_v2  ;;  %v14759_v3 = vld [vmem:[#allocation174_spill] sm:$0xff] }
 0x5a9   :  { %7868 = vmatprep.subr.bf16.mxu1 %v9185_v12  ;;  %7909 = vmatprep.subr.bf16.mxu0 %v9249_v24  ;;  %v14736_v12 = vld [vmem:[#allocation196_spill] sm:$0xff]  ;;  %v14761_v18 = vld [vmem:[#allocation238_spill] sm:$0xff] }
 0x5aa   :  { %v9221_v5 = vcombine.high %v14736_v12, %v14735_v45  ;;  %v14738_v24 = vld [vmem:[#allocation260_spill] sm:$0xff] }
 0x5ab   :  { %v9284_v7 = vcombine.low %v14738_v24, %v14737_v41 }
 0x5ac   :  { %7869 = vmatpush1.bf16.msra.mxu1 %v9184_v46  ;;  %7910 = vmatpush1.bf16.msra.mxu0 %v9248_v25  ;;  %v9285_v46 = vcombine.high %v14738_v24, %v14737_v41  ;;  %v9220_v25 = vcombine.low %v14736_v12, %v14735_v45  ;;  %v14764_v41 = vld [vmem:[#allocation43_spill] sm:$0xff] }
 0x5ad   :  { %7870 = vmatprep.subr.bf16.mxu1 %v9181_v42  ;;  %7911 = vmatprep.subr.bf16.mxu0 %v9245_v56  ;;  %v14740_v42 = vld [vmem:[#allocation192_spill] sm:$0xff] }
 0x5ae   :  { %v9217_v38 = vcombine.high %v14740_v42, %v14739_v57  ;;  %v14742_v56 = vld [vmem:[#allocation256_spill] sm:$0xff] }
 0x5af   :  { %v9280_v35 = vcombine.low %v14742_v56, %v14741_v60 }
 0x5b0   :  { %7871 = vmatpush1.bf16.msra.mxu1 %v9180_v26  ;;  %7912 = vmatpush1.bf16.msra.mxu0 %v9244_v54  ;;  %v9281_v26 = vcombine.high %v14742_v56, %v14741_v60  ;;  %v9216_v54 = vcombine.low %v14740_v42, %v14739_v57  ;;  %v14767_v42 = vld [vmem:[#allocation42_spill] sm:$0xff]  ;;  %v14769_v56 = vld [vmem:[#allocation104_spill] sm:$0xff] }
 0x5b1   :  { %7872 = vmatprep.subr.bf16.mxu1 %v9177_v27  ;;  %7913 = vmatprep.subr.bf16.mxu0 %v9241_v48  ;;  %v14744_v27 = vld [vmem:[#allocation188_spill] sm:$0xff] }
 0x5b2   :  { %v9213_v53 = vcombine.high %v14744_v27, %v14743_v23  ;;  %v14746_v48 = vld [vmem:[#allocation252_spill] sm:$0xff] }
 0x5b3   :  { %v9276_v22 = vcombine.low %v14746_v48, %v14745_v29 }
 0x5b4   :  { %7873 = vmatpush1.bf16.msra.mxu1 %v9176_v59  ;;  %7914 = vmatpush1.bf16.msra.mxu0 %v9240_v33  ;;  %v9277_v59 = vcombine.high %v14746_v48, %v14745_v29  ;;  %v9212_v33 = vcombine.low %v14744_v27, %v14743_v23  ;;  %v14771_v27 = vld [vmem:[#allocation38_spill] sm:$0xff]  ;;  %v14773_v48 = vld [vmem:[#allocation100_spill] sm:$0xff] }
 0x5b5   :  { %7874 = vmatprep.subr.bf16.mxu1 %v9173_v43  ;;  %7915 = vmatprep.subr.bf16.mxu0 %v9237_v0  ;;  %v14748_v43 = vld [vmem:[#allocation184_spill] sm:$0xff] }
 0x5b6   :  { %v9209_v39 = vcombine.high %v14748_v43, %v14747_v47  ;;  %v14750_v0 = vld [vmem:[#allocation248_spill] sm:$0xff] }
 0x5b7   :  { %v9272_v20 = vcombine.low %v14750_v0, %v14749_v15 }
 0x5b8   :  { %7875 = vmatpush1.bf16.msra.mxu1 %v9172_v31  ;;  %7916 = vmatpush1.bf16.msra.mxu0 %v9236_v36  ;;  %v9273_v31 = vcombine.high %v14750_v0, %v14749_v15  ;;  %v9208_v36 = vcombine.low %v14748_v43, %v14747_v47  ;;  %v14775_v43 = vld [vmem:[#allocation34_spill] sm:$0xff]  ;;  %v14777_v0 = vld [vmem:[#allocation96_spill] sm:$0xff] }
 0x5b9   :  { %7876 = vmatprep.subr.bf16.mxu1 %v9169_v21  ;;  %7917 = vmatprep.subr.bf16.mxu0 %v9233_v61  ;;  %v14752_v21 = vld [vmem:[#allocation180_spill] sm:$0xff] }
 0x5ba   :  { %v9205_v50 = vcombine.high %v14752_v21, %v14751_v63  ;;  %v14754_v61 = vld [vmem:[#allocation244_spill] sm:$0xff] }
 0x5bb   :  { %v9268_v30 = vcombine.low %v14754_v61, %v14753_v49 }
 0x5bc   :  { %7877 = vmatpush1.bf16.msra.mxu1 %v9168_v28  ;;  %7918 = vmatpush1.bf16.msra.mxu0 %v9232_v13  ;;  %v9269_v28 = vcombine.high %v14754_v61, %v14753_v49  ;;  %v9204_v13 = vcombine.low %v14752_v21, %v14751_v63  ;;  %v14780_v63 = vld [vmem:[#allocation28_spill] sm:$0xff]  ;;  %v14782_v49 = vld [vmem:[#allocation90_spill] sm:$0xff] }
 0x5bd   :  { %7878 = vmatprep.subr.bf16.mxu1 %v9165_v14  ;;  %7919 = vmatprep.subr.bf16.mxu0 %v9229_v37  ;;  %v14756_v14 = vld [vmem:[#allocation176_spill] sm:$0xff] }
 0x5be   :  { %v9201_v17 = vcombine.high %v14756_v14, %v14755_v62  ;;  %v14758_v37 = vld [vmem:[#allocation240_spill] sm:$0xff] }
 0x5bf   :  { %v9264_v2 = vcombine.low %v14758_v37, %v14757_v10 }
 0x5c0   :  { %7879 = vmatpush1.bf16.msra.mxu1 %v9164_v1  ;;  %7920 = vmatpush1.bf16.msra.mxu0 %v9228_v52  ;;  %v9265_v1 = vcombine.high %v14758_v37, %v14757_v10  ;;  %v9200_v52 = vcombine.low %v14756_v14, %v14755_v62  ;;  %v14784_v62 = vld [vmem:[#allocation24_spill] sm:$0xff]  ;;  %v14786_v10 = vld [vmem:[#allocation86_spill] sm:$0xff] }
 0x5c1   :  { %7880 = vmatprep.subr.bf16.mxu1 %v9225_v44  ;;  %7921 = vmatprep.subr.bf16.mxu0 %v9289_v11  ;;  %v14760_v44 = vld [vmem:[#allocation172_spill] sm:$0xff] }
 0x5c2   :  { %v9197_v4 = vcombine.high %v14760_v44, %v14759_v3  ;;  %v14762_v11 = vld [vmem:[#allocation236_spill] sm:$0xff]  ;;  %v9196_v45 = vcombine.low %v14760_v44, %v14759_v3 }
 0x5c3   :  { %v9260_v12 = vcombine.low %v14762_v11, %v14761_v18  ;;  %v14788_v3 = vld [vmem:[#allocation20_spill] sm:$0xff] }
 0x5c4   :  { %7881 = vmatpush2.bf16.msra.mxu1 %v9224_v34  ;;  %7922 = vmatpush2.bf16.msra.mxu0 %v9288_v55  ;;  %v9261_v34 = vcombine.high %v14762_v11, %v14761_v18  ;;  %v13688_v55 = vrot.slane %v13527_v19, %v13246_v40  ;;  %v14790_v18 = vld [vmem:[#allocation82_spill] sm:$0xff] }
 0x5c5   :  { %7882 = vmatprep.subr.bf16.mxu1 %v9221_v5  ;;  %7923 = vmatprep.subr.bf16.mxu0 %v9285_v46  ;;  %v14763_v5 = vld [vmem:[#allocation44_spill] sm:$0xff]  ;;  %v14765_v46 = vld [vmem:[#allocation107_spill] sm:$0xff] }
 0x5c6   :  { %v9067_v24 = vcombine.high %v14764_v41, %v14763_v5  ;;  %v13700_v40 = vcombine.high %v13688_v55, %v13688_v55  ;;  %v9066_v19 = vcombine.low %v14764_v41, %v14763_v5  ;;  %v14792_v5 = vld [vmem:[#allocation16_spill] sm:$0xff] }
 0x5c8   :  { %7883 = vmatpush2.bf16.msra.mxu1 %v9220_v25  ;;  %7924 = vmatpush2.bf16.msra.mxu0 %v9284_v7  ;;  %v14766_v25 = vld [vmem:[#allocation106_spill] sm:$0xff] }
 0x5c9   :  { %7884 = vmatprep.subr.bf16.mxu1 %v9217_v38  ;;  %7925 = vmatprep.subr.bf16.mxu0 %v9281_v26  ;;  %v9131_v7 = vcombine.high %v14766_v25, %v14765_v46  ;;  %v9130_v57 = vcombine.low %v14766_v25, %v14765_v46  ;;  %v14768_v38 = vld [vmem:[#allocation40_spill] sm:$0xff]  ;;  %v14770_v26 = vld [vmem:[#allocation102_spill] sm:$0xff] }
 0x5ca   :  { %v9063_v60 = vcombine.high %v14768_v38, %v14767_v42  ;;  %v9126_v23 = vcombine.low %v14770_v26, %v14769_v56  ;;  %v14794_v46 = vld [vmem:[#allocation78_spill] sm:$0xff] }
 0x5cc   :  { %7885 = vmatpush2.bf16.msra.mxu1 %v9216_v54  ;;  %7926 = vmatpush2.bf16.msra.mxu0 %v9280_v35  ;;  %v9127_v54 = vcombine.high %v14770_v26, %v14769_v56  ;;  %v9062_v35 = vcombine.low %v14768_v38, %v14767_v42  ;;  %v14796_v42 = vld [vmem:[#allocation74_spill] sm:$0xff]  ;;  %v14798_v56 = vld [vmem:[#allocation137_spill] sm:$0xff] }
 0x5cd   :  { %7886 = vmatprep.subr.bf16.mxu1 %v9213_v53  ;;  %7927 = vmatprep.subr.bf16.mxu0 %v9277_v59  ;;  %v14772_v53 = vld [vmem:[#allocation36_spill] sm:$0xff]  ;;  %v14774_v59 = vld [vmem:[#allocation98_spill] sm:$0xff] }
 0x5ce   :  { %v9059_v29 = vcombine.high %v14772_v53, %v14771_v27  ;;  %v9122_v47 = vcombine.low %v14774_v59, %v14773_v48 }
 0x5d0   :  { %7887 = vmatpush2.bf16.msra.mxu1 %v9212_v33  ;;  %7928 = vmatpush2.bf16.msra.mxu0 %v9276_v22  ;;  %v9123_v33 = vcombine.high %v14774_v59, %v14773_v48  ;;  %v9058_v22 = vcombine.low %v14772_v53, %v14771_v27  ;;  %v14800_v27 = vld [vmem:[#allocation70_spill] sm:$0xff]  ;;  %v14802_v48 = vld [vmem:[#allocation133_spill] sm:$0xff] }
 0x5d1   :  { %7888 = vmatprep.subr.bf16.mxu1 %v9209_v39  ;;  %7929 = vmatprep.subr.bf16.mxu0 %v9273_v31  ;;  %v14776_v39 = vld [vmem:[#allocation32_spill] sm:$0xff]  ;;  %v14778_v31 = vld [vmem:[#allocation94_spill] sm:$0xff] }
 0x5d2   :  { %v9055_v15 = vcombine.high %v14776_v39, %v14775_v43 }
 0x5d4   :  { %7889 = vmatpush2.bf16.msra.mxu1 %v9208_v36  ;;  %7930 = vmatpush2.bf16.msra.mxu0 %v9272_v20  ;;  %v9119_v36 = vcombine.high %v14778_v31, %v14777_v0  ;;  %v14779_v20 = vld [vmem:[#allocation30_spill] sm:$0xff] }
 0x5d5   :  { %7890 = vmatprep.subr.bf16.mxu1 %v9205_v50  ;;  %7931 = vmatprep.subr.bf16.mxu0 %v9269_v28  ;;  %v9051_v21 = vcombine.high %v14780_v63, %v14779_v20  ;;  %v14781_v50 = vld [vmem:[#allocation92_spill] sm:$0xff]  ;;  %v9050_v28 = vcombine.low %v14780_v63, %v14779_v20  ;;  %v14808_v20 = vld [vmem:[#allocation62_spill] sm:$0xff] }
 0x5d6   :  { %v9115_v61 = vcombine.high %v14782_v49, %v14781_v50 }
 0x5d8   :  { %7891 = vmatpush2.bf16.msra.mxu1 %v9204_v13  ;;  %7932 = vmatpush2.bf16.msra.mxu0 %v9268_v30  ;;  %v9114_v13 = vcombine.low %v14782_v49, %v14781_v50  ;;  %v14783_v30 = vld [vmem:[#allocation26_spill] sm:$0xff]  ;;  %v14810_v50 = vld [vmem:[#allocation125_spill] sm:$0xff] }
 0x5d9   :  { %7892 = vmatprep.subr.bf16.mxu1 %v9201_v17  ;;  %7933 = vmatprep.subr.bf16.mxu0 %v9265_v1  ;;  %v9047_v14 = vcombine.high %v14784_v62, %v14783_v30  ;;  %v14785_v17 = vld [vmem:[#allocation88_spill] sm:$0xff]  ;;  %v9046_v1 = vcombine.low %v14784_v62, %v14783_v30  ;;  %v14812_v30 = vld [vmem:[#allocation58_spill] sm:$0xff] }
 0x5da   :  { %v9111_v37 = vcombine.high %v14786_v10, %v14785_v17 }
 0x5dc   :  { %7893 = vmatpush2.bf16.msra.mxu1 %v9200_v52  ;;  %7934 = vmatpush2.bf16.msra.mxu0 %v9264_v2  ;;  %v9110_v52 = vcombine.low %v14786_v10, %v14785_v17  ;;  %v14787_v2 = vld [vmem:[#allocation22_spill] sm:$0xff]  ;;  %v14814_v17 = vld [vmem:[#allocation121_spill] sm:$0xff] }
 0x5dd   :  { %7894 = vmatprep.subr.bf16.mxu1 %v9197_v4  ;;  %7935 = vmatprep.subr.bf16.mxu0 %v9261_v34  ;;  %v9043_v44 = vcombine.high %v14788_v3, %v14787_v2  ;;  %v14789_v4 = vld [vmem:[#allocation84_spill] sm:$0xff]  ;;  %v9042_v34 = vcombine.low %v14788_v3, %v14787_v2  ;;  %v14816_v2 = vld [vmem:[#allocation54_spill] sm:$0xff] }
 0x5de   :  { %v9107_v11 = vcombine.high %v14790_v18, %v14789_v4 }
 0x5e0   :  { %7895 = vmatpush2.bf16.msra.mxu1 %v9196_v45  ;;  %7936 = vmatpush2.bf16.msra.mxu0 %v9260_v12  ;;  %v9106_v45 = vcombine.low %v14790_v18, %v14789_v4  ;;  %v14791_v12 = vld [vmem:[#allocation18_spill] sm:$0xff]  ;;  %v14818_v4 = vld [vmem:[#allocation117_spill] sm:$0xff] }
 0x5e1   :  { %7946 = vmatprep.subr.bf16.mxu1 %v9067_v24  ;;  %7987 = vmatprep.subr.bf16.mxu0 %v9131_v7  ;;  %v9039_v41 = vcombine.high %v14792_v5, %v14791_v12  ;;  %v14793_v24 = vld [vmem:[#allocation80_spill] sm:$0xff]  ;;  %v9038_v7 = vcombine.low %v14792_v5, %v14791_v12  ;;  %v14820_v12 = vld [vmem:[#allocation50_spill] sm:$0xff] }
 0x5e2   :  { %v9103_v25 = vcombine.high %v14794_v46, %v14793_v24 }
 0x5e3   :  { %7897 = vmatmul.mubr.bf16.vlgmr.msra.gmra.mxu1 %v13688_v55  ;;  %7938 = vmatmul.mubr.bf16.vlgmr.msra.gmra.mxu0 %v13700_v40 }
 0x5e4   :  { %7947 = vmatpush1.bf16.msra.mxu1 %v9066_v19  ;;  %7988 = vmatpush1.bf16.msra.mxu0 %v9130_v57  ;;  %v9102_v19 = vcombine.low %v14794_v46, %v14793_v24  ;;  %v14795_v57 = vld [vmem:[#allocation76_spill] sm:$0xff]  ;;  %v14822_v24 = vld [vmem:[#allocation113_spill] sm:$0xff] }
 0x5e5   :  { %7948 = vmatprep.subr.bf16.mxu1 %v9063_v60  ;;  %7989 = vmatprep.subr.bf16.mxu0 %v9127_v54  ;;  %v9099_v38 = vcombine.high %v14796_v42, %v14795_v57  ;;  %v14797_v60 = vld [vmem:[#allocation139_spill] sm:$0xff]  ;;  %v9098_v54 = vcombine.low %v14796_v42, %v14795_v57  ;;  %v14824_v57 = vld [vmem:[#allocation46_spill] sm:$0xff] }
 0x5e6   :  { %7978 = vmatprep.mubr.bf16.mxu1 %v13452_v58  ;;  %8019 = vmatprep.mubr.bf16.mxu0 %v13464_v51  ;;  %v9054_v58 = vcombine.low %v14776_v39, %v14775_v43  ;;  %v9118_v51 = vcombine.low %v14778_v31, %v14777_v0  ;;  %v9163_v26 = vcombine.high %v14798_v56, %v14797_v60  ;;  %v14804_v43 = vld [vmem:[#allocation66_spill] sm:$0xff]  ;;  %v14806_v0 = vld [vmem:[#allocation129_spill] sm:$0xff] }
 0x5e8   :  { %7949 = vmatpush1.bf16.msra.mxu1 %v9062_v35  ;;  %7990 = vmatpush1.bf16.msra.mxu0 %v9126_v23  ;;  %v9162_v35 = vcombine.low %v14798_v56, %v14797_v60  ;;  %v14799_v23 = vld [vmem:[#allocation72_spill] sm:$0xff]  ;;  %v14826_v60 = vld [vmem:[#allocation109_spill] sm:$0xff] }
 0x5e9   :  { %7950 = vmatprep.subr.bf16.mxu1 %v9059_v29  ;;  %7991 = vmatprep.subr.bf16.mxu0 %v9123_v33  ;;  %v9095_v53 = vcombine.high %v14800_v27, %v14799_v23  ;;  %v14801_v29 = vld [vmem:[#allocation135_spill] sm:$0xff]  ;;  %v9094_v33 = vcombine.low %v14800_v27, %v14799_v23  ;;  %v14828_v23 = vld [vmem:[#allocation169_spill] sm:$0xff] }
 0x5ea   :  { %v9159_v59 = vcombine.high %v14802_v48, %v14801_v29 }
 0x5ec   :  { %7951 = vmatpush1.bf16.msra.mxu1 %v9058_v22  ;;  %7992 = vmatpush1.bf16.msra.mxu0 %v9122_v47  ;;  %v9158_v22 = vcombine.low %v14802_v48, %v14801_v29  ;;  %v14803_v47 = vld [vmem:[#allocation68_spill] sm:$0xff]  ;;  %v14830_v29 = vld [vmem:[#allocation233_spill] sm:$0xff] }
 0x5ed   :  { %7952 = vmatprep.subr.bf16.mxu1 %v9055_v15  ;;  %7993 = vmatprep.subr.bf16.mxu0 %v9119_v36  ;;  %v9091_v39 = vcombine.high %v14804_v43, %v14803_v47  ;;  %v14805_v15 = vld [vmem:[#allocation131_spill] sm:$0xff]  ;;  %v9090_v36 = vcombine.low %v14804_v43, %v14803_v47  ;;  %v14832_v47 = vld [vmem:[#allocation165_spill] sm:$0xff] }
 0x5ee   :  { %v9155_v31 = vcombine.high %v14806_v0, %v14805_v15 }
 0x5f0   :  { %7953 = vmatpush1.bf16.msra.mxu1 %v9054_v58  ;;  %7994 = vmatpush1.bf16.msra.mxu0 %v9118_v51  ;;  %v9154_v58 = vcombine.low %v14806_v0, %v14805_v15  ;;  %v14807_v51 = vld [vmem:[#allocation64_spill] sm:$0xff]  ;;  %v14834_v15 = vld [vmem:[#allocation229_spill] sm:$0xff] }
 0x5f1   :  { %7954 = vmatprep.subr.bf16.mxu1 %v9051_v21  ;;  %7995 = vmatprep.subr.bf16.mxu0 %v9115_v61  ;;  %v9087_v63 = vcombine.high %v14808_v20, %v14807_v51  ;;  %v14809_v21 = vld [vmem:[#allocation127_spill] sm:$0xff]  ;;  %v9086_v61 = vcombine.low %v14808_v20, %v14807_v51  ;;  %v14836_v51 = vld [vmem:[#allocation161_spill] sm:$0xff] }
 0x5f2   :  { %v9151_v49 = vcombine.high %v14810_v50, %v14809_v21 }
 0x5f4   :  { %7955 = vmatpush1.bf16.msra.mxu1 %v9050_v28  ;;  %7996 = vmatpush1.bf16.msra.mxu0 %v9114_v13  ;;  %v9150_v28 = vcombine.low %v14810_v50, %v14809_v21  ;;  %v14811_v13 = vld [vmem:[#allocation60_spill] sm:$0xff]  ;;  %v14838_v21 = vld [vmem:[#allocation225_spill] sm:$0xff] }
 0x5f5   :  { %7956 = vmatprep.subr.bf16.mxu1 %v9047_v14  ;;  %7997 = vmatprep.subr.bf16.mxu0 %v9111_v37  ;;  %v9083_v62 = vcombine.high %v14812_v30, %v14811_v13  ;;  %v14813_v14 = vld [vmem:[#allocation123_spill] sm:$0xff]  ;;  %v9082_v37 = vcombine.low %v14812_v30, %v14811_v13  ;;  %v14842_v30 = vld [vmem:[#allocation221_spill] sm:$0xff] }
 0x5f6   :  { %v9147_v10 = vcombine.high %v14814_v17, %v14813_v14  ;;  %v14841_v13 = vld [vmem:[#allocation223_spill] sm:$0xff] }
 0x5f8   :  { %7957 = vmatpush1.bf16.msra.mxu1 %v9046_v1  ;;  %7998 = vmatpush1.bf16.msra.mxu0 %v9110_v52  ;;  %v9146_v1 = vcombine.low %v14814_v17, %v14813_v14  ;;  %v14815_v52 = vld [vmem:[#allocation56_spill] sm:$0xff]  ;;  %v14843_v14 = vld [vmem:[#allocation155_spill] sm:$0xff]  ;;  %v14844_v17 = vld [vmem:[#allocation153_spill] sm:$0xff] }
 0x5f9   :  { %7958 = vmatprep.subr.bf16.mxu1 %v9043_v44  ;;  %7999 = vmatprep.subr.bf16.mxu0 %v9107_v11  ;;  %v9079_v3 = vcombine.high %v14816_v2, %v14815_v52  ;;  %v14817_v44 = vld [vmem:[#allocation119_spill] sm:$0xff]  ;;  %v9078_v11 = vcombine.low %v14816_v2, %v14815_v52  ;;  %v9178_v2 = vcombine.low %v14844_v17, %v14843_v14 }
 0x5fa   :  { %v9143_v18 = vcombine.high %v14818_v4, %v14817_v44 }
 0x5fc   :  { %7959 = vmatpush1.bf16.msra.mxu1 %v9042_v34  ;;  %8000 = vmatpush1.bf16.msra.mxu0 %v9106_v45  ;;  %v9142_v34 = vcombine.low %v14818_v4, %v14817_v44  ;;  %v14819_v45 = vld [vmem:[#allocation52_spill] sm:$0xff]  ;;  %v14847_v44 = vld [vmem:[#allocation151_spill] sm:$0xff]  ;;  %v14848_v4 = vld [vmem:[#allocation149_spill] sm:$0xff] }
 0x5fd   :  { %7960 = vmatprep.subr.bf16.mxu1 %v9039_v41  ;;  %8001 = vmatprep.subr.bf16.mxu0 %v9103_v25  ;;  %v9075_v5 = vcombine.high %v14820_v12, %v14819_v45  ;;  %v14821_v41 = vld [vmem:[#allocation115_spill] sm:$0xff]  ;;  %v9074_v25 = vcombine.low %v14820_v12, %v14819_v45  ;;  %v9174_v12 = vcombine.low %v14848_v4, %v14847_v44 }
 0x5fe   :  { %v9139_v46 = vcombine.high %v14822_v24, %v14821_v41 }
 0x600   :  { %7961 = vmatpush1.bf16.msra.mxu1 %v9038_v7  ;;  %8002 = vmatpush1.bf16.msra.mxu0 %v9102_v19  ;;  %v9138_v7 = vcombine.low %v14822_v24, %v14821_v41  ;;  %v14823_v19 = vld [vmem:[#allocation48_spill] sm:$0xff]  ;;  %v14851_v41 = vld [vmem:[#allocation147_spill] sm:$0xff]  ;;  %v14852_v24 = vld [vmem:[#allocation145_spill] sm:$0xff] }
 0x601   :  { %7962 = vmatprep.subr.bf16.mxu1 %v9099_v38  ;;  %8003 = vmatprep.subr.bf16.mxu0 %v9163_v26  ;;  %v9071_v42 = vcombine.high %v14824_v57, %v14823_v19  ;;  %v14825_v38 = vld [vmem:[#allocation111_spill] sm:$0xff]  ;;  %v9070_v26 = vcombine.low %v14824_v57, %v14823_v19  ;;  %v9170_v57 = vcombine.low %v14852_v24, %v14851_v41 }
 0x602   :  { %v9135_v56 = vcombine.high %v14826_v60, %v14825_v38 }
 0x604   :  { %7963 = vmatpush2.bf16.msra.mxu1 %v9098_v54  ;;  %8004 = vmatpush2.bf16.msra.mxu0 %v9162_v35  ;;  %v9134_v54 = vcombine.low %v14826_v60, %v14825_v38  ;;  %v14827_v35 = vld [vmem:[#allocation171_spill] sm:$0xff]  ;;  %v14856_v60 = vld [vmem:[#allocation141_spill] sm:$0xff] }
 0x605   :  { %7964 = vmatprep.subr.bf16.mxu1 %v9095_v53  ;;  %8005 = vmatprep.subr.bf16.mxu0 %v9159_v59  ;;  %v9195_v27 = vcombine.high %v14828_v23, %v14827_v35  ;;  %v14829_v53 = vld [vmem:[#allocation235_spill] sm:$0xff]  ;;  %v9194_v59 = vcombine.low %v14828_v23, %v14827_v35 }
 0x606   :  { %v9259_v48 = vcombine.high %v14830_v29, %v14829_v53  ;;  %v14855_v38 = vld [vmem:[#allocation143_spill] sm:$0xff] }
 0x607   :  { %v9166_v23 = vcombine.low %v14856_v60, %v14855_v38 }
 0x608   :  { %7965 = vmatpush2.bf16.msra.mxu1 %v9094_v33  ;;  %8006 = vmatpush2.bf16.msra.mxu0 %v9158_v22  ;;  %v9258_v33 = vcombine.low %v14830_v29, %v14829_v53  ;;  %v14831_v22 = vld [vmem:[#allocation167_spill] sm:$0xff]  ;;  %v14860_v29 = vld [vmem:[#allocation201_spill] sm:$0xff] }
 0x609   :  { %7966 = vmatprep.subr.bf16.mxu1 %v9091_v39  ;;  %8007 = vmatprep.subr.bf16.mxu0 %v9155_v31  ;;  %v9191_v43 = vcombine.high %v14832_v47, %v14831_v22  ;;  %v14833_v39 = vld [vmem:[#allocation231_spill] sm:$0xff]  ;;  %v9190_v31 = vcombine.low %v14832_v47, %v14831_v22 }
 0x60a   :  { %v9255_v0 = vcombine.high %v14834_v15, %v14833_v39  ;;  %v14859_v53 = vld [vmem:[#allocation203_spill] sm:$0xff] }
 0x60b   :  { %v9226_v47 = vcombine.low %v14860_v29, %v14859_v53 }
 0x60c   :  { %7967 = vmatpush2.bf16.msra.mxu1 %v9090_v36  ;;  %8008 = vmatpush2.bf16.msra.mxu0 %v9154_v58  ;;  %v9254_v36 = vcombine.low %v14834_v15, %v14833_v39  ;;  %v14835_v58 = vld [vmem:[#allocation163_spill] sm:$0xff]  ;;  %v14864_v15 = vld [vmem:[#allocation197_spill] sm:$0xff] }
 0x60d   :  { %7968 = vmatprep.subr.bf16.mxu1 %v9087_v63  ;;  %8009 = vmatprep.subr.bf16.mxu0 %v9151_v49  ;;  %v9187_v20 = vcombine.high %v14836_v51, %v14835_v58  ;;  %v14837_v63 = vld [vmem:[#allocation227_spill] sm:$0xff] }
 0x60e   :  { %v9251_v50 = vcombine.high %v14838_v21, %v14837_v63  ;;  %v14839_v49 = vld [vmem:[#allocation159_spill] sm:$0xff] }
 0x60f   :  { %v14863_v39 = vld [vmem:[#allocation199_spill] sm:$0xff] }
 0x610   :  { %7969 = vmatpush2.bf16.msra.mxu1 %v9086_v61  ;;  %8010 = vmatpush2.bf16.msra.mxu0 %v9150_v28  ;;  %v14840_v61 = vld [vmem:[#allocation157_spill] sm:$0xff] }
 0x611   :  { %7970 = vmatprep.subr.bf16.mxu1 %v9083_v62  ;;  %8011 = vmatprep.subr.bf16.mxu0 %v9147_v10  ;;  %v9183_v28 = vcombine.high %v14840_v61, %v14839_v49  ;;  %v9247_v62 = vcombine.high %v14842_v30, %v14841_v13  ;;  %v9179_v10 = vcombine.high %v14844_v17, %v14843_v14 }
 0x614   :  { %7971 = vmatpush2.bf16.msra.mxu1 %v9082_v37  ;;  %8012 = vmatpush2.bf16.msra.mxu0 %v9146_v1  ;;  %v14845_v37 = vld [vmem:[#allocation219_spill] sm:$0xff]  ;;  %v14846_v1 = vld [vmem:[#allocation217_spill] sm:$0xff] }
 0x615   :  { %7972 = vmatprep.subr.bf16.mxu1 %v9079_v3  ;;  %8013 = vmatprep.subr.bf16.mxu0 %v9143_v18  ;;  %v9243_v52 = vcombine.high %v14846_v1, %v14845_v37  ;;  %v9242_v3 = vcombine.low %v14846_v1, %v14845_v37  ;;  %v9175_v18 = vcombine.high %v14848_v4, %v14847_v44  ;;  %v14875_v37 = vld [vmem:[#allocation187_spill] sm:$0xff]  ;;  %v14876_v1 = vld [vmem:[#allocation185_spill] sm:$0xff] }
 0x616   :  { %v9210_v4 = vcombine.low %v14876_v1, %v14875_v37 }
 0x618   :  { %7973 = vmatpush2.bf16.msra.mxu1 %v9078_v11  ;;  %8014 = vmatpush2.bf16.msra.mxu0 %v9142_v34  ;;  %v14849_v11 = vld [vmem:[#allocation215_spill] sm:$0xff]  ;;  %v14850_v34 = vld [vmem:[#allocation213_spill] sm:$0xff] }
 0x619   :  { %7974 = vmatprep.subr.bf16.mxu1 %v9075_v5  ;;  %8015 = vmatprep.subr.bf16.mxu0 %v9139_v46  ;;  %v9239_v45 = vcombine.high %v14850_v34, %v14849_v11  ;;  %v9238_v5 = vcombine.low %v14850_v34, %v14849_v11  ;;  %v9171_v46 = vcombine.high %v14852_v24, %v14851_v41  ;;  %v14879_v11 = vld [vmem:[#allocation183_spill] sm:$0xff]  ;;  %v14880_v34 = vld [vmem:[#allocation181_spill] sm:$0xff] }
 0x61a   :  { %v9206_v24 = vcombine.low %v14880_v34, %v14879_v11 }
 0x61c   :  { %7975 = vmatpush2.bf16.msra.mxu1 %v9074_v25  ;;  %8016 = vmatpush2.bf16.msra.mxu0 %v9138_v7  ;;  %v14853_v25 = vld [vmem:[#allocation211_spill] sm:$0xff]  ;;  %v14854_v7 = vld [vmem:[#allocation209_spill] sm:$0xff] }
 0x61d   :  { %7976 = vmatprep.subr.bf16.mxu1 %v9071_v42  ;;  %8017 = vmatprep.subr.bf16.mxu0 %v9135_v56  ;;  %v9235_v19 = vcombine.high %v14854_v7, %v14853_v25  ;;  %v9234_v42 = vcombine.low %v14854_v7, %v14853_v25  ;;  %v9167_v56 = vcombine.high %v14856_v60, %v14855_v38  ;;  %v14883_v25 = vld [vmem:[#allocation179_spill] sm:$0xff]  ;;  %v14884_v7 = vld [vmem:[#allocation177_spill] sm:$0xff] }
 0x61e   :  { %v9202_v60 = vcombine.low %v14884_v7, %v14883_v25 }
 0x620   :  { %7977 = vmatpush2.bf16.msra.mxu1 %v9070_v26  ;;  %8018 = vmatpush2.bf16.msra.mxu0 %v9134_v54  ;;  %v14857_v26 = vld [vmem:[#allocation207_spill] sm:$0xff]  ;;  %v14858_v54 = vld [vmem:[#allocation205_spill] sm:$0xff] }
 0x621   :  { %8028 = vmatprep.subr.bf16.mxu1 %v9195_v27  ;;  %8069 = vmatprep.subr.bf16.mxu0 %v9259_v48  ;;  %v9231_v35 = vcombine.high %v14858_v54, %v14857_v26  ;;  %v9230_v27 = vcombine.low %v14858_v54, %v14857_v26  ;;  %v9227_v48 = vcombine.high %v14860_v29, %v14859_v53  ;;  %v14887_v26 = vld [vmem:[#allocation175_spill] sm:$0xff]  ;;  %v14888_v54 = vld [vmem:[#allocation173_spill] sm:$0xff] }
 0x622   :  { %v9198_v29 = vcombine.low %v14888_v54, %v14887_v26 }
 0x623   :  { %7979 = vmatmul.mubr.bf16.vlgmr.msra.gmra.mxu1 %v13541_v9  ;;  %8020 = vmatmul.mubr.bf16.vlgmr.msra.gmra.mxu0 %v13556_v32  ;;  %v9186_v9 = vcombine.low %v14836_v51, %v14835_v58  ;;  %v9250_v32 = vcombine.low %v14838_v21, %v14837_v63  ;;  %v9222_v51 = vcombine.low %v14864_v15, %v14863_v39  ;;  %v14867_v63 = vld [vmem:[#allocation195_spill] sm:$0xff]  ;;  %v14868_v21 = vld [vmem:[#allocation193_spill] sm:$0xff] }
 0x624   :  { %8029 = vmatpush1.bf16.msra.mxu1 %v9194_v59  ;;  %8070 = vmatpush1.bf16.msra.mxu0 %v9258_v33  ;;  %v14861_v59 = vld [vmem:[#allocation267_spill] sm:$0xff]  ;;  %v14862_v33 = vld [vmem:[#allocation265_spill] sm:$0xff] }
 0x625   :  { %8030 = vmatprep.subr.bf16.mxu1 %v9191_v43  ;;  %8071 = vmatprep.subr.bf16.mxu0 %v9255_v0  ;;  %v9291_v22 = vcombine.high %v14862_v33, %v14861_v59  ;;  %v9290_v43 = vcombine.low %v14862_v33, %v14861_v59  ;;  %v9223_v0 = vcombine.high %v14864_v15, %v14863_v39  ;;  %v10354_v59 = vld [vmem:[%s14091_s9 + $0x78] sm:$0xff]   ;;  %v10357_v39 = vld [vmem:[%s14091_s9 + $0x30] sm:$0xff]  }
 0x626   :  { %8060 = vmatprep.mubr.bf16.mxu1 %v13552_v6  ;;  %8101 = vmatprep.mubr.bf16.mxu0 %v13568_v8  ;;  %v9182_v6 = vcombine.low %v14840_v61, %v14839_v49  ;;  %v9246_v8 = vcombine.low %v14842_v30, %v14841_v13  ;;  %v9218_v61 = vcombine.low %v14868_v21, %v14867_v63  ;;  %v14871_v13 = vld [vmem:[#allocation191_spill] sm:$0xff]  ;;  %v14872_v30 = vld [vmem:[#allocation189_spill] sm:$0xff] }
 0x627   :  { %v9214_v17 = vcombine.low %v14872_v30, %v14871_v13  ;;  %v10355_v33 = vld [vmem:[%s14091_s9 + $0x38] sm:$0xff]  }
 0x628   :  { %8031 = vmatpush1.bf16.msra.mxu1 %v9190_v31  ;;  %8072 = vmatpush1.bf16.msra.mxu0 %v9254_v36  ;;  %v14865_v31 = vld [vmem:[#allocation263_spill] sm:$0xff]  ;;  %v14866_v36 = vld [vmem:[#allocation261_spill] sm:$0xff] }
 0x629   :  { %8032 = vmatprep.subr.bf16.mxu1 %v9187_v20  ;;  %8073 = vmatprep.subr.bf16.mxu0 %v9251_v50  ;;  %v9287_v58 = vcombine.high %v14866_v36, %v14865_v31  ;;  %v9286_v20 = vcombine.low %v14866_v36, %v14865_v31  ;;  %v9219_v50 = vcombine.high %v14868_v21, %v14867_v63  ;;  %v10358_v31 = vld [vmem:[%s14091_s9 + $0x68] sm:$0xff]   ;;  %v10370_v63 = vld [vmem:[%s14091_s9 + $0xf8] sm:$0xff]  }
 0x62a   :  { %v10371_v21 = vld [vmem:[%s14091_s9 + $0xb8] sm:$0xff]  }
 0x62c   :  { %8033 = vmatpush1.bf16.msra.mxu1 %v9186_v9  ;;  %8074 = vmatpush1.bf16.msra.mxu0 %v9250_v32  ;;  %v14869_v9 = vld [vmem:[#allocation259_spill] sm:$0xff]  ;;  %v14870_v32 = vld [vmem:[#allocation257_spill] sm:$0xff] }
 0x62d   :  { %8034 = vmatprep.subr.bf16.mxu1 %v9183_v28  ;;  %8075 = vmatprep.subr.bf16.mxu0 %v9247_v62  ;;  %v9283_v49 = vcombine.high %v14870_v32, %v14869_v9  ;;  %v9282_v28 = vcombine.low %v14870_v32, %v14869_v9  ;;  %v9215_v62 = vcombine.high %v14872_v30, %v14871_v13  ;;  %v10361_v9 = vld [vmem:[%s14091_s9 + $0x20] sm:$0xff]   ;;  %v10373_v32 = vld [vmem:[%s14091_s9 + $0xb0] sm:$0xff]   ;;  %v10375_v13 = vld [vmem:[%s14091_s9 + $0xa8] sm:$0xff]  }
 0x62e   :  { %v10364_v30 = vld [vmem:[%s14091_s9 + $0x50] sm:$0xff]  }
 0x630   :  { %8035 = vmatpush1.bf16.msra.mxu1 %v9182_v6  ;;  %8076 = vmatpush1.bf16.msra.mxu0 %v9246_v8  ;;  %v14873_v6 = vld [vmem:[#allocation255_spill] sm:$0xff]  ;;  %v14874_v8 = vld [vmem:[#allocation253_spill] sm:$0xff] }
 0x631   :  { %8036 = vmatprep.subr.bf16.mxu1 %v9179_v10  ;;  %8077 = vmatprep.subr.bf16.mxu0 %v9243_v52  ;;  %v9279_v14 = vcombine.high %v14874_v8, %v14873_v6  ;;  %v9278_v10 = vcombine.low %v14874_v8, %v14873_v6  ;;  %v9211_v52 = vcombine.high %v14876_v1, %v14875_v37  ;;  %v10365_v6 = vld [vmem:[%s14091_s9 + $0x10] sm:$0xff]   ;;  %v10377_v8 = vld [vmem:[%s14091_s9 + $0xa0] sm:$0xff]   ;;  %v10379_v37 = vld [vmem:[%s14091_s9 + $0x98] sm:$0xff]  }
 0x632   :  { %v10368_v1 = vld [vmem:[%s14091_s9 + $0x40] sm:$0xff]  }
 0x634   :  { %8037 = vmatpush1.bf16.msra.mxu1 %v9178_v2  ;;  %8078 = vmatpush1.bf16.msra.mxu0 %v9242_v3  ;;  %v14877_v2 = vld [vmem:[#allocation251_spill] sm:$0xff]  ;;  %v14878_v3 = vld [vmem:[#allocation249_spill] sm:$0xff] }
 0x635   :  { %8038 = vmatprep.subr.bf16.mxu1 %v9175_v18  ;;  %8079 = vmatprep.subr.bf16.mxu0 %v9239_v45  ;;  %v9275_v44 = vcombine.high %v14878_v3, %v14877_v2  ;;  %v9274_v18 = vcombine.low %v14878_v3, %v14877_v2  ;;  %v9207_v45 = vcombine.high %v14880_v34, %v14879_v11  ;;  %v6426_v2 = vsub.s32 0, %v13242_v16  ;;  %v6422_v3 = vld [vmem:[%s14090_s8] sm:$0xf] }
 0x638   :  { %8039 = vmatpush1.bf16.msra.mxu1 %v9174_v12  ;;  %8080 = vmatpush1.bf16.msra.mxu0 %v9238_v5  ;;  %v14881_v12 = vld [vmem:[#allocation247_spill] sm:$0xff]  ;;  %v14882_v5 = vld [vmem:[#allocation245_spill] sm:$0xff] }
 0x639   :  { %8040 = vmatprep.subr.bf16.mxu1 %v9171_v46  ;;  %8081 = vmatprep.subr.bf16.mxu0 %v9235_v19  ;;  %v9271_v41 = vcombine.high %v14882_v5, %v14881_v12  ;;  %v9270_v46 = vcombine.low %v14882_v5, %v14881_v12  ;;  %v9203_v19 = vcombine.high %v14884_v7, %v14883_v25  ;;  %v10381_v5 = vld [vmem:[%s14091_s9 + $0x90] sm:$0xff]  }
 0x63c   :  { %8041 = vmatpush1.bf16.msra.mxu1 %v9170_v57  ;;  %8082 = vmatpush1.bf16.msra.mxu0 %v9234_v42  ;;  %v14885_v57 = vld [vmem:[#allocation243_spill] sm:$0xff]  ;;  %v14886_v42 = vld [vmem:[#allocation241_spill] sm:$0xff] }
 0x63d   :  { %8042 = vmatprep.subr.bf16.mxu1 %v9167_v56  ;;  %8083 = vmatprep.subr.bf16.mxu0 %v9231_v35  ;;  %v9267_v38 = vcombine.high %v14886_v42, %v14885_v57  ;;  %v9266_v56 = vcombine.low %v14886_v42, %v14885_v57  ;;  %v9199_v35 = vcombine.high %v14888_v54, %v14887_v26  ;;  %v10382_v57 = vld [vmem:[%s14091_s9 + $0xc8] sm:$0xff]  }
 0x640   :  { %8043 = vmatpush1.bf16.msra.mxu1 %v9166_v23  ;;  %8084 = vmatpush1.bf16.msra.mxu0 %v9230_v27  ;;  %v14889_v23 = vld [vmem:[#allocation239_spill] sm:$0xff]  ;;  %v14890_v27 = vld [vmem:[#allocation237_spill] sm:$0xff] }
 0x641   :  { %8044 = vmatprep.subr.bf16.mxu1 %v9227_v48  ;;  %8085 = vmatprep.subr.bf16.mxu0 %v9291_v22  ;;  %v9263_v53 = vcombine.high %v14890_v27, %v14889_v23  ;;  %v9262_v48 = vcombine.low %v14890_v27, %v14889_v23  ;;  %v10356_v22 = vld [vmem:[%s14091_s9 + $0x70] sm:$0xff]  }
 0x644   :  { %8045 = vmatpush2.bf16.msra.mxu1 %v9226_v47  ;;  %8086 = vmatpush2.bf16.msra.mxu0 %v9290_v43 }
 0x645   :  { %8046 = vmatprep.subr.bf16.mxu1 %v9223_v0  ;;  %8087 = vmatprep.subr.bf16.mxu0 %v9287_v58 }
 0x648   :  { %8047 = vmatpush2.bf16.msra.mxu1 %v9222_v51  ;;  %8088 = vmatpush2.bf16.msra.mxu0 %v9286_v20 }
 0x649   :  { %8048 = vmatprep.subr.bf16.mxu1 %v9219_v50  ;;  %8089 = vmatprep.subr.bf16.mxu0 %v9283_v49  ;;  %v10372_v50 = vld [vmem:[%s14091_s9 + $0xf0] sm:$0xff]   ;;  %v10362_v49 = vld [vmem:[%s14091_s9 + $0x58] sm:$0xff]  }
 0x64c   :  { %8049 = vmatpush2.bf16.msra.mxu1 %v9218_v61  ;;  %8090 = vmatpush2.bf16.msra.mxu0 %v9282_v28  ;;  %v10374_v61 = vld [vmem:[%s14091_s9 + $0xe8] sm:$0xff]   ;;  %v10363_v28 = vld [vmem:[%s14091_s9 + $0x18] sm:$0xff]  }
 0x64d   :  { %8050 = vmatprep.subr.bf16.mxu1 %v9215_v62  ;;  %8091 = vmatprep.subr.bf16.mxu0 %v9279_v14  ;;  %v10376_v62 = vld [vmem:[%s14091_s9 + $0xe0] sm:$0xff]   ;;  %v10366_v14 = vld [vmem:[%s14091_s9 + $0x48] sm:$0xff]  }
 0x650   :  { %8051 = vmatpush2.bf16.msra.mxu1 %v9214_v17  ;;  %8092 = vmatpush2.bf16.msra.mxu0 %v9278_v10  ;;  %v10378_v17 = vld [vmem:[%s14091_s9 + $0xd8] sm:$0xff]   ;;  %v10367_v10 = vld [vmem:[%s14091_s9 + $0x8] sm:$0xff]  }
 0x651   :  { %8052 = vmatprep.subr.bf16.mxu1 %v9211_v52  ;;  %8093 = vmatprep.subr.bf16.mxu0 %v9275_v44  ;;  %v10369_v52 = vld [vmem:[%s14091_s9] sm:$0xff]   ;;  %v6430_v44 = vsub.s32 1, %v13242_v16 }
 0x654   :  { %8053 = vmatpush2.bf16.msra.mxu1 %v9210_v4  ;;  %8094 = vmatpush2.bf16.msra.mxu0 %v9274_v18  ;;  %v6427_v4 = vrot.slane %v6422_v3, %v6426_v2  ;;  %v6431_v18 = vrot.slane %v6422_v3, %v6430_v44 }
 0x655   :  { %8054 = vmatprep.subr.bf16.mxu1 %v9207_v45  ;;  %8095 = vmatprep.subr.bf16.mxu0 %v9271_v41  ;;  %v10380_v45 = vld [vmem:[%s14091_s9 + $0xd0] sm:$0xff]  }
 0x658   :  { %8055 = vmatpush2.bf16.msra.mxu1 %v9206_v24  ;;  %8096 = vmatpush2.bf16.msra.mxu0 %v9270_v46 }
 0x659   :  { %8056 = vmatprep.subr.bf16.mxu1 %v9203_v19  ;;  %8097 = vmatprep.subr.bf16.mxu0 %v9267_v38 }
 0x65c   :  { %8057 = vmatpush2.bf16.msra.mxu1 %v9202_v60  ;;  %8098 = vmatpush2.bf16.msra.mxu0 %v9266_v56  ;;  %v10383_v60 = vld [vmem:[%s14091_s9 + $0x88] sm:$0xff]  }
 0x65d   :  { %8058 = vmatprep.subr.bf16.mxu1 %v9199_v35  ;;  %8099 = vmatprep.subr.bf16.mxu0 %v9263_v53  ;;  %v10384_v53 = vld [vmem:[%s14091_s9 + $0xc0] sm:$0xff]  }
 0x660   :  { %8059 = vmatpush2.bf16.msra.mxu1 %v9198_v29  ;;  %8100 = vmatpush2.bf16.msra.mxu0 %v9262_v48  ;;  %v10385_v48 = vld [vmem:[%s14091_s9 + $0x80] sm:$0xff]  }
 0x661   :  { %9917 = vmatprep.subr.bf16.mxu1 %v10354_v59  ;;  %9939 = vmatprep.subr.bf16.mxu0 %v10370_v63 }
 0x663   :  { %v13971_v47 = vpop.f32.mrf.mxu1  ;;  %v13973_v43 = vpop.f32.mrf.mxu0  ;;  %8061 = vmatmul.mubr.bf16.vlgmr.msra.gmra.mxu1 %v13688_v55  ;;  %8102 = vmatmul.mubr.bf16.vlgmr.msra.gmra.mxu0 %v13700_v40  ;;  %v10359_v55 = vld [vmem:[%s14091_s9 + $0x28] sm:$0xff]   ;;  %v10360_v40 = vld [vmem:[%s14091_s9 + $0x60] sm:$0xff]  }
 0x664   :  { %9918 = vmatpush3.bf16.msra.mxu1 %v10355_v33  ;;  %9940 = vmatpush3.bf16.msra.mxu0 %v10371_v21  ;;  %v7817_v11 = vadd.f32 %v13971_v47, %v6427_v4 }
 0x665   :  { %v7818_v15 = vpop.f32.mrf.mxu1  ;;  %v13980_v0 = vpop.f32.mrf.mxu0  ;;  %9919 = vmatprep.subr.bf16.mxu1 %v10356_v22  ;;  %9941 = vmatprep.subr.bf16.mxu0 %v10372_v50 }
 0x666   :  { %v7819_v34 = vadd.f32 %v7818_v15, %v6431_v18  ;;  %v7858_v12 = vadd.f32 %v13973_v43, %v7817_v11  ;;  %v9292_v18 = vld [vmem:[%s14092_s10] ss:$0 sm:$0xff] }
 0x667   :  { %v7820_v36 = vpop.f32.mrf.mxu1  ;;  %v7861_v58 = vpop.f32.mrf.mxu0 }
 0x668   :  { %9920 = vmatpush3.bf16.msra.mxu1 %v10357_v39  ;;  %9942 = vmatpush3.bf16.msra.mxu0 %v10373_v32  ;;  %v7860_v46 = vadd.f32 %v13980_v0, %v7819_v34  ;;  %v6434_v58 = vsub.s32 2, %v13242_v16 }
 0x669   :  { %v7821_v51 = vpop.f32.mrf.mxu1  ;;  %v7862_v20 = vpop.f32.mrf.mxu0  ;;  %9921 = vmatprep.subr.bf16.mxu1 %v10358_v31  ;;  %9943 = vmatprep.subr.bf16.mxu0 %v10374_v61 }
 0x66c   :  { %9922 = vmatpush3.bf16.msra.mxu1 %v10359_v55  ;;  %9944 = vmatpush3.bf16.msra.mxu0 %v10375_v13  ;;  %v6438_v55 = vsub.s32 3, %v13242_v16 }
 0x66d   :  { %9923 = vmatprep.subr.bf16.mxu1 %v10360_v40  ;;  %9945 = vmatprep.subr.bf16.mxu0 %v10376_v62  ;;  %v6435_v40 = vrot.slane %v6422_v3, %v6434_v58 }
 0x66e   :  { %v6439_v51 = vrot.slane %v6422_v3, %v6438_v55 }
 0x670   :  { %9924 = vmatpush3.bf16.msra.mxu1 %v10361_v9  ;;  %9946 = vmatpush3.bf16.msra.mxu0 %v10377_v8 }
 0x671   :  { %9925 = vmatprep.subr.bf16.mxu1 %v10362_v49  ;;  %9947 = vmatprep.subr.bf16.mxu0 %v10378_v17 }
 0x674   :  { %9926 = vmatpush3.bf16.msra.mxu1 %v10363_v28  ;;  %9948 = vmatpush3.bf16.msra.mxu0 %v10379_v37 }
 0x675   :  { %9927 = vmatprep.subr.bf16.mxu1 %v10364_v30  ;;  %9949 = vmatprep.subr.bf16.mxu0 %v10380_v45 }
 0x678   :  { %9928 = vmatpush3.bf16.msra.mxu1 %v10365_v6  ;;  %9950 = vmatpush3.bf16.msra.mxu0 %v10381_v5 }
 0x679   :  { %9929 = vmatprep.subr.bf16.mxu1 %v10366_v14  ;;  %9951 = vmatprep.subr.bf16.mxu0 %v10382_v57 }
 0x67c   :  { %9930 = vmatpush3.bf16.msra.mxu1 %v10367_v10  ;;  %9952 = vmatpush3.bf16.msra.mxu0 %v10383_v60 }
 0x67d   :  { %9931 = vmatprep.subr.bf16.mxu1 %v10368_v1  ;;  %9953 = vmatprep.subr.bf16.mxu0 %v10384_v53 }
 0x680   :  { %9932 = vmatpush3.bf16.msra.mxu1 %v10369_v52  ;;  %9954 = vmatpush3.bf16.msra.mxu0 %v10385_v48 }
 0x6a3   :  { %v7898_v41 = vpop.f32.mrf.mxu1  ;;  %v7939_v24 = vpop.f32.mrf.mxu0 }
 0x6a4   :  { %v7899_v25 = vadd.f32 %v7898_v41, %v7858_v12 }
 0x6a5   :  { %v7900_v7 = vpop.f32.mrf.mxu1  ;;  %v7941_v19 = vpop.f32.mrf.mxu0 }
 0x6a6   :  { %v7940_v42 = vadd.f32 %v7939_v24, %v7899_v25  ;;  %v7901_v38 = vadd.f32 %v7900_v7, %v7860_v46 }
 0x6a7   :  { %v7902_v56 = vpop.f32.mrf.mxu1  ;;  %v7943_v26 = vpop.f32.mrf.mxu0 }
 0x6a8   :  { %v7942_v54 = vadd.f32 %v7941_v19, %v7901_v38  ;;  %v8110_v35 = vmax.f32 %v7940_v42, 0.0 }
 0x6a9   :  { %v7903_v23 = vpop.f32.mrf.mxu1  ;;  %v7944_v27 = vpop.f32.mrf.mxu0 }
 0x6aa   :  { %v8111_v29 = vmax.f32 %v7942_v54, 0.0  ;;  %v8114_v33 = vpack.c.bf16 %v8110_v35, %v8110_v35 }
 0x6ac   :  { %v8115_v59 = vpack.c.bf16 %v8111_v29, %v8111_v29 }
 0x6ae   :  { %8413 = vmatprep.mubr.bf16.mxu1 %v8115_v59 }
 0x6af   :  { %8414 = vmatmul.mubr.bf16.vlgmr.msra.gmra.mxu1 %v8114_v33 }
 0x6e3   :  { %v7980_v22 = vpop.f32.mrf.mxu1  ;;  %v8021_v47 = vpop.f32.mrf.mxu0 }
 0x6e4   :  { %v7981_v20 = vadd.f32 %v7980_v22, %v6435_v40 }
 0x6e5   :  { %v7982_v43 = vpop.f32.mrf.mxu1  ;;  %v8023_v39 = vpop.f32.mrf.mxu0 }
 0x6e6   :  { %v7983_v63 = vadd.f32 %v7982_v43, %v6439_v51  ;;  %v8022_v21 = vadd.f32 %v8021_v47, %v7981_v20 }
 0x6e7   :  { %v7984_v15 = vpop.f32.mrf.mxu1  ;;  %v8025_v0 = vpop.f32.mrf.mxu0 }
 0x6e8   :  { %v8024_v32 = vadd.f32 %v8023_v39, %v7983_v63 }
 0x6e9   :  { %v7985_v31 = vpop.f32.mrf.mxu1  ;;  %v8026_v36 = vpop.f32.mrf.mxu0 }
 0x723   :  { %v8062_v50 = vpop.f32.mrf.mxu1  ;;  %v8103_v9 = vpop.f32.mrf.mxu0 }
 0x724   :  { %v8063_v49 = vadd.f32 %v8062_v50, %v8022_v21 }
 0x725   :  { %v8064_v61 = vpop.f32.mrf.mxu1  ;;  %v8105_v28 = vpop.f32.mrf.mxu0 }
 0x726   :  { %v8104_v13 = vadd.f32 %v8103_v9, %v8063_v49  ;;  %v8065_v30 = vadd.f32 %v8064_v61, %v8024_v32 }
 0x727   :  { %v8066_v62 = vpop.f32.mrf.mxu1  ;;  %v8107_v6 = vpop.f32.mrf.mxu0 }
 0x728   :  { %v8106_v8 = vadd.f32 %v8105_v28, %v8065_v30  ;;  %v8112_v14 = vmax.f32 %v8104_v13, 0.0 }
 0x729   :  { %v8067_v17 = vpop.f32.mrf.mxu1  ;;  %v8108_v10 = vpop.f32.mrf.mxu0 }
 0x72a   :  { %v8113_v16 = vmax.f32 %v8106_v8, 0.0  ;;  %v8116_v1 = vpack.c.bf16 %v8112_v14, %v8112_v14 }
 0x72c   :  { %v8117_v37 = vpack.c.bf16 %v8113_v16, %v8113_v16 }
 0x72e   :  { %8453 = vmatprep.mubr.bf16.mxu0 %v8117_v37 }
 0x72f   :  { %8454 = vmatmul.mubr.bf16.vlgmr.msra.gmra.mxu0 %v8116_v1 }
 0x76f   :  { %v9933_v52 = vpop.f32.mrf.mxu1 }
 0x771   :  { %v9934_v2 = vpop.f32.mrf.mxu1 }
 0x772   :  { %v9935_v3 = vadd.f32 %v9934_v2, %v9933_v52 }
 0x773   :  { %v9936_v44 = vpop.f32.mrf.mxu1 }
 0x774   :  { %v8416_v45 = vadd.f32 %v9935_v3, %v9292_v18 }
 0x775   :  { %v9937_v4 = vpop.f32.mrf.mxu1 }
 0x7ef   :  { %v9955_v11 = vpop.f32.mrf.mxu0 }
 0x7f1   :  { %v9956_v34 = vpop.f32.mrf.mxu0 }
 0x7f2   :  { %v9957_v12 = vadd.f32 %v9956_v34, %v9955_v11 }
 0x7f3   :  { %v9958_v5 = vpop.f32.mrf.mxu0 }
 0x7f4   :  { %v8456_v41 = vadd.f32 %v9957_v12, %v8416_v45 }
 0x7f5   :  { %v9959_v24 = vpop.f32.mrf.mxu0 }
 0x7f6   :  { %8461 = vst [vmem:[#allocation10] sm:$0x3] %v8456_v41 }
 0x7f7   :  { %10397 = shalt.err (!%p10394_p4)
}
 0x7f8   :  { %8471 = dma.vmem_to_hbm [thread:$0]  %s8469_s28, 32, %s14093_s11, [#allocation11]  }
 0x7f9   :  { %10408 = dma.done.wait [#allocation11], 32  }
 0x7fa   :  { %10409 = vsyncadd [#allocation11], 4294967264 }
 0x7fb   :  { %8475 = vsyncpa [#allocation11], 1 }
 0x7fc   :  { %8476 = vsyncmov [#allocation9] }
 0x7ff   :  { %s8477_s1 = vpop.sfrf %8476 }
 0x800   :  { %p9325_p5 = scmp.ne.s32.totalorder %s8477_s1, 0 }
 0x802   :  { %8481 = shalt.err (%p9325_p5)  }

</bundles_post_ra>
